<compile_context>
chip_gen: v7x
topology: tpu7x:2x2x1
jax: 0.10.0
libtpu: 0.0.40
codegen_flags: <defaults>
</compile_context>

<pallas_src>
import math

import jax
import jax.numpy as jnp
from jax.experimental import pallas as pl
from jax.experimental.pallas import tpu as pltpu

_EPS = 1e-5      # nn.GroupNorm default eps
_LANE = 128      # TPU lane width


def _round_up(n, m):
    return ((n + m - 1) // m) * m


def _group_avg_matrix(c, n_groups, hw):
    """[c, c] matrix A with A[i, j] = 1/(cg*hw) iff channels i, j share a group."""
    cg = c // n_groups
    gid = jnp.arange(c) // cg
    return (gid[:, None] == gid[None, :]).astype(jnp.float32) / float(cg * hw)


# ---------------------------------------------------------------------------
# Kernel factory (per-sample grid step; shapes / shortcut flag closed over)
# ---------------------------------------------------------------------------
def _make_kernel(H, W, has_shortcut):
    HW = H * W

    def gn_silu(h2, a_ref, g_ref, b_ref):
        """GroupNorm + SiLU, single statistics sweep in f32; returns bf16 [HW, C].

        Group aggregation of the per-channel sums uses the small [C, C]
        group-average matrix (zero for padded channels, so they stay zero).
        """
        hf = h2.astype(jnp.float32)
        s = jnp.sum(hf, axis=0, keepdims=True)                             # [1, C]
        ss = jnp.sum(hf * hf, axis=0, keepdims=True)                       # [1, C]
        mean = jnp.dot(s, a_ref[...], preferred_element_type=jnp.float32)  # E[x]  per channel
        ex2 = jnp.dot(ss, a_ref[...], preferred_element_type=jnp.float32)  # E[x^2]
        var = ex2 - mean * mean                                            # f32 accumulators
        scale = jax.lax.rsqrt(var + _EPS) * g_ref[...]
        shift = b_ref[...] - mean * scale
        hn = hf * scale + shift
        # SiLU = x*sigmoid(x) = 0.5*x*(tanh(x/2)+1): tanh on EUP, no VALU divide.
        return (0.5 * hn * (jnp.tanh(0.5 * hn) + 1.0)).astype(jnp.bfloat16)

    def conv3x3(h2, w_ref, b_ref):
        """3x3 same-padding conv, dy-split im2col: 3 accumulating MXU dots.

        h2: [HW, C] bf16.  w_ref: [9*C, Cout] bf16 (ky-major, then kx, then cin).
        Returns [HW, Cout] f32 (bias added).
        """
        C = h2.shape[-1]
        h3 = h2.reshape(H, W, C)
        zrow = jnp.zeros((1, W, C), jnp.bfloat16)
        zcol = jnp.zeros((H, 1, C), jnp.bfloat16)

        def shift_y(a, dy):                     # out[y] = a[y+dy], zero outside
            if dy == 0:
                return a
            if dy > 0:
                return jnp.concatenate([a[1:], zrow], axis=0)
            return jnp.concatenate([zrow, a[:-1]], axis=0)

        def shift_x(a, dx):                     # out[:, x] = a[:, x+dx], zero outside
            if dx == 0:
                return a
            if dx > 0:
                return jnp.concatenate([a[:, 1:, :], zcol], axis=1)
            return jnp.concatenate([zcol, a[:, :-1, :]], axis=1)

        acc = None
        for i, dy in enumerate((-1, 0, 1)):     # ky = i; matches HWIO row-major reshape
            ay = shift_y(h3, dy)
            slab = jnp.concatenate(
                [shift_x(ay, dx).reshape(HW, C) for dx in (-1, 0, 1)], axis=-1)  # [HW, 3C]
            part = jnp.dot(slab, w_ref[pl.ds(i * 3 * C, 3 * C), :],
                           preferred_element_type=jnp.float32)
            acc = part if acc is None else acc + part
        return acc + b_ref[...]

    def kernel(x_ref, temb_ref,
               g1_ref, be1_ref, a1_ref, w1_ref, b1_ref,
               g2_ref, be2_ref, a2_ref, w2_ref, b2_ref,
               *rest):
        if has_shortcut:
            ws_ref, bs_ref, out_ref = rest
        else:
            (out_ref,) = rest

        cout = out_ref.shape[-1]
        x2 = x_ref[...].reshape(HW, x_ref.shape[-1])                      # [HW, Cin] bf16

        # h = conv1(silu(norm1(x)))
        h = gn_silu(x2, a1_ref, g1_ref, be1_ref)                          # bf16
        h = conv3x3(h, w1_ref, b1_ref)                                    # [HW, Cout] f32

        # h += time_embedding(t)[:, :, None, None]  (GEMM precomputed by XLA)
        h = h + temb_ref[0]

        # h = conv2(silu(norm2(h)))
        h = gn_silu(h, a2_ref, g2_ref, be2_ref)
        h = conv3x3(h, w2_ref, b2_ref)

        # h + shortcut(x)
        if has_shortcut:
            sc = jnp.dot(x2, ws_ref[...],
                         preferred_element_type=jnp.float32) + bs_ref[...]
        else:
            sc = x2.astype(jnp.float32)                                   # nn.Identity
        out_ref[...] = (h + sc).astype(out_ref.dtype).reshape(1, H, W, cout)

    return kernel


# ---------------------------------------------------------------------------
# Wrapper
# ---------------------------------------------------------------------------
def residual_block_pallas(x, t, params, n_groups):
    """x: [B, H, W, Cin] NHWC f32, t: [B, Tc] f32 -> [B, H, W, Cout] bf16."""
    B, H, W, Cin = x.shape
    Cout = params["w1"].shape[-1]
    # W % 16 is preferred (bf16 packs 16 sublanes); % 8 is the hard requirement
    # for free (HW, C) <-> (H, W, C) reshapes.
    assert W % 8 == 0, "W must be a multiple of 8 (sublane) for free reshapes"
    ci = _round_up(Cin, _LANE)
    co = _round_up(Cout, _LANE)
    has_shortcut = Cin != Cout
    hw = H * W
    f32, bf16 = jnp.float32, jnp.bfloat16

    def pad_c(v, c_to):      # zero-pad the channel (last) dim
        return jnp.pad(v, [(0, 0)] * (v.ndim - 1) + [(0, c_to - v.shape[-1])])

    # ---- operands prepared once on the XLA side ---------------------------
    xp = pad_c(x, ci).astype(bf16)                                         # [B,H,W,ci] bf16

    temb = (jnp.dot(t, params["wt"], precision=jax.lax.Precision.HIGHEST)
            + params["bt"][None, :])
    tembp = pad_c(temb, co).reshape(B, 1, co).astype(f32)                  # [B,1,co]

    g1 = pad_c(params["g1"][None, :], ci).astype(f32)
    be1 = pad_c(params["be1"][None, :], ci).astype(f32)
    a1 = jnp.pad(_group_avg_matrix(Cin, n_groups, hw),
                 ((0, ci - Cin), (0, ci - Cin)))
    w1 = jnp.pad(params["w1"], ((0, 0), (0, 0), (0, ci - Cin), (0, co - Cout))
                 ).reshape(9 * ci, co).astype(bf16)
    b1 = pad_c(params["b1"][None, :], co).astype(f32)

    g2 = pad_c(params["g2"][None, :], co).astype(f32)
    be2 = pad_c(params["be2"][None, :], co).astype(f32)
    a2 = jnp.pad(_group_avg_matrix(Cout, n_groups, hw),
                 ((0, co - Cout), (0, co - Cout)))
    w2 = jnp.pad(params["w2"], ((0, 0), (0, 0), (0, co - Cout), (0, co - Cout))
                 ).reshape(9 * co, co).astype(bf16)
    b2 = pad_c(params["b2"][None, :], co).astype(f32)

    args = [xp, tembp, g1, be1, a1, w1, b1, g2, be2, a2, w2, b2]
    const_shapes = [(1, ci), (1, ci), (ci, ci), (9 * ci, co), (1, co),     # norm1 / conv1
                    (1, co), (1, co), (co, co), (9 * co, co), (1, co)]     # norm2 / conv2
    if has_shortcut:
        ws = jnp.pad(params["ws"], ((0, ci - Cin), (0, co - Cout))).astype(bf16)
        bs = pad_c(params["bs"][None, :], co).astype(f32)
        args += [ws, bs]
        const_shapes += [(ci, co), (1, co)]                                # shortcut

    # Per-generation VMEM budget (~80% of capacity: ~102 MiB v5e/v6e, ~51 MiB v7x).
    try:
        vmem_limit = int(pltpu.get_tpu_info().vmem_capacity_bytes * 0.8)
    except Exception:
        vmem_limit = 64 * 1024 * 1024

    def build(single_buffer_consts):
        def const_spec(shape):
            zeros = (0,) * len(shape)
            idx = lambda b, _z=zeros: _z
            if single_buffer_consts:
                # Grid-invariant operands: one VMEM copy instead of two.
                return pl.BlockSpec(shape, idx, pipeline_mode=pl.Buffered(1))
            return pl.BlockSpec(shape, idx)

        in_specs = [pl.BlockSpec((1, H, W, ci), lambda b: (b, 0, 0, 0)),   # x
                    pl.BlockSpec((1, 1, co), lambda b: (b, 0, 0))]         # temb
        in_specs += [const_spec(s) for s in const_shapes]

        return pl.pallas_call(
            _make_kernel(H, W, has_shortcut),
            out_shape=jax.ShapeDtypeStruct((B, H, W, co), bf16),
            grid_spec=pltpu.PrefetchScalarGridSpec(
                num_scalar_prefetch=0,
                grid=(B,),
                in_specs=in_specs,
                out_specs=pl.BlockSpec((1, H, W, co), lambda b: (b, 0, 0, 0)),
            ),
            compiler_params=pltpu.CompilerParams(
                dimension_semantics=("parallel",),
                vmem_limit_bytes=vmem_limit,
            ),
        )

    try:
        out = build(True)(*args)
    except Exception:
        # Fallback for jax versions without BlockSpec(pipeline_mode=...) support.
        out = build(False)(*args)

    return out[..., :Cout]


# ---------------------------------------------------------------------------
# Pure-JAX reference (f32, HIGHEST precision) for correctness check
# ---------------------------------------------------------------------------
def residual_block_ref(x, t, params, n_groups):
    def gn(h, gamma, beta):
        B, H, W, C = h.shape
        g = n_groups
        hg = h.reshape(B, H, W, g, C // g)
        mean = hg.mean(axis=(1, 2, 4), keepdims=True)
        var = ((hg - mean) ** 2).mean(axis=(1, 2, 4), keepdims=True)
        hn = ((hg - mean) / jnp.sqrt(var + _EPS)).reshape(B, H, W, C)
        return hn * gamma.reshape(1, 1, 1, C) + beta.reshape(1, 1, 1, C)

    def conv3(h, w, b):
        y = jax.lax.conv_general_dilated(
            h, w, (1, 1), ((1, 1), (1, 1)),
            dimension_numbers=("NHWC", "HWIO", "NHWC"),
            precision=jax.lax.Precision.HIGHEST)
        return y + b.reshape(1, 1, 1, -1)

    h = jax.nn.silu(gn(x, params["g1"], params["be1"]))
    h = conv3(h, params["w1"], params["b1"])
    temb = jnp.dot(t, params["wt"], precision=jax.lax.Precision.HIGHEST) + params["bt"]
    h = h + temb[:, None, None, :]
    h = jax.nn.silu(gn(h, params["g2"], params["be2"]))
    h = conv3(h, params["w2"], params["b2"])
    if "ws" in params:
        sc = jnp.einsum("bhwi,io->bhwo", x, params["ws"],
                        precision=jax.lax.Precision.HIGHEST) + params["bs"]
    else:
        sc = x
    return h + sc


# ---------------------------------------------------------------------------
if __name__ == "__main__":
    B, Cin, Cout, Tc, H, W = 2, 8, 16, 32, 16, 16
    n_groups = 4   # must divide both Cin and Cout

    key = jax.random.PRNGKey(0)
    ks = jax.random.split(key, 16)
    x = jax.random.normal(ks[0], (B, H, W, Cin), jnp.float32)   # NHWC
    t = jax.random.normal(ks[1], (B, Tc), jnp.float32)

    params = {
        # GroupNorm 1 (per-channel affine)
        "g1": 1.0 + 0.1 * jax.random.normal(ks[2], (Cin,), jnp.float32),
        "be1": 0.1 * jax.random.normal(ks[3], (Cin,), jnp.float32),
        # Conv1 3x3 (HWIO)
        "w1": jax.random.normal(ks[4], (3, 3, Cin, Cout), jnp.float32) / math.sqrt(9 * Cin),
        "b1": 0.1 * jax.random.normal(ks[5], (Cout,), jnp.float32),
        # time embedding Linear
        "wt": jax.random.normal(ks[6], (Tc, Cout), jnp.float32) / math.sqrt(Tc),
        "bt": 0.1 * jax.random.normal(ks[7], (Cout,), jnp.float32),
        # GroupNorm 2
        "g2": 1.0 + 0.1 * jax.random.normal(ks[8], (Cout,), jnp.float32),
        "be2": 0.1 * jax.random.normal(ks[9], (Cout,), jnp.float32),
        # Conv2 3x3 (HWIO)
        "w2": jax.random.normal(ks[10], (3, 3, Cout, Cout), jnp.float32) / math.sqrt(9 * Cout),
        "b2": 0.1 * jax.random.normal(ks[11], (Cout,), jnp.float32),
    }
    if Cin != Cout:   # 1x1-conv shortcut (nn.Conv2d(in, out, 1)); identity otherwise
        params["ws"] = jax.random.normal(ks[12], (Cin, Cout), jnp.float32) / math.sqrt(Cin)
        params["bs"] = 0.1 * jax.random.normal(ks[13], (Cout,), jnp.float32)

    out = residual_block_pallas(x, t, params, n_groups)
    out = jax.block_until_ready(out)

    ref = residual_block_ref(x, t, params, n_groups)
    max_err = float(jnp.max(jnp.abs(out.astype(jnp.float32) - ref)))
    assert out.shape == (B, H, W, Cout)
    # bf16 activations at the HBM boundary + bf16 MXU operands (f32 accumulation),
    # so allow bf16-level mismatch against the f32 HIGHEST-precision reference.
    assert max_err < 1.5e-1, f"mismatch vs reference, max abs err = {max_err}"

    print("KERNEL_OK")
</pallas_src>

<mosaic_0001>
module attributes {stable_mosaic.version = 11 : i64} {
  func.func @kernel(%arg0: i32, %arg1: memref<1x16x16x128xbf16, #tpu.memory_space<vmem>>, %arg2: memref<1x1x128xf32, #tpu.memory_space<vmem>>, %arg3: memref<1x128xf32, #tpu.memory_space<vmem>>, %arg4: memref<1x128xf32, #tpu.memory_space<vmem>>, %arg5: memref<128x128xf32, #tpu.memory_space<vmem>>, %arg6: memref<1152x128xbf16, #tpu.memory_space<vmem>>, %arg7: memref<1x128xf32, #tpu.memory_space<vmem>>, %arg8: memref<1x128xf32, #tpu.memory_space<vmem>>, %arg9: memref<1x128xf32, #tpu.memory_space<vmem>>, %arg10: memref<128x128xf32, #tpu.memory_space<vmem>>, %arg11: memref<1152x128xbf16, #tpu.memory_space<vmem>>, %arg12: memref<1x128xf32, #tpu.memory_space<vmem>>, %arg13: memref<128x128xbf16, #tpu.memory_space<vmem>>, %arg14: memref<1x128xf32, #tpu.memory_space<vmem>>, %arg15: memref<1x16x16x128xbf16, #tpu.memory_space<vmem>>) attributes {dimension_semantics = [#tpu.dimension_semantics<parallel>], iteration_bounds = array<i64: 2>, scalar_prefetch = 0 : i64, scratch_operands = 0 : i64, tpu.core_type = #tpu.core_type<tc>, window_params = [{transform_indices = @transform_0, window_bounds = array<i64: 1, 16, 16, 128>}, {transform_indices = @transform_1, window_bounds = array<i64: 1, 1, 128>}, {pipeline_mode = #tpu.pipeline_mode<synchronous>, transform_indices = @transform_2, window_bounds = array<i64: 1, 128>}, {pipeline_mode = #tpu.pipeline_mode<synchronous>, transform_indices = @transform_3, window_bounds = array<i64: 1, 128>}, {pipeline_mode = #tpu.pipeline_mode<synchronous>, transform_indices = @transform_4, window_bounds = array<i64: 128, 128>}, {pipeline_mode = #tpu.pipeline_mode<synchronous>, transform_indices = @transform_5, window_bounds = array<i64: 1152, 128>}, {pipeline_mode = #tpu.pipeline_mode<synchronous>, transform_indices = @transform_6, window_bounds = array<i64: 1, 128>}, {pipeline_mode = #tpu.pipeline_mode<synchronous>, transform_indices = @transform_7, window_bounds = array<i64: 1, 128>}, {pipeline_mode = #tpu.pipeline_mode<synchronous>, transform_indices = @transform_8, window_bounds = array<i64: 1, 128>}, {pipeline_mode = #tpu.pipeline_mode<synchronous>, transform_indices = @transform_9, window_bounds = array<i64: 128, 128>}, {pipeline_mode = #tpu.pipeline_mode<synchronous>, transform_indices = @transform_10, window_bounds = array<i64: 1152, 128>}, {pipeline_mode = #tpu.pipeline_mode<synchronous>, transform_indices = @transform_11, window_bounds = array<i64: 1, 128>}, {pipeline_mode = #tpu.pipeline_mode<synchronous>, transform_indices = @transform_12, window_bounds = array<i64: 128, 128>}, {pipeline_mode = #tpu.pipeline_mode<synchronous>, transform_indices = @transform_13, window_bounds = array<i64: 1, 128>}, {transform_indices = @transform_14, window_bounds = array<i64: 1, 16, 16, 128>}]} {
    %c0 = arith.constant 0 : index
    %c0_0 = arith.constant 0 : index
    %c0_1 = arith.constant 0 : index
    %c0_2 = arith.constant 0 : index
    %0 = vector.load %arg1[%c0, %c0_0, %c0_1, %c0_2] : memref<1x16x16x128xbf16, #tpu.memory_space<vmem>>, vector<1x16x16x128xbf16>
    %1 = vector.shape_cast %0 : vector<1x16x16x128xbf16> to vector<256x128xbf16>
    %2 = arith.extf %1 : vector<256x128xbf16> to vector<256x128xf32>
    %cst = arith.constant dense<0.000000e+00> : vector<128xf32>
    %3 = vector.multi_reduction <add>, %2, %cst [0] : vector<256x128xf32> to vector<128xf32>
    %4 = vector.shape_cast %3 : vector<128xf32> to vector<1x128xf32>
    %5 = arith.mulf %2, %2 : vector<256x128xf32>
    %cst_3 = arith.constant dense<0.000000e+00> : vector<128xf32>
    %6 = vector.multi_reduction <add>, %5, %cst_3 [0] : vector<256x128xf32> to vector<128xf32>
    %7 = vector.shape_cast %6 : vector<128xf32> to vector<1x128xf32>
    %c0_4 = arith.constant 0 : index
    %c0_5 = arith.constant 0 : index
    %8 = vector.load %arg5[%c0_4, %c0_5] : memref<128x128xf32, #tpu.memory_space<vmem>>, vector<128x128xf32>
    %cst_6 = arith.constant dense<0.000000e+00> : vector<1x128xf32>
    %9 = tpu.matmul %4, %8, %cst_6 {dimension_numbers = #tpu.dot_dimension_numbers<[1], [0], [0], [1], [0, 0, 1, 1], [], []>} : vector<1x128xf32>, vector<128x128xf32>, vector<1x128xf32> -> vector<1x128xf32>
    %c0_7 = arith.constant 0 : index
    %c0_8 = arith.constant 0 : index
    %10 = vector.load %arg5[%c0_7, %c0_8] : memref<128x128xf32, #tpu.memory_space<vmem>>, vector<128x128xf32>
    %cst_9 = arith.constant dense<0.000000e+00> : vector<1x128xf32>
    %11 = tpu.matmul %7, %10, %cst_9 {dimension_numbers = #tpu.dot_dimension_numbers<[1], [0], [0], [1], [0, 0, 1, 1], [], []>} : vector<1x128xf32>, vector<128x128xf32>, vector<1x128xf32> -> vector<1x128xf32>
    %12 = arith.mulf %9, %9 : vector<1x128xf32>
    %13 = arith.subf %11, %12 : vector<1x128xf32>
    %cst_10 = arith.constant 9.99999974E-6 : f32
    %14 = vector.broadcast %cst_10 : f32 to vector<1x128xf32>
    %15 = arith.addf %13, %14 : vector<1x128xf32>
    %16 = math.rsqrt %15 : vector<1x128xf32>
    %c0_11 = arith.constant 0 : index
    %c0_12 = arith.constant 0 : index
    %17 = vector.load %arg3[%c0_11, %c0_12] : memref<1x128xf32, #tpu.memory_space<vmem>>, vector<1x128xf32>
    %18 = arith.mulf %16, %17 : vector<1x128xf32>
    %c0_13 = arith.constant 0 : index
    %c0_14 = arith.constant 0 : index
    %19 = vector.load %arg4[%c0_13, %c0_14] : memref<1x128xf32, #tpu.memory_space<vmem>>, vector<1x128xf32>
    %20 = arith.mulf %9, %18 : vector<1x128xf32>
    %21 = arith.subf %19, %20 : vector<1x128xf32>
    %22 = vector.broadcast %18 : vector<1x128xf32> to vector<256x128xf32>
    %23 = arith.mulf %2, %22 : vector<256x128xf32>
    %24 = vector.broadcast %21 : vector<1x128xf32> to vector<256x128xf32>
    %25 = arith.addf %23, %24 : vector<256x128xf32>
    %cst_15 = arith.constant 5.000000e-01 : f32
    %26 = vector.broadcast %cst_15 : f32 to vector<256x128xf32>
    %27 = arith.mulf %26, %25 : vector<256x128xf32>
    %cst_16 = arith.constant 5.000000e-01 : f32
    %28 = vector.broadcast %cst_16 : f32 to vector<256x128xf32>
    %29 = arith.mulf %28, %25 : vector<256x128xf32>
    %30 = math.tanh %29 : vector<256x128xf32>
    %cst_17 = arith.constant 1.000000e+00 : f32
    %31 = vector.broadcast %cst_17 : f32 to vector<256x128xf32>
    %32 = arith.addf %30, %31 : vector<256x128xf32>
    %33 = arith.mulf %27, %32 : vector<256x128xf32>
    %34 = arith.truncf %33 : vector<256x128xf32> to vector<256x128xbf16>
    %35 = vector.shape_cast %34 : vector<256x128xbf16> to vector<16x16x128xbf16>
    %cst_18 = arith.constant 0.000000e+00 : bf16
    %36 = vector.broadcast %cst_18 : bf16 to vector<1x16x128xbf16>
    %cst_19 = arith.constant 0.000000e+00 : bf16
    %37 = vector.broadcast %cst_19 : bf16 to vector<16x1x128xbf16>
    %38 = vector.extract_strided_slice %35 {offsets = [0, 0, 0], sizes = [15, 16, 128], strides = [1, 1, 1]} : vector<16x16x128xbf16> to vector<15x16x128xbf16>
    %39 = tpu.concatenate %36, %38 in 0 : vector<1x16x128xbf16>, vector<15x16x128xbf16> -> vector<16x16x128xbf16>
    %40 = vector.extract_strided_slice %39 {offsets = [0, 0, 0], sizes = [16, 15, 128], strides = [1, 1, 1]} : vector<16x16x128xbf16> to vector<16x15x128xbf16>
    %41 = tpu.concatenate %37, %40 in 1 : vector<16x1x128xbf16>, vector<16x15x128xbf16> -> vector<16x16x128xbf16>
    %42 = vector.shape_cast %41 : vector<16x16x128xbf16> to vector<256x128xbf16>
    %43 = vector.shape_cast %39 : vector<16x16x128xbf16> to vector<256x128xbf16>
    %44 = vector.extract_strided_slice %39 {offsets = [0, 1, 0], sizes = [16, 15, 128], strides = [1, 1, 1]} : vector<16x16x128xbf16> to vector<16x15x128xbf16>
    %45 = tpu.concatenate %44, %37 in 1 : vector<16x15x128xbf16>, vector<16x1x128xbf16> -> vector<16x16x128xbf16>
    %46 = vector.shape_cast %45 : vector<16x16x128xbf16> to vector<256x128xbf16>
    %47 = tpu.concatenate %42, %43, %46 in 1 : vector<256x128xbf16>, vector<256x128xbf16>, vector<256x128xbf16> -> vector<256x384xbf16>
    %c0_20 = arith.constant 0 : index
    %c0_21 = arith.constant 0 : index
    %48 = vector.load %arg6[%c0_20, %c0_21] : memref<1152x128xbf16, #tpu.memory_space<vmem>>, vector<384x128xbf16>
    %cst_22 = arith.constant dense<0.000000e+00> : vector<256x128xf32>
    %49 = tpu.matmul %47, %48, %cst_22 {dimension_numbers = #tpu.dot_dimension_numbers<[1], [0], [0], [1], [0, 0, 1, 1], [], []>} : vector<256x384xbf16>, vector<384x128xbf16>, vector<256x128xf32> -> vector<256x128xf32>
    %50 = vector.extract_strided_slice %35 {offsets = [0, 0, 0], sizes = [16, 15, 128], strides = [1, 1, 1]} : vector<16x16x128xbf16> to vector<16x15x128xbf16>
    %51 = tpu.concatenate %37, %50 in 1 : vector<16x1x128xbf16>, vector<16x15x128xbf16> -> vector<16x16x128xbf16>
    %52 = vector.shape_cast %51 : vector<16x16x128xbf16> to vector<256x128xbf16>
    %53 = vector.shape_cast %35 : vector<16x16x128xbf16> to vector<256x128xbf16>
    %54 = vector.extract_strided_slice %35 {offsets = [0, 1, 0], sizes = [16, 15, 128], strides = [1, 1, 1]} : vector<16x16x128xbf16> to vector<16x15x128xbf16>
    %55 = tpu.concatenate %54, %37 in 1 : vector<16x15x128xbf16>, vector<16x1x128xbf16> -> vector<16x16x128xbf16>
    %56 = vector.shape_cast %55 : vector<16x16x128xbf16> to vector<256x128xbf16>
    %57 = tpu.concatenate %52, %53, %56 in 1 : vector<256x128xbf16>, vector<256x128xbf16>, vector<256x128xbf16> -> vector<256x384xbf16>
    %c384 = arith.constant 384 : index
    %c0_23 = arith.constant 0 : index
    %58 = vector.load %arg6[%c384, %c0_23] : memref<1152x128xbf16, #tpu.memory_space<vmem>>, vector<384x128xbf16>
    %cst_24 = arith.constant dense<0.000000e+00> : vector<256x128xf32>
    %59 = tpu.matmul %57, %58, %cst_24 {dimension_numbers = #tpu.dot_dimension_numbers<[1], [0], [0], [1], [0, 0, 1, 1], [], []>} : vector<256x384xbf16>, vector<384x128xbf16>, vector<256x128xf32> -> vector<256x128xf32>
    %60 = arith.addf %49, %59 : vector<256x128xf32>
    %61 = vector.extract_strided_slice %35 {offsets = [1, 0, 0], sizes = [15, 16, 128], strides = [1, 1, 1]} : vector<16x16x128xbf16> to vector<15x16x128xbf16>
    %62 = tpu.concatenate %61, %36 in 0 : vector<15x16x128xbf16>, vector<1x16x128xbf16> -> vector<16x16x128xbf16>
    %63 = vector.extract_strided_slice %62 {offsets = [0, 0, 0], sizes = [16, 15, 128], strides = [1, 1, 1]} : vector<16x16x128xbf16> to vector<16x15x128xbf16>
    %64 = tpu.concatenate %37, %63 in 1 : vector<16x1x128xbf16>, vector<16x15x128xbf16> -> vector<16x16x128xbf16>
    %65 = vector.shape_cast %64 : vector<16x16x128xbf16> to vector<256x128xbf16>
    %66 = vector.shape_cast %62 : vector<16x16x128xbf16> to vector<256x128xbf16>
    %67 = vector.extract_strided_slice %62 {offsets = [0, 1, 0], sizes = [16, 15, 128], strides = [1, 1, 1]} : vector<16x16x128xbf16> to vector<16x15x128xbf16>
    %68 = tpu.concatenate %67, %37 in 1 : vector<16x15x128xbf16>, vector<16x1x128xbf16> -> vector<16x16x128xbf16>
    %69 = vector.shape_cast %68 : vector<16x16x128xbf16> to vector<256x128xbf16>
    %70 = tpu.concatenate %65, %66, %69 in 1 : vector<256x128xbf16>, vector<256x128xbf16>, vector<256x128xbf16> -> vector<256x384xbf16>
    %c768 = arith.constant 768 : index
    %c0_25 = arith.constant 0 : index
    %71 = vector.load %arg6[%c768, %c0_25] : memref<1152x128xbf16, #tpu.memory_space<vmem>>, vector<384x128xbf16>
    %cst_26 = arith.constant dense<0.000000e+00> : vector<256x128xf32>
    %72 = tpu.matmul %70, %71, %cst_26 {dimension_numbers = #tpu.dot_dimension_numbers<[1], [0], [0], [1], [0, 0, 1, 1], [], []>} : vector<256x384xbf16>, vector<384x128xbf16>, vector<256x128xf32> -> vector<256x128xf32>
    %73 = arith.addf %60, %72 : vector<256x128xf32>
    %c0_27 = arith.constant 0 : index
    %c0_28 = arith.constant 0 : index
    %74 = vector.load %arg7[%c0_27, %c0_28] : memref<1x128xf32, #tpu.memory_space<vmem>>, vector<1x128xf32>
    %75 = vector.broadcast %74 : vector<1x128xf32> to vector<256x128xf32>
    %76 = arith.addf %73, %75 : vector<256x128xf32>
    %c0_29 = arith.constant 0 : index
    %c0_30 = arith.constant 0 : index
    %c0_31 = arith.constant 0 : index
    %77 = vector.load %arg2[%c0_29, %c0_30, %c0_31] : memref<1x1x128xf32, #tpu.memory_space<vmem>>, vector<1x1x128xf32>
    %78 = vector.shape_cast %77 : vector<1x1x128xf32> to vector<1x128xf32>
    %79 = vector.broadcast %78 : vector<1x128xf32> to vector<256x128xf32>
    %80 = arith.addf %76, %79 : vector<256x128xf32>
    %cst_32 = arith.constant dense<0.000000e+00> : vector<128xf32>
    %81 = vector.multi_reduction <add>, %80, %cst_32 [0] : vector<256x128xf32> to vector<128xf32>
    %82 = vector.shape_cast %81 : vector<128xf32> to vector<1x128xf32>
    %83 = arith.mulf %80, %80 : vector<256x128xf32>
    %cst_33 = arith.constant dense<0.000000e+00> : vector<128xf32>
    %84 = vector.multi_reduction <add>, %83, %cst_33 [0] : vector<256x128xf32> to vector<128xf32>
    %85 = vector.shape_cast %84 : vector<128xf32> to vector<1x128xf32>
    %c0_34 = arith.constant 0 : index
    %c0_35 = arith.constant 0 : index
    %86 = vector.load %arg10[%c0_34, %c0_35] : memref<128x128xf32, #tpu.memory_space<vmem>>, vector<128x128xf32>
    %cst_36 = arith.constant dense<0.000000e+00> : vector<1x128xf32>
    %87 = tpu.matmul %82, %86, %cst_36 {dimension_numbers = #tpu.dot_dimension_numbers<[1], [0], [0], [1], [0, 0, 1, 1], [], []>} : vector<1x128xf32>, vector<128x128xf32>, vector<1x128xf32> -> vector<1x128xf32>
    %c0_37 = arith.constant 0 : index
    %c0_38 = arith.constant 0 : index
    %88 = vector.load %arg10[%c0_37, %c0_38] : memref<128x128xf32, #tpu.memory_space<vmem>>, vector<128x128xf32>
    %cst_39 = arith.constant dense<0.000000e+00> : vector<1x128xf32>
    %89 = tpu.matmul %85, %88, %cst_39 {dimension_numbers = #tpu.dot_dimension_numbers<[1], [0], [0], [1], [0, 0, 1, 1], [], []>} : vector<1x128xf32>, vector<128x128xf32>, vector<1x128xf32> -> vector<1x128xf32>
    %90 = arith.mulf %87, %87 : vector<1x128xf32>
    %91 = arith.subf %89, %90 : vector<1x128xf32>
    %cst_40 = arith.constant 9.99999974E-6 : f32
    %92 = vector.broadcast %cst_40 : f32 to vector<1x128xf32>
    %93 = arith.addf %91, %92 : vector<1x128xf32>
    %94 = math.rsqrt %93 : vector<1x128xf32>
    %c0_41 = arith.constant 0 : index
    %c0_42 = arith.constant 0 : index
    %95 = vector.load %arg8[%c0_41, %c0_42] : memref<1x128xf32, #tpu.memory_space<vmem>>, vector<1x128xf32>
    %96 = arith.mulf %94, %95 : vector<1x128xf32>
    %c0_43 = arith.constant 0 : index
    %c0_44 = arith.constant 0 : index
    %97 = vector.load %arg9[%c0_43, %c0_44] : memref<1x128xf32, #tpu.memory_space<vmem>>, vector<1x128xf32>
    %98 = arith.mulf %87, %96 : vector<1x128xf32>
    %99 = arith.subf %97, %98 : vector<1x128xf32>
    %100 = vector.broadcast %96 : vector<1x128xf32> to vector<256x128xf32>
    %101 = arith.mulf %80, %100 : vector<256x128xf32>
    %102 = vector.broadcast %99 : vector<1x128xf32> to vector<256x128xf32>
    %103 = arith.addf %101, %102 : vector<256x128xf32>
    %cst_45 = arith.constant 5.000000e-01 : f32
    %104 = vector.broadcast %cst_45 : f32 to vector<256x128xf32>
    %105 = arith.mulf %104, %103 : vector<256x128xf32>
    %cst_46 = arith.constant 5.000000e-01 : f32
    %106 = vector.broadcast %cst_46 : f32 to vector<256x128xf32>
    %107 = arith.mulf %106, %103 : vector<256x128xf32>
    %108 = math.tanh %107 : vector<256x128xf32>
    %cst_47 = arith.constant 1.000000e+00 : f32
    %109 = vector.broadcast %cst_47 : f32 to vector<256x128xf32>
    %110 = arith.addf %108, %109 : vector<256x128xf32>
    %111 = arith.mulf %105, %110 : vector<256x128xf32>
    %112 = arith.truncf %111 : vector<256x128xf32> to vector<256x128xbf16>
    %113 = vector.shape_cast %112 : vector<256x128xbf16> to vector<16x16x128xbf16>
    %cst_48 = arith.constant 0.000000e+00 : bf16
    %114 = vector.broadcast %cst_48 : bf16 to vector<1x16x128xbf16>
    %cst_49 = arith.constant 0.000000e+00 : bf16
    %115 = vector.broadcast %cst_49 : bf16 to vector<16x1x128xbf16>
    %116 = vector.extract_strided_slice %113 {offsets = [0, 0, 0], sizes = [15, 16, 128], strides = [1, 1, 1]} : vector<16x16x128xbf16> to vector<15x16x128xbf16>
    %117 = tpu.concatenate %114, %116 in 0 : vector<1x16x128xbf16>, vector<15x16x128xbf16> -> vector<16x16x128xbf16>
    %118 = vector.extract_strided_slice %117 {offsets = [0, 0, 0], sizes = [16, 15, 128], strides = [1, 1, 1]} : vector<16x16x128xbf16> to vector<16x15x128xbf16>
    %119 = tpu.concatenate %115, %118 in 1 : vector<16x1x128xbf16>, vector<16x15x128xbf16> -> vector<16x16x128xbf16>
    %120 = vector.shape_cast %119 : vector<16x16x128xbf16> to vector<256x128xbf16>
    %121 = vector.shape_cast %117 : vector<16x16x128xbf16> to vector<256x128xbf16>
    %122 = vector.extract_strided_slice %117 {offsets = [0, 1, 0], sizes = [16, 15, 128], strides = [1, 1, 1]} : vector<16x16x128xbf16> to vector<16x15x128xbf16>
    %123 = tpu.concatenate %122, %115 in 1 : vector<16x15x128xbf16>, vector<16x1x128xbf16> -> vector<16x16x128xbf16>
    %124 = vector.shape_cast %123 : vector<16x16x128xbf16> to vector<256x128xbf16>
    %125 = tpu.concatenate %120, %121, %124 in 1 : vector<256x128xbf16>, vector<256x128xbf16>, vector<256x128xbf16> -> vector<256x384xbf16>
    %c0_50 = arith.constant 0 : index
    %c0_51 = arith.constant 0 : index
    %126 = vector.load %arg11[%c0_50, %c0_51] : memref<1152x128xbf16, #tpu.memory_space<vmem>>, vector<384x128xbf16>
    %cst_52 = arith.constant dense<0.000000e+00> : vector<256x128xf32>
    %127 = tpu.matmul %125, %126, %cst_52 {dimension_numbers = #tpu.dot_dimension_numbers<[1], [0], [0], [1], [0, 0, 1, 1], [], []>} : vector<256x384xbf16>, vector<384x128xbf16>, vector<256x128xf32> -> vector<256x128xf32>
    %128 = vector.extract_strided_slice %113 {offsets = [0, 0, 0], sizes = [16, 15, 128], strides = [1, 1, 1]} : vector<16x16x128xbf16> to vector<16x15x128xbf16>
    %129 = tpu.concatenate %115, %128 in 1 : vector<16x1x128xbf16>, vector<16x15x128xbf16> -> vector<16x16x128xbf16>
    %130 = vector.shape_cast %129 : vector<16x16x128xbf16> to vector<256x128xbf16>
    %131 = vector.shape_cast %113 : vector<16x16x128xbf16> to vector<256x128xbf16>
    %132 = vector.extract_strided_slice %113 {offsets = [0, 1, 0], sizes = [16, 15, 128], strides = [1, 1, 1]} : vector<16x16x128xbf16> to vector<16x15x128xbf16>
    %133 = tpu.concatenate %132, %115 in 1 : vector<16x15x128xbf16>, vector<16x1x128xbf16> -> vector<16x16x128xbf16>
    %134 = vector.shape_cast %133 : vector<16x16x128xbf16> to vector<256x128xbf16>
    %135 = tpu.concatenate %130, %131, %134 in 1 : vector<256x128xbf16>, vector<256x128xbf16>, vector<256x128xbf16> -> vector<256x384xbf16>
    %c384_53 = arith.constant 384 : index
    %c0_54 = arith.constant 0 : index
    %136 = vector.load %arg11[%c384_53, %c0_54] : memref<1152x128xbf16, #tpu.memory_space<vmem>>, vector<384x128xbf16>
    %cst_55 = arith.constant dense<0.000000e+00> : vector<256x128xf32>
    %137 = tpu.matmul %135, %136, %cst_55 {dimension_numbers = #tpu.dot_dimension_numbers<[1], [0], [0], [1], [0, 0, 1, 1], [], []>} : vector<256x384xbf16>, vector<384x128xbf16>, vector<256x128xf32> -> vector<256x128xf32>
    %138 = arith.addf %127, %137 : vector<256x128xf32>
    %139 = vector.extract_strided_slice %113 {offsets = [1, 0, 0], sizes = [15, 16, 128], strides = [1, 1, 1]} : vector<16x16x128xbf16> to vector<15x16x128xbf16>
    %140 = tpu.concatenate %139, %114 in 0 : vector<15x16x128xbf16>, vector<1x16x128xbf16> -> vector<16x16x128xbf16>
    %141 = vector.extract_strided_slice %140 {offsets = [0, 0, 0], sizes = [16, 15, 128], strides = [1, 1, 1]} : vector<16x16x128xbf16> to vector<16x15x128xbf16>
    %142 = tpu.concatenate %115, %141 in 1 : vector<16x1x128xbf16>, vector<16x15x128xbf16> -> vector<16x16x128xbf16>
    %143 = vector.shape_cast %142 : vector<16x16x128xbf16> to vector<256x128xbf16>
    %144 = vector.shape_cast %140 : vector<16x16x128xbf16> to vector<256x128xbf16>
    %145 = vector.extract_strided_slice %140 {offsets = [0, 1, 0], sizes = [16, 15, 128], strides = [1, 1, 1]} : vector<16x16x128xbf16> to vector<16x15x128xbf16>
    %146 = tpu.concatenate %145, %115 in 1 : vector<16x15x128xbf16>, vector<16x1x128xbf16> -> vector<16x16x128xbf16>
    %147 = vector.shape_cast %146 : vector<16x16x128xbf16> to vector<256x128xbf16>
    %148 = tpu.concatenate %143, %144, %147 in 1 : vector<256x128xbf16>, vector<256x128xbf16>, vector<256x128xbf16> -> vector<256x384xbf16>
    %c768_56 = arith.constant 768 : index
    %c0_57 = arith.constant 0 : index
    %149 = vector.load %arg11[%c768_56, %c0_57] : memref<1152x128xbf16, #tpu.memory_space<vmem>>, vector<384x128xbf16>
    %cst_58 = arith.constant dense<0.000000e+00> : vector<256x128xf32>
    %150 = tpu.matmul %148, %149, %cst_58 {dimension_numbers = #tpu.dot_dimension_numbers<[1], [0], [0], [1], [0, 0, 1, 1], [], []>} : vector<256x384xbf16>, vector<384x128xbf16>, vector<256x128xf32> -> vector<256x128xf32>
    %151 = arith.addf %138, %150 : vector<256x128xf32>
    %c0_59 = arith.constant 0 : index
    %c0_60 = arith.constant 0 : index
    %152 = vector.load %arg12[%c0_59, %c0_60] : memref<1x128xf32, #tpu.memory_space<vmem>>, vector<1x128xf32>
    %153 = vector.broadcast %152 : vector<1x128xf32> to vector<256x128xf32>
    %154 = arith.addf %151, %153 : vector<256x128xf32>
    %c0_61 = arith.constant 0 : index
    %c0_62 = arith.constant 0 : index
    %155 = vector.load %arg13[%c0_61, %c0_62] : memref<128x128xbf16, #tpu.memory_space<vmem>>, vector<128x128xbf16>
    %cst_63 = arith.constant dense<0.000000e+00> : vector<256x128xf32>
    %156 = tpu.matmul %1, %155, %cst_63 {dimension_numbers = #tpu.dot_dimension_numbers<[1], [0], [0], [1], [0, 0, 1, 1], [], []>} : vector<256x128xbf16>, vector<128x128xbf16>, vector<256x128xf32> -> vector<256x128xf32>
    %c0_64 = arith.constant 0 : index
    %c0_65 = arith.constant 0 : index
    %157 = vector.load %arg14[%c0_64, %c0_65] : memref<1x128xf32, #tpu.memory_space<vmem>>, vector<1x128xf32>
    %158 = vector.broadcast %157 : vector<1x128xf32> to vector<256x128xf32>
    %159 = arith.addf %156, %158 : vector<256x128xf32>
    %160 = arith.addf %154, %159 : vector<256x128xf32>
    %161 = arith.truncf %160 : vector<256x128xf32> to vector<256x128xbf16>
    %162 = vector.shape_cast %161 : vector<256x128xbf16> to vector<1x16x16x128xbf16>
    %c0_66 = arith.constant 0 : index
    %c0_67 = arith.constant 0 : index
    %c0_68 = arith.constant 0 : index
    %c0_69 = arith.constant 0 : index
    %163 = vector.load %arg15[%c0_66, %c0_67, %c0_68, %c0_69] : memref<1x16x16x128xbf16, #tpu.memory_space<vmem>>, vector<1x16x16x128xbf16>
    tpu.vector_store %arg15[%c0_66, %c0_67, %c0_68, %c0_69], %162 {strides = array<i32>} : memref<1x16x16x128xbf16, #tpu.memory_space<vmem>>, vector<1x16x16x128xbf16>,
    return
  }
  func.func @transform_0(%arg0: i32) -> (i32, i32, i32, i32) {
    %c0_i32 = arith.constant 0 : i32
    %c0_i32_0 = arith.constant 0 : i32
    %c0_i32_1 = arith.constant 0 : i32
    %c0_i32_2 = arith.constant 0 : i32
    return %arg0, %c0_i32, %c0_i32_0, %c0_i32_1 : i32, i32, i32, i32
  }
  func.func @transform_1(%arg0: i32) -> (i32, i32, i32) {
    %c0_i32 = arith.constant 0 : i32
    %c0_i32_0 = arith.constant 0 : i32
    %c0_i32_1 = arith.constant 0 : i32
    return %arg0, %c0_i32, %c0_i32_0 : i32, i32, i32
  }
  func.func @transform_2(%arg0: i32) -> (i32, i32) {
    %c0_i32 = arith.constant 0 : i32
    %c0_i32_0 = arith.constant 0 : i32
    %c0_i32_1 = arith.constant 0 : i32
    return %c0_i32, %c0_i32_0 : i32, i32
  }
  func.func @transform_3(%arg0: i32) -> (i32, i32) {
    %c0_i32 = arith.constant 0 : i32
    %c0_i32_0 = arith.constant 0 : i32
    %c0_i32_1 = arith.constant 0 : i32
    return %c0_i32, %c0_i32_0 : i32, i32
  }
  func.func @transform_4(%arg0: i32) -> (i32, i32) {
    %c0_i32 = arith.constant 0 : i32
    %c0_i32_0 = arith.constant 0 : i32
    %c0_i32_1 = arith.constant 0 : i32
    return %c0_i32, %c0_i32_0 : i32, i32
  }
  func.func @transform_5(%arg0: i32) -> (i32, i32) {
    %c0_i32 = arith.constant 0 : i32
    %c0_i32_0 = arith.constant 0 : i32
    %c0_i32_1 = arith.constant 0 : i32
    return %c0_i32, %c0_i32_0 : i32, i32
  }
  func.func @transform_6(%arg0: i32) -> (i32, i32) {
    %c0_i32 = arith.constant 0 : i32
    %c0_i32_0 = arith.constant 0 : i32
    %c0_i32_1 = arith.constant 0 : i32
    return %c0_i32, %c0_i32_0 : i32, i32
  }
  func.func @transform_7(%arg0: i32) -> (i32, i32) {
    %c0_i32 = arith.constant 0 : i32
    %c0_i32_0 = arith.constant 0 : i32
    %c0_i32_1 = arith.constant 0 : i32
    return %c0_i32, %c0_i32_0 : i32, i32
  }
  func.func @transform_8(%arg0: i32) -> (i32, i32) {
    %c0_i32 = arith.constant 0 : i32
    %c0_i32_0 = arith.constant 0 : i32
    %c0_i32_1 = arith.constant 0 : i32
    return %c0_i32, %c0_i32_0 : i32, i32
  }
  func.func @transform_9(%arg0: i32) -> (i32, i32) {
    %c0_i32 = arith.constant 0 : i32
    %c0_i32_0 = arith.constant 0 : i32
    %c0_i32_1 = arith.constant 0 : i32
    return %c0_i32, %c0_i32_0 : i32, i32
  }
  func.func @transform_10(%arg0: i32) -> (i32, i32) {
    %c0_i32 = arith.constant 0 : i32
    %c0_i32_0 = arith.constant 0 : i32
    %c0_i32_1 = arith.constant 0 : i32
    return %c0_i32, %c0_i32_0 : i32, i32
  }
  func.func @transform_11(%arg0: i32) -> (i32, i32) {
    %c0_i32 = arith.constant 0 : i32
    %c0_i32_0 = arith.constant 0 : i32
    %c0_i32_1 = arith.constant 0 : i32
    return %c0_i32, %c0_i32_0 : i32, i32
  }
  func.func @transform_12(%arg0: i32) -> (i32, i32) {
    %c0_i32 = arith.constant 0 : i32
    %c0_i32_0 = arith.constant 0 : i32
    %c0_i32_1 = arith.constant 0 : i32
    return %c0_i32, %c0_i32_0 : i32, i32
  }
  func.func @transform_13(%arg0: i32) -> (i32, i32) {
    %c0_i32 = arith.constant 0 : i32
    %c0_i32_0 = arith.constant 0 : i32
    %c0_i32_1 = arith.constant 0 : i32
    return %c0_i32, %c0_i32_0 : i32, i32
  }
  func.func @transform_14(%arg0: i32) -> (i32, i32, i32, i32) {
    %c0_i32 = arith.constant 0 : i32
    %c0_i32_0 = arith.constant 0 : i32
    %c0_i32_1 = arith.constant 0 : i32
    %c0_i32_2 = arith.constant 0 : i32
    return %arg0, %c0_i32, %c0_i32_0, %c0_i32_1 : i32, i32, i32, i32
  }
}

module attributes {stable_mosaic.version = 11 : i64} {
  func.func @kernel(%arg0: i32, %arg1: memref<1x16x16x128xbf16, #tpu.memory_space<vmem>>, %arg2: memref<1x1x128xf32, #tpu.memory_space<vmem>>, %arg3: memref<1x128xf32, #tpu.memory_space<vmem>>, %arg4: memref<1x128xf32, #tpu.memory_space<vmem>>, %arg5: memref<128x128xf32, #tpu.memory_space<vmem>>, %arg6: memref<1152x128xbf16, #tpu.memory_space<vmem>>, %arg7: memref<1x128xf32, #tpu.memory_space<vmem>>, %arg8: memref<1x128xf32, #tpu.memory_space<vmem>>, %arg9: memref<1x128xf32, #tpu.memory_space<vmem>>, %arg10: memref<128x128xf32, #tpu.memory_space<vmem>>, %arg11: memref<1152x128xbf16, #tpu.memory_space<vmem>>, %arg12: memref<1x128xf32, #tpu.memory_space<vmem>>, %arg13: memref<128x128xbf16, #tpu.memory_space<vmem>>, %arg14: memref<1x128xf32, #tpu.memory_space<vmem>>, %arg15: memref<1x16x16x128xbf16, #tpu.memory_space<vmem>>) attributes {dimension_semantics = [#tpu.dimension_semantics<parallel>], iteration_bounds = array<i64: 2>, scalar_prefetch = 0 : i64, scratch_operands = 0 : i64, tpu.core_type = #tpu.core_type<tc>, window_params = [{transform_indices = @transform_0, window_bounds = array<i64: 1, 16, 16, 128>}, {transform_indices = @transform_1, window_bounds = array<i64: 1, 1, 128>}, {pipeline_mode = #tpu.pipeline_mode<synchronous>, transform_indices = @transform_2, window_bounds = array<i64: 1, 128>}, {pipeline_mode = #tpu.pipeline_mode<synchronous>, transform_indices = @transform_3, window_bounds = array<i64: 1, 128>}, {pipeline_mode = #tpu.pipeline_mode<synchronous>, transform_indices = @transform_4, window_bounds = array<i64: 128, 128>}, {pipeline_mode = #tpu.pipeline_mode<synchronous>, transform_indices = @transform_5, window_bounds = array<i64: 1152, 128>}, {pipeline_mode = #tpu.pipeline_mode<synchronous>, transform_indices = @transform_6, window_bounds = array<i64: 1, 128>}, {pipeline_mode = #tpu.pipeline_mode<synchronous>, transform_indices = @transform_7, window_bounds = array<i64: 1, 128>}, {pipeline_mode = #tpu.pipeline_mode<synchronous>, transform_indices = @transform_8, window_bounds = array<i64: 1, 128>}, {pipeline_mode = #tpu.pipeline_mode<synchronous>, transform_indices = @transform_9, window_bounds = array<i64: 128, 128>}, {pipeline_mode = #tpu.pipeline_mode<synchronous>, transform_indices = @transform_10, window_bounds = array<i64: 1152, 128>}, {pipeline_mode = #tpu.pipeline_mode<synchronous>, transform_indices = @transform_11, window_bounds = array<i64: 1, 128>}, {pipeline_mode = #tpu.pipeline_mode<synchronous>, transform_indices = @transform_12, window_bounds = array<i64: 128, 128>}, {pipeline_mode = #tpu.pipeline_mode<synchronous>, transform_indices = @transform_13, window_bounds = array<i64: 1, 128>}, {transform_indices = @transform_14, window_bounds = array<i64: 1, 16, 16, 128>}]} {
    %c0 = arith.constant 0 : index
    %c0_0 = arith.constant 0 : index
    %c0_1 = arith.constant 0 : index
    %c0_2 = arith.constant 0 : index
    %0 = vector.load %arg1[%c0, %c0_0, %c0_1, %c0_2] : memref<1x16x16x128xbf16, #tpu.memory_space<vmem>>, vector<1x16x16x128xbf16>
    %1 = vector.shape_cast %0 : vector<1x16x16x128xbf16> to vector<256x128xbf16>
    %2 = arith.extf %1 : vector<256x128xbf16> to vector<256x128xf32>
    %cst = arith.constant dense<0.000000e+00> : vector<128xf32>
    %3 = vector.multi_reduction <add>, %2, %cst [0] : vector<256x128xf32> to vector<128xf32>
    %4 = vector.shape_cast %3 : vector<128xf32> to vector<1x128xf32>
    %5 = arith.mulf %2, %2 : vector<256x128xf32>
    %cst_3 = arith.constant dense<0.000000e+00> : vector<128xf32>
    %6 = vector.multi_reduction <add>, %5, %cst_3 [0] : vector<256x128xf32> to vector<128xf32>
    %7 = vector.shape_cast %6 : vector<128xf32> to vector<1x128xf32>
    %c0_4 = arith.constant 0 : index
    %c0_5 = arith.constant 0 : index
    %8 = vector.load %arg5[%c0_4, %c0_5] : memref<128x128xf32, #tpu.memory_space<vmem>>, vector<128x128xf32>
    %cst_6 = arith.constant dense<0.000000e+00> : vector<1x128xf32>
    %9 = tpu.matmul %4, %8, %cst_6 {dimension_numbers = #tpu.dot_dimension_numbers<[1], [0], [0], [1], [0, 0, 1, 1], [], []>} : vector<1x128xf32>, vector<128x128xf32>, vector<1x128xf32> -> vector<1x128xf32>
    %c0_7 = arith.constant 0 : index
    %c0_8 = arith.constant 0 : index
    %10 = vector.load %arg5[%c0_7, %c0_8] : memref<128x128xf32, #tpu.memory_space<vmem>>, vector<128x128xf32>
    %cst_9 = arith.constant dense<0.000000e+00> : vector<1x128xf32>
    %11 = tpu.matmul %7, %10, %cst_9 {dimension_numbers = #tpu.dot_dimension_numbers<[1], [0], [0], [1], [0, 0, 1, 1], [], []>} : vector<1x128xf32>, vector<128x128xf32>, vector<1x128xf32> -> vector<1x128xf32>
    %12 = arith.mulf %9, %9 : vector<1x128xf32>
    %13 = arith.subf %11, %12 : vector<1x128xf32>
    %cst_10 = arith.constant 9.99999974E-6 : f32
    %14 = vector.broadcast %cst_10 : f32 to vector<1x128xf32>
    %15 = arith.addf %13, %14 : vector<1x128xf32>
    %16 = math.rsqrt %15 : vector<1x128xf32>
    %c0_11 = arith.constant 0 : index
    %c0_12 = arith.constant 0 : index
    %17 = vector.load %arg3[%c0_11, %c0_12] : memref<1x128xf32, #tpu.memory_space<vmem>>, vector<1x128xf32>
    %18 = arith.mulf %16, %17 : vector<1x128xf32>
    %c0_13 = arith.constant 0 : index
    %c0_14 = arith.constant 0 : index
    %19 = vector.load %arg4[%c0_13, %c0_14] : memref<1x128xf32, #tpu.memory_space<vmem>>, vector<1x128xf32>
    %20 = arith.mulf %9, %18 : vector<1x128xf32>
    %21 = arith.subf %19, %20 : vector<1x128xf32>
    %22 = vector.broadcast %18 : vector<1x128xf32> to vector<256x128xf32>
    %23 = arith.mulf %2, %22 : vector<256x128xf32>
    %24 = vector.broadcast %21 : vector<1x128xf32> to vector<256x128xf32>
    %25 = arith.addf %23, %24 : vector<256x128xf32>
    %cst_15 = arith.constant 5.000000e-01 : f32
    %26 = vector.broadcast %cst_15 : f32 to vector<256x128xf32>
    %27 = arith.mulf %26, %25 : vector<256x128xf32>
    %cst_16 = arith.constant 5.000000e-01 : f32
    %28 = vector.broadcast %cst_16 : f32 to vector<256x128xf32>
    %29 = arith.mulf %28, %25 : vector<256x128xf32>
    %30 = math.tanh %29 : vector<256x128xf32>
    %cst_17 = arith.constant 1.000000e+00 : f32
    %31 = vector.broadcast %cst_17 : f32 to vector<256x128xf32>
    %32 = arith.addf %30, %31 : vector<256x128xf32>
    %33 = arith.mulf %27, %32 : vector<256x128xf32>
    %34 = arith.truncf %33 : vector<256x128xf32> to vector<256x128xbf16>
    %35 = vector.shape_cast %34 : vector<256x128xbf16> to vector<16x16x128xbf16>
    %cst_18 = arith.constant 0.000000e+00 : bf16
    %36 = vector.broadcast %cst_18 : bf16 to vector<1x16x128xbf16>
    %cst_19 = arith.constant 0.000000e+00 : bf16
    %37 = vector.broadcast %cst_19 : bf16 to vector<16x1x128xbf16>
    %38 = vector.extract_strided_slice %35 {offsets = [0, 0, 0], sizes = [15, 16, 128], strides = [1, 1, 1]} : vector<16x16x128xbf16> to vector<15x16x128xbf16>
    %39 = tpu.concatenate %36, %38 in 0 : vector<1x16x128xbf16>, vector<15x16x128xbf16> -> vector<16x16x128xbf16>
    %40 = vector.extract_strided_slice %39 {offsets = [0, 0, 0], sizes = [16, 15, 128], strides = [1, 1, 1]} : vector<16x16x128xbf16> to vector<16x15x128xbf16>
    %41 = tpu.concatenate %37, %40 in 1 : vector<16x1x128xbf16>, vector<16x15x128xbf16> -> vector<16x16x128xbf16>
    %42 = vector.shape_cast %41 : vector<16x16x128xbf16> to vector<256x128xbf16>
    %43 = vector.shape_cast %39 : vector<16x16x128xbf16> to vector<256x128xbf16>
    %44 = vector.extract_strided_slice %39 {offsets = [0, 1, 0], sizes = [16, 15, 128], strides = [1, 1, 1]} : vector<16x16x128xbf16> to vector<16x15x128xbf16>
    %45 = tpu.concatenate %44, %37 in 1 : vector<16x15x128xbf16>, vector<16x1x128xbf16> -> vector<16x16x128xbf16>
    %46 = vector.shape_cast %45 : vector<16x16x128xbf16> to vector<256x128xbf16>
    %47 = tpu.concatenate %42, %43, %46 in 1 : vector<256x128xbf16>, vector<256x128xbf16>, vector<256x128xbf16> -> vector<256x384xbf16>
    %c0_20 = arith.constant 0 : index
    %c0_21 = arith.constant 0 : index
    %48 = vector.load %arg6[%c0_20, %c0_21] : memref<1152x128xbf16, #tpu.memory_space<vmem>>, vector<384x128xbf16>
    %cst_22 = arith.constant dense<0.000000e+00> : vector<256x128xf32>
    %49 = tpu.matmul %47, %48, %cst_22 {dimension_numbers = #tpu.dot_dimension_numbers<[1], [0], [0], [1], [0, 0, 1, 1], [], []>} : vector<256x384xbf16>, vector<384x128xbf16>, vector<256x128xf32> -> vector<256x128xf32>
    %50 = vector.extract_strided_slice %35 {offsets = [0, 0, 0], sizes = [16, 15, 128], strides = [1, 1, 1]} : vector<16x16x128xbf16> to vector<16x15x128xbf16>
    %51 = tpu.concatenate %37, %50 in 1 : vector<16x1x128xbf16>, vector<16x15x128xbf16> -> vector<16x16x128xbf16>
    %52 = vector.shape_cast %51 : vector<16x16x128xbf16> to vector<256x128xbf16>
    %53 = vector.shape_cast %35 : vector<16x16x128xbf16> to vector<256x128xbf16>
    %54 = vector.extract_strided_slice %35 {offsets = [0, 1, 0], sizes = [16, 15, 128], strides = [1, 1, 1]} : vector<16x16x128xbf16> to vector<16x15x128xbf16>
    %55 = tpu.concatenate %54, %37 in 1 : vector<16x15x128xbf16>, vector<16x1x128xbf16> -> vector<16x16x128xbf16>
    %56 = vector.shape_cast %55 : vector<16x16x128xbf16> to vector<256x128xbf16>
    %57 = tpu.concatenate %52, %53, %56 in 1 : vector<256x128xbf16>, vector<256x128xbf16>, vector<256x128xbf16> -> vector<256x384xbf16>
    %c384 = arith.constant 384 : index
    %c0_23 = arith.constant 0 : index
    %58 = vector.load %arg6[%c384, %c0_23] : memref<1152x128xbf16, #tpu.memory_space<vmem>>, vector<384x128xbf16>
    %cst_24 = arith.constant dense<0.000000e+00> : vector<256x128xf32>
    %59 = tpu.matmul %57, %58, %cst_24 {dimension_numbers = #tpu.dot_dimension_numbers<[1], [0], [0], [1], [0, 0, 1, 1], [], []>} : vector<256x384xbf16>, vector<384x128xbf16>, vector<256x128xf32> -> vector<256x128xf32>
    %60 = arith.addf %49, %59 : vector<256x128xf32>
    %61 = vector.extract_strided_slice %35 {offsets = [1, 0, 0], sizes = [15, 16, 128], strides = [1, 1, 1]} : vector<16x16x128xbf16> to vector<15x16x128xbf16>
    %62 = tpu.concatenate %61, %36 in 0 : vector<15x16x128xbf16>, vector<1x16x128xbf16> -> vector<16x16x128xbf16>
    %63 = vector.extract_strided_slice %62 {offsets = [0, 0, 0], sizes = [16, 15, 128], strides = [1, 1, 1]} : vector<16x16x128xbf16> to vector<16x15x128xbf16>
    %64 = tpu.concatenate %37, %63 in 1 : vector<16x1x128xbf16>, vector<16x15x128xbf16> -> vector<16x16x128xbf16>
    %65 = vector.shape_cast %64 : vector<16x16x128xbf16> to vector<256x128xbf16>
    %66 = vector.shape_cast %62 : vector<16x16x128xbf16> to vector<256x128xbf16>
    %67 = vector.extract_strided_slice %62 {offsets = [0, 1, 0], sizes = [16, 15, 128], strides = [1, 1, 1]} : vector<16x16x128xbf16> to vector<16x15x128xbf16>
    %68 = tpu.concatenate %67, %37 in 1 : vector<16x15x128xbf16>, vector<16x1x128xbf16> -> vector<16x16x128xbf16>
    %69 = vector.shape_cast %68 : vector<16x16x128xbf16> to vector<256x128xbf16>
    %70 = tpu.concatenate %65, %66, %69 in 1 : vector<256x128xbf16>, vector<256x128xbf16>, vector<256x128xbf16> -> vector<256x384xbf16>
    %c768 = arith.constant 768 : index
    %c0_25 = arith.constant 0 : index
    %71 = vector.load %arg6[%c768, %c0_25] : memref<1152x128xbf16, #tpu.memory_space<vmem>>, vector<384x128xbf16>
    %cst_26 = arith.constant dense<0.000000e+00> : vector<256x128xf32>
    %72 = tpu.matmul %70, %71, %cst_26 {dimension_numbers = #tpu.dot_dimension_numbers<[1], [0], [0], [1], [0, 0, 1, 1], [], []>} : vector<256x384xbf16>, vector<384x128xbf16>, vector<256x128xf32> -> vector<256x128xf32>
    %73 = arith.addf %60, %72 : vector<256x128xf32>
    %c0_27 = arith.constant 0 : index
    %c0_28 = arith.constant 0 : index
    %74 = vector.load %arg7[%c0_27, %c0_28] : memref<1x128xf32, #tpu.memory_space<vmem>>, vector<1x128xf32>
    %75 = vector.broadcast %74 : vector<1x128xf32> to vector<256x128xf32>
    %76 = arith.addf %73, %75 : vector<256x128xf32>
    %c0_29 = arith.constant 0 : index
    %c0_30 = arith.constant 0 : index
    %c0_31 = arith.constant 0 : index
    %77 = vector.load %arg2[%c0_29, %c0_30, %c0_31] : memref<1x1x128xf32, #tpu.memory_space<vmem>>, vector<1x1x128xf32>
    %78 = vector.shape_cast %77 : vector<1x1x128xf32> to vector<1x128xf32>
    %79 = vector.broadcast %78 : vector<1x128xf32> to vector<256x128xf32>
    %80 = arith.addf %76, %79 : vector<256x128xf32>
    %cst_32 = arith.constant dense<0.000000e+00> : vector<128xf32>
    %81 = vector.multi_reduction <add>, %80, %cst_32 [0] : vector<256x128xf32> to vector<128xf32>
    %82 = vector.shape_cast %81 : vector<128xf32> to vector<1x128xf32>
    %83 = arith.mulf %80, %80 : vector<256x128xf32>
    %cst_33 = arith.constant dense<0.000000e+00> : vector<128xf32>
    %84 = vector.multi_reduction <add>, %83, %cst_33 [0] : vector<256x128xf32> to vector<128xf32>
    %85 = vector.shape_cast %84 : vector<128xf32> to vector<1x128xf32>
    %c0_34 = arith.constant 0 : index
    %c0_35 = arith.constant 0 : index
    %86 = vector.load %arg10[%c0_34, %c0_35] : memref<128x128xf32, #tpu.memory_space<vmem>>, vector<128x128xf32>
    %cst_36 = arith.constant dense<0.000000e+00> : vector<1x128xf32>
    %87 = tpu.matmul %82, %86, %cst_36 {dimension_numbers = #tpu.dot_dimension_numbers<[1], [0], [0], [1], [0, 0, 1, 1], [], []>} : vector<1x128xf32>, vector<128x128xf32>, vector<1x128xf32> -> vector<1x128xf32>
    %c0_37 = arith.constant 0 : index
    %c0_38 = arith.constant 0 : index
    %88 = vector.load %arg10[%c0_37, %c0_38] : memref<128x128xf32, #tpu.memory_space<vmem>>, vector<128x128xf32>
    %cst_39 = arith.constant dense<0.000000e+00> : vector<1x128xf32>
    %89 = tpu.matmul %85, %88, %cst_39 {dimension_numbers = #tpu.dot_dimension_numbers<[1], [0], [0], [1], [0, 0, 1, 1], [], []>} : vector<1x128xf32>, vector<128x128xf32>, vector<1x128xf32> -> vector<1x128xf32>
    %90 = arith.mulf %87, %87 : vector<1x128xf32>
    %91 = arith.subf %89, %90 : vector<1x128xf32>
    %cst_40 = arith.constant 9.99999974E-6 : f32
    %92 = vector.broadcast %cst_40 : f32 to vector<1x128xf32>
    %93 = arith.addf %91, %92 : vector<1x128xf32>
    %94 = math.rsqrt %93 : vector<1x128xf32>
    %c0_41 = arith.constant 0 : index
    %c0_42 = arith.constant 0 : index
    %95 = vector.load %arg8[%c0_41, %c0_42] : memref<1x128xf32, #tpu.memory_space<vmem>>, vector<1x128xf32>
    %96 = arith.mulf %94, %95 : vector<1x128xf32>
    %c0_43 = arith.constant 0 : index
    %c0_44 = arith.constant 0 : index
    %97 = vector.load %arg9[%c0_43, %c0_44] : memref<1x128xf32, #tpu.memory_space<vmem>>, vector<1x128xf32>
    %98 = arith.mulf %87, %96 : vector<1x128xf32>
    %99 = arith.subf %97, %98 : vector<1x128xf32>
    %100 = vector.broadcast %96 : vector<1x128xf32> to vector<256x128xf32>
    %101 = arith.mulf %80, %100 : vector<256x128xf32>
    %102 = vector.broadcast %99 : vector<1x128xf32> to vector<256x128xf32>
    %103 = arith.addf %101, %102 : vector<256x128xf32>
    %cst_45 = arith.constant 5.000000e-01 : f32
    %104 = vector.broadcast %cst_45 : f32 to vector<256x128xf32>
    %105 = arith.mulf %104, %103 : vector<256x128xf32>
    %cst_46 = arith.constant 5.000000e-01 : f32
    %106 = vector.broadcast %cst_46 : f32 to vector<256x128xf32>
    %107 = arith.mulf %106, %103 : vector<256x128xf32>
    %108 = math.tanh %107 : vector<256x128xf32>
    %cst_47 = arith.constant 1.000000e+00 : f32
    %109 = vector.broadcast %cst_47 : f32 to vector<256x128xf32>
    %110 = arith.addf %108, %109 : vector<256x128xf32>
    %111 = arith.mulf %105, %110 : vector<256x128xf32>
    %112 = arith.truncf %111 : vector<256x128xf32> to vector<256x128xbf16>
    %113 = vector.shape_cast %112 : vector<256x128xbf16> to vector<16x16x128xbf16>
    %cst_48 = arith.constant 0.000000e+00 : bf16
    %114 = vector.broadcast %cst_48 : bf16 to vector<1x16x128xbf16>
    %cst_49 = arith.constant 0.000000e+00 : bf16
    %115 = vector.broadcast %cst_49 : bf16 to vector<16x1x128xbf16>
    %116 = vector.extract_strided_slice %113 {offsets = [0, 0, 0], sizes = [15, 16, 128], strides = [1, 1, 1]} : vector<16x16x128xbf16> to vector<15x16x128xbf16>
    %117 = tpu.concatenate %114, %116 in 0 : vector<1x16x128xbf16>, vector<15x16x128xbf16> -> vector<16x16x128xbf16>
    %118 = vector.extract_strided_slice %117 {offsets = [0, 0, 0], sizes = [16, 15, 128], strides = [1, 1, 1]} : vector<16x16x128xbf16> to vector<16x15x128xbf16>
    %119 = tpu.concatenate %115, %118 in 1 : vector<16x1x128xbf16>, vector<16x15x128xbf16> -> vector<16x16x128xbf16>
    %120 = vector.shape_cast %119 : vector<16x16x128xbf16> to vector<256x128xbf16>
    %121 = vector.shape_cast %117 : vector<16x16x128xbf16> to vector<256x128xbf16>
    %122 = vector.extract_strided_slice %117 {offsets = [0, 1, 0], sizes = [16, 15, 128], strides = [1, 1, 1]} : vector<16x16x128xbf16> to vector<16x15x128xbf16>
    %123 = tpu.concatenate %122, %115 in 1 : vector<16x15x128xbf16>, vector<16x1x128xbf16> -> vector<16x16x128xbf16>
    %124 = vector.shape_cast %123 : vector<16x16x128xbf16> to vector<256x128xbf16>
    %125 = tpu.concatenate %120, %121, %124 in 1 : vector<256x128xbf16>, vector<256x128xbf16>, vector<256x128xbf16> -> vector<256x384xbf16>
    %c0_50 = arith.constant 0 : index
    %c0_51 = arith.constant 0 : index
    %126 = vector.load %arg11[%c0_50, %c0_51] : memref<1152x128xbf16, #tpu.memory_space<vmem>>, vector<384x128xbf16>
    %cst_52 = arith.constant dense<0.000000e+00> : vector<256x128xf32>
    %127 = tpu.matmul %125, %126, %cst_52 {dimension_numbers = #tpu.dot_dimension_numbers<[1], [0], [0], [1], [0, 0, 1, 1], [], []>} : vector<256x384xbf16>, vector<384x128xbf16>, vector<256x128xf32> -> vector<256x128xf32>
    %128 = vector.extract_strided_slice %113 {offsets = [0, 0, 0], sizes = [16, 15, 128], strides = [1, 1, 1]} : vector<16x16x128xbf16> to vector<16x15x128xbf16>
    %129 = tpu.concatenate %115, %128 in 1 : vector<16x1x128xbf16>, vector<16x15x128xbf16> -> vector<16x16x128xbf16>
    %130 = vector.shape_cast %129 : vector<16x16x128xbf16> to vector<256x128xbf16>
    %131 = vector.shape_cast %113 : vector<16x16x128xbf16> to vector<256x128xbf16>
    %132 = vector.extract_strided_slice %113 {offsets = [0, 1, 0], sizes = [16, 15, 128], strides = [1, 1, 1]} : vector<16x16x128xbf16> to vector<16x15x128xbf16>
    %133 = tpu.concatenate %132, %115 in 1 : vector<16x15x128xbf16>, vector<16x1x128xbf16> -> vector<16x16x128xbf16>
    %134 = vector.shape_cast %133 : vector<16x16x128xbf16> to vector<256x128xbf16>
    %135 = tpu.concatenate %130, %131, %134 in 1 : vector<256x128xbf16>, vector<256x128xbf16>, vector<256x128xbf16> -> vector<256x384xbf16>
    %c384_53 = arith.constant 384 : index
    %c0_54 = arith.constant 0 : index
    %136 = vector.load %arg11[%c384_53, %c0_54] : memref<1152x128xbf16, #tpu.memory_space<vmem>>, vector<384x128xbf16>
    %cst_55 = arith.constant dense<0.000000e+00> : vector<256x128xf32>
    %137 = tpu.matmul %135, %136, %cst_55 {dimension_numbers = #tpu.dot_dimension_numbers<[1], [0], [0], [1], [0, 0, 1, 1], [], []>} : vector<256x384xbf16>, vector<384x128xbf16>, vector<256x128xf32> -> vector<256x128xf32>
    %138 = arith.addf %127, %137 : vector<256x128xf32>
    %139 = vector.extract_strided_slice %113 {offsets = [1, 0, 0], sizes = [15, 16, 128], strides = [1, 1, 1]} : vector<16x16x128xbf16> to vector<15x16x128xbf16>
    %140 = tpu.concatenate %139, %114 in 0 : vector<15x16x128xbf16>, vector<1x16x128xbf16> -> vector<16x16x128xbf16>
    %141 = vector.extract_strided_slice %140 {offsets = [0, 0, 0], sizes = [16, 15, 128], strides = [1, 1, 1]} : vector<16x16x128xbf16> to vector<16x15x128xbf16>
    %142 = tpu.concatenate %115, %141 in 1 : vector<16x1x128xbf16>, vector<16x15x128xbf16> -> vector<16x16x128xbf16>
    %143 = vector.shape_cast %142 : vector<16x16x128xbf16> to vector<256x128xbf16>
    %144 = vector.shape_cast %140 : vector<16x16x128xbf16> to vector<256x128xbf16>
    %145 = vector.extract_strided_slice %140 {offsets = [0, 1, 0], sizes = [16, 15, 128], strides = [1, 1, 1]} : vector<16x16x128xbf16> to vector<16x15x128xbf16>
    %146 = tpu.concatenate %145, %115 in 1 : vector<16x15x128xbf16>, vector<16x1x128xbf16> -> vector<16x16x128xbf16>
    %147 = vector.shape_cast %146 : vector<16x16x128xbf16> to vector<256x128xbf16>
    %148 = tpu.concatenate %143, %144, %147 in 1 : vector<256x128xbf16>, vector<256x128xbf16>, vector<256x128xbf16> -> vector<256x384xbf16>
    %c768_56 = arith.constant 768 : index
    %c0_57 = arith.constant 0 : index
    %149 = vector.load %arg11[%c768_56, %c0_57] : memref<1152x128xbf16, #tpu.memory_space<vmem>>, vector<384x128xbf16>
    %cst_58 = arith.constant dense<0.000000e+00> : vector<256x128xf32>
    %150 = tpu.matmul %148, %149, %cst_58 {dimension_numbers = #tpu.dot_dimension_numbers<[1], [0], [0], [1], [0, 0, 1, 1], [], []>} : vector<256x384xbf16>, vector<384x128xbf16>, vector<256x128xf32> -> vector<256x128xf32>
    %151 = arith.addf %138, %150 : vector<256x128xf32>
    %c0_59 = arith.constant 0 : index
    %c0_60 = arith.constant 0 : index
    %152 = vector.load %arg12[%c0_59, %c0_60] : memref<1x128xf32, #tpu.memory_space<vmem>>, vector<1x128xf32>
    %153 = vector.broadcast %152 : vector<1x128xf32> to vector<256x128xf32>
    %154 = arith.addf %151, %153 : vector<256x128xf32>
    %c0_61 = arith.constant 0 : index
    %c0_62 = arith.constant 0 : index
    %155 = vector.load %arg13[%c0_61, %c0_62] : memref<128x128xbf16, #tpu.memory_space<vmem>>, vector<128x128xbf16>
    %cst_63 = arith.constant dense<0.000000e+00> : vector<256x128xf32>
    %156 = tpu.matmul %1, %155, %cst_63 {dimension_numbers = #tpu.dot_dimension_numbers<[1], [0], [0], [1], [0, 0, 1, 1], [], []>} : vector<256x128xbf16>, vector<128x128xbf16>, vector<256x128xf32> -> vector<256x128xf32>
    %c0_64 = arith.constant 0 : index
    %c0_65 = arith.constant 0 : index
    %157 = vector.load %arg14[%c0_64, %c0_65] : memref<1x128xf32, #tpu.memory_space<vmem>>, vector<1x128xf32>
    %158 = vector.broadcast %157 : vector<1x128xf32> to vector<256x128xf32>
    %159 = arith.addf %156, %158 : vector<256x128xf32>
    %160 = arith.addf %154, %159 : vector<256x128xf32>
    %161 = arith.truncf %160 : vector<256x128xf32> to vector<256x128xbf16>
    %162 = vector.shape_cast %161 : vector<256x128xbf16> to vector<1x16x16x128xbf16>
    %c0_66 = arith.constant 0 : index
    %c0_67 = arith.constant 0 : index
    %c0_68 = arith.constant 0 : index
    %c0_69 = arith.constant 0 : index
    %163 = vector.load %arg15[%c0_66, %c0_67, %c0_68, %c0_69] : memref<1x16x16x128xbf16, #tpu.memory_space<vmem>>, vector<1x16x16x128xbf16>
    tpu.vector_store %arg15[%c0_66, %c0_67, %c0_68, %c0_69], %162 {strides = array<i32>} : memref<1x16x16x128xbf16, #tpu.memory_space<vmem>>, vector<1x16x16x128xbf16>,
    return
  }
  func.func @transform_0(%arg0: i32) -> (i32, i32, i32, i32) {
    %c0_i32 = arith.constant 0 : i32
    %c0_i32_0 = arith.constant 0 : i32
    %c0_i32_1 = arith.constant 0 : i32
    %c0_i32_2 = arith.constant 0 : i32
    return %arg0, %c0_i32, %c0_i32_0, %c0_i32_1 : i32, i32, i32, i32
  }
  func.func @transform_1(%arg0: i32) -> (i32, i32, i32) {
    %c0_i32 = arith.constant 0 : i32
    %c0_i32_0 = arith.constant 0 : i32
    %c0_i32_1 = arith.constant 0 : i32
    return %arg0, %c0_i32, %c0_i32_0 : i32, i32, i32
  }
  func.func @transform_2(%arg0: i32) -> (i32, i32) {
    %c0_i32 = arith.constant 0 : i32
    %c0_i32_0 = arith.constant 0 : i32
    %c0_i32_1 = arith.constant 0 : i32
    return %c0_i32, %c0_i32_0 : i32, i32
  }
  func.func @transform_3(%arg0: i32) -> (i32, i32) {
    %c0_i32 = arith.constant 0 : i32
    %c0_i32_0 = arith.constant 0 : i32
    %c0_i32_1 = arith.constant 0 : i32
    return %c0_i32, %c0_i32_0 : i32, i32
  }
  func.func @transform_4(%arg0: i32) -> (i32, i32) {
    %c0_i32 = arith.constant 0 : i32
    %c0_i32_0 = arith.constant 0 : i32
    %c0_i32_1 = arith.constant 0 : i32
    return %c0_i32, %c0_i32_0 : i32, i32
  }
  func.func @transform_5(%arg0: i32) -> (i32, i32) {
    %c0_i32 = arith.constant 0 : i32
    %c0_i32_0 = arith.constant 0 : i32
    %c0_i32_1 = arith.constant 0 : i32
    return %c0_i32, %c0_i32_0 : i32, i32
  }
  func.func @transform_6(%arg0: i32) -> (i32, i32) {
    %c0_i32 = arith.constant 0 : i32
    %c0_i32_0 = arith.constant 0 : i32
    %c0_i32_1 = arith.constant 0 : i32
    return %c0_i32, %c0_i32_0 : i32, i32
  }
  func.func @transform_7(%arg0: i32) -> (i32, i32) {
    %c0_i32 = arith.constant 0 : i32
    %c0_i32_0 = arith.constant 0 : i32
    %c0_i32_1 = arith.constant 0 : i32
    return %c0_i32, %c0_i32_0 : i32, i32
  }
  func.func @transform_8(%arg0: i32) -> (i32, i32) {
    %c0_i32 = arith.constant 0 : i32
    %c0_i32_0 = arith.constant 0 : i32
    %c0_i32_1 = arith.constant 0 : i32
    return %c0_i32, %c0_i32_0 : i32, i32
  }
  func.func @transform_9(%arg0: i32) -> (i32, i32) {
    %c0_i32 = arith.constant 0 : i32
    %c0_i32_0 = arith.constant 0 : i32
    %c0_i32_1 = arith.constant 0 : i32
    return %c0_i32, %c0_i32_0 : i32, i32
  }
  func.func @transform_10(%arg0: i32) -> (i32, i32) {
    %c0_i32 = arith.constant 0 : i32
    %c0_i32_0 = arith.constant 0 : i32
    %c0_i32_1 = arith.constant 0 : i32
    return %c0_i32, %c0_i32_0 : i32, i32
  }
  func.func @transform_11(%arg0: i32) -> (i32, i32) {
    %c0_i32 = arith.constant 0 : i32
    %c0_i32_0 = arith.constant 0 : i32
    %c0_i32_1 = arith.constant 0 : i32
    return %c0_i32, %c0_i32_0 : i32, i32
  }
  func.func @transform_12(%arg0: i32) -> (i32, i32) {
    %c0_i32 = arith.constant 0 : i32
    %c0_i32_0 = arith.constant 0 : i32
    %c0_i32_1 = arith.constant 0 : i32
    return %c0_i32, %c0_i32_0 : i32, i32
  }
  func.func @transform_13(%arg0: i32) -> (i32, i32) {
    %c0_i32 = arith.constant 0 : i32
    %c0_i32_0 = arith.constant 0 : i32
    %c0_i32_1 = arith.constant 0 : i32
    return %c0_i32, %c0_i32_0 : i32, i32
  }
  func.func @transform_14(%arg0: i32) -> (i32, i32, i32, i32) {
    %c0_i32 = arith.constant 0 : i32
    %c0_i32_0 = arith.constant 0 : i32
    %c0_i32_1 = arith.constant 0 : i32
    %c0_i32_2 = arith.constant 0 : i32
    return %arg0, %c0_i32, %c0_i32_0, %c0_i32_1 : i32, i32, i32, i32
  }
}

</mosaic_0001>

<bundles_post_ra>
// kernel: tpu_custom_call.1
= control target key start
LH: loop header
LB: loop body
LE: loop exit
PB: predicated region body
PF: predicated region fallthrough
CT: control target
= control target key end

     0   :  { %s12703_s0 = inlined_call_operand.hbm [shape: bf16[2,16,16,128], index: 0, kind: input, shape index: {}]   ;;  %s12704_s1 = inlined_call_operand.hbm [shape: f32[2,1,128], index: 1, kind: input, shape index: {}]   ;;  %s12705_s2 = inlined_call_operand.hbm [shape: f32[1,128], index: 2, kind: input, shape index: {}]   ;;  %s12706_s3 = inlined_call_operand.hbm [shape: f32[1,128], index: 3, kind: input, shape index: {}]   ;;  %s12707_s4 = inlined_call_operand.hbm [shape: f32[128,128], index: 4, kind: input, shape index: {}]   ;;  %s12708_s5 = inlined_call_operand.hbm [shape: bf16[1152,128], index: 5, kind: input, shape index: {}]   ;;  %s12709_s6 = inlined_call_operand.hbm [shape: f32[1,128], index: 6, kind: input, shape index: {}]   ;;  %s12710_s7 = inlined_call_operand.hbm [shape: f32[1,128], index: 7, kind: input, shape index: {}]   ;;  %s12711_s8 = inlined_call_operand.hbm [shape: f32[1,128], index: 8, kind: input, shape index: {}]   ;;  %s12712_s9 = inlined_call_operand.hbm [shape: f32[128,128], index: 9, kind: input, shape index: {}]   ;;  %s12713_s10 = inlined_call_operand.hbm [shape: bf16[1152,128], index: 10, kind: input, shape index: {}]   ;;  %s12714_s11 = inlined_call_operand.hbm [shape: f32[1,128], index: 11, kind: input, shape index: {}]   ;;  %s12715_s12 = inlined_call_operand.hbm [shape: bf16[128,128], index: 12, kind: input, shape index: {}]   ;;  %s12716_s13 = inlined_call_operand.hbm [shape: f32[1,128], index: 13, kind: input, shape index: {}]   ;;  %s12717_s14 = inlined_call_operand.hbm [shape: bf16[2,16,16,128], index: 14, kind: output, shape index: {}]  }
   0x1   :  { %12757 = sst [smem:[#allocation61_spill]] %s12703_s0 }
   0x2   :  { %12758 = sst [smem:[#allocation62_spill]] %s12704_s1 }
   0x3   :  { %12759 = sst [smem:[#allocation63_spill]] %s12705_s2 }
   0x4   :  { %12760 = sst [smem:[#allocation64_spill]] %s12706_s3 }
   0x5   :  { %12761 = sst [smem:[#allocation65_spill]] %s12707_s4 }
   0x6   :  { %12762 = sst [smem:[#allocation66_spill]] %s12708_s5 }
   0x7   :  { %12763 = sst [smem:[#allocation67_spill]] %s12709_s6 }
   0x8   :  { %12764 = sst [smem:[#allocation68_spill]] %s12710_s7 }
   0x9   :  { %12765 = sst [smem:[#allocation69_spill]] %s12711_s8 }
   0xa   :  { %12766 = sst [smem:[#allocation70_spill]] %s12712_s9 }
   0xb   :  { %12767 = sst [smem:[#allocation71_spill]] %s12713_s10 }
   0xc   :  { %12768 = sst [smem:[#allocation72_spill]] %s12717_s14 }
   0xd   :  { %19 = vsyncpa [#allocation3], 0 }
   0xe   :  { %21 = vsyncpa [#allocation3 + $0x1], 0 }
   0xf   :  { %22 = vsyncpa [#allocation6], 0 }
  0x10   :  { %24 = vsyncpa [#allocation6 + $0x1], 0 }
  0x11   :  { %25 = vsyncpa [#allocation9], 0 }
  0x12   :  { %26 = vsyncpa [#allocation12], 0 }
  0x13   :  { %27 = vsyncpa [#allocation15], 0 }
  0x14   :  { %28 = vsyncpa [#allocation18], 0 }
  0x15   :  { %29 = vsyncpa [#allocation21], 0 }
  0x16   :  { %30 = vsyncpa [#allocation24], 0 }
  0x17   :  { %31 = vsyncpa [#allocation4], 0 }
  0x18   :  { %33 = vsyncpa [#allocation4 + $0x1], 0  ;;  %s9542_s29 = smov 0   ;;  %s9544_s30 = smov 0  }
  0x19   :  { %s9546_s15 = smov 0   ;;  %s9548_s16 = smov 0  }
  0x1a LB: > { %s9442_s17 = smov [#allocation7]   ;;  %s9563_s19 = sadd.s32 4294967295, %s9440_s16   ;;  %s9440_s16 = sphi %s9548_s16, %s12893_s16   ;;  %s9436_s15 = sphi %s9546_s15, %s12892_s15   ;;  %s9432_s30 = sphi %s9544_s30, %s12891_s30   ;;  %s9428_s29 = sphi %s9542_s29, %s12890_s29  }
  0x1b   : > { %s387_s18 = sshll.u32 %s9442_s17, 4  ;;  %p6165_p0 = scmp.ge.s32.totalorder %s9440_s16, 1  ;;  %s9568_s18 = int_to_ptr.vmem [resolvable:$true] %s387_s18 }
  0x1c   : > { %p12722_p1 = scmp.eq.s32.totalorder %s9563_s19, 0  ;;  %p374_p2 = scmp.lt.s32.totalorder %s9440_s16, 3 }
  0x1d   : > { %s9443_s21 = smov [#allocation8]   ;;  %s9444_s23 = smov [#allocation11]  }
  0x1e   : > { %p9570_p3 = pnand %p6165_p0, %p374_p2  ;;  %s398_s22 = sshll.u32 %s9443_s21, 4  ;;  %s9577_s22 = int_to_ptr.vmem [resolvable:$true] %s398_s22 }
  0x1f   : > { %s421_s24 = sshll.u32 %s9444_s23, 4  ;;  %s12772_s2 = sld [smem:[#allocation63_spill]]  ;;  %s9585_s24 = int_to_ptr.vmem [resolvable:$true] %s421_s24 }
  0x20   : > { %s12769_s20 = scalar_select %p9570_p3, 1, 0 }
  0x21   : > { %p8486_p5 = pneg %p9570_p3 }
  0x22   : > { %12770 = sst [smem:[#allocation36_spill]] %s12769_s20 }
  0x23   : > { %p9581_p6 = pnand %p8486_p5, %p12722_p1 }
  0x25   : > { %s8946_s28 = scalar_lea.hbm %s12772_s2, 16  ;;  %p9595_p8 = pneg %p9581_p6 }
  0x26   : > { %p8947_p7 = scmp.ne.s32.totalorder %s12772_s2, %s8946_s28  ;;  %p8953_p11 = scmp.lt.u32.totalorder %s8946_s28, %s12772_s2 }
  0x28   : > { %p8949_p9 = pnand %p9595_p8, %p8947_p7 }
  0x2a   : > { %p8950_p10 = pneg %p8949_p9 }
  0x2c   : > { %p8955_p12 = pnand %p8953_p11, %p8950_p10 }
  0x2e   : > { %8958 = shalt.err (!%p8955_p12)
}
  0x2f   : > { %s8959_s14 = scalar_lea.vmem %s9568_s18, 16  ;;  %s8966_s26 = scalar_lea.vmem %s9568_s18, 32 }
  0x30   : > { %p8960_p13 = scmp.ne.s32.totalorder %s9568_s18, %s8959_s14  ;;  %p8967_p5 = scmp.lt.s32.totalorder %s9568_s18, %s9568_s18 }
  0x31   : > { %p8968_p7 = scmp.lt.s32.totalorder %s8966_s26, %s8959_s14 }
  0x32   : > { %p8962_p0 = pnand %p8960_p13, %p9595_p8 }
  0x33   : > { %p8969_p9 = por %p8968_p7, %p8967_p5 }
  0x34   : > { %p8963_p2 = pneg %p8962_p0 }
  0x36   : > { %p8970_p4 = pnand %p8969_p9, %p8963_p2 }
  0x38   : > { %8973 = shalt.err (!%p8970_p4)
}
  0x39   : > { %8489 = dma.hbm_to_vmem [thread:$0]  (!%p9581_p6), %s12772_s2, 16, %s9568_s18, [#allocation6]  }
  0x3a   : > { %s12774_s3 = sld [smem:[#allocation64_spill]] }
  0x40   : > { %s8974_s23 = scalar_lea.hbm %s12774_s3, 16 }
  0x41   : > { %p8975_p10 = scmp.ne.s32.totalorder %s12774_s3, %s8974_s23  ;;  %p8981_p4 = scmp.lt.u32.totalorder %s8974_s23, %s12774_s3 }
  0x43   : > { %p8977_p11 = pnand %p8975_p10, %p9595_p8 }
  0x45   : > { %p8978_p12 = pneg %p8977_p11 }
  0x47   : > { %p8983_p13 = pnand %p8981_p4, %p8978_p12 }
  0x49   : > { %8986 = shalt.err (!%p8983_p13)
}
  0x4a   : > { %s8987_s18 = scalar_lea.vmem %s9577_s22, 16  ;;  %s8994_s0 = scalar_lea.vmem %s9577_s22, 32 }
  0x4b   : > { %p8988_p0 = scmp.ne.s32.totalorder %s9577_s22, %s8987_s18  ;;  %p8995_p7 = scmp.lt.s32.totalorder %s9577_s22, %s9577_s22 }
  0x4c   : > { %p8996_p9 = scmp.lt.s32.totalorder %s8994_s0, %s8987_s18 }
  0x4d   : > { %p8990_p2 = pnand %p8988_p0, %p9595_p8 }
  0x4e   : > { %p8997_p10 = por %p8996_p9, %p8995_p7 }
  0x4f   : > { %p8991_p5 = pneg %p8990_p2 }
  0x51   : > { %p8998_p11 = pnand %p8997_p10, %p8991_p5 }
  0x53   : > { %9001 = shalt.err (!%p8998_p11)
}
  0x54   : > { %8492 = dma.hbm_to_vmem [thread:$0]  (!%p9581_p6), %s12774_s3, 16, %s9577_s22, [#allocation9]  }
  0x55   : > { %s12775_s5 = sld [smem:[#allocation66_spill]] }
  0x5b   : > { %s9002_s17 = scalar_lea.hbm %s12775_s5, 9216 }
  0x5c   : > { %p9003_p12 = scmp.ne.s32.totalorder %s12775_s5, %s9002_s17  ;;  %p9009_p0 = scmp.lt.u32.totalorder %s9002_s17, %s12775_s5 }
  0x5e   : > { %p9005_p4 = pnand %p9003_p12, %p9595_p8 }
  0x60   : > { %p9006_p13 = pneg %p9005_p4 }
  0x62   : > { %p9011_p2 = pnand %p9009_p0, %p9006_p13 }
  0x64   : > { %9014 = shalt.err (!%p9011_p2)
}
  0x65   : > { %s9015_s22 = scalar_lea.vmem %s9585_s24, 9216  ;;  %p9023_p10 = scmp.lt.s32.totalorder %s9585_s24, %s9585_s24 }
  0x66   : > { %p9016_p5 = scmp.ne.s32.totalorder %s9585_s24, %s9015_s22  ;;  %p9024_p11 = scmp.lt.s32.totalorder %s9015_s22, %s9015_s22 }
  0x68   : > { %p9018_p7 = pnand %p9016_p5, %p9595_p8  ;;  %p9025_p12 = por %p9024_p11, %p9023_p10 }
  0x6a   : > { %p9019_p9 = pneg %p9018_p7 }
  0x6c   : > { %p9026_p4 = pnand %p9025_p12, %p9019_p9 }
  0x6e   : > { %9029 = shalt.err (!%p9026_p4)
}
  0x6f   : > { %s12724_s0 = smov 64   ;;  %s12726_s1 = smov 4  }
  0x70   : > { %8498 = dma.hbm_to_vmem [thread:$0]  (!%p9581_p6), %s12775_s5, 9216, %s9585_s24, [#allocation12], %s12724_s0, %s12724_s0, %s12726_s1  }
  0x71   : > { %s9447_s28 = smov [#allocation14]   ;;  %s12776_s7 = sld [smem:[#allocation68_spill]] }
  0x72   : > { %s446_s17 = sshll.u32 %s9447_s28, 4  ;;  %s447_s17 = int_to_ptr.vmem [resolvable:$true] %s446_s17 }
  0x77   : > { %s9030_s26 = scalar_lea.hbm %s12776_s7, 16 }
  0x78   : > { %p9031_p13 = scmp.ne.s32.totalorder %s12776_s7, %s9030_s26  ;;  %p9037_p5 = scmp.lt.u32.totalorder %s9030_s26, %s12776_s7 }
  0x7a   : > { %p9033_p0 = pnand %p9031_p13, %p9595_p8 }
  0x7c   : > { %p9034_p2 = pneg %p9033_p0 }
  0x7e   : > { %p9039_p7 = pnand %p9037_p5, %p9034_p2 }
  0x80   : > { %9042 = shalt.err (!%p9039_p7)
}
  0x81   : > { %s9043_s24 = scalar_lea.vmem %s447_s17, 16  ;;  %s9050_s20 = scalar_lea.vmem %s447_s17, 32 }
  0x82   : > { %p9044_p9 = scmp.ne.s32.totalorder %s447_s17, %s9043_s24  ;;  %p9051_p12 = scmp.lt.s32.totalorder %s447_s17, %s447_s17 }
  0x83   : > { %p9052_p4 = scmp.lt.s32.totalorder %s9050_s20, %s9043_s24 }
  0x84   : > { %p9046_p10 = pnand %p9044_p9, %p9595_p8 }
  0x85   : > { %p9053_p1 = por %p9052_p4, %p9051_p12 }
  0x86   : > { %p9047_p11 = pneg %p9046_p10 }
  0x88   : > { %p9054_p3 = pnand %p9053_p1, %p9047_p11 }
  0x8a   : > { %9057 = shalt.err (!%p9054_p3)
}
  0x8b   : > { %8504 = dma.hbm_to_vmem [thread:$0]  (!%p9581_p6), %s12776_s7, 16, %s447_s17, [#allocation15]  }
  0x8c   : > { %s9448_s2 = smov [#allocation17]   ;;  %s9449_s23 = smov [#allocation20]  }
  0x8d   : > { %s467_s3 = sshll.u32 %s9448_s2, 4  ;;  %s494_s14 = sshll.u32 %s9449_s23, 4  ;;  %s468_s3 = int_to_ptr.vmem [resolvable:$true] %s467_s3  ;;  %s9685_s14 = int_to_ptr.vmem [resolvable:$true] %s494_s14 }
  0x8e   : > { %s12777_s9 = sld [smem:[#allocation70_spill]] }
  0x94   : > { %s9058_s22 = scalar_lea.hbm %s12777_s9, 2048 }
  0x95   : > { %p9059_p1 = scmp.ne.s32.totalorder %s12777_s9, %s9058_s22  ;;  %p9065_p0 = scmp.lt.u32.totalorder %s9058_s22, %s12777_s9 }
  0x97   : > { %p9061_p3 = pnand %p9059_p1, %p9595_p8 }
  0x99   : > { %p9062_p13 = pneg %p9061_p3 }
  0x9b   : > { %p9067_p2 = pnand %p9065_p0, %p9062_p13 }
  0x9d   : > { %9070 = shalt.err (!%p9067_p2)
}
  0x9e   : > { %s9071_s28 = scalar_lea.vmem %s468_s3, 2048  ;;  %p9079_p10 = scmp.lt.s32.totalorder %s468_s3, %s468_s3 }
  0x9f   : > { %p9072_p5 = scmp.ne.s32.totalorder %s468_s3, %s9071_s28  ;;  %p9080_p11 = scmp.lt.s32.totalorder %s9071_s28, %s9071_s28 }
  0xa1   : > { %p9074_p7 = pnand %p9072_p5, %p9595_p8  ;;  %p9081_p12 = por %p9080_p11, %p9079_p10 }
  0xa3   : > { %p9075_p9 = pneg %p9074_p7 }
  0xa5   : > { %p9082_p4 = pnand %p9081_p12, %p9075_p9 }
  0xa7   : > { %9085 = shalt.err (!%p9082_p4)
}
  0xa8   : > { %s9450_s2 = smov 128   ;;  %s9451_s23 = smov 8  }
  0xa9   : > { %8510 = dma.hbm_to_vmem [thread:$0]  (!%p9581_p6), %s12777_s9, 2048, %s468_s3, [#allocation18], %s9450_s2, %s9450_s2, %s9451_s23  }
  0xaa   : > { %s9086_s20 = scalar_lea.hbm %s12714_s11, 16 }
  0xab   : > { %p9087_p1 = scmp.ne.s32.totalorder %s12714_s11, %s9086_s20  ;;  %p9093_p0 = scmp.lt.u32.totalorder %s9086_s20, %s12714_s11 }
  0xad   : > { %p9089_p3 = pnand %p9087_p1, %p9595_p8 }
  0xaf   : > { %p9090_p13 = pneg %p9089_p3 }
  0xb1   : > { %p9095_p2 = pnand %p9093_p0, %p9090_p13 }
  0xb3   : > { %9098 = shalt.err (!%p9095_p2)
}
  0xb4   : > { %s9099_s3 = scalar_lea.vmem %s9685_s14, 16  ;;  %s9106_s26 = scalar_lea.vmem %s9685_s14, 32 }
  0xb5   : > { %p9100_p5 = scmp.ne.s32.totalorder %s9685_s14, %s9099_s3  ;;  %p9107_p10 = scmp.lt.s32.totalorder %s9685_s14, %s9685_s14 }
  0xb6   : > { %p9108_p11 = scmp.lt.s32.totalorder %s9106_s26, %s9099_s3 }
  0xb7   : > { %p9102_p7 = pnand %p9100_p5, %p9595_p8 }
  0xb8   : > { %p9109_p12 = por %p9108_p11, %p9107_p10 }
  0xb9   : > { %p9103_p9 = pneg %p9102_p7 }
  0xbb   : > { %p9110_p4 = pnand %p9109_p12, %p9103_p9 }
  0xbd   : > { %9113 = shalt.err (!%p9110_p4)
}
  0xbe   : > { %8516 = dma.hbm_to_vmem [thread:$0]  (!%p9581_p6), %s12714_s11, 16, %s9685_s14, [#allocation21]  }
  0xbf   : > { %s9452_s22 = smov [#allocation10]   ;;  %s9453_s20 = smov [#allocation13]  }
  0xc0   : > { %s408_s24 = sshll.u32 %s9452_s22, 4  ;;  %s435_s27 = sshll.u32 %s9453_s20, 4  ;;  %s409_s24 = int_to_ptr.vmem [resolvable:$true] %s408_s24  ;;  %s9732_s27 = int_to_ptr.vmem [resolvable:$true] %s435_s27 }
  0xc1   : > { %s12778_s4 = sld [smem:[#allocation65_spill]] }
  0xc7   : > { %s9114_s3 = scalar_lea.hbm %s12778_s4, 2048 }
  0xc8   : > { %p9115_p1 = scmp.ne.s32.totalorder %s12778_s4, %s9114_s3  ;;  %p9121_p0 = scmp.lt.u32.totalorder %s9114_s3, %s12778_s4 }
  0xca   : > { %p9117_p3 = pnand %p9115_p1, %p9595_p8 }
  0xcc   : > { %p9118_p13 = pneg %p9117_p3 }
  0xce   : > { %p9123_p2 = pnand %p9121_p0, %p9118_p13 }
  0xd0   : > { %9126 = shalt.err (!%p9123_p2)
}
  0xd1   : > { %s9127_s18 = scalar_lea.vmem %s409_s24, 2048  ;;  %p9135_p10 = scmp.lt.s32.totalorder %s409_s24, %s409_s24 }
  0xd2   : > { %p9128_p5 = scmp.ne.s32.totalorder %s409_s24, %s9127_s18  ;;  %p9136_p11 = scmp.lt.s32.totalorder %s9127_s18, %s9127_s18 }
  0xd4   : > { %p9130_p7 = pnand %p9128_p5, %p9595_p8  ;;  %p9137_p12 = por %p9136_p11, %p9135_p10 }
  0xd6   : > { %p9131_p9 = pneg %p9130_p7 }
  0xd8   : > { %p9138_p4 = pnand %p9137_p12, %p9131_p9 }
  0xda   : > { %9141 = shalt.err (!%p9138_p4)
}
  0xdb   : > { %8495 = dma.hbm_to_vmem [thread:$0]  (!%p9581_p6), %s12778_s4, 2048, %s409_s24, [#allocation9], %s9450_s2, %s9450_s2, %s9451_s23  }
  0xdc   : > { %s12779_s6 = sld [smem:[#allocation67_spill]] }
  0xe2   : > { %s9142_s28 = scalar_lea.hbm %s12779_s6, 16 }
  0xe3   : > { %p9143_p1 = scmp.ne.s32.totalorder %s12779_s6, %s9142_s28  ;;  %p9149_p0 = scmp.lt.u32.totalorder %s9142_s28, %s12779_s6 }
  0xe5   : > { %p9145_p3 = pnand %p9143_p1, %p9595_p8 }
  0xe7   : > { %p9146_p13 = pneg %p9145_p3 }
  0xe9   : > { %p9151_p2 = pnand %p9149_p0, %p9146_p13 }
  0xeb   : > { %9154 = shalt.err (!%p9151_p2)
}
  0xec   : > { %s9155_s2 = scalar_lea.vmem %s9732_s27, 16  ;;  %s9162_s23 = scalar_lea.vmem %s9732_s27, 32 }
  0xed   : > { %p9156_p5 = scmp.ne.s32.totalorder %s9732_s27, %s9155_s2  ;;  %p9163_p10 = scmp.lt.s32.totalorder %s9732_s27, %s9732_s27 }
  0xee   : > { %p9164_p11 = scmp.lt.s32.totalorder %s9162_s23, %s9155_s2 }
  0xef   : > { %p9158_p7 = pnand %p9156_p5, %p9595_p8 }
  0xf0   : > { %p9165_p12 = por %p9164_p11, %p9163_p10 }
  0xf1   : > { %p9159_p9 = pneg %p9158_p7 }
  0xf3   : > { %p9166_p4 = pnand %p9165_p12, %p9159_p9 }
  0xf5   : > { %9169 = shalt.err (!%p9166_p4)
}
  0xf6   : > { %8501 = dma.hbm_to_vmem [thread:$0]  (!%p9581_p6), %s12779_s6, 16, %s9732_s27, [#allocation12]  }
  0xf7   : > { %s9454_s1 = smov [#allocation16]   ;;  %s9455_s20 = smov [#allocation19]  }
  0xf8   : > { %s457_s22 = sshll.u32 %s9454_s1, 4  ;;  %s480_s17 = sshll.u32 %s9455_s20, 4  ;;  %s458_s22 = int_to_ptr.vmem [resolvable:$true] %s457_s22  ;;  %s9779_s17 = int_to_ptr.vmem [resolvable:$true] %s480_s17 }
  0xf9   : > { %s12780_s8 = sld [smem:[#allocation69_spill]] }
  0xff   : > { %s9170_s26 = scalar_lea.hbm %s12780_s8, 16 }
 0x100   : > { %p9171_p1 = scmp.ne.s32.totalorder %s12780_s8, %s9170_s26  ;;  %p9177_p0 = scmp.lt.u32.totalorder %s9170_s26, %s12780_s8 }
 0x102   : > { %p9173_p3 = pnand %p9171_p1, %p9595_p8 }
 0x104   : > { %p9174_p13 = pneg %p9173_p3 }
 0x106   : > { %p9179_p2 = pnand %p9177_p0, %p9174_p13 }
 0x108   : > { %9182 = shalt.err (!%p9179_p2)
}
 0x109   : > { %s9183_s23 = scalar_lea.vmem %s458_s22, 16  ;;  %s9190_s24 = scalar_lea.vmem %s458_s22, 32 }
 0x10a   : > { %p9184_p5 = scmp.ne.s32.totalorder %s458_s22, %s9183_s23  ;;  %p9191_p10 = scmp.lt.s32.totalorder %s458_s22, %s458_s22 }
 0x10b   : > { %p9192_p11 = scmp.lt.s32.totalorder %s9190_s24, %s9183_s23 }
 0x10c   : > { %p9186_p7 = pnand %p9184_p5, %p9595_p8 }
 0x10d   : > { %p9193_p12 = por %p9192_p11, %p9191_p10 }
 0x10e   : > { %p9187_p9 = pneg %p9186_p7 }
 0x110   : > { %p9194_p4 = pnand %p9193_p12, %p9187_p9 }
 0x112   : > { %9197 = shalt.err (!%p9194_p4)
}
 0x113   : > { %8507 = dma.hbm_to_vmem [thread:$0]  (!%p9581_p6), %s12780_s8, 16, %s458_s22, [#allocation15]  }
 0x114   : > { %s12781_s10 = sld [smem:[#allocation71_spill]] }
 0x11a   : > { %s9198_s3 = scalar_lea.hbm %s12781_s10, 9216 }
 0x11b   : > { %p9199_p1 = scmp.ne.s32.totalorder %s12781_s10, %s9198_s3  ;;  %p9205_p0 = scmp.lt.u32.totalorder %s9198_s3, %s12781_s10 }
 0x11d   : > { %p9201_p3 = pnand %p9199_p1, %p9595_p8 }
 0x11f   : > { %p9202_p13 = pneg %p9201_p3 }
 0x121   : > { %p9207_p2 = pnand %p9205_p0, %p9202_p13 }
 0x123   : > { %9210 = shalt.err (!%p9207_p2)
}
 0x124   : > { %s9211_s22 = scalar_lea.vmem %s9779_s17, 9216  ;;  %p9219_p10 = scmp.lt.s32.totalorder %s9779_s17, %s9779_s17 }
 0x125   : > { %p9212_p5 = scmp.ne.s32.totalorder %s9779_s17, %s9211_s22  ;;  %p9220_p11 = scmp.lt.s32.totalorder %s9211_s22, %s9211_s22 }
 0x127   : > { %p9214_p7 = pnand %p9212_p5, %p9595_p8  ;;  %p9221_p12 = por %p9220_p11, %p9219_p10 }
 0x129   : > { %p9215_p9 = pneg %p9214_p7 }
 0x12b   : > { %p9222_p4 = pnand %p9221_p12, %p9215_p9 }
 0x12d   : > { %9225 = shalt.err (!%p9222_p4)
}
 0x12e   : > { %s12782_s27 = smov 4   ;;  %s12783_s23 = smov 64  }
 0x12f   : > { %8513 = dma.hbm_to_vmem [thread:$0]  (!%p9581_p6), %s12781_s10, 9216, %s9779_s17, [#allocation18], %s12783_s23, %s12783_s23, %s12782_s27  }
 0x130   : > { %s9456_s1 = smov [#allocation22]   ;;  %s9457_s28 = smov [#allocation23]  }
 0x131   : > { %s504_s20 = sshll.u32 %s9456_s1, 4  ;;  %s518_s3 = sshll.u32 %s9457_s28, 4  ;;  %s505_s20 = int_to_ptr.vmem [resolvable:$true] %s504_s20  ;;  %s9825_s3 = int_to_ptr.vmem [resolvable:$true] %s518_s3 }
 0x132   : > { %s9226_s14 = scalar_lea.hbm %s12715_s12, 1024 }
 0x133   : > { %p9227_p1 = scmp.ne.s32.totalorder %s12715_s12, %s9226_s14  ;;  %p9233_p0 = scmp.lt.u32.totalorder %s9226_s14, %s12715_s12 }
 0x135   : > { %p9229_p3 = pnand %p9227_p1, %p9595_p8 }
 0x137   : > { %p9230_p13 = pneg %p9229_p3 }
 0x139   : > { %p9235_p2 = pnand %p9233_p0, %p9230_p13 }
 0x13b   : > { %9238 = shalt.err (!%p9235_p2)
}
 0x13c   : > { %s9239_s18 = scalar_lea.vmem %s505_s20, 1024  ;;  %p9247_p10 = scmp.lt.s32.totalorder %s505_s20, %s505_s20 }
 0x13d   : > { %p9240_p5 = scmp.ne.s32.totalorder %s505_s20, %s9239_s18  ;;  %p9248_p11 = scmp.lt.s32.totalorder %s9239_s18, %s9239_s18 }
 0x13f   : > { %p9242_p7 = pnand %p9240_p5, %p9595_p8  ;;  %p9249_p12 = por %p9248_p11, %p9247_p10 }
 0x141   : > { %p9243_p9 = pneg %p9242_p7 }
 0x143   : > { %p9250_p4 = pnand %p9249_p12, %p9243_p9 }
 0x145   : > { %9253 = shalt.err (!%p9250_p4)
}
 0x146   : > { %8519 = dma.hbm_to_vmem [thread:$0]  (!%p9581_p6), %s12715_s12, 1024, %s505_s20, [#allocation21], %s12783_s23, %s12783_s23, %s12782_s27  }
 0x147   : > { %s9254_s14 = scalar_lea.hbm %s12716_s13, 16 }
 0x148   : > { %p9255_p1 = scmp.ne.s32.totalorder %s12716_s13, %s9254_s14  ;;  %p9261_p0 = scmp.lt.u32.totalorder %s9254_s14, %s12716_s13 }
 0x14a   : > { %p9257_p3 = pnand %p9255_p1, %p9595_p8 }
 0x14c   : > { %p9258_p13 = pneg %p9257_p3 }
 0x14e   : > { %p9263_p2 = pnand %p9261_p0, %p9258_p13 }
 0x150   : > { %9266 = shalt.err (!%p9263_p2)
}
 0x151   : > { %s9267_s20 = scalar_lea.vmem %s9825_s3, 16  ;;  %s9274_s18 = scalar_lea.vmem %s9825_s3, 32 }
 0x152   : > { %p9268_p5 = scmp.ne.s32.totalorder %s9825_s3, %s9267_s20  ;;  %p9275_p10 = scmp.lt.s32.totalorder %s9825_s3, %s9825_s3 }
 0x153   : > { %p9276_p11 = scmp.lt.s32.totalorder %s9274_s18, %s9267_s20 }
 0x154   : > { %p9270_p7 = pnand %p9268_p5, %p9595_p8 }
 0x155   : > { %p9277_p12 = por %p9276_p11, %p9275_p10 }
 0x156   : > { %p9271_p9 = pneg %p9270_p7 }
 0x158   : > { %p9278_p4 = pnand %p9277_p12, %p9271_p9 }
 0x15a   : > { %9281 = shalt.err (!%p9278_p4)
}
 0x15b   : > { %8522 = dma.hbm_to_vmem [thread:$0]  (!%p9581_p6), %s12716_s13, 16, %s9825_s3, [#allocation24]  }
 0x15c   : > { %s6164_s25 = sadd.s32 4294967294, %s9440_s16   ;;  %s9874_s21 = sadd.s32 1, %s9440_s16  }
 0x15d   : > { %s43_s26 = ssub.s32 %s9440_s16, %s9874_s21  ;;  %s46_s0 = sadd.s32 1, %s9436_s15 }
 0x15e   : > { %p44_p8 = scmp.eq.s32.totalorder %s43_s26, 0  ;;  %p53_p1 = scmp.ne.s32.totalorder %s9436_s15, %s9432_s30 }
 0x15f   : > { %p54_p3 = scmp.eq.s32.totalorder %s9440_s16, 0  ;;  %p59_p13 = scmp.ne.s32.totalorder %s9432_s30, %s9428_s29 }
 0x160   : > { %s9885_s14 = scalar_select %p44_p8, %s9436_s15, %s46_s0  }
 0x161   : > { %p9887_p0 = por %p54_p3, %p53_p1  ;;  %p12785_p2 = scmp.eq.s32.totalorder %s9563_s19, 0 }
 0x162   : > { %p361_p5 = scmp.eq.s32.totalorder %s9563_s19, 1  ;;  %p367_p7 = scmp.eq.s32.totalorder %s6164_s25, 1 }
 0x163   : > { %p9893_p6 = por %p12785_p2, %p59_p13  ;;  %p8546_p9 = scmp.lt.s32.totalorder %s9440_s16, 2 }
 0x164   : > { %s9900_s22 = sand.u32 1, %s9436_s15   ;;  %p9902_p10 = por %p361_p5, %p53_p1 }
 0x165   : > { %s12786_s3 = scalar_select %p9893_p6, 1, 0 }
 0x166   : > { %s12787_s24 = scalar_select %p9902_p10, 1, 0 }
 0x167   : > { %p9906_p11 = por %p367_p7, %p59_p13  ;;  %s6179_s20 = sshll.u32 %s9900_s22, 7 }
 0x168   : > { %s6407_s18 = sshll.u32 %s9440_s16, 11  ;;  %s12789_s26 = sld [smem:[#allocation61_spill]] }
 0x169   : > { %s12788_s17 = scalar_select %p9906_p11, 1, 0 }
 0x16a   : > { %s533_s25 = scalar_lea.vmem [#allocation2], %s6179_s20  ;;  %p9921_p12 = pnand %p8546_p9, %p9887_p0 }
 0x16b   : > { %s540_s4 = sshll.u32 %s533_s25, 4  ;;  %s530_s7 = scalar_lea.sflag [#allocation3], %s9900_s22  ;;  %s9917_s4 = int_to_ptr.vmem [resolvable:$true] %s540_s4 }
 0x16c   : > { %p9284_p8 = pneg %p9921_p12 }
 0x16e   : > { %s9915_s0 = scalar_lea.hbm %s12789_s26, %s6407_s18  ;;  %s9287_s2 = scalar_lea.hbm %s12789_s26, 4096 }
 0x16f   : > { %s9282_s1 = scalar_lea.hbm %s9915_s0, 2048  ;;  %p9288_p13 = scmp.lt.u32.totalorder %s9915_s0, %s12789_s26 }
 0x170   : > { %p9283_p4 = scmp.ne.s32.totalorder %s9915_s0, %s9282_s1  ;;  %p9289_p0 = scmp.lt.u32.totalorder %s9287_s2, %s9282_s1 }
 0x171   : > { %p9291_p5 = scmp.lt.u32.totalorder %s9282_s1, %s9915_s0 }
 0x172   : > { %p9285_p1 = pnand %p9284_p8, %p9283_p4  ;;  %p9290_p2 = por %p9289_p0, %p9288_p13 }
 0x174   : > { %p9286_p3 = pneg %p9285_p1  ;;  %p9292_p7 = por %p9291_p5, %p9290_p2 }
 0x176   : > { %p9293_p9 = pnand %p9292_p7, %p9286_p3 }
 0x178   : > { %9296 = shalt.err (!%p9293_p9)
}
 0x179   : > { %s9297_s6 = scalar_lea.vmem %s9917_s4, 2048  ;;  %s9458_s20 = smov [#allocation2]  }
 0x17a   : > { %p9298_p4 = scmp.ne.s32.totalorder %s9917_s4, %s9297_s6  ;;  %s9302_s18 = sshll.u32 %s9458_s20, 4  ;;  %s9303_s18 = int_to_ptr.vmem [resolvable:$false] %s9302_s18 }
 0x17b   : > { %s9304_s28 = scalar_lea.vmem %s9303_s18, 4096  ;;  %p9305_p10 = scmp.lt.s32.totalorder %s9917_s4, %s9303_s18 }
 0x17c   : > { %p9300_p1 = pnand %p9298_p4, %p9284_p8  ;;  %p9306_p13 = scmp.lt.s32.totalorder %s9304_s28, %s9297_s6 }
 0x17e   : > { %p9301_p11 = pneg %p9300_p1  ;;  %p9307_p0 = por %p9306_p13, %p9305_p10 }
 0x180   : > { %p9308_p2 = pnand %p9307_p0, %p9301_p11 }
 0x182   : > { %9311 = shalt.err (!%p9308_p2)
}
 0x183   : > { %8526 = dma.hbm_to_vmem [thread:$0]  (!%p9921_p12), %s9915_s0, 2048, %s9917_s4, %s530_s7, %s12783_s23, %s12783_s23, %s12782_s27  }
 0x184   : > { %s6182_s1 = sshll.u32 %s9440_s16, 4  ;;  %s553_s2 = scalar_lea.vmem [#allocation5], %s9900_s22 }
 0x185   : > { %s560_s6 = sshll.u32 %s553_s2, 4  ;;  %s12791_s18 = sld [smem:[#allocation62_spill]]  ;;  %s561_s6 = int_to_ptr.vmem [resolvable:$true] %s560_s6 }
 0x186   : > { %s12792_s8 = sand.u32 1, %s9440_s16  }
 0x187   : > { %s551_s9 = scalar_lea.sflag [#allocation6], %s12792_s8 }
 0x18b   : > { %s9962_s28 = scalar_lea.hbm %s12791_s18, %s6182_s1  ;;  %s9317_s27 = scalar_lea.hbm %s12791_s18, 32 }
 0x18c   : > { %s9312_s10 = scalar_lea.hbm %s9962_s28, 16  ;;  %p9318_p5 = scmp.lt.u32.totalorder %s9962_s28, %s12791_s18 }
 0x18d   : > { %p9313_p10 = scmp.ne.s32.totalorder %s9962_s28, %s9312_s10  ;;  %p9319_p7 = scmp.lt.u32.totalorder %s9317_s27, %s9312_s10 }
 0x18e   : > { %p9321_p4 = scmp.lt.u32.totalorder %s9312_s10, %s9962_s28 }
 0x18f   : > { %p9315_p11 = pnand %p9313_p10, %p9284_p8  ;;  %p9320_p9 = por %p9319_p7, %p9318_p5 }
 0x191   : > { %p9316_p3 = pneg %p9315_p11  ;;  %p9322_p1 = por %p9321_p4, %p9320_p9 }
 0x193   : > { %p9323_p13 = pnand %p9322_p1, %p9316_p3 }
 0x195   : > { %9326 = shalt.err (!%p9323_p13)
}
 0x196   : > { %s9327_s8 = scalar_lea.vmem %s561_s6, 16  ;;  %s9459_s0 = smov [#allocation5]  }
 0x197   : > { %p9328_p0 = scmp.ne.s32.totalorder %s561_s6, %s9327_s8  ;;  %s9332_s1 = sshll.u32 %s9459_s0, 4  ;;  %s9333_s1 = int_to_ptr.vmem [resolvable:$false] %s9332_s1 }
 0x198   : > { %s9334_s2 = scalar_lea.vmem %s9333_s1, 32  ;;  %p9335_p11 = scmp.lt.s32.totalorder %s561_s6, %s9333_s1 }
 0x199   : > { %p9330_p2 = pnand %p9328_p0, %p9284_p8  ;;  %p9336_p6 = scmp.lt.s32.totalorder %s9334_s2, %s9327_s8 }
 0x19b   : > { %p9331_p10 = pneg %p9330_p2  ;;  %p9337_p5 = por %p9336_p6, %p9335_p11 }
 0x19d   : > { %p9338_p7 = pnand %p9337_p5, %p9331_p10 }
 0x19f   : > { %9341 = shalt.err (!%p9338_p7)
}
 0x1a0   : > { %8529 = dma.hbm_to_vmem [thread:$0]  (!%p9921_p12), %s9962_s28, 16, %s561_s6, %s551_s9  }
 0x1a1   : > { %s12793_s10 = sld [smem:[#allocation36_spill]] }
 0x1a7   : > { %p12794_p3 = scmp.ne.s32.totalorder %s12793_s10, 0 }
 0x1a9   : > { %569 = sbr.rel (%p12794_p3) target bundleno = 2298 (0x8fa), region = 76 }
 0x1b0   : > { %s9988_s25 = sand.u32 1, %s9432_s30   ;;  %p12795_p6 = scmp.ne.s32.totalorder %s12786_s3, 0 }
 0x1b1   : > { %s6184_s20 = sshll.u32 %s9988_s25, 7  ;;  %s572_s4 = scalar_lea.sflag [#allocation3], %s9988_s25 }
 0x1b2   : > { %s9994_s7 = scalar_lea.vmem [#allocation2], %s6184_s20 }
 0x1b3   : > { %9387 = dma.done.wait (%p12795_p6), %s572_s4, 2048  }
 0x1b4   : > { %9389 = vsyncadd (%p12795_p6), %s572_s4, 4294965248  ;;  %s580_s5 = sand.u32 1, %s9563_s19   ;;  %s583_s6 = scalar_lea.vmem [#allocation5], %s9988_s25 }
 0x1b5   : > { %s581_s9 = scalar_lea.sflag [#allocation6], %s580_s5 }
 0x1b6   : > { %9391 = dma.done.wait (%p12795_p6), %s581_s9, 16  }
 0x1b7   : > { %9393 = vsyncadd (%p12795_p6), %s581_s9, 4294967280  ;;  %p12796_p12 = scmp.eq.s32.totalorder %s9563_s19, 0 }
 0x1b9   : > { %9395 = dma.done.wait (%p12796_p12), [#allocation6], 16   ;;  %p12797_p8 = pmov %p12796_p12 }
 0x1bb   : > { %9397 = vsyncadd (%p12797_p8), [#allocation6], 4294967280  ;;  %p12798_p9 = pmov %p12797_p8 }
 0x1bc   : > { %p12799_p4 = pmov %p12797_p8 }
 0x1bd   : > { %9399 = dma.done.wait (%p12798_p9), [#allocation9], 2064  }
 0x1be   : > { %9401 = vsyncadd (%p12799_p4), [#allocation9], 4294965232  ;;  %p12800_p1 = pmov %p12799_p4 }
 0x1c0   : > { %9403 = dma.done.wait (%p12800_p1), [#allocation12], 9232   ;;  %p12801_p13 = pmov %p12800_p1 }
 0x1c1   : > { %p12802_p0 = pmov %p12800_p1 }
 0x1c2   : > { %9405 = vsyncadd (%p12801_p13), [#allocation12], 4294958064 }
 0x1c3   : > { %9407 = dma.done.wait (%p12802_p0), [#allocation15], 32   ;;  %p12803_p2 = pmov %p12802_p0 }
 0x1c4   : > { %p12804_p10 = pmov %p12802_p0 }
 0x1c5   : > { %9409 = vsyncadd (%p12803_p2), [#allocation15], 4294967264 }
 0x1c6   : > { %9411 = dma.done.wait (%p12804_p10), [#allocation18], 11264   ;;  %p12805_p11 = pmov %p12802_p0 }
 0x1c7   : > { %p12806_p5 = pmov %p12802_p0 }
 0x1c8   : > { %9413 = vsyncadd (%p12805_p11), [#allocation18], 4294956032 }
 0x1c9   : > { %9415 = dma.done.wait (%p12806_p5), [#allocation21], 1040   ;;  %p12807_p7 = pmov %p12802_p0 }
 0x1ca   : > { %p12808_p3 = pmov %p12802_p0 }
 0x1cb   : > { %9417 = vsyncadd (%p12807_p7), [#allocation21], 4294966256 }
 0x1cc   : > { %9419 = dma.done.wait (%p12808_p3), [#allocation24], 16   ;;  %p12809_p6 = pmov %p12802_p0 }
 0x1cd   : > { %v12735_v0 = vmov 0.0|0.0   ;;  %vm9461_vm0 = vmmov 0   ;;  %v12730_v1 = vmov 0.0   ;;  %v851_v2 = vld [vmem:[#allocation10] sm:$0xff]  ;;  %v852_v3 = vld [vmem:[#allocation10 + $0x8] sm:$0xff]  ;;  %v853_v4 = vld [vmem:[#allocation10 + $0x10] sm:$0xff] }
 0x1ce   : > { %9421 = vsyncadd (%p12809_p6), [#allocation24], 4294967280  ;;  %7920 = vmatprep.subr.bf16.mxu0 %v12735_v0  ;;  %7944 = vmatprep.subr.bf16.mxu1 %v12735_v0  ;;  %v7921_v5 = vpack.c.bf16 %v852_v3, %v851_v2  ;;  %v854_v6 = vld [vmem:[#allocation10 + $0x18] sm:$0xff]  ;;  %v855_v8 = vld [vmem:[#allocation10 + $0x20] sm:$0xff]  ;;  %vm1362_vm1 = vcmask 1040384   ;;  %vm1429_vm4 = vcmask 1047552  }
 0x1cf   : > { %7476 = vmatprep.mubr.msk.f32.mxu0 %vm9461_vm0, %v12730_v1  ;;  %7511 = vmatprep.mubr.msk.f32.mxu1 %vm9461_vm0, %v12730_v1  ;;  %v7924_v7 = vpack.c.bf16 %v854_v6, %v853_v4  ;;  %v856_v9 = vld [vmem:[#allocation10 + $0x28] sm:$0xff]  ;;  %v681_v11 = vld [vmem:[%s9994_s7] sm:$0xff]   ;;  %v857_v12 = vld [vmem:[#allocation10 + $0x30] sm:$0xff]  ;;  %vm1363_vm2 = vsmask.f32 256  ;;  %s12558_s3 = scalar_lea.vmem [#allocation25], %s6184_s20 }
 0x1d0   : > { %7922 = vmatpush3.bf16.msra.mxu0 %v7921_v5  ;;  %7946 = vmatpush3.bf16.msra.mxu1 %v7921_v5  ;;  %v7927_v10 = vpack.c.bf16 %v856_v9, %v855_v8  ;;  %v858_v13 = vld [vmem:[#allocation10 + $0x38] sm:$0xff]  ;;  %v683_v14 = vld [vmem:[%s9994_s7 + $0x8] sm:$0xff]   ;;  %v10046_v17 = vunpack.c.l.bf16 %v681_v11  ;;  %v10048_v18 = vunpack.c.h.bf16 %v681_v11  ;;  %v685_v20 = vld [vmem:[%s9994_s7 + $0x10] sm:$0xff]   ;;  %vm1430_vm5 = vsmask.f32 7424  ;;  %s6440_s28 = sshll.u32 %s9563_s19, 11 }
 0x1d1   : > { %7923 = vmatprep.subr.bf16.mxu0 %v12735_v0  ;;  %7947 = vmatprep.subr.bf16.mxu1 %v12735_v0  ;;  %v859_v15 = vld [vmem:[#allocation10 + $0x40] sm:$0xff]  ;;  %v860_v16 = vld [vmem:[#allocation10 + $0x48] sm:$0xff]  ;;  %v7930_v19 = vpack.c.bf16 %v858_v13, %v857_v12  ;;  %v10053_v21 = vunpack.c.l.bf16 %v683_v14  ;;  %v861_v22 = vld [vmem:[#allocation10 + $0x50] sm:$0xff]  ;;  %v10055_v24 = vunpack.c.h.bf16 %v683_v14  ;;  %v10062_v28 = vunpack.c.l.bf16 %v685_v20  ;;  %s5957_s27 = sshll.u32 %s12558_s3, 4  ;;  %s12886_s8 = sld [smem:[#allocation72_spill]]  ;;  %s12657_s27 = int_to_ptr.vmem [resolvable:$true] %s5957_s27 }
 0x1d2   : > { %v862_v23 = vld [vmem:[#allocation10 + $0x58] sm:$0xff]  ;;  %v745_v25 = vadd.f32 %v10048_v18, %v10046_v17  ;;  %v7933_v26 = vpack.c.bf16 %v860_v16, %v859_v15  ;;  %v863_v30 = vld [vmem:[#allocation10 + $0x60] sm:$0xff]  ;;  %v864_v31 = vld [vmem:[#allocation10 + $0x68] sm:$0xff]  ;;  %v10065_v32 = vunpack.c.h.bf16 %v685_v20  ;;  %v782_v38 = vmul.f32 %v10046_v17, %v10046_v17  ;;  %s5944_s1 = scalar_lea.sflag [#allocation4], %s9988_s25  ;;  %s9342_s19 = scalar_lea.vmem %s12657_s27, 2048 }
 0x1d3   : > { %v687_v27 = vld [vmem:[%s9994_s7 + $0x18] sm:$0xff]   ;;  %v7936_v34 = vpack.c.bf16 %v862_v23, %v861_v22  ;;  %v689_v35 = vld [vmem:[%s9994_s7 + $0x20] sm:$0xff]   ;;  %v783_v39 = vmul.f32 %v10048_v18, %v10048_v18  ;;  %v7939_v44 = vpack.c.bf16 %v864_v31, %v863_v30  ;;  %v691_v45 = vld [vmem:[%s9994_s7 + $0x28] sm:$0xff]   ;;  %v784_v46 = vmul.f32 %v10053_v21, %v10053_v21  ;;  %p9343_p12 = scmp.ne.s32.totalorder %s12657_s27, %s9342_s19  ;;  %p12887_p8 = scmp.ne.s32.totalorder %s12787_s24, 0 }
 0x1d4   : > { %7925 = vmatpush3.bf16.msra.mxu0 %v7924_v7  ;;  %7949 = vmatpush3.bf16.msra.mxu1 %v7924_v7  ;;  %v746_v29 = vadd.f32 %v745_v25, %v10053_v21  ;;  %v10071_v36 = vunpack.c.l.bf16 %v687_v27  ;;  %v865_v40 = vld [vmem:[#allocation10 + $0x70] sm:$0xff]  ;;  %v866_v41 = vld [vmem:[#allocation10 + $0x78] sm:$0xff]  ;;  %v10078_v42 = vunpack.c.h.bf16 %v687_v27  ;;  %v10086_v47 = vunpack.c.l.bf16 %v689_v35  ;;  %v699_v22 = vld [vmem:[%s9994_s7 + $0x48] sm:$0xff]   ;;  %s9464_s2 = smov [#allocation25]  }
 0x1d5   : > { %7926 = vmatprep.subr.bf16.mxu0 %v12735_v0  ;;  %7950 = vmatprep.subr.bf16.mxu1 %v12735_v0  ;;  %v785_v49 = vmul.f32 %v10055_v24, %v10055_v24  ;;  %v814_v50 = vadd.f32 %v783_v39, %v782_v38  ;;  %v10091_v51 = vunpack.c.h.bf16 %v689_v35  ;;  %v7942_v53 = vpack.c.bf16 %v866_v41, %v865_v40  ;;  %v693_v54 = vld [vmem:[%s9994_s7 + $0x30] sm:$0xff]   ;;  %v695_v63 = vld [vmem:[%s9994_s7 + $0x38] sm:$0xff]   ;;  %vm10232_vm3 = vmand %vm1362_vm1, %vm1363_vm2  ;;  %p9344_p9 = pnand %p9343_p12, %p12887_p8  ;;  %s9346_s10 = sshll.u32 %s9464_s2, 4  ;;  %s9347_s10 = int_to_ptr.vmem [resolvable:$false] %s9346_s10 }
 0x1d6   : > { %v747_v33 = vadd.f32 %v746_v29, %v10055_v24  ;;  %v786_v55 = vmul.f32 %v10062_v28, %v10062_v28  ;;  %v10099_v57 = vunpack.c.l.bf16 %v691_v45  ;;  %v787_v59 = vmul.f32 %v10065_v32, %v10065_v32  ;;  %vm10760_vm6 = vmand %vm1429_vm4, %vm1430_vm5  ;;  %v8664_v1 = vld [vmem:[#allocation11 + $0x1c8] sm:$0xff]   ;;  %s9348_s20 = scalar_lea.vmem %s9347_s10, 4096  ;;  %p9349_p1 = scmp.lt.s32.totalorder %s12657_s27, %s9347_s10 }
 0x1d7   : > { %v815_v56 = vadd.f32 %v814_v50, %v784_v46  ;;  %v10104_v61 = vunpack.c.h.bf16 %v691_v45  ;;  %v788_v2 = vmul.f32 %v10071_v36, %v10071_v36  ;;  %v10110_v4 = vunpack.c.l.bf16 %v693_v54  ;;  %v703_v45 = vld [vmem:[%s9994_s7 + $0x58] sm:$0xff]   ;;  %s12655_s0 = scalar_lea.hbm %s12886_s8, %s6440_s28  ;;  %p9345_p4 = pneg %p9344_p9 }
 0x1d8   : > { %7928 = vmatpush3.bf16.msra.mxu0 %v7927_v10  ;;  %7952 = vmatpush3.bf16.msra.mxu1 %v7927_v10  ;;  %v748_v37 = vadd.f32 %v747_v33, %v10062_v28  ;;  %v789_v6 = vmul.f32 %v10078_v42, %v10078_v42  ;;  %v10115_v8 = vunpack.c.h.bf16 %v693_v54  ;;  %v697_v10 = vld [vmem:[%s9994_s7 + $0x40] sm:$0xff]   ;;  %v790_v11 = vmul.f32 %v10086_v47, %v10086_v47  ;;  %p9350_p13 = scmp.lt.s32.totalorder %s9348_s20, %s9342_s19 }
 0x1d9   : > { %7929 = vmatprep.subr.bf16.mxu0 %v12735_v0  ;;  %7953 = vmatprep.subr.bf16.mxu1 %v12735_v0  ;;  %v816_v60 = vadd.f32 %v815_v56, %v785_v49  ;;  %v10121_v13 = vunpack.c.l.bf16 %v695_v63  ;;  %v791_v15 = vmul.f32 %v10091_v51, %v10091_v51  ;;  %v792_v23 = vmul.f32 %v10099_v57, %v10099_v57  ;;  %v705_v56 = vld [vmem:[%s9994_s7 + $0x60] sm:$0xff]  }
 0x1da   : > { %v749_v43 = vadd.f32 %v748_v37, %v10065_v32  ;;  %v793_v29 = vmul.f32 %v10104_v61, %v10104_v61  ;;  %v10137_v31 = vunpack.c.h.bf16 %v697_v10  ;;  %v794_v35 = vmul.f32 %v10110_v4, %v10110_v4  ;;  %p9351_p0 = por %p9350_p13, %p9349_p1 }
 0x1db   : > { %v817_v3 = vadd.f32 %v816_v60, %v786_v55  ;;  %v10143_v38 = vunpack.c.l.bf16 %v699_v22  ;;  %v795_v40 = vmul.f32 %v10115_v8, %v10115_v8  ;;  %v796_v46 = vmul.f32 %v10121_v13, %v10121_v13 }
 0x1dc   : > { %7931 = vmatpush3.bf16.msra.mxu0 %v7930_v19  ;;  %7955 = vmatpush3.bf16.msra.mxu1 %v7930_v19  ;;  %v750_v48 = vadd.f32 %v749_v43, %v10071_v36  ;;  %v10126_v19 = vunpack.c.h.bf16 %v695_v63  ;;  %v10148_v43 = vunpack.c.h.bf16 %v699_v22  ;;  %v10165_v60 = vunpack.c.l.bf16 %v703_v45  ;;  %p9352_p2 = pnand %p9351_p0, %p9345_p4 }
 0x1dd   : > { %7932 = vmatprep.subr.bf16.mxu0 %v12735_v0  ;;  %7956 = vmatprep.subr.bf16.mxu1 %v12735_v0  ;;  %v818_v7 = vadd.f32 %v817_v3, %v787_v59  ;;  %v799_v63 = vmul.f32 %v10137_v31, %v10137_v31  ;;  %v10170_v3 = vunpack.c.h.bf16 %v703_v45 }
 0x1de   : > { %v751_v52 = vadd.f32 %v750_v48, %v10078_v42 }
 0x1df   : > { %v819_v12 = vadd.f32 %v818_v7, %v788_v2  ;;  %v800_v7 = vmul.f32 %v10143_v38, %v10143_v38 }
 0x1e0   : > { %7934 = vmatpush3.bf16.msra.mxu0 %v7933_v26  ;;  %7958 = vmatpush3.bf16.msra.mxu1 %v7933_v26  ;;  %v752_v58 = vadd.f32 %v751_v52, %v10086_v47  ;;  %v10132_v26 = vunpack.c.l.bf16 %v697_v10  ;;  %v797_v52 = vmul.f32 %v10126_v19, %v10126_v19  ;;  %v10176_v10 = vunpack.c.l.bf16 %v705_v56 }
 0x1e1   : > { %7935 = vmatprep.subr.bf16.mxu0 %v12735_v0  ;;  %7959 = vmatprep.subr.bf16.mxu1 %v12735_v0  ;;  %v820_v16 = vadd.f32 %v819_v12, %v789_v6  ;;  %v707_v6 = vld [vmem:[%s9994_s7 + $0x68] sm:$0xff]   ;;  %v801_v12 = vmul.f32 %v10148_v43, %v10148_v43 }
 0x1e2   : > { %v753_v62 = vadd.f32 %v752_v58, %v10091_v51  ;;  %v798_v58 = vmul.f32 %v10132_v26, %v10132_v26 }
 0x1e3   : > { %v821_v25 = vadd.f32 %v820_v16, %v790_v11 }
 0x1e4   : > { %7937 = vmatpush3.bf16.msra.mxu0 %v7936_v34  ;;  %7961 = vmatpush3.bf16.msra.mxu1 %v7936_v34  ;;  %v754_v5 = vadd.f32 %v753_v62, %v10099_v57  ;;  %v701_v34 = vld [vmem:[%s9994_s7 + $0x50] sm:$0xff]  }
 0x1e5   : > { %7938 = vmatprep.subr.bf16.mxu0 %v12735_v0  ;;  %7962 = vmatprep.subr.bf16.mxu1 %v12735_v0  ;;  %v822_v30 = vadd.f32 %v821_v25, %v791_v15  ;;  %v10154_v49 = vunpack.c.l.bf16 %v701_v34  ;;  %v10159_v54 = vunpack.c.h.bf16 %v701_v34  ;;  %v10181_v15 = vunpack.c.h.bf16 %v705_v56 }
 0x1e6   : > { %v755_v9 = vadd.f32 %v754_v5, %v10104_v61  ;;  %v10187_v25 = vunpack.c.l.bf16 %v707_v6 }
 0x1e7   : > { %v823_v37 = vadd.f32 %v822_v30, %v792_v23  ;;  %v802_v22 = vmul.f32 %v10154_v49, %v10154_v49  ;;  %v807_v56 = vmul.f32 %v10181_v15, %v10181_v15 }
 0x1e8   : > { %7940 = vmatpush3.bf16.msra.mxu0 %v7939_v44  ;;  %7964 = vmatpush3.bf16.msra.mxu1 %v7939_v44  ;;  %v756_v14 = vadd.f32 %v755_v9, %v10110_v4 }
 0x1e9   : > { %7941 = vmatprep.subr.bf16.mxu0 %v12735_v0  ;;  %7965 = vmatprep.subr.bf16.mxu1 %v12735_v0  ;;  %v824_v41 = vadd.f32 %v823_v37, %v793_v29  ;;  %v803_v29 = vmul.f32 %v10159_v54, %v10159_v54  ;;  %v804_v37 = vmul.f32 %v10165_v60, %v10165_v60 }
 0x1ea   : > { %v757_v20 = vadd.f32 %v756_v14, %v10115_v8 }
 0x1eb   : > { %v825_v48 = vadd.f32 %v824_v41, %v794_v35  ;;  %v711_v35 = vld [vmem:[%s9994_s7 + $0x78] sm:$0xff]  }
 0x1ec   : > { %7943 = vmatpush3.bf16.msra.mxu0 %v7942_v53  ;;  %7967 = vmatpush3.bf16.msra.mxu1 %v7942_v53  ;;  %v758_v27 = vadd.f32 %v757_v20, %v10121_v13  ;;  %v709_v20 = vld [vmem:[%s9994_s7 + $0x70] sm:$0xff]  }
 0x1ed   : > { %v826_v53 = vadd.f32 %v825_v48, %v795_v40  ;;  %v10198_v40 = vunpack.c.l.bf16 %v709_v20 }
 0x1ee   : > { %v759_v33 = vadd.f32 %v758_v27, %v10126_v19 }
 0x1ef   : > { %v827_v59 = vadd.f32 %v826_v53, %v796_v46  ;;  %v10203_v46 = vunpack.c.h.bf16 %v709_v20  ;;  %v10208_v53 = vunpack.c.l.bf16 %v711_v35 }
 0x1f0   : > { %v760_v39 = vadd.f32 %v759_v33, %v10132_v26  ;;  %v10192_v33 = vunpack.c.h.bf16 %v707_v6 }
 0x1f1   : > { %v828_v2 = vadd.f32 %v827_v59, %v797_v52  ;;  %v10213_v59 = vunpack.c.h.bf16 %v711_v35 }
 0x1f2   : > { %v761_v44 = vadd.f32 %v760_v39, %v10137_v31  ;;  %v809_v6 = vmul.f32 %v10192_v33, %v10192_v33 }
 0x1f3   : > { %v829_v9 = vadd.f32 %v828_v2, %v798_v58 }
 0x1f4   : > { %v762_v50 = vadd.f32 %v761_v44, %v10143_v38  ;;  %v805_v44 = vmul.f32 %v10170_v3, %v10170_v3 }
 0x1f5   : > { %v830_v14 = vadd.f32 %v829_v9, %v799_v63  ;;  %v808_v63 = vmul.f32 %v10187_v25, %v10187_v25 }
 0x1f6   : > { %v763_v55 = vadd.f32 %v762_v50, %v10148_v43  ;;  %v806_v50 = vmul.f32 %v10176_v10, %v10176_v10 }
 0x1f7   : > { %v831_v23 = vadd.f32 %v830_v14, %v800_v7 }
 0x1f8   : > { %v764_v62 = vadd.f32 %v763_v55, %v10154_v49 }
 0x1f9   : > { %v832_v30 = vadd.f32 %v831_v23, %v801_v12  ;;  %v812_v23 = vmul.f32 %v10208_v53, %v10208_v53 }
 0x1fa   : > { %v765_v5 = vadd.f32 %v764_v62, %v10159_v54 }
 0x1fb   : > { %v833_v39 = vadd.f32 %v832_v30, %v802_v22  ;;  %v813_v30 = vmul.f32 %v10213_v59, %v10213_v59 }
 0x1fc   : > { %v766_v11 = vadd.f32 %v765_v5, %v10165_v60 }
 0x1fd   : > { %v834_v45 = vadd.f32 %v833_v39, %v803_v29 }
 0x1fe   : > { %v767_v16 = vadd.f32 %v766_v11, %v10170_v3  ;;  %v810_v11 = vmul.f32 %v10198_v40, %v10198_v40 }
 0x1ff   : > { %v835_v52 = vadd.f32 %v834_v45, %v804_v37 }
 0x200   : > { %v768_v27 = vadd.f32 %v767_v16, %v10176_v10  ;;  %v811_v16 = vmul.f32 %v10203_v46, %v10203_v46 }
 0x201   : > { %v836_v58 = vadd.f32 %v835_v52, %v805_v44 }
 0x202   : > { %v769_v34 = vadd.f32 %v768_v27, %v10181_v15 }
 0x203   : > { %v837_v2 = vadd.f32 %v836_v58, %v806_v50  ;;  %v8614_v58 = vld [vmem:[#allocation11 + $0x40] sm:$0xff]  }
 0x204   : > { %v770_v41 = vadd.f32 %v769_v34, %v10187_v25  ;;  %6706 = vmatprep.subr.bf16.mxu1 %v8614_v58  ;;  %v8642_v58 = vld [vmem:[#allocation11 + $0x130] sm:$0xff]  }
 0x205   : > { %v838_v7 = vadd.f32 %v837_v2, %v807_v56  ;;  %v8617_v2 = vld [vmem:[#allocation11 + $0x8] sm:$0xff]  }
 0x206   : > { %v771_v48 = vadd.f32 %v770_v41, %v10192_v33 }
 0x207   : > { %v839_v12 = vadd.f32 %v838_v7, %v808_v63  ;;  %v8616_v63 = vld [vmem:[#allocation11 + $0x48] sm:$0xff]   ;;  %v8619_v7 = vld [vmem:[#allocation11 + $0xc0] sm:$0xff]  }
 0x208   : > { %v772_v55 = vadd.f32 %v771_v48, %v10198_v40 }
 0x209   : > { %v840_v20 = vadd.f32 %v839_v12, %v809_v6  ;;  %v8620_v6 = vld [vmem:[#allocation11 + $0x50] sm:$0xff]   ;;  %v8623_v12 = vld [vmem:[#allocation11 + $0xc8] sm:$0xff]  }
 0x20a   : > { %v773_v62 = vadd.f32 %v772_v55, %v10203_v46 }
 0x20b   : > { %v841_v27 = vadd.f32 %v840_v20, %v810_v11  ;;  %v8622_v11 = vld [vmem:[#allocation11 + $0x108] sm:$0xff]   ;;  %v8626_v20 = vld [vmem:[#allocation11 + $0x110] sm:$0xff]  }
 0x20c   : > { %v774_v5 = vadd.f32 %v773_v62, %v10208_v53  ;;  %v8615_v62 = vld [vmem:[#allocation11] sm:$0xff]  }
 0x20d   : > { %v842_v34 = vadd.f32 %v841_v27, %v811_v16  ;;  %v8625_v16 = vld [vmem:[#allocation11 + $0x18] sm:$0xff]   ;;  %v8627_v27 = vld [vmem:[#allocation11 + $0xd0] sm:$0xff]  }
 0x20e   : > { %v775_v9 = vadd.f32 %v774_v5, %v10213_v59  ;;  %v8618_v5 = vld [vmem:[#allocation11 + $0x100] sm:$0xff]  }
 0x20f   : > { %v843_v37 = vadd.f32 %v842_v34, %v812_v23  ;;  %6570 = vmatprep.subr.bf16.mxu0 %v8618_v5  ;;  %v8628_v23 = vld [vmem:[#allocation11 + $0x60] sm:$0xff]   ;;  %v8632_v34 = vld [vmem:[#allocation11 + $0x68] sm:$0xff]   ;;  %v8644_v5 = vld [vmem:[#allocation11 + $0x138] sm:$0xff]  }
 0x210   : > { %v776_v14 = vrot.slane %v775_v9, 4 }
 0x211   : > { %v844_v41 = vadd.f32 %v843_v37, %v813_v30  ;;  %v8630_v30 = vld [vmem:[#allocation11 + $0x118] sm:$0xff]   ;;  %v8633_v37 = vld [vmem:[#allocation11 + $0x28] sm:$0xff]  }
 0x212   : > { %v777_v22 = vadd.f32 %v776_v14, %v775_v9  ;;  %v8621_v9 = vld [vmem:[#allocation11 + $0x10] sm:$0xff]   ;;  %v8624_v14 = vld [vmem:[#allocation11 + $0x58] sm:$0xff]  }
 0x213   : > { %v845_v45 = vrot.slane %v844_v41, 4 }
 0x214   : > { %v778_v29 = vrot.slane %v777_v22, 2 }
 0x215   : > { %v846_v48 = vadd.f32 %v845_v45, %v844_v41  ;;  %v8636_v41 = vld [vmem:[#allocation11 + $0x70] sm:$0xff]  }
 0x216   : > { %v779_v35 = vadd.f32 %v778_v29, %v777_v22  ;;  %v12732_v22 = vmov 0   ;;  %v8629_v29 = vld [vmem:[#allocation11 + $0x20] sm:$0xff]   ;;  %v8637_v45 = vld [vmem:[#allocation11 + $0x30] sm:$0xff]  }
 0x217   : > { %v847_v50 = vrot.slane %v846_v48, 2 }
 0x218   : > { %v780_v39 = vrot.slane %v779_v35, 1 }
 0x219   : > { %v848_v52 = vadd.f32 %v847_v50, %v846_v48  ;;  %v8638_v48 = vld [vmem:[#allocation11 + $0x128] sm:$0xff]   ;;  %v8640_v50 = vld [vmem:[#allocation11 + $0x78] sm:$0xff]  }
 0x21a   : > { %v781_v44 = vadd.f32 %v780_v39, %v779_v35  ;;  %v8631_v35 = vld [vmem:[#allocation11 + $0xd8] sm:$0xff]   ;;  %v8634_v39 = vld [vmem:[#allocation11 + $0x120] sm:$0xff]  }
 0x21b   : > { %v849_v55 = vrot.slane %v848_v52, 1 }
 0x21c   : > { %7477 = vmatmul.mubr.f32.vlgmr.msra.gmra.mrb[0].mxu0 %v781_v44  ;;  %v8635_v44 = vld [vmem:[#allocation11 + $0xe0] sm:$0xff]  }
 0x21d   : > { %v850_v56 = vadd.f32 %v849_v55, %v848_v52  ;;  %6571 = vmatpush3.bf16.msra.mxu0 %v8619_v7  ;;  %v8639_v52 = vld [vmem:[#allocation11 + $0xe8] sm:$0xff]   ;;  %v8641_v55 = vld [vmem:[#allocation11 + $0x38] sm:$0xff]   ;;  %v10241_v7 = vld [vmem:[#allocation11 + $0x140] sm:$0xff]  }
 0x21e   : > { %6572 = vmatprep.subr.bf16.mxu0 %v8622_v11 }
 0x21f   : > { %7512 = vmatmul.mubr.f32.vlgmr.msra.gmra.mrb[0].mxu1 %v850_v56  ;;  %v1237_v56 = vrot.slane %v12732_v22, 7 }
 0x220   : > { %6707 = vmatpush3.bf16.msra.mxu1 %v8615_v62  ;;  %2199 = vmatprep.mubr.bf16.mxu1 %v12732_v22  ;;  %v12810_v62 = vmov 0 }
 0x221   : > { %6708 = vmatprep.subr.bf16.mxu1 %v8616_v63  ;;  %6573 = vmatpush3.bf16.msra.mxu0 %v8623_v12  ;;  %v12811_v62 = vsel %vm10232_vm3, 4294967295, %v12810_v62  ;;  %v8643_v63 = vld [vmem:[#allocation11 + $0xf0] sm:$0xff]  }
 0x222   : > { %6574 = vmatprep.subr.bf16.mxu0 %v8626_v20  ;;  %12812 = vst [vmem:[#allocation37_spill] sm:$0xff] %v12811_v62 }
 0x224   : > { %6709 = vmatpush3.bf16.msra.mxu1 %v8617_v2  ;;  %v10238_v2 = vsel %vm10232_vm3, 0, %v1237_v56 }
 0x225   : > { %6710 = vmatprep.subr.bf16.mxu1 %v8620_v6  ;;  %6575 = vmatpush3.bf16.msra.mxu0 %v8627_v27  ;;  %12813 = vst [vmem:[#allocation38_spill] sm:$0xff] %v10238_v2  ;;  %v8645_v6 = vld [vmem:[#allocation11 + $0xf8] sm:$0xff]  }
 0x226   : > { %6576 = vmatprep.subr.bf16.mxu0 %v8630_v30  ;;  %v1016_v30 = vlaneseq }
 0x228   : > { %6711 = vmatpush3.bf16.msra.mxu1 %v8621_v9  ;;  %v8651_v9 = vld [vmem:[#allocation11 + $0x80] sm:$0xff]  }
 0x229   : > { %6712 = vmatprep.subr.bf16.mxu1 %v8624_v14  ;;  %6577 = vmatpush3.bf16.msra.mxu0 %v8631_v35  ;;  %v1011_v35 = vld [vmem:[#allocation7] sm:$0x1] }
 0x22a   : > { %6578 = vmatprep.subr.bf16.mxu0 %v8634_v39  ;;  %v8655_v39 = vld [vmem:[#allocation11 + $0x90] sm:$0xff]  }
 0x22c   : > { %6713 = vmatpush3.bf16.msra.mxu1 %v8625_v16  ;;  %v8653_v16 = vld [vmem:[#allocation11 + $0x88] sm:$0xff]  }
 0x22d   : > { %6714 = vmatprep.subr.bf16.mxu1 %v8628_v23  ;;  %6579 = vmatpush3.bf16.msra.mxu0 %v8635_v44 }
 0x22e   : > { %6580 = vmatprep.subr.bf16.mxu0 %v8638_v48 }
 0x230   : > { %6715 = vmatpush3.bf16.msra.mxu1 %v8629_v29 }
 0x231   : > { %6716 = vmatprep.subr.bf16.mxu1 %v8632_v34  ;;  %6581 = vmatpush3.bf16.msra.mxu0 %v8639_v52  ;;  %v1017_v34 = vshrl.u32 %v1016_v30, 7 }
 0x232   : > { %6582 = vmatprep.subr.bf16.mxu0 %v8642_v58 }
 0x234   : > { %6717 = vmatpush3.bf16.msra.mxu1 %v8633_v37  ;;  %v10244_v37 = vsub.s32 0, %v1017_v34 }
 0x235   : > { %6718 = vmatprep.subr.bf16.mxu1 %v8636_v41  ;;  %6583 = vmatpush3.bf16.msra.mxu0 %v8643_v63 }
 0x236   : > { %6584 = vmatprep.subr.bf16.mxu0 %v8644_v5  ;;  %12814 = vst [vmem:[#allocation39_spill] sm:$0xff] %v10244_v37 }
 0x238   : > { %6719 = vmatpush3.bf16.msra.mxu1 %v8637_v45  ;;  %v1013_v45 = vld [vmem:[#allocation8] sm:$0x1] }
 0x239   : > { %6720 = vmatprep.subr.bf16.mxu1 %v8640_v50  ;;  %6585 = vmatpush3.bf16.msra.mxu0 %v8645_v6 }
 0x23a   : > { %7514 = vmatprep.subr.bf16.mxu0 %v10241_v7 }
 0x23c   : > { %6721 = vmatpush3.bf16.msra.mxu1 %v8641_v55 }
 0x23d   : > { %7562 = vmatprep.subr.bf16.mxu1 %v8651_v9 }
 0x23f   : > { %2200 = vmatmul.mubr.bf16.vlgmr.msra.gmra.mrb[4].mxu1 %v10238_v2 }
 0x240   : > { %7563 = vmatpush3.bf16.msra.mxu1 %v8651_v9 }
 0x241   : > { %7564 = vmatprep.subr.bf16.mxu1 %v8653_v16 }
 0x244   : > { %7565 = vmatpush3.bf16.msra.mxu1 %v8653_v16 }
 0x245   : > { %7566 = vmatprep.subr.bf16.mxu1 %v8655_v39 }
 0x248   : > { %7567 = vmatpush3.bf16.msra.mxu1 %v8655_v39 }
 0x2ef   : > { %v933_v11 = vpop.f32.mrb[0].mxu0 }
 0x2f0   : > { %v7478_v12 = vpop.f32.mrb[1].mxu0  ;;  %v1007_v14 = vmul.f32 %v933_v11, %v933_v11 }
 0x2f2   : > { %v1003_v20 = vpop.f32.mrb[0].mxu1 }
 0x2f3   : > { %v1008_v23 = vsub.f32 %v1003_v20, %v1007_v14  ;;  %v7513_v27 = vpop.f32.mrb[1].mxu1 }
 0x2f5   : > { %v1009_v29 = vadd.f32 1e-05, %v1008_v23 }
 0x2f7   : > { %8798 = vrsqrt.f32 %v1009_v29 }
 0x301   : > { %v8799_v41 = vpop.eup %8798 }
 0x302   : > { %v1012_v44 = vmul.f32 %v8799_v41, %v1011_v35 }
 0x304   : > { %v1014_v48 = vmul.f32 %v1012_v44, %v933_v11  ;;  %v10247_v50 = vrot.slane %v1012_v44, %v10244_v37  ;;  %v8656_v11 = vld [vmem:[#allocation11 + $0x98] sm:$0xff]  }
 0x305   : > { %7568 = vmatprep.subr.bf16.mxu1 %v8656_v11 }
 0x306   : > { %v1015_v52 = vsub.f32 %v1013_v45, %v1014_v48  ;;  %v1020_v55 = vmul.f32 %v10247_v50, %v10046_v17  ;;  %v1021_v56 = vmul.f32 %v10247_v50, %v10048_v18  ;;  %v1022_v58 = vmul.f32 %v10247_v50, %v10053_v21  ;;  %7569 = vmatpush3.bf16.msra.mxu1 %v8656_v11 }
 0x307   : > { %v1023_v63 = vmul.f32 %v10247_v50, %v10055_v24  ;;  %v1024_v5 = vmul.f32 %v10247_v50, %v10062_v28  ;;  %v1025_v9 = vmul.f32 %v10247_v50, %v10065_v32  ;;  %v1026_v17 = vmul.f32 %v10247_v50, %v10071_v36 }
 0x308   : > { %v10260_v6 = vrot.slane %v1015_v52, %v10244_v37  ;;  %v1027_v18 = vmul.f32 %v10247_v50, %v10078_v42  ;;  %v1028_v21 = vmul.f32 %v10247_v50, %v10086_v47  ;;  %v1029_v24 = vmul.f32 %v10247_v50, %v10091_v51  ;;  %v8657_v52 = vld [vmem:[#allocation11 + $0xa0] sm:$0xff]  }
 0x309   : > { %v1030_v28 = vmul.f32 %v10247_v50, %v10099_v57  ;;  %v1031_v12 = vmul.f32 %v10247_v50, %v10104_v61  ;;  %v1032_v27 = vmul.f32 %v10247_v50, %v10110_v4  ;;  %v1033_v35 = vmul.f32 %v10247_v50, %v10115_v8  ;;  %7570 = vmatprep.subr.bf16.mxu1 %v8657_v52 }
 0x30a   : > { %v1058_v32 = vadd.f32 %v10260_v6, %v1020_v55  ;;  %v1059_v36 = vadd.f32 %v10260_v6, %v1021_v56  ;;  %v1060_v14 = vadd.f32 %v10260_v6, %v1022_v58  ;;  %v1061_v42 = vadd.f32 %v10260_v6, %v1023_v63  ;;  %v8658_v58 = vld [vmem:[#allocation11 + $0xa8] sm:$0xff]   ;;  %7571 = vmatpush3.bf16.msra.mxu1 %v8657_v52 }
 0x30b   : > { %v1062_v47 = vadd.f32 %v10260_v6, %v1024_v5  ;;  %v1063_v16 = vadd.f32 %v10260_v6, %v1025_v9  ;;  %v1064_v51 = vadd.f32 %v10260_v6, %v1026_v17  ;;  %v1065_v57 = vadd.f32 %v10260_v6, %v1027_v18  ;;  %7572 = vmatprep.subr.bf16.mxu1 %v8658_v58 }
 0x30c   : > { %v10284_v20 = vmul.f32 0.5, %v1058_v32  ;;  %v10286_v61 = vmul.f32 0.5, %v1059_v36  ;;  %v10288_v23 = vmul.f32 0.5, %v1060_v14  ;;  %v10292_v29 = vmul.f32 0.5, %v1061_v42  ;;  %v8660_v14 = vld [vmem:[#allocation11 + $0xb0] sm:$0xff]  }
 0x30d   : > { %v10294_v30 = vmul.f32 0.5, %v1062_v47  ;;  %v10296_v34 = vmul.f32 0.5, %v1063_v16  ;;  %v1066_v39 = vadd.f32 %v10260_v6, %v1028_v21  ;;  %v1067_v41 = vadd.f32 %v10260_v6, %v1029_v24 }
 0x30e   : > { %8800 = vtanh.f32 %v10284_v20  ;;  %v1068_v44 = vadd.f32 %v10260_v6, %v1030_v28  ;;  %v1069_v4 = vadd.f32 %v10260_v6, %v1031_v12  ;;  %v1070_v45 = vadd.f32 %v10260_v6, %v1032_v27  ;;  %7573 = vmatpush3.bf16.msra.mxu1 %v8658_v58 }
 0x30f   : > { %8802 = vtanh.f32 %v10286_v61  ;;  %v1071_v48 = vadd.f32 %v10260_v6, %v1033_v35  ;;  %v10309_v8 = vmul.f32 0.5, %v1064_v51  ;;  %v10311_v55 = vmul.f32 0.5, %v1065_v57  ;;  %v8661_v57 = vld [vmem:[#allocation11 + $0xb8] sm:$0xff]   ;;  %7574 = vmatprep.subr.bf16.mxu1 %v8660_v14 }
 0x310   : > { %8804 = vtanh.f32 %v10288_v23  ;;  %v10313_v56 = vmul.f32 0.5, %v1066_v39  ;;  %v10316_v63 = vmul.f32 0.5, %v1067_v41  ;;  %v10318_v5 = vmul.f32 0.5, %v1068_v44 }
 0x311   : > { %8806 = vtanh.f32 %v10292_v29  ;;  %v10320_v9 = vmul.f32 0.5, %v1069_v4  ;;  %v1034_v17 = vmul.f32 %v10247_v50, %v10121_v13  ;;  %v1035_v18 = vmul.f32 %v10247_v50, %v10126_v19 }
 0x312   : > { %8808 = vtanh.f32 %v10294_v30  ;;  %v1036_v11 = vmul.f32 %v10247_v50, %v10132_v26  ;;  %v1037_v21 = vmul.f32 %v10247_v50, %v10137_v31  ;;  %v1038_v24 = vmul.f32 %v10247_v50, %v10143_v38  ;;  %7575 = vmatpush3.bf16.msra.mxu1 %v8660_v14 }
 0x313   : > { %8810 = vtanh.f32 %v10296_v34  ;;  %v1039_v28 = vmul.f32 %v10247_v50, %v10148_v43  ;;  %v1072_v13 = vadd.f32 %v10260_v6, %v1034_v17  ;;  %v1073_v19 = vadd.f32 %v10260_v6, %v1035_v18  ;;  %7576 = vmatprep.subr.bf16.mxu1 %v8661_v57 }
 0x314   : > { %8812 = vtanh.f32 %v10309_v8  ;;  %v1074_v26 = vadd.f32 %v10260_v6, %v1036_v11  ;;  %v1075_v12 = vadd.f32 %v10260_v6, %v1037_v21  ;;  %v10343_v31 = vadd.f32 %v10260_v6, %v1038_v24 }
 0x315   : > { %8814 = vtanh.f32 %v10311_v55  ;;  %v10346_v38 = vadd.f32 %v10260_v6, %v1039_v28  ;;  %v10349_v43 = vmul.f32 0.5, %v1070_v45  ;;  %v10352_v32 = vmul.f32 0.5, %v1071_v48 }
 0x316   : > { %8816 = vtanh.f32 %v10313_v56  ;;  %v10354_v36 = vmul.f32 0.5, %v1072_v13  ;;  %v10357_v47 = vmul.f32 0.5, %v1073_v19  ;;  %v1040_v16 = vmul.f32 %v10247_v50, %v10154_v49  ;;  %7577 = vmatpush3.bf16.msra.mxu1 %v8661_v57 }
 0x317   : > { %8818 = vtanh.f32 %v10316_v63  ;;  %v1041_v51 = vmul.f32 %v10247_v50, %v10159_v54  ;;  %v10364_v39 = vmul.f32 0.5, %v1074_v26  ;;  %v1042_v41 = vmul.f32 %v10247_v50, %v10165_v60 }
 0x318   : > { %v8801_v42 = vpop.eup %8800  ;;  %8820 = vtanh.f32 %v10318_v5  ;;  %v10370_v49 = vadd.f32 %v10260_v6, %v1040_v16  ;;  %v10381_v11 = vmul.f32 0.5, %v1075_v12 }
 0x319   : > { %v8803_v27 = vpop.eup %8802  ;;  %v1154_v35 = vadd.f32 1.0, %v8801_v42  ;;  %8822 = vtanh.f32 %v10320_v9  ;;  %v10373_v54 = vadd.f32 %v10260_v6, %v1041_v51  ;;  %v10378_v60 = vadd.f32 %v10260_v6, %v1042_v41 }
 0x31a   : > { %v8805_v44 = vpop.eup %8804  ;;  %v1155_v4 = vadd.f32 1.0, %v8803_v27  ;;  %8824 = vtanh.f32 %v10349_v43 }
 0x31b   : > { %v8807_v45 = vpop.eup %8806  ;;  %v1186_v48 = vmul.f32 %v1154_v35, %v10284_v20  ;;  %v1156_v52 = vadd.f32 1.0, %v8805_v44  ;;  %8826 = vtanh.f32 %v10352_v32  ;;  %v1043_v20 = vmul.f32 %v10247_v50, %v10170_v3 }
 0x31c   : > { %v8809_v58 = vpop.eup %8808  ;;  %v1187_v17 = vmul.f32 %v1155_v4, %v10286_v61  ;;  %v1157_v18 = vadd.f32 1.0, %v8807_v45  ;;  %8828 = vtanh.f32 %v10354_v36 }
 0x31d   : > { %v8811_v21 = vpop.eup %8810  ;;  %v1188_v24 = vmul.f32 %v1156_v52, %v10288_v23  ;;  %v1158_v28 = vadd.f32 1.0, %v8809_v58  ;;  %8830 = vtanh.f32 %v10357_v47  ;;  %v10394_v23 = vadd.f32 %v10260_v6, %v1043_v20 }
 0x31e   : > { %v8813_v13 = vpop.eup %8812  ;;  %v10387_v19 = vpack.c.bf16 %v1187_v17, %v1186_v48  ;;  %v1189_v26 = vmul.f32 %v1157_v18, %v10292_v29  ;;  %v1159_v14 = vadd.f32 1.0, %v8811_v21  ;;  %8832 = vtanh.f32 %v10364_v39 }
 0x31f   : > { %v8815_v61 = vpop.eup %8814  ;;  %v1190_v12 = vmul.f32 %v1158_v28, %v10294_v30  ;;  %v1160_v42 = vadd.f32 1.0, %v8813_v13  ;;  %8834 = vtanh.f32 %v10381_v11  ;;  %v10409_v48 = vmul.f32 0.5, %v10343_v31  ;;  %v8647_v13 = vld [vmem:[#allocation11 + $0x148] sm:$0xff]  }
 0x320   : > { %v8817_v16 = vpop.eup %8816  ;;  %1733 = vmatprep.mubr.bf16.mxu0 %v10387_v19  ;;  %2207 = vmatprep.mubr.bf16.mxu1 %v10387_v19  ;;  %v1242_v3 = vshrl.u32 %v10387_v19, 16  ;;  %v10399_v29 = vpack.c.bf16 %v1189_v26, %v1188_v24  ;;  %v1191_v51 = vmul.f32 %v1159_v14, %v10296_v34  ;;  %v1161_v57 = vadd.f32 1.0, %v8815_v61 }
 0x321   : > { %v8819_v30 = vpop.eup %8818  ;;  %v1192_v27 = vmul.f32 %v1160_v42, %v10309_v8  ;;  %v1162_v35 = vadd.f32 1.0, %v8817_v16  ;;  %v1245_v4 = vshll.u32 %v10387_v19, 16  ;;  %8836 = vtanh.f32 %v10409_v48 }
 0x322   : > { %v8821_v41 = vpop.eup %8820  ;;  %v1244_v44 = vrot.slane %v1242_v3, 7  ;;  %v1249_v45 = vshrl.u32 %v10399_v29, 16  ;;  %v10411_v34 = vpack.c.bf16 %v1191_v51, %v1190_v12  ;;  %v1193_v58 = vmul.f32 %v1161_v57, %v10311_v55 }
 0x323   : > { %v8823_v52 = vpop.eup %8822  ;;  %v1163_v17 = vadd.f32 1.0, %v8819_v30  ;;  %v1194_v8 = vmul.f32 %v1162_v35, %v10313_v56  ;;  %v1164_v24 = vadd.f32 1.0, %v8821_v41 }
 0x324   : > { %v8825_v18 = vpop.eup %8824  ;;  %v1247_v21 = vor.u32 %v1245_v4, %v1244_v44  ;;  %v1165_v28 = vadd.f32 1.0, %v8823_v52  ;;  %v10417_v26 = vpack.c.bf16 %v1193_v58, %v1192_v27  ;;  %v1251_v55 = vrot.slane %v1249_v45, 7 }
 0x325   : > { %v8827_v20 = vpop.eup %8826  ;;  %v1195_v31 = vmul.f32 %v1163_v17, %v10316_v63  ;;  %v1196_v56 = vmul.f32 %v1164_v24, %v10318_v5  ;;  %v1252_v63 = vshll.u32 %v10399_v29, 16  ;;  %v1166_v30 = vadd.f32 1.0, %v8825_v18 }
 0x326   : > { %v1366_v14 = vsel %vm10232_vm3, 0, %v1247_v21  ;;  %v1197_v61 = vmul.f32 %v1165_v28, %v10320_v9  ;;  %v8829_v12 = vpop.eup %8828  ;;  %v1167_v5 = vadd.f32 1.0, %v8827_v20  ;;  %v8648_v9 = vld [vmem:[#allocation11 + $0x150] sm:$0xff]   ;;  %v1256_v41 = vshrl.u32 %v10411_v34, 16 }
 0x327   : > { %1734 = vmatmul.mubr.bf16.vlgmr.msra.gmra.mrb[4].mxu0 %v1366_v14  ;;  %2208 = vmatmul.mubr.bf16.gmra.mrb[8].mxu1 %v1366_v14  ;;  %v10426_v42 = vpack.c.bf16 %v1195_v31, %v1194_v8  ;;  %v8831_v16 = vpop.eup %8830  ;;  %v1254_v35 = vor.u32 %v1252_v63, %v1251_v55  ;;  %v1168_v52 = vadd.f32 1.0, %v8829_v12  ;;  %v10441_v58 = vmul.f32 0.5, %v10346_v38 }
 0x328   : > { %7515 = vmatpush3.bf16.msra.mxu0 %v10241_v7  ;;  %1741 = vmatprep.mubr.bf16.mxu0 %v10399_v29  ;;  %v10432_v51 = vpack.c.bf16 %v1197_v61, %v1196_v56  ;;  %v8833_v57 = vpop.eup %8832  ;;  %v1198_v7 = vmul.f32 %v1166_v30, %v10349_v43  ;;  %v1199_v44 = vmul.f32 %v1167_v5, %v10352_v32  ;;  %v1169_v8 = vadd.f32 1.0, %v8831_v16  ;;  %v8649_v32 = vld [vmem:[#allocation11 + $0x158] sm:$0xff]   ;;  %v8650_v61 = vld [vmem:[#allocation11 + $0x160] sm:$0xff]  }
 0x329   : > { %2215 = vmatprep.mubr.bf16.mxu1 %v10399_v29  ;;  %7516 = vmatprep.subr.bf16.mxu0 %v8647_v13  ;;  %v8835_v27 = vpop.eup %8834  ;;  %v1170_v18 = vadd.f32 1.0, %v8833_v57  ;;  %v1200_v21 = vmul.f32 %v1168_v52, %v10354_v36  ;;  %v10447_v28 = vmul.f32 0.5, %v10370_v49  ;;  %v10451_v43 = vsel %vm10232_vm3, 0, %v1254_v35 }
 0x32a   : > { %v10443_v17 = vpack.c.bf16 %v1199_v44, %v1198_v7  ;;  %v1171_v24 = vadd.f32 1.0, %v8835_v27  ;;  %v1258_v38 = vrot.slane %v1256_v41, 7  ;;  %v1201_v20 = vmul.f32 %v1169_v8, %v10357_v47 }
 0x32b   : > { %v1202_v36 = vmul.f32 %v1170_v18, %v10364_v39  ;;  %8838 = vtanh.f32 %v10441_v58  ;;  %v10462_v49 = vmul.f32 0.5, %v10373_v54  ;;  %v1259_v31 = vshll.u32 %v10411_v34, 16  ;;  %v8837_v55 = vpop.eup %8836 }
 0x32c   : > { %7517 = vmatpush3.bf16.msra.mxu0 %v8647_v13  ;;  %v1203_v13 = vmul.f32 %v1171_v24, %v10381_v11  ;;  %v1263_v47 = vshrl.u32 %v10417_v26, 16  ;;  %v10468_v14 = vpack.c.bf16 %v1201_v20, %v1200_v21  ;;  %8840 = vtanh.f32 %v10447_v28  ;;  %v8654_v20 = vld [vmem:[#allocation11 + $0x170] sm:$0xff]  }
 0x32d   : > { %7518 = vmatprep.subr.bf16.mxu0 %v8648_v9  ;;  %v10474_v11 = vmul.f32 0.5, %v10378_v60  ;;  %v10477_v54 = vmul.f32 0.5, %v10394_v23  ;;  %v1261_v56 = vor.u32 %v1259_v31, %v1258_v38  ;;  %v1044_v12 = vmul.f32 %v10247_v50, %v10176_v10 }
 0x32e   : > { %v10470_v39 = vpack.c.bf16 %v1203_v13, %v1202_v36  ;;  %v1383_v16 = vrot.slane %v1245_v4, 1  ;;  %8842 = vtanh.f32 %v10462_v49  ;;  %v1045_v60 = vmul.f32 %v10247_v50, %v10181_v15 }
 0x32f   : > { %1742 = vmatmul.mubr.bf16.gmra.mrb[8].mxu0 %v10451_v43  ;;  %2216 = vmatmul.mubr.bf16.gmra.mrb[12].mxu1 %v10451_v43  ;;  %v1265_v23 = vrot.slane %v1263_v47, 7  ;;  %v1266_v30 = vshll.u32 %v10417_v26, 16  ;;  %8844 = vtanh.f32 %v10474_v11  ;;  %v1082_v5 = vadd.f32 %v10260_v6, %v1044_v12 }
 0x330   : > { %1749 = vmatprep.mubr.bf16.mxu0 %v10411_v34  ;;  %2223 = vmatprep.mubr.bf16.mxu1 %v10411_v34  ;;  %v1172_v57 = vadd.f32 1.0, %v8837_v55  ;;  %8846 = vtanh.f32 %v10477_v54  ;;  %v1083_v10 = vadd.f32 %v10260_v6, %v1045_v60  ;;  %v1046_v4 = vmul.f32 %v10247_v50, %v10187_v25 }
 0x331   : > { %7519 = vmatpush3.bf16.msra.mxu0 %v8648_v9  ;;  %v10499_v15 = vsel %vm10232_vm3, 0, %v1261_v56  ;;  %v8652_v9 = vld [vmem:[#allocation11 + $0x168] sm:$0xff]   ;;  %v10501_v27 = vmul.f32 0.5, %v1082_v5  ;;  %v1047_v35 = vmul.f32 %v10247_v50, %v10192_v33  ;;  %v1048_v7 = vmul.f32 %v10247_v50, %v10198_v40 }
 0x332   : > { %7520 = vmatprep.subr.bf16.mxu0 %v8649_v32  ;;  %v1270_v25 = vshrl.u32 %v10426_v42, 16  ;;  %v10510_v44 = vmul.f32 0.5, %v1083_v10  ;;  %v1084_v52 = vadd.f32 %v10260_v6, %v1046_v4  ;;  %v1049_v8 = vmul.f32 %v10247_v50, %v10203_v46 }
 0x333   : > { %v1268_v33 = vor.u32 %v1266_v30, %v1265_v23  ;;  %8848 = vtanh.f32 %v10501_v27  ;;  %v1085_v40 = vadd.f32 %v10260_v6, %v1047_v35  ;;  %v1086_v18 = vadd.f32 %v10260_v6, %v1048_v7  ;;  %v8659_v7 = vld [vmem:[#allocation11 + $0x178] sm:$0xff]  }
 0x334   : > { %v1204_v24 = vmul.f32 %v1172_v57, %v10409_v48  ;;  %8850 = vtanh.f32 %v10510_v44  ;;  %v10524_v46 = vmul.f32 0.5, %v1084_v52  ;;  %v1087_v38 = vadd.f32 %v10260_v6, %v1049_v8 }
 0x335   : > { %7521 = vmatpush3.bf16.msra.mxu0 %v8649_v32  ;;  %v8839_v21 = vpop.eup %8838  ;;  %v10527_v36 = vmul.f32 0.5, %v1085_v40  ;;  %v10529_v13 = vmul.f32 0.5, %v1086_v18  ;;  %v1050_v55 = vmul.f32 %v10247_v50, %v10208_v53  ;;  %v1272_v48 = vrot.slane %v1270_v25, 7 }
 0x336   : > { %7522 = vmatprep.subr.bf16.mxu0 %v8650_v61  ;;  %v1173_v32 = vadd.f32 1.0, %v8839_v21  ;;  %v8841_v56 = vpop.eup %8840  ;;  %8852 = vtanh.f32 %v10524_v46  ;;  %v1051_v12 = vmul.f32 %v10247_v50, %v10213_v59  ;;  %v10545_v53 = vsel %vm10232_vm3, 0, %v1268_v33 }
 0x337   : > { %1750 = vmatmul.mubr.bf16.gmra.mrb[12].mxu0 %v10499_v15  ;;  %2224 = vmatmul.mubr.bf16.gmra.mrb[16].mxu1 %v10499_v15  ;;  %v1174_v23 = vadd.f32 1.0, %v8841_v56  ;;  %8854 = vtanh.f32 %v10527_v36  ;;  %v1088_v5 = vadd.f32 %v10260_v6, %v1050_v55  ;;  %v10551_v59 = vor.u32 %v1383_v16, %v1242_v3  ;;  %v10563_v3 = vld [vmem:[#allocation11 + $0x200] sm:$0xff]  }
 0x338   : > { %1757 = vmatprep.mubr.bf16.mxu0 %v10417_v26  ;;  %2231 = vmatprep.mubr.bf16.mxu1 %v10417_v26  ;;  %v1205_v60 = vmul.f32 %v1173_v32, %v10441_v58  ;;  %v8843_v57 = vpop.eup %8842  ;;  %8856 = vtanh.f32 %v10529_v13  ;;  %v1089_v10 = vadd.f32 %v10260_v6, %v1051_v12  ;;  %v1277_v16 = vshrl.u32 %v10432_v51, 16 }
 0x339   : > { %7523 = vmatpush3.bf16.msra.mxu0 %v8650_v61  ;;  %v10536_v61 = vmul.f32 0.5, %v1087_v38  ;;  %v8845_v50 = vpop.eup %8844  ;;  %v1175_v4 = vadd.f32 1.0, %v8843_v57  ;;  %v1206_v35 = vmul.f32 %v1174_v23, %v10447_v28  ;;  %v1273_v28 = vshll.u32 %v10426_v42, 16  ;;  %7610 = vmatprep.subr.bf16.mxu1 %v10563_v3 }
 0x33a   : > { %7524 = vmatprep.subr.bf16.mxu0 %v8652_v9  ;;  %v10553_v58 = vpack.c.bf16 %v1205_v60, %v1204_v24  ;;  %v8847_v52 = vpop.eup %8846  ;;  %v1176_v6 = vadd.f32 1.0, %v8845_v50  ;;  %v10561_v19 = vmul.f32 0.5, %v1089_v10  ;;  %v1385_v18 = vrot.slane %v1252_v63, 1 }
 0x33b   : > { %8858 = vtanh.f32 %v10536_v61  ;;  %v1207_v8 = vmul.f32 %v1175_v4, %v10462_v49  ;;  %v1177_v33 = vadd.f32 1.0, %v8847_v52  ;;  %v1387_v21 = vrot.slane %v1259_v31, 1 }
 0x33c   : > { %v1208_v40 = vmul.f32 %v1176_v6, %v10474_v11  ;;  %v1275_v38 = vor.u32 %v1273_v28, %v1272_v48  ;;  %v8662_v11 = vld [vmem:[#allocation11 + $0x1c0] sm:$0xff]   ;;  %v10583_v63 = vor.u32 %v1385_v18, %v1249_v45  ;;  %v1389_v56 = vrot.slane %v1266_v30, 1 }
 0x33d   : > { %7525 = vmatpush3.bf16.msra.mxu0 %v8652_v9  ;;  %v10559_v9 = vmul.f32 0.5, %v1088_v5  ;;  %v8849_v24 = vpop.eup %8848  ;;  %v10577_v32 = vpack.c.bf16 %v1207_v8, %v1206_v35  ;;  %v1209_v49 = vmul.f32 %v1177_v33, %v10477_v54  ;;  %v10587_v31 = vor.u32 %v1387_v21, %v1256_v41 }
 0x33e   : > { %7526 = vmatprep.subr.bf16.mxu0 %v8654_v20  ;;  %v1178_v55 = vadd.f32 1.0, %v8849_v24  ;;  %v1279_v54 = vrot.slane %v1277_v16, 7  ;;  %v10598_v45 = vsel %vm10232_vm3, 0, %v1275_v38  ;;  %v1280_v41 = vshll.u32 %v10432_v51, 16 }
 0x33f   : > { %1758 = vmatmul.mubr.bf16.gmra.mrb[16].mxu0 %v10545_v53  ;;  %2232 = vmatmul.mubr.bf16.gmra.mrb[20].mxu1 %v10545_v53  ;;  %8860 = vtanh.f32 %v10559_v9  ;;  %v10593_v48 = vpack.c.bf16 %v1209_v49, %v1208_v40  ;;  %v1284_v57 = vshrl.u32 %v10443_v17, 16  ;;  %v10607_v4 = vor.u32 %v1389_v56, %v1263_v47 }
 0x340   : > { %1765 = vmatprep.mubr.bf16.mxu0 %v10426_v42  ;;  %2239 = vmatprep.mubr.bf16.mxu1 %v10426_v42  ;;  %8862 = vtanh.f32 %v10561_v19  ;;  %v1210_v23 = vmul.f32 %v1178_v55, %v10501_v27  ;;  %v1391_v6 = vrot.slane %v1273_v28, 1  ;;  %v1287_v24 = vshll.u32 %v10443_v17, 16 }
 0x341   : > { %7527 = vmatpush3.bf16.msra.mxu0 %v8654_v20  ;;  %v8851_v20 = vpop.eup %8850  ;;  %v1286_v47 = vrot.slane %v1284_v57, 7  ;;  %v1294_v28 = vshll.u32 %v10468_v14, 16  ;;  %v1301_v55 = vshll.u32 %v10470_v39, 16 }
 0x342   : > { %7528 = vmatprep.subr.bf16.mxu0 %v8659_v7  ;;  %v8853_v12 = vpop.eup %8852  ;;  %v1179_v60 = vadd.f32 1.0, %v8851_v20 }
 0x343   : > { %v8855_v5 = vpop.eup %8854  ;;  %v1180_v50 = vadd.f32 1.0, %v8853_v12 }
 0x344   : > { %v8857_v30 = vpop.eup %8856  ;;  %v1211_v10 = vmul.f32 %v1179_v60, %v10510_v44  ;;  %v1181_v27 = vadd.f32 1.0, %v8855_v5  ;;  %v1315_v5 = vshll.u32 %v10577_v32, 16 }
 0x345   : > { %7529 = vmatpush3.bf16.msra.mxu0 %v8659_v7  ;;  %v8859_v35 = vpop.eup %8858  ;;  %v1282_v7 = vor.u32 %v1280_v41, %v1279_v54  ;;  %v1182_v52 = vadd.f32 1.0, %v8857_v30  ;;  %v1212_v33 = vmul.f32 %v1180_v50, %v10524_v46  ;;  %v10623_v46 = vor.u32 %v1391_v6, %v1270_v25 }
 0x346   : > { %6842 = vmatprep.subr.bf16.mxu0 %v8662_v11  ;;  %v10611_v8 = vpack.c.bf16 %v1211_v10, %v1210_v23  ;;  %v1213_v44 = vmul.f32 %v1181_v27, %v10527_v36  ;;  %v1183_v40 = vadd.f32 1.0, %v8859_v35  ;;  %v1393_v36 = vrot.slane %v1280_v41, 1 }
 0x347   : > { %1766 = vmatmul.mubr.bf16.gmra.mrb[20].mxu0 %v10598_v45  ;;  %2240 = vmatmul.mubr.bf16.gmra.mrb[24].mxu1 %v10598_v45  ;;  %v1214_v18 = vmul.f32 %v1182_v52, %v10529_v13  ;;  %v10627_v13 = vsel %vm10232_vm3, 0, %v1282_v7  ;;  %v1308_v54 = vshll.u32 %v10553_v58, 16  ;;  %v1289_v25 = vor.u32 %v1287_v24, %v1286_v47 }
 0x348   : > { %1773 = vmatprep.mubr.bf16.mxu0 %v10432_v51  ;;  %2247 = vmatprep.mubr.bf16.mxu1 %v10432_v51  ;;  %v10617_v38 = vpack.c.bf16 %v1213_v44, %v1212_v33  ;;  %v1215_v49 = vmul.f32 %v1183_v40, %v10536_v61  ;;  %v10636_v60 = vor.u32 %v1393_v36, %v1277_v16  ;;  %v1291_v23 = vshrl.u32 %v10468_v14, 16 }
 0x349   : > { %v8861_v21 = vpop.eup %8860  ;;  %v1298_v41 = vshrl.u32 %v10470_v39, 16  ;;  %v1395_v30 = vrot.slane %v1287_v24, 1  ;;  %v1397_v16 = vrot.slane %v1294_v28, 1  ;;  %v1322_v10 = vshll.u32 %v10593_v48, 16 }
 0x34a   : > { %v8863_v11 = vpop.eup %8862  ;;  %v1184_v20 = vadd.f32 1.0, %v8861_v21  ;;  %v10630_v56 = vpack.c.bf16 %v1215_v49, %v1214_v18  ;;  %v1329_v50 = vshll.u32 %v10611_v8, 16  ;;  %v1336_v27 = vshll.u32 %v10617_v38, 16 }
 0x34b   : > { %v1185_v61 = vadd.f32 1.0, %v8863_v11  ;;  %v1399_v35 = vrot.slane %v1301_v55, 1  ;;  %v10651_v52 = vor.u32 %v1395_v30, %v1284_v57  ;;  %v10653_v6 = vor.u32 %v1397_v16, %v1291_v23 }
 0x34c   : > { %v1216_v12 = vmul.f32 %v1184_v20, %v10559_v9  ;;  %v1401_v33 = vrot.slane %v1308_v54, 1  ;;  %v1305_v44 = vshrl.u32 %v10553_v58, 16  ;;  %v1403_v18 = vrot.slane %v1315_v5, 1 }
 0x34d   : > { %v1217_v9 = vmul.f32 %v1185_v61, %v10561_v19  ;;  %v1312_v19 = vshrl.u32 %v10577_v32, 16  ;;  %v10657_v40 = vor.u32 %v1399_v35, %v1298_v41  ;;  %v10661_v21 = vsel %vm10232_vm3, 0, %v1289_v25 }
 0x34e   : > { %v1293_v47 = vrot.slane %v1291_v23, 7  ;;  %v1319_v24 = vshrl.u32 %v10593_v48, 16  ;;  %v10664_v49 = vor.u32 %v1401_v33, %v1305_v44  ;;  %v1326_v11 = vshrl.u32 %v10611_v8, 16 }
 0x34f   : > { %1774 = vmatmul.mubr.bf16.gmra.mrb[24].mxu0 %v10627_v13  ;;  %2248 = vmatmul.mubr.bf16.gmra.mrb[28].mxu1 %v10627_v13  ;;  %v10649_v7 = vpack.c.bf16 %v1217_v9, %v1216_v12  ;;  %v10666_v57 = vor.u32 %v1403_v18, %v1312_v19  ;;  %v1405_v20 = vrot.slane %v1322_v10, 1  ;;  %v1407_v36 = vrot.slane %v1329_v50, 1 }
 0x350   : > { %1781 = vmatprep.mubr.bf16.mxu0 %v10443_v17  ;;  %2255 = vmatprep.mubr.bf16.mxu1 %v10443_v17  ;;  %v1409_v61 = vrot.slane %v1336_v27, 1  ;;  %v1333_v12 = vshrl.u32 %v10617_v38, 16  ;;  %v1296_v30 = vor.u32 %v1294_v28, %v1293_v47  ;;  %v1300_v35 = vrot.slane %v1298_v41, 7 }
 0x351   : > { %v10680_v25 = vor.u32 %v1405_v20, %v1319_v24  ;;  %v10682_v23 = vor.u32 %v1407_v36, %v1326_v11  ;;  %v1307_v20 = vrot.slane %v1305_v44, 7  ;;  %v1314_v47 = vrot.slane %v1312_v19, 7 }
 0x352   : > { %v10684_v9 = vor.u32 %v1409_v61, %v1333_v12  ;;  %v10688_v16 = vsel %vm10232_vm3, 0, %v1296_v30  ;;  %v1303_v33 = vor.u32 %v1301_v55, %v1300_v35  ;;  %v6722_v55 = vpop.f32.mrb[4].mxu1  ;;  %v1321_v30 = vrot.slane %v1319_v24, 7 }
 0x353   : > { %v1310_v28 = vor.u32 %v1308_v54, %v1307_v20  ;;  %v1317_v44 = vor.u32 %v1315_v5, %v1314_v47  ;;  %v6723_v36 = vpop.f32.mrb[5].mxu1  ;;  %v1328_v24 = vrot.slane %v1326_v11, 7 }
 0x354   : > { %v10696_v18 = vsel %vm10232_vm3, 0, %v1303_v33  ;;  %v10710_v61 = vadd.f32 %v6723_v36, %v6722_v55  ;;  %v6725_v19 = vpop.f32.mrb[6].mxu1  ;;  %v1324_v5 = vor.u32 %v1322_v10, %v1321_v30  ;;  %v1335_v10 = vrot.slane %v1333_v12, 7 }
 0x355   : > { %v10704_v41 = vsel %vm10232_vm3, 0, %v1310_v28  ;;  %v10714_v54 = vsel %vm10232_vm3, 0, %v1317_v44  ;;  %v6726_v35 = vpop.f32.mrb[7].mxu1  ;;  %v1331_v28 = vor.u32 %v1329_v50, %v1328_v24  ;;  %v1340_v55 = vshrl.u32 %v10630_v56, 16 }
 0x356   : > { %v10720_v33 = vadd.f32 %v6726_v35, %v6725_v19  ;;  %v10726_v20 = vsel %vm10232_vm3, 0, %v1324_v5  ;;  %v1338_v11 = vor.u32 %v1336_v27, %v1335_v10  ;;  %v1343_v44 = vshll.u32 %v10630_v56, 16 }
 0x357   : > { %1782 = vmatmul.mubr.bf16.gmra.mrb[28].mxu0 %v10661_v21  ;;  %2256 = vmatmul.mubr.bf16.gmra.mrb[32].mxu1 %v10661_v21  ;;  %v10736_v47 = vsel %vm10232_vm3, 0, %v1331_v28  ;;  %v1342_v12 = vrot.slane %v1340_v55, 7  ;;  %v1381_v27 = vrot.slane %v12732_v22, 1  ;;  %v12734_v30 = vshrl.u32 %v10649_v7, 16  ;;  %v8678_v22 = vld [vmem:[#allocation11 + $0x220] sm:$0xff]  }
 0x358   : > { %1789 = vmatprep.mubr.bf16.mxu0 %v10468_v14  ;;  %2263 = vmatprep.mubr.bf16.mxu1 %v10468_v14  ;;  %v10747_v50 = vsel %vm10232_vm3, 0, %v1338_v11  ;;  %v12815_v19 = vmov 0  ;;  %v1500_v28 = vshll.u32 %v10649_v7, 16 }
 0x359   : > { %v1345_v36 = vor.u32 %v1343_v44, %v1342_v12  ;;  %v12816_v19 = vsel %vm10760_vm6, 4294967295, %v12815_v19  ;;  %v10766_v35 = vsel %vm10760_vm6, %v1381_v27, 0  ;;  %v1499_v24 = vrot.slane %v12734_v30, 7  ;;  %v8671_v27 = vld [vmem:[#allocation11 + $0x208] sm:$0xff]   ;;  %v8668_v30 = vld [vmem:[#allocation11 + $0x1d8] sm:$0xff]  }
 0x35a   : > { %12817 = vst [vmem:[#allocation40_spill] sm:$0xff] %v12816_v19  ;;  %12818 = vst [vmem:[#allocation41_spill] sm:$0xff] %v10766_v35  ;;  %v1433_v12 = vsel %vm10760_vm6, %v10551_v59, 0  ;;  %v10799_v59 = vsel %vm10760_vm6, %v10587_v31, 0  ;;  %v8666_v31 = vld [vmem:[#allocation11 + $0x1d0] sm:$0xff]  }
 0x35b   : > { %v10770_v5 = vsel %vm10232_vm3, 0, %v1345_v36  ;;  %v1502_v10 = vor.u32 %v1500_v28, %v1499_v24  ;;  %v10792_v36 = vsel %vm10760_vm6, %v10583_v63, 0  ;;  %v8674_v24 = vld [vmem:[#allocation11 + $0x210] sm:$0xff]   ;;  %v8675_v63 = vld [vmem:[#allocation11 + $0x218] sm:$0xff]  }
 0x35d   : > { %v10783_v11 = vsel %vm10232_vm3, 0, %v1502_v10  ;;  %v8663_v10 = vld [vmem:[#allocation11 + $0x180] sm:$0xff]  }
 0x35f   : > { %1790 = vmatmul.mubr.bf16.gmra.mrb[32].mxu0 %v10688_v16  ;;  %2264 = vmatmul.mubr.bf16.gmra.mrb[36].mxu1 %v10688_v16 }
 0x360   : > { %1797 = vmatprep.mubr.bf16.mxu0 %v10470_v39  ;;  %2271 = vmatprep.mubr.bf16.mxu1 %v10470_v39 }
 0x367   : > { %1798 = vmatmul.mubr.bf16.gmra.mrb[36].mxu0 %v10696_v18  ;;  %2272 = vmatmul.mubr.bf16.gmra.mrb[40].mxu1 %v10696_v18 }
 0x368   : > { %1805 = vmatprep.mubr.bf16.mxu0 %v10553_v58  ;;  %2279 = vmatprep.mubr.bf16.mxu1 %v10553_v58 }
 0x36f   : > { %1806 = vmatmul.mubr.bf16.gmra.mrb[40].mxu0 %v10704_v41  ;;  %2280 = vmatmul.mubr.bf16.gmra.mrb[44].mxu1 %v10704_v41 }
 0x370   : > { %1813 = vmatprep.mubr.bf16.mxu0 %v10577_v32  ;;  %2287 = vmatprep.mubr.bf16.mxu1 %v10577_v32 }
 0x377   : > { %1814 = vmatmul.mubr.bf16.gmra.mrb[44].mxu0 %v10714_v54  ;;  %2288 = vmatmul.mubr.bf16.gmra.mrb[48].mxu1 %v10714_v54 }
 0x378   : > { %1821 = vmatprep.mubr.bf16.mxu0 %v10593_v48  ;;  %2295 = vmatprep.mubr.bf16.mxu1 %v10593_v48 }
 0x37f   : > { %1822 = vmatmul.mubr.bf16.gmra.mrb[48].mxu0 %v10726_v20  ;;  %2296 = vmatmul.mubr.bf16.gmra.mrb[52].mxu1 %v10726_v20 }
 0x380   : > { %1829 = vmatprep.mubr.bf16.mxu0 %v10611_v8  ;;  %2303 = vmatprep.mubr.bf16.mxu1 %v10611_v8 }
 0x387   : > { %1830 = vmatmul.mubr.bf16.gmra.mrb[52].mxu0 %v10736_v47  ;;  %2304 = vmatmul.mubr.bf16.gmra.mrb[56].mxu1 %v10736_v47 }
 0x388   : > { %1837 = vmatprep.mubr.bf16.mxu0 %v10617_v38  ;;  %2311 = vmatprep.mubr.bf16.mxu1 %v10617_v38 }
 0x38f   : > { %1838 = vmatmul.mubr.bf16.gmra.mrb[56].mxu0 %v10747_v50  ;;  %2312 = vmatmul.mubr.bf16.gmra.mrb[60].mxu1 %v10747_v50 }
 0x390   : > { %1845 = vmatprep.mubr.bf16.mxu0 %v10630_v56  ;;  %2319 = vmatprep.mubr.bf16.mxu1 %v10630_v56 }
 0x397   : > { %1846 = vmatmul.mubr.bf16.gmra.mrb[60].mxu0 %v10770_v5  ;;  %2320 = vmatmul.mubr.bf16.gmra.mrb[64].mxu1 %v10770_v5 }
 0x398   : > { %1853 = vmatprep.mubr.bf16.mxu0 %v10649_v7  ;;  %7578 = vmatprep.mubr.bf16.mxu1 %v10766_v35 }
 0x39f   : > { %1854 = vmatmul.mubr.bf16.gmra.mrb[64].mxu0 %v10783_v11  ;;  %7579 = vmatmul.mubr.bf16.vlgmr.msra.gmra.mrb[68].mxu1 %v1433_v12 }
 0x3a0   : > { %7530 = vmatprep.mubr.bf16.mxu0 %v1433_v12  ;;  %7582 = vmatprep.mubr.bf16.mxu1 %v10792_v36  ;;  %v8665_v12 = vld [vmem:[#allocation11 + $0x188] sm:$0xff]  }
 0x3a1   : > { %7611 = vmatpush3.bf16.msra.mxu1 %v10563_v3  ;;  %v10807_v3 = vsel %vm10760_vm6, %v10607_v4, 0  ;;  %v8679_v4 = vld [vmem:[#allocation11 + $0x228] sm:$0xff]  }
 0x3a2   : > { %7612 = vmatprep.subr.bf16.mxu1 %v8671_v27 }
 0x3a5   : > { %7613 = vmatpush3.bf16.msra.mxu1 %v8671_v27  ;;  %v8667_v27 = vld [vmem:[#allocation11 + $0x190] sm:$0xff]  }
 0x3a6   : > { %7614 = vmatprep.subr.bf16.mxu1 %v8674_v24 }
 0x3a7   : > { %7531 = vmatmul.mubr.bf16.vlgmr.msra.gmra.mrb[68].mxu0 %v10792_v36  ;;  %7583 = vmatmul.mubr.bf16.gmra.mrb[72].mxu1 %v10799_v59 }
 0x3a8   : > { %6843 = vmatpush3.bf16.msra.mxu0 %v8663_v10  ;;  %7534 = vmatprep.mubr.bf16.mxu0 %v10799_v59  ;;  %v10813_v10 = vsel %vm10760_vm6, %v10623_v46, 0  ;;  %v8672_v46 = vld [vmem:[#allocation11 + $0x1e0] sm:$0xff]  }
 0x3a9   : > { %7586 = vmatprep.mubr.bf16.mxu1 %v10807_v3  ;;  %6844 = vmatprep.subr.bf16.mxu0 %v8664_v1  ;;  %v10820_v1 = vsel %vm10760_vm6, %v10636_v60, 0  ;;  %v10827_v60 = vsel %vm10760_vm6, %v10651_v52, 0  ;;  %v8680_v52 = vld [vmem:[#allocation11 + $0x1f0] sm:$0xff]  }
 0x3aa   : > { %7615 = vmatpush3.bf16.msra.mxu1 %v8674_v24  ;;  %v8669_v24 = vld [vmem:[#allocation11 + $0x198] sm:$0xff]  }
 0x3ab   : > { %7616 = vmatprep.subr.bf16.mxu1 %v8675_v63 }
 0x3ac   : > { %6845 = vmatpush3.bf16.msra.mxu0 %v8665_v12  ;;  %v8682_v12 = vld [vmem:[#allocation11 + $0x230] sm:$0xff]  }
 0x3ad   : > { %6846 = vmatprep.subr.bf16.mxu0 %v8666_v31  ;;  %v8676_v31 = vld [vmem:[#allocation11 + $0x1e8] sm:$0xff]  }
 0x3ae   : > { %7617 = vmatpush3.bf16.msra.mxu1 %v8675_v63  ;;  %v8673_v63 = vld [vmem:[#allocation11 + $0x1a0] sm:$0xff]  }
 0x3af   : > { %7535 = vmatmul.mubr.bf16.gmra.mrb[72].mxu0 %v10807_v3  ;;  %7587 = vmatmul.mubr.bf16.gmra.mrb[76].mxu1 %v10813_v10 }
 0x3b0   : > { %7538 = vmatprep.mubr.bf16.mxu0 %v10813_v10  ;;  %7590 = vmatprep.mubr.bf16.mxu1 %v10820_v1 }
 0x3b1   : > { %6847 = vmatpush3.bf16.msra.mxu0 %v8667_v27  ;;  %7618 = vmatprep.subr.bf16.mxu1 %v8678_v22  ;;  %v8677_v27 = vld [vmem:[#allocation11 + $0x1a8] sm:$0xff]  }
 0x3b2   : > { %6848 = vmatprep.subr.bf16.mxu0 %v8668_v30  ;;  %7619 = vmatpush3.bf16.msra.mxu1 %v8678_v22  ;;  %v1440_v22 = vsel %vm10760_vm6, %v10653_v6, 0  ;;  %v8683_v30 = vld [vmem:[#allocation11 + $0x238] sm:$0xff]  }
 0x3b3   : > { %7620 = vmatprep.subr.bf16.mxu1 %v8679_v4  ;;  %v8684_v6 = vld [vmem:[#allocation11 + $0x1f8] sm:$0xff]  }
 0x3b5   : > { %6849 = vmatpush3.bf16.msra.mxu0 %v8669_v24  ;;  %v1441_v24 = vsel %vm10760_vm6, %v10657_v40, 0  ;;  %v1444_v40 = vsel %vm10760_vm6, %v10680_v25, 0 }
 0x3b6   : > { %6850 = vmatprep.subr.bf16.mxu0 %v8672_v46  ;;  %7621 = vmatpush3.bf16.msra.mxu1 %v8679_v4  ;;  %v8681_v4 = vld [vmem:[#allocation11 + $0x1b0] sm:$0xff]   ;;  %v1442_v46 = vsel %vm10760_vm6, %v10664_v49, 0  ;;  %v1445_v49 = vsel %vm10760_vm6, %v10682_v23, 0  ;;  %v1505_v23 = vrot.slane %v1500_v28, 1 }
 0x3b7   : > { %7539 = vmatmul.mubr.bf16.gmra.mrb[76].mxu0 %v10820_v1  ;;  %7591 = vmatmul.mubr.bf16.gmra.mrb[80].mxu1 %v10827_v60 }
 0x3b8   : > { %7542 = vmatprep.mubr.bf16.mxu0 %v10827_v60  ;;  %7594 = vmatprep.mubr.bf16.mxu1 %v1440_v22 }
 0x3b9   : > { %6851 = vmatpush3.bf16.msra.mxu0 %v8673_v63  ;;  %7622 = vmatprep.subr.bf16.mxu1 %v8682_v12  ;;  %v8685_v63 = vld [vmem:[#allocation11 + $0x1b8] sm:$0xff]  }
 0x3ba   : > { %6852 = vmatprep.subr.bf16.mxu0 %v8676_v31  ;;  %7623 = vmatpush3.bf16.msra.mxu1 %v8682_v12  ;;  %v1443_v12 = vsel %vm10760_vm6, %v10666_v57, 0  ;;  %v1411_v31 = vrot.slane %v1343_v44, 1  ;;  %v1446_v57 = vsel %vm10760_vm6, %v10684_v9, 0  ;;  %v12819_v9 = vshrl.u32 %v10649_v7, 16 }
 0x3bb   : > { %7624 = vmatprep.subr.bf16.mxu1 %v8683_v30 }
 0x3bc   : > { %v1412_v25 = vor.u32 %v1411_v31, %v1340_v55  ;;  %v1506_v44 = vor.u32 %v1505_v23, %v12819_v9 }
 0x3bd   : > { %6853 = vmatpush3.bf16.msra.mxu0 %v8677_v27 }
 0x3be   : > { %6854 = vmatprep.subr.bf16.mxu0 %v8680_v52  ;;  %7625 = vmatpush3.bf16.msra.mxu1 %v8683_v30  ;;  %v10860_v30 = vsel %vm10760_vm6, %v1412_v25, 0  ;;  %v10871_v55 = vsel %vm10760_vm6, %v1506_v44, 0 }
 0x3bf   : > { %7543 = vmatmul.mubr.bf16.gmra.mrb[80].mxu0 %v1440_v22  ;;  %7595 = vmatmul.mubr.bf16.gmra.mrb[84].mxu1 %v1441_v24 }
 0x3c0   : > { %7546 = vmatprep.mubr.bf16.mxu0 %v1441_v24  ;;  %7598 = vmatprep.mubr.bf16.mxu1 %v1442_v46 }
 0x3c1   : > { %6855 = vmatpush3.bf16.msra.mxu0 %v8681_v4 }
 0x3c2   : > { %6856 = vmatprep.subr.bf16.mxu0 %v8684_v6 }
 0x3c5   : > { %6857 = vmatpush3.bf16.msra.mxu0 %v8685_v63 }
 0x3c6   : > { %7968 = vmatprep.subr.bf16.mxu0 %v12735_v0 }
 0x3c7   : > { %7547 = vmatmul.mubr.bf16.gmra.mrb[84].mxu0 %v1442_v46  ;;  %7599 = vmatmul.mubr.bf16.gmra.mrb[88].mxu1 %v1443_v12 }
 0x3c8   : > { %7550 = vmatprep.mubr.bf16.mxu0 %v1443_v12  ;;  %7602 = vmatprep.mubr.bf16.mxu1 %v1444_v40 }
 0x3cf   : > { %7551 = vmatmul.mubr.bf16.gmra.mrb[88].mxu0 %v1444_v40  ;;  %7603 = vmatmul.mubr.bf16.gmra.mrb[92].mxu1 %v1445_v49 }
 0x3d0   : > { %7554 = vmatprep.mubr.bf16.mxu0 %v1445_v49  ;;  %7606 = vmatprep.mubr.bf16.mxu1 %v1446_v57 }
 0x3d7   : > { %7555 = vmatmul.mubr.bf16.gmra.mrb[92].mxu0 %v1446_v57  ;;  %7607 = vmatmul.mubr.bf16.gmra.mrb[96].mxu1 %v10860_v30 }
 0x3d8   : > { %7558 = vmatprep.mubr.bf16.mxu0 %v10860_v30  ;;  %7626 = vmatprep.mubr.bf16.mxu1 %v10792_v36 }
 0x3df   : > { %7559 = vmatmul.mubr.bf16.gmra.mrb[96].mxu0 %v10871_v55  ;;  %7627 = vmatmul.mubr.bf16.vlgmr.msra.gmra.mrb[68].mxu1 %v10799_v59 }
 0x3e0   : > { %2713 = vmatprep.mubr.bf16.mxu0 %v10399_v29  ;;  %7630 = vmatprep.mubr.bf16.mxu1 %v10807_v3 }
 0x3e7   : > { %2714 = vmatmul.mubr.bf16.vlgmr.msra.gmra.mrb[100].mxu0 %v10451_v43  ;;  %7631 = vmatmul.mubr.bf16.gmra.mrb[72].mxu1 %v10813_v10 }
 0x3e8   : > { %2721 = vmatprep.mubr.bf16.mxu0 %v10411_v34  ;;  %7634 = vmatprep.mubr.bf16.mxu1 %v10820_v1 }
 0x3ef   : > { %2722 = vmatmul.mubr.bf16.gmra.mrb[104].mxu0 %v10499_v15  ;;  %7635 = vmatmul.mubr.bf16.gmra.mrb[76].mxu1 %v10827_v60 }
 0x3f0   : > { %2729 = vmatprep.mubr.bf16.mxu0 %v10417_v26  ;;  %7638 = vmatprep.mubr.bf16.mxu1 %v1440_v22 }
 0x3f7   : > { %2730 = vmatmul.mubr.bf16.gmra.mrb[108].mxu0 %v10545_v53  ;;  %7639 = vmatmul.mubr.bf16.gmra.mrb[80].mxu1 %v1441_v24 }
 0x3f8   : > { %2737 = vmatprep.mubr.bf16.mxu0 %v10426_v42  ;;  %7642 = vmatprep.mubr.bf16.mxu1 %v1442_v46 }
 0x3fa   : > { %v6586_v29 = vpop.f32.mrb[4].mxu0  ;;  %v6728_v43 = vpop.f32.mrb[8].mxu1 }
 0x3fb   : > { %v6587_v28 = vpop.f32.mrb[5].mxu0  ;;  %v6729_v36 = vpop.f32.mrb[9].mxu1 }
 0x3fc   : > { %v10886_v34 = vadd.f32 %v6729_v36, %v6728_v43  ;;  %v6589_v59 = vpop.f32.mrb[6].mxu0  ;;  %v6731_v3 = vpop.f32.mrb[10].mxu1  ;;  %v10888_v15 = vadd.f32 %v6587_v28, %v6586_v29 }
 0x3fd   : > { %v6590_v10 = vpop.f32.mrb[7].mxu0  ;;  %v6732_v1 = vpop.f32.mrb[11].mxu1 }
 0x3fe   : > { %v10890_v26 = vadd.f32 %v6732_v1, %v6731_v3  ;;  %v10892_v60 = vadd.f32 %v6590_v10, %v6589_v59 }
 0x3ff   : > { %2738 = vmatmul.mubr.bf16.gmra.mrb[112].mxu0 %v10598_v45  ;;  %7643 = vmatmul.mubr.bf16.gmra.mrb[84].mxu1 %v1443_v12 }
 0x400   : > { %2745 = vmatprep.mubr.bf16.mxu0 %v10432_v51  ;;  %7646 = vmatprep.mubr.bf16.mxu1 %v1444_v40 }
 0x402   : > { %v6592_v42 = vpop.f32.mrb[8].mxu0  ;;  %v6734_v53 = vpop.f32.mrb[12].mxu1 }
 0x403   : > { %v6593_v22 = vpop.f32.mrb[9].mxu0  ;;  %v6735_v27 = vpop.f32.mrb[13].mxu1 }
 0x404   : > { %v10896_v52 = vadd.f32 %v6735_v27, %v6734_v53  ;;  %v6595_v4 = vpop.f32.mrb[10].mxu0  ;;  %v6737_v24 = vpop.f32.mrb[14].mxu1  ;;  %v10898_v6 = vadd.f32 %v6593_v22, %v6592_v42 }
 0x405   : > { %v6596_v46 = vpop.f32.mrb[11].mxu0  ;;  %v6738_v63 = vpop.f32.mrb[15].mxu1 }
 0x406   : > { %v10900_v31 = vadd.f32 %v6738_v63, %v6737_v24  ;;  %v10902_v25 = vadd.f32 %v6596_v46, %v6595_v4 }
 0x407   : > { %2746 = vmatmul.mubr.bf16.gmra.mrb[116].mxu0 %v10627_v13  ;;  %7647 = vmatmul.mubr.bf16.gmra.mrb[88].mxu1 %v1445_v49 }
 0x408   : > { %2753 = vmatprep.mubr.bf16.mxu0 %v10443_v17  ;;  %7650 = vmatprep.mubr.bf16.mxu1 %v1446_v57 }
 0x40a   : > { %v6598_v51 = vpop.f32.mrb[12].mxu0  ;;  %v6740_v45 = vpop.f32.mrb[16].mxu1 }
 0x40b   : > { %v6599_v12 = vpop.f32.mrb[13].mxu0  ;;  %v6741_v40 = vpop.f32.mrb[17].mxu1 }
 0x40c   : > { %v10906_v23 = vadd.f32 %v6741_v40, %v6740_v45  ;;  %v6601_v9 = vpop.f32.mrb[14].mxu0  ;;  %v6743_v44 = vpop.f32.mrb[18].mxu1  ;;  %v10908_v29 = vadd.f32 %v6599_v12, %v6598_v51 }
 0x40d   : > { %v6602_v43 = vpop.f32.mrb[15].mxu0  ;;  %v6744_v28 = vpop.f32.mrb[19].mxu1 }
 0x40e   : > { %v10910_v36 = vadd.f32 %v6744_v28, %v6743_v44  ;;  %v10912_v59 = vadd.f32 %v6602_v43, %v6601_v9 }
 0x40f   : > { %2754 = vmatmul.mubr.bf16.gmra.mrb[120].mxu0 %v10661_v21  ;;  %7651 = vmatmul.mubr.bf16.gmra.mrb[92].mxu1 %v10860_v30 }
 0x410   : > { %2761 = vmatprep.mubr.bf16.mxu0 %v10468_v14  ;;  %7654 = vmatprep.mubr.bf16.mxu1 %v10871_v55 }
 0x412   : > { %v6604_v17 = vpop.f32.mrb[16].mxu0  ;;  %v6746_v13 = vpop.f32.mrb[20].mxu1 }
 0x413   : > { %v6605_v49 = vpop.f32.mrb[17].mxu0  ;;  %v6747_v57 = vpop.f32.mrb[21].mxu1 }
 0x414   : > { %v10918_v3 = vadd.f32 %v6747_v57, %v6746_v13  ;;  %v6607_v10 = vpop.f32.mrb[18].mxu0  ;;  %v6749_v1 = vpop.f32.mrb[22].mxu1  ;;  %v10920_v42 = vadd.f32 %v6605_v49, %v6604_v17 }
 0x415   : > { %v6608_v53 = vpop.f32.mrb[19].mxu0  ;;  %v6750_v22 = vpop.f32.mrb[23].mxu1 }
 0x416   : > { %v10922_v27 = vadd.f32 %v6750_v22, %v6749_v1  ;;  %v10924_v21 = vadd.f32 %v6608_v53, %v6607_v10 }
 0x417   : > { %2762 = vmatmul.mubr.bf16.gmra.mrb[124].mxu0 %v10688_v16  ;;  %7655 = vmatmul.mubr.bf16.gmra.mrb[96].mxu1 %v10766_v35 }
 0x418   : > { %2769 = vmatprep.mubr.bf16.mxu0 %v10470_v39 }
 0x41a   : > { %v6610_v14 = vpop.f32.mrb[20].mxu0  ;;  %v6752_v30 = vpop.f32.mrb[24].mxu1 }
 0x41b   : > { %v6611_v55 = vpop.f32.mrb[21].mxu0  ;;  %v6753_v4 = vpop.f32.mrb[25].mxu1 }
 0x41c   : > { %v10929_v24 = vadd.f32 %v6753_v4, %v6752_v30  ;;  %v6613_v46 = vpop.f32.mrb[22].mxu0  ;;  %v6755_v63 = vpop.f32.mrb[26].mxu1  ;;  %v10931_v51 = vadd.f32 %v6611_v55, %v6610_v14 }
 0x41d   : > { %v6614_v45 = vpop.f32.mrb[23].mxu0  ;;  %v6756_v12 = vpop.f32.mrb[27].mxu1 }
 0x41e   : > { %v10933_v40 = vadd.f32 %v6756_v12, %v6755_v63  ;;  %v10935_v9 = vadd.f32 %v6614_v45, %v6613_v46 }
 0x41f   : > { %2770 = vmatmul.mubr.bf16.gmra.mrb[128].mxu0 %v10696_v18 }
 0x420   : > { %2777 = vmatprep.mubr.bf16.mxu0 %v10553_v58 }
 0x422   : > { %v6616_v39 = vpop.f32.mrb[24].mxu0  ;;  %v6758_v16 = vpop.f32.mrb[28].mxu1 }
 0x423   : > { %v6617_v44 = vpop.f32.mrb[25].mxu0  ;;  %v6759_v43 = vpop.f32.mrb[29].mxu1 }
 0x424   : > { %v10939_v28 = vadd.f32 %v6759_v43, %v6758_v16  ;;  %v6619_v17 = vpop.f32.mrb[26].mxu0  ;;  %v6761_v13 = vpop.f32.mrb[30].mxu1  ;;  %v10941_v49 = vadd.f32 %v6617_v44, %v6616_v39 }
 0x425   : > { %v6620_v57 = vpop.f32.mrb[27].mxu0  ;;  %v6762_v10 = vpop.f32.mrb[31].mxu1 }
 0x426   : > { %v10943_v1 = vadd.f32 %v6762_v10, %v6761_v13  ;;  %v10945_v53 = vadd.f32 %v6620_v57, %v6619_v17 }
 0x427   : > { %2778 = vmatmul.mubr.bf16.gmra.mrb[132].mxu0 %v10704_v41 }
 0x428   : > { %2785 = vmatprep.mubr.bf16.mxu0 %v10577_v32 }
 0x42a   : > { %v6622_v58 = vpop.f32.mrb[28].mxu0  ;;  %v6764_v18 = vpop.f32.mrb[32].mxu1 }
 0x42b   : > { %v6623_v22 = vpop.f32.mrb[29].mxu0  ;;  %v6765_v14 = vpop.f32.mrb[33].mxu1 }
 0x42c   : > { %v10949_v30 = vadd.f32 %v6765_v14, %v6764_v18  ;;  %v6625_v55 = vpop.f32.mrb[30].mxu0  ;;  %v6767_v4 = vpop.f32.mrb[34].mxu1  ;;  %v10951_v46 = vadd.f32 %v6623_v22, %v6622_v58 }
 0x42d   : > { %v6626_v63 = vpop.f32.mrb[31].mxu0  ;;  %v6768_v45 = vpop.f32.mrb[35].mxu1 }
 0x42e   : > { %v10953_v12 = vadd.f32 %v6768_v45, %v6767_v4  ;;  %v10955_v39 = vadd.f32 %v6626_v63, %v6625_v55 }
 0x42f   : > { %2786 = vmatmul.mubr.bf16.gmra.mrb[136].mxu0 %v10714_v54 }
 0x430   : > { %2793 = vmatprep.mubr.bf16.mxu0 %v10593_v48 }
 0x432   : > { %v6628_v32 = vpop.f32.mrb[32].mxu0  ;;  %v6770_v41 = vpop.f32.mrb[36].mxu1 }
 0x433   : > { %v6629_v16 = vpop.f32.mrb[33].mxu0  ;;  %v6771_v44 = vpop.f32.mrb[37].mxu1 }
 0x434   : > { %v10959_v43 = vadd.f32 %v6771_v44, %v6770_v41  ;;  %v6631_v17 = vpop.f32.mrb[34].mxu0  ;;  %v6773_v13 = vpop.f32.mrb[38].mxu1  ;;  %v10961_v57 = vadd.f32 %v6629_v16, %v6628_v32 }
 0x435   : > { %v6632_v10 = vpop.f32.mrb[35].mxu0  ;;  %v6774_v58 = vpop.f32.mrb[39].mxu1 }
 0x436   : > { %v10963_v18 = vadd.f32 %v6774_v58, %v6773_v13  ;;  %v10965_v22 = vadd.f32 %v6632_v10, %v6631_v17 }
 0x437   : > { %2794 = vmatmul.mubr.bf16.gmra.mrb[140].mxu0 %v10726_v20 }
 0x438   : > { %2801 = vmatprep.mubr.bf16.mxu0 %v10611_v8 }
 0x43a   : > { %v6634_v48 = vpop.f32.mrb[36].mxu0  ;;  %v6776_v54 = vpop.f32.mrb[40].mxu1 }
 0x43b   : > { %v6635_v14 = vpop.f32.mrb[37].mxu0  ;;  %v6777_v55 = vpop.f32.mrb[41].mxu1 }
 0x43c   : > { %v10969_v4 = vadd.f32 %v6777_v55, %v6776_v54  ;;  %v6637_v63 = vpop.f32.mrb[38].mxu0  ;;  %v6779_v45 = vpop.f32.mrb[42].mxu1  ;;  %v10971_v32 = vadd.f32 %v6635_v14, %v6634_v48 }
 0x43d   : > { %v6638_v41 = vpop.f32.mrb[39].mxu0  ;;  %v6780_v16 = vpop.f32.mrb[43].mxu1 }
 0x43e   : > { %v10973_v44 = vadd.f32 %v6780_v16, %v6779_v45  ;;  %v10975_v17 = vadd.f32 %v6638_v41, %v6637_v63 }
 0x43f   : > { %2802 = vmatmul.mubr.bf16.gmra.mrb[144].mxu0 %v10736_v47 }
 0x440   : > { %2809 = vmatprep.mubr.bf16.mxu0 %v10617_v38 }
 0x442   : > { %v6640_v8 = vpop.f32.mrb[40].mxu0  ;;  %v6782_v20 = vpop.f32.mrb[44].mxu1 }
 0x443   : > { %v6641_v13 = vpop.f32.mrb[41].mxu0  ;;  %v6783_v10 = vpop.f32.mrb[45].mxu1 }
 0x444   : > { %v10979_v58 = vadd.f32 %v6783_v10, %v6782_v20  ;;  %v6643_v54 = vpop.f32.mrb[42].mxu0  ;;  %v6785_v55 = vpop.f32.mrb[46].mxu1  ;;  %v10981_v48 = vadd.f32 %v6641_v13, %v6640_v8 }
 0x445   : > { %v6644_v14 = vpop.f32.mrb[43].mxu0  ;;  %v6786_v0 = vpop.f32.mrb[47].mxu1 }
 0x446   : > { %12820 = vst [vmem:[#allocation42_spill] sm:$0xff] %v10979_v58  ;;  %v10983_v45 = vadd.f32 %v6786_v0, %v6785_v55  ;;  %v10985_v63 = vadd.f32 %v6644_v14, %v6643_v54 }
 0x447   : > { %2810 = vmatmul.mubr.bf16.gmra.mrb[148].mxu0 %v10747_v50 }
 0x448   : > { %12821 = vst [vmem:[#allocation43_spill] sm:$0xff] %v10983_v45  ;;  %2817 = vmatprep.mubr.bf16.mxu0 %v10630_v56 }
 0x44a   : > { %v6646_v38 = vpop.f32.mrb[44].mxu0  ;;  %v6788_v47 = vpop.f32.mrb[48].mxu1 }
 0x44b   : > { %v6647_v41 = vpop.f32.mrb[45].mxu0  ;;  %v6789_v16 = vpop.f32.mrb[49].mxu1 }
 0x44c   : > { %v10989_v20 = vadd.f32 %v6647_v41, %v6646_v38  ;;  %v10991_v10 = vadd.f32 %v6789_v16, %v6788_v47  ;;  %v6649_v8 = vpop.f32.mrb[46].mxu0  ;;  %v6791_v13 = vpop.f32.mrb[50].mxu1 }
 0x44d   : > { %v6650_v35 = vpop.f32.mrb[47].mxu0  ;;  %v6792_v62 = vpop.f32.mrb[51].mxu1 }
 0x44e   : > { %v10993_v0 = vadd.f32 %v6650_v35, %v6649_v8  ;;  %v10995_v54 = vadd.f32 %v6792_v62, %v6791_v13 }
 0x44f   : > { %2818 = vmatmul.mubr.bf16.gmra.mrb[152].mxu0 %v10770_v5  ;;  %v12826_v5 = vmov 0  }
 0x450   : > { %12822 = vst [vmem:[#allocation44_spill] sm:$0xff] %v10993_v0  ;;  %12823 = vst [vmem:[#allocation45_spill] sm:$0xff] %v10995_v54  ;;  %2825 = vmatprep.mubr.bf16.mxu0 %v10649_v7  ;;  %v3222_v0 = vld [vmem:[#allocation17 + $0x18] sm:$0xff] }
 0x452   : > { %v6652_v56 = vpop.f32.mrb[48].mxu0  ;;  %v6794_v50 = vpop.f32.mrb[52].mxu1 }
 0x453   : > { %v6653_v55 = vpop.f32.mrb[49].mxu0  ;;  %v6795_v14 = vpop.f32.mrb[53].mxu1 }
 0x454   : > { %v10999_v38 = vadd.f32 %v6653_v55, %v6652_v56  ;;  %v11001_v47 = vadd.f32 %v6795_v14, %v6794_v50  ;;  %v6655_v41 = vpop.f32.mrb[50].mxu0  ;;  %v6797_v16 = vpop.f32.mrb[54].mxu1  ;;  %v3219_v56 = vld [vmem:[#allocation17] sm:$0xff]  ;;  %v3220_v55 = vld [vmem:[#allocation17 + $0x8] sm:$0xff] }
 0x455   : > { %v6656_v19 = vpop.f32.mrb[51].mxu0  ;;  %v6798_v37 = vpop.f32.mrb[55].mxu1 }
 0x456   : > { %12824 = vst [vmem:[#allocation46_spill] sm:$0xff] %v11001_v47  ;;  %v11003_v35 = vadd.f32 %v6656_v19, %v6655_v41  ;;  %v11005_v62 = vadd.f32 %v6798_v37, %v6797_v16  ;;  %v11013_v19 = vpack.c.bf16 %v3220_v55, %v3219_v56 }
 0x457   : > { %2826 = vmatmul.mubr.bf16.gmra.mrb[156].mxu0 %v10783_v11 }
 0x458   : > { %12825 = vst [vmem:[#allocation47_spill] sm:$0xff] %v11005_v62  ;;  %2833 = vmatprep.mubr.bf16.mxu0 %v12826_v5  ;;  %12829 = vst [vmem:[#allocation50_spill] sm:$0xff] %v11013_v19  ;;  %7970 = vmatpush3.bf16.msra.mxu0 %v11013_v19  ;;  %v12832_v5 = vmov 0.0|0.0  }
 0x459   : > { %7971 = vmatprep.subr.bf16.mxu0 %v12832_v5 }
 0x45a   : > { %v6658_v7 = vpop.f32.mrb[52].mxu0  ;;  %v6800_v8 = vpop.f32.mrb[56].mxu1 }
 0x45b   : > { %v6659_v13 = vpop.f32.mrb[53].mxu0  ;;  %v6801_v45 = vpop.f32.mrb[57].mxu1 }
 0x45c   : > { %v11009_v50 = vadd.f32 %v6659_v13, %v6658_v7  ;;  %v11011_v14 = vadd.f32 %v6801_v45, %v6800_v8  ;;  %v6661_v47 = vpop.f32.mrb[54].mxu0  ;;  %v6803_v54 = vpop.f32.mrb[58].mxu1  ;;  %v12833_v7 = vmov 0.0  }
 0x45d   : > { %v6662_v37 = vpop.f32.mrb[55].mxu0  ;;  %v6804_v41 = vpop.f32.mrb[59].mxu1 }
 0x45e   : > { %12827 = vst [vmem:[#allocation48_spill] sm:$0xff] %v11009_v50  ;;  %12828 = vst [vmem:[#allocation49_spill] sm:$0xff] %v11011_v14  ;;  %v11015_v16 = vadd.f32 %v6662_v37, %v6661_v47  ;;  %v11017_v11 = vadd.f32 %v6804_v41, %v6803_v54  ;;  %v3221_v50 = vld [vmem:[#allocation17 + $0x10] sm:$0xff] }
 0x45f   : > { %2834 = vmatmul.mubr.bf16.gmra.mrb[160].mxu0 %v10238_v2 }
 0x460   : > { %12830 = vst [vmem:[#allocation51_spill] sm:$0xff] %v11015_v16  ;;  %12831 = vst [vmem:[#allocation52_spill] sm:$0xff] %v11017_v11  ;;  %7690 = vmatprep.mubr.msk.f32.mxu0 %vm9461_vm0, %v12833_v7 }
 0x462   : > { %v6664_v45 = vpop.f32.mrb[56].mxu0  ;;  %v6806_v8 = vpop.f32.mrb[60].mxu1 }
 0x463   : > { %v6665_v13 = vpop.f32.mrb[57].mxu0  ;;  %v6807_v56 = vpop.f32.mrb[61].mxu1 }
 0x464   : > { %v11024_v55 = vadd.f32 %v6665_v13, %v6664_v45  ;;  %v11026_v62 = vadd.f32 %v6807_v56, %v6806_v8  ;;  %v6667_v47 = vpop.f32.mrb[58].mxu0  ;;  %v6809_v54 = vpop.f32.mrb[62].mxu1  ;;  %v11036_v56 = vpack.c.bf16 %v3222_v0, %v3221_v50 }
 0x465   : > { %v6668_v37 = vpop.f32.mrb[59].mxu0  ;;  %v6810_v41 = vpop.f32.mrb[63].mxu1 }
 0x466   : > { %12834 = vst [vmem:[#allocation53_spill] sm:$0xff] %v11024_v55  ;;  %12835 = vst [vmem:[#allocation54_spill] sm:$0xff] %v11026_v62  ;;  %v11028_v19 = vadd.f32 %v6668_v37, %v6667_v47  ;;  %v11030_v2 = vadd.f32 %v6810_v41, %v6809_v54  ;;  %7973 = vmatpush3.bf16.msra.mxu0 %v11036_v56 }
 0x467   : > { %12837 = vst [vmem:[#allocation56_spill] sm:$0xff] %v11036_v56  ;;  %7974 = vmatprep.subr.bf16.mxu0 %v12832_v5 }
 0x468   : > { %12836 = vst [vmem:[#allocation55_spill] sm:$0xff] %v11030_v2 }
 0x46a   : > { %v6670_v11 = vpop.f32.mrb[60].mxu0  ;;  %v6812_v16 = vpop.f32.mrb[64].mxu1 }
 0x46b   : > { %v6671_v14 = vpop.f32.mrb[61].mxu0  ;;  %v6813_v7 = vpop.f32.mrb[65].mxu1 }
 0x46c   : > { %v11032_v58 = vadd.f32 %v6671_v14, %v6670_v11  ;;  %v11034_v45 = vadd.f32 %v6813_v7, %v6812_v16  ;;  %v6673_v8 = vpop.f32.mrb[62].mxu0  ;;  %v6815_v13 = vpop.f32.mrb[66].mxu1 }
 0x46d   : > { %v6674_v62 = vpop.f32.mrb[63].mxu0  ;;  %v6816_v55 = vpop.f32.mrb[67].mxu1 }
 0x46e   : > { %v11038_v47 = vadd.f32 %v6674_v62, %v6673_v8  ;;  %v11040_v54 = vadd.f32 %v6816_v55, %v6815_v13  ;;  %v3223_v62 = vld [vmem:[#allocation17 + $0x20] sm:$0xff]  ;;  %v3224_v8 = vld [vmem:[#allocation17 + $0x28] sm:$0xff] }
 0x46f   : > { %v11050_v56 = vpack.c.bf16 %v3224_v8, %v3223_v62 }
 0x470   : > { %12838 = vst [vmem:[#allocation57_spill] sm:$0xff] %v11040_v54 }
 0x471   : > { %12839 = vst [vmem:[#allocation58_spill] sm:$0xff] %v11050_v56  ;;  %7976 = vmatpush3.bf16.msra.mxu0 %v11050_v56 }
 0x472   : > { %v6676_v37 = vpop.f32.mrb[64].mxu0  ;;  %7977 = vmatprep.subr.bf16.mxu0 %v12832_v5 }
 0x473   : > { %v6677_v41 = vpop.f32.mrb[65].mxu0 }
 0x474   : > { %v11044_v14 = vadd.f32 %v6677_v41, %v6676_v37  ;;  %v6679_v16 = vpop.f32.mrb[66].mxu0 }
 0x475   : > { %v6680_v11 = vpop.f32.mrb[67].mxu0 }
 0x476   : > { %v11046_v7 = vadd.f32 %v6680_v11, %v6679_v16 }
 0x47a   : > { %v7532_v0 = vpop.f32.mrb[68].mxu0 }
 0x47b   : > { %v1905_v50 = vadd.f32 %v7532_v0, %v10898_v6  ;;  %v1896_v2 = vpop.f32.mrb[69].mxu0 }
 0x47c   : > { %v1897_v55 = vadd.f32 %v10888_v15, %v1896_v2  ;;  %v7533_v13 = vpop.f32.mrb[70].mxu0 }
 0x47d   : > { %v11053_v54 = vadd.f32 %v10886_v34, %v1905_v50  ;;  %v1908_v37 = vadd.f32 %v7533_v13, %v10902_v25  ;;  %v1899_v41 = vpop.f32.mrb[71].mxu0 }
 0x47e   : > { %v11057_v16 = vadd.f32 %v10710_v61, %v1897_v55  ;;  %v1900_v11 = vadd.f32 %v10892_v60, %v1899_v41 }
 0x47f   : > { %v11062_v6 = vadd.f32 %v10890_v26, %v1908_v37  ;;  %v3226_v37 = vld [vmem:[#allocation17 + $0x38] sm:$0xff] }
 0x480   : > { %v11066_v2 = vadd.f32 %v10720_v33, %v1900_v11 }
 0x482   : > { %v7536_v34 = vpop.f32.mrb[72].mxu0 }
 0x483   : > { %v1921_v15 = vadd.f32 %v7536_v34, %v10920_v42  ;;  %v1912_v25 = vpop.f32.mrb[73].mxu0 }
 0x484   : > { %v1913_v0 = vadd.f32 %v10908_v29, %v1912_v25  ;;  %v7537_v61 = vpop.f32.mrb[74].mxu0 }
 0x485   : > { %v11071_v50 = vadd.f32 %v10906_v23, %v1921_v15  ;;  %v1924_v60 = vadd.f32 %v7537_v61, %v10924_v21  ;;  %v1915_v62 = vpop.f32.mrb[75].mxu0  ;;  %v3225_v23 = vld [vmem:[#allocation17 + $0x30] sm:$0xff] }
 0x486   : > { %v11075_v26 = vadd.f32 %v10896_v52, %v1913_v0  ;;  %v1916_v8 = vadd.f32 %v10912_v59, %v1915_v62  ;;  %v11086_v11 = vpack.c.bf16 %v3226_v37, %v3225_v23 }
 0x487   : > { %v11079_v33 = vadd.f32 %v10910_v36, %v1924_v60 }
 0x488   : > { %v11082_v42 = vadd.f32 %v10900_v31, %v1916_v8  ;;  %12840 = vst [vmem:[#allocation59_spill] sm:$0xff] %v11086_v11  ;;  %7979 = vmatpush3.bf16.msra.mxu0 %v11086_v11 }
 0x489   : > { %7980 = vmatprep.subr.bf16.mxu0 %v12832_v5 }
 0x48a   : > { %v7540_v55 = vpop.f32.mrb[76].mxu0 }
 0x48b   : > { %v1937_v29 = vadd.f32 %v7540_v55, %v10941_v49  ;;  %v1928_v13 = vpop.f32.mrb[77].mxu0  ;;  %v3228_v55 = vld [vmem:[#allocation17 + $0x48] sm:$0xff] }
 0x48c   : > { %v1929_v21 = vadd.f32 %v10931_v51, %v1928_v13  ;;  %v7541_v41 = vpop.f32.mrb[78].mxu0 }
 0x48d   : > { %v11089_v52 = vadd.f32 %v10929_v24, %v1937_v29  ;;  %v1940_v36 = vadd.f32 %v7541_v41, %v10945_v53  ;;  %v1931_v59 = vpop.f32.mrb[79].mxu0 }
 0x48e   : > { %v11093_v31 = vadd.f32 %v10918_v3, %v1929_v21  ;;  %v1932_v34 = vadd.f32 %v10935_v9, %v1931_v59 }
 0x48f   : > { %v11098_v49 = vadd.f32 %v10933_v40, %v1940_v36 }
 0x490   : > { %v11102_v51 = vadd.f32 %v10922_v27, %v1932_v34  ;;  %v12843_v34 = vld [vmem:[#allocation44_spill] sm:$0xff] }
 0x492   : > { %v7544_v24 = vpop.f32.mrb[80].mxu0 }
 0x493   : > { %v1953_v15 = vadd.f32 %v7544_v24, %v10961_v57  ;;  %v1944_v53 = vpop.f32.mrb[81].mxu0 }
 0x494   : > { %v1945_v25 = vadd.f32 %v10951_v46, %v1944_v53  ;;  %v7545_v3 = vpop.f32.mrb[82].mxu0  ;;  %v12845_v53 = vld [vmem:[#allocation43_spill] sm:$0xff] }
 0x495   : > { %v11107_v0 = vadd.f32 %v10949_v30, %v1953_v15  ;;  %v1956_v9 = vadd.f32 %v7545_v3, %v10965_v22  ;;  %v1947_v61 = vpop.f32.mrb[83].mxu0  ;;  %v3227_v30 = vld [vmem:[#allocation17 + $0x40] sm:$0xff] }
 0x496   : > { %v11111_v40 = vadd.f32 %v10939_v28, %v1945_v25  ;;  %v1948_v60 = vadd.f32 %v10955_v39, %v1947_v61  ;;  %v11122_v13 = vpack.c.bf16 %v3228_v55, %v3227_v30  ;;  %v3230_v61 = vld [vmem:[#allocation17 + $0x58] sm:$0xff] }
 0x497   : > { %v11115_v27 = vadd.f32 %v10953_v12, %v1956_v9 }
 0x498   : > { %v11118_v57 = vadd.f32 %v10943_v1, %v1948_v60  ;;  %12841 = vst [vmem:[#allocation60_spill] sm:$0xff] %v11122_v13  ;;  %7982 = vmatpush3.bf16.msra.mxu0 %v11122_v13  ;;  %v12847_v60 = vld [vmem:[#allocation48_spill] sm:$0xff] }
 0x499   : > { %7983 = vmatprep.subr.bf16.mxu0 %v12832_v5 }
 0x49a   : > { %v7548_v62 = vpop.f32.mrb[84].mxu0 }
 0x49b   : > { %v1969_v46 = vadd.f32 %v7548_v62, %v10981_v48  ;;  %v1960_v8 = vpop.f32.mrb[85].mxu0 }
 0x49c   : > { %v1961_v22 = vadd.f32 %v10971_v32, %v1960_v8  ;;  %v7549_v29 = vpop.f32.mrb[86].mxu0  ;;  %v12849_v8 = vld [vmem:[#allocation49_spill] sm:$0xff] }
 0x49d   : > { %v11125_v28 = vadd.f32 %v10969_v4, %v1969_v46  ;;  %v1972_v12 = vadd.f32 %v7549_v29, %v10985_v63  ;;  %v1963_v39 = vpop.f32.mrb[87].mxu0  ;;  %v12850_v29 = vld [vmem:[#allocation46_spill] sm:$0xff] }
 0x49e   : > { %v11129_v1 = vadd.f32 %v10959_v43, %v1961_v22  ;;  %v1964_v23 = vadd.f32 %v10975_v17, %v1963_v39  ;;  %v12851_v39 = vld [vmem:[#allocation51_spill] sm:$0xff] }
 0x49f   : > { %v11134_v48 = vadd.f32 %v10973_v44, %v1972_v12  ;;  %v12842_v44 = vld [vmem:[#allocation42_spill] sm:$0xff] }
 0x4a0   : > { %v11138_v32 = vadd.f32 %v10963_v18, %v1964_v23  ;;  %v12844_v18 = vld [vmem:[#allocation45_spill] sm:$0xff] }
 0x4a2   : > { %v7552_v4 = vpop.f32.mrb[88].mxu0 }
 0x4a3   : > { %v1985_v37 = vadd.f32 %v7552_v4, %v10999_v38  ;;  %v1976_v63 = vpop.f32.mrb[89].mxu0  ;;  %v12852_v4 = vld [vmem:[#allocation52_spill] sm:$0xff] }
 0x4a4   : > { %v1977_v21 = vadd.f32 %v10989_v20, %v1976_v63  ;;  %v7553_v43 = vpop.f32.mrb[90].mxu0  ;;  %v12846_v20 = vld [vmem:[#allocation53_spill] sm:$0xff]  ;;  %v12853_v63 = vld [vmem:[#allocation47_spill] sm:$0xff] }
 0x4a5   : > { %v11143_v41 = vadd.f32 %v10991_v10, %v1985_v37  ;;  %v1988_v17 = vadd.f32 %v7553_v43, %v11003_v35  ;;  %v1979_v36 = vpop.f32.mrb[91].mxu0  ;;  %v3229_v10 = vld [vmem:[#allocation17 + $0x50] sm:$0xff] }
 0x4a6   : > { %v11147_v59 = vadd.f32 %v12842_v44, %v1977_v21  ;;  %v1980_v24 = vadd.f32 %v12843_v34, %v1979_v36  ;;  %v11158_v46 = vpack.c.bf16 %v3230_v61, %v3229_v10 }
 0x4a7   : > { %v11151_v15 = vadd.f32 %v12844_v18, %v1988_v17 }
 0x4a8   : > { %v11154_v38 = vadd.f32 %v12845_v53, %v1980_v24  ;;  %12848 = vst [vmem:[#allocation42_spill] sm:$0xff] %v11158_v46  ;;  %7985 = vmatpush3.bf16.msra.mxu0 %v11158_v46 }
 0x4a9   : > { %7986 = vmatprep.subr.bf16.mxu0 %v12832_v5 }
 0x4aa   : > { %v7556_v25 = vpop.f32.mrb[92].mxu0 }
 0x4ab   : > { %v2001_v3 = vadd.f32 %v7556_v25, %v12846_v20  ;;  %v1992_v9 = vpop.f32.mrb[93].mxu0 }
 0x4ac   : > { %v1993_v35 = vadd.f32 %v12847_v60, %v1992_v9  ;;  %v7557_v62 = vpop.f32.mrb[94].mxu0  ;;  %v12855_v9 = vld [vmem:[#allocation54_spill] sm:$0xff]  ;;  %v12856_v60 = vld [vmem:[#allocation57_spill] sm:$0xff] }
 0x4ad   : > { %v11161_v30 = vadd.f32 %v12849_v8, %v2001_v3  ;;  %v2004_v55 = vadd.f32 %v7557_v62, %v11028_v19  ;;  %v1995_v22 = vpop.f32.mrb[95].mxu0 }
 0x4ae   : > { %v11165_v12 = vadd.f32 %v12850_v29, %v1993_v35  ;;  %v1996_v23 = vadd.f32 %v12851_v39, %v1995_v22  ;;  %v12858_v35 = vld [vmem:[#allocation55_spill] sm:$0xff]  ;;  %v3231_v22 = vld [vmem:[#allocation17 + $0x60] sm:$0xff]  ;;  %v3232_v29 = vld [vmem:[#allocation17 + $0x68] sm:$0xff] }
 0x4af   : > { %v11170_v37 = vadd.f32 %v12852_v4, %v2004_v55  ;;  %v11192_v4 = vpack.c.bf16 %v3232_v29, %v3231_v22 }
 0x4b0   : > { %v11174_v21 = vadd.f32 %v12853_v63, %v1996_v23 }
 0x4b1   : > { %12859 = vst [vmem:[#allocation43_spill] sm:$0xff] %v11192_v4  ;;  %7988 = vmatpush3.bf16.msra.mxu0 %v11192_v4 }
 0x4b2   : > { %v7560_v43 = vpop.f32.mrb[96].mxu0  ;;  %v7628_v17 = vpop.f32.mrb[68].mxu1  ;;  %7989 = vmatprep.subr.bf16.mxu0 %v12832_v5 }
 0x4b3   : > { %v2017_v19 = vadd.f32 %v7560_v43, %v11044_v14  ;;  %v2008_v36 = vpop.f32.mrb[97].mxu0  ;;  %v2876_v44 = vpop.f32.mrb[69].mxu1 }
 0x4b4   : > { %v2009_v34 = vadd.f32 %v11032_v58, %v2008_v36  ;;  %v7561_v24 = vpop.f32.mrb[98].mxu0  ;;  %v7629_v18 = vpop.f32.mrb[70].mxu1 }
 0x4b5   : > { %v11179_v53 = vadd.f32 %v11034_v45, %v2017_v19  ;;  %v2020_v25 = vadd.f32 %v7561_v24, %v11046_v7  ;;  %v2011_v20 = vpop.f32.mrb[99].mxu0  ;;  %v2879_v3 = vpop.f32.mrb[71].mxu1 }
 0x4b6   : > { %v11183_v10 = vadd.f32 %v12855_v9, %v2009_v34  ;;  %v2012_v61 = vadd.f32 %v11038_v47, %v2011_v20 }
 0x4b7   : > { %12854 = vst [vmem:[#allocation44_spill] sm:$0xff] %v11179_v53  ;;  %v11187_v14 = vadd.f32 %v12856_v60, %v2020_v25 }
 0x4b8   : > { %v11190_v62 = vadd.f32 %v12858_v35, %v2012_v61 }
 0x4b9   : > { %12857 = vst [vmem:[#allocation45_spill] sm:$0xff] %v11187_v14 }
 0x4ba   : > { %v6858_v58 = vpop.f32.mrb[100].mxu0  ;;  %v7632_v8 = vpop.f32.mrb[72].mxu1 }
 0x4bb   : > { %v6859_v55 = vpop.f32.mrb[101].mxu0  ;;  %v2892_v45 = vpop.f32.mrb[73].mxu1 }
 0x4bc   : > { %v6860_v7 = vadd.f32 %v6859_v55, %v6858_v58  ;;  %v6861_v39 = vpop.f32.mrb[102].mxu0  ;;  %v7633_v23 = vpop.f32.mrb[74].mxu1  ;;  %v3234_v55 = vld [vmem:[#allocation17 + $0x78] sm:$0xff] }
 0x4bd   : > { %v6862_v63 = vpop.f32.mrb[103].mxu0  ;;  %v2895_v43 = vpop.f32.mrb[75].mxu1 }
 0x4be   : > { %v8022_v47 = vadd.f32 %v6860_v7, %v11057_v16  ;;  %v6863_v19 = vadd.f32 %v6862_v63, %v6861_v39  ;;  %v3233_v16 = vld [vmem:[#allocation17 + $0x70] sm:$0xff] }
 0x4bf   : > { %v11204_v7 = vpack.c.bf16 %v3234_v55, %v3233_v16 }
 0x4c0   : > { %v11197_v36 = vadd.f32 %v8022_v47, %v2876_v44  ;;  %v8030_v34 = vadd.f32 %v6863_v19, %v11066_v2 }
 0x4c1   : > { %12860 = vst [vmem:[#allocation53_spill] sm:$0xff] %v11204_v7  ;;  %7991 = vmatpush3.bf16.msra.mxu0 %v11204_v7 }
 0x4c2   : > { %v8031_v24 = vadd.f32 %v8030_v34, %v2879_v3  ;;  %v6864_v25 = vpop.f32.mrb[104].mxu0  ;;  %v11200_v20 = vpop.f32.mrb[76].mxu1  ;;  %7992 = vmatprep.subr.bf16.mxu0 %v12832_v5 }
 0x4c3   : > { %v6865_v9 = vpop.f32.mrb[105].mxu0  ;;  %v2908_v61 = vpop.f32.mrb[77].mxu1 }
 0x4c4   : > { %v6866_v60 = vadd.f32 %v6865_v9, %v6864_v25  ;;  %v6867_v35 = vpop.f32.mrb[106].mxu0  ;;  %v11202_v58 = vpop.f32.mrb[78].mxu1 }
 0x4c5   : > { %v6868_v22 = vpop.f32.mrb[107].mxu0  ;;  %v2911_v29 = vpop.f32.mrb[79].mxu1 }
 0x4c6   : > { %v8018_v44 = vadd.f32 %v6866_v60, %v11053_v54  ;;  %v6869_v39 = vadd.f32 %v6868_v22, %v6867_v35 }
 0x4c8   : > { %v8019_v2 = vadd.f32 %v8018_v44, %v7628_v17  ;;  %v8026_v3 = vadd.f32 %v6869_v39, %v11062_v6 }
 0x4ca   : > { %v8027_v63 = vadd.f32 %v8026_v3, %v7629_v18  ;;  %v6870_v47 = vpop.f32.mrb[108].mxu0  ;;  %v11210_v19 = vpop.f32.mrb[80].mxu1 }
 0x4cb   : > { %v6871_v34 = vpop.f32.mrb[109].mxu0  ;;  %v11212_v25 = vpop.f32.mrb[81].mxu1 }
 0x4cc   : > { %v6872_v9 = vadd.f32 %v6871_v34, %v6870_v47  ;;  %v6873_v16 = vpop.f32.mrb[110].mxu0  ;;  %v11214_v55 = vpop.f32.mrb[82].mxu1 }
 0x4cd   : > { %v6874_v54 = vpop.f32.mrb[111].mxu0  ;;  %v11216_v60 = vpop.f32.mrb[83].mxu1 }
 0x4ce   : > { %v8038_v17 = vadd.f32 %v6872_v9, %v11075_v26  ;;  %v6875_v35 = vadd.f32 %v6874_v54, %v6873_v16 }
 0x4d0   : > { %v8039_v6 = vadd.f32 %v8038_v17, %v2892_v45  ;;  %v8046_v22 = vadd.f32 %v6875_v35, %v11082_v42 }
 0x4d2   : > { %v6876_v18 = vpop.f32.mrb[112].mxu0  ;;  %v11220_v44 = vpop.f32.mrb[84].mxu1  ;;  %v8047_v39 = vadd.f32 %v8046_v22, %v2895_v43 }
 0x4d3   : > { %v6877_v3 = vpop.f32.mrb[113].mxu0  ;;  %v11222_v7 = vpop.f32.mrb[85].mxu1 }
 0x4d4   : > { %v6878_v47 = vadd.f32 %v6877_v3, %v6876_v18  ;;  %v6879_v34 = vpop.f32.mrb[114].mxu0  ;;  %v11224_v4 = vpop.f32.mrb[86].mxu1 }
 0x4d5   : > { %v6880_v46 = vpop.f32.mrb[115].mxu0  ;;  %v11226_v13 = vpop.f32.mrb[87].mxu1 }
 0x4d6   : > { %v8034_v26 = vadd.f32 %v6878_v47, %v11071_v50  ;;  %v6881_v9 = vadd.f32 %v6880_v46, %v6879_v34  ;;  %v11238_v50 = vld [vmem:[#allocation13] ss:$0 sm:$0xff] }
 0x4d7   : > { %v3042_v47 = vadd.f32 %v11197_v36, %v11238_v50 }
 0x4d8   : > { %v8035_v45 = vadd.f32 %v8034_v26, %v7632_v8  ;;  %v8042_v42 = vadd.f32 %v6881_v9, %v11079_v33  ;;  %v3043_v8 = vadd.f32 %v8031_v24, %v11238_v50  ;;  %v11247_v26 = vld [vmem:[%s583_s6] ss:$0 sm:$0xff]  ;;  %v3044_v9 = vadd.f32 %v8019_v2, %v11238_v50 }
 0x4da   : > { %v8043_v16 = vadd.f32 %v8042_v42, %v7633_v23  ;;  %v6882_v54 = vpop.f32.mrb[116].mxu0  ;;  %v11230_v43 = vpop.f32.mrb[88].mxu1  ;;  %v11265_v2 = vadd.f32 %v11247_v26, %v3044_v9 }
 0x4db   : > { %v6883_v17 = vpop.f32.mrb[117].mxu0  ;;  %v11232_v35 = vpop.f32.mrb[89].mxu1 }
 0x4dc   : > { %v6884_v22 = vadd.f32 %v6883_v17, %v6882_v54  ;;  %v6885_v18 = vpop.f32.mrb[118].mxu0  ;;  %v11234_v3 = vpop.f32.mrb[90].mxu1 }
 0x4dd   : > { %v6886_v11 = vpop.f32.mrb[119].mxu0  ;;  %v11236_v56 = vpop.f32.mrb[91].mxu1 }
 0x4de   : > { %v8054_v46 = vadd.f32 %v6884_v22, %v11093_v31  ;;  %v6887_v33 = vadd.f32 %v6886_v11, %v6885_v18  ;;  %v11255_v11 = vadd.f32 %v11247_v26, %v3043_v8  ;;  %v3046_v8 = vadd.f32 %v8039_v6, %v11238_v50 }
 0x4e0   : > { %v8055_v23 = vadd.f32 %v8054_v46, %v2908_v61  ;;  %v8062_v34 = vadd.f32 %v6887_v33, %v11102_v51  ;;  %v11260_v51 = vadd.f32 %v11247_v26, %v3042_v47 }
 0x4e2   : > { %v6888_v42 = vpop.f32.mrb[120].mxu0  ;;  %v11250_v54 = vpop.f32.mrb[92].mxu1  ;;  %v8063_v17 = vadd.f32 %v8062_v34, %v2911_v29  ;;  %v3045_v29 = vadd.f32 %v8027_v63, %v11238_v50 }
 0x4e3   : > { %v6889_v5 = vpop.f32.mrb[121].mxu0  ;;  %v11252_v31 = vpop.f32.mrb[93].mxu1 }
 0x4e4   : > { %v6890_v24 = vadd.f32 %v6889_v5, %v6888_v42  ;;  %v6891_v61 = vpop.f32.mrb[122].mxu0  ;;  %v11257_v36 = vpop.f32.mrb[94].mxu1  ;;  %v3113_v5 = vadd.f32 %v11255_v11, %v11260_v51  ;;  %v11276_v14 = vadd.f32 %v11247_v26, %v3045_v29 }
 0x4e5   : > { %v6892_v22 = vpop.f32.mrb[123].mxu0  ;;  %v11262_v18 = vpop.f32.mrb[95].mxu1 }
 0x4e6   : > { %v8050_v46 = vadd.f32 %v6890_v24, %v11089_v52  ;;  %v6893_v33 = vadd.f32 %v6892_v22, %v6891_v61  ;;  %v3114_v42 = vadd.f32 %v3113_v5, %v11265_v2  ;;  %v11284_v61 = vadd.f32 %v11247_v26, %v3046_v8 }
 0x4e8   : > { %v8051_v34 = vadd.f32 %v8050_v46, %v11200_v20  ;;  %v8058_v47 = vadd.f32 %v6893_v33, %v11098_v49  ;;  %v3047_v20 = vadd.f32 %v8047_v39, %v11238_v50  ;;  %v3048_v33 = vadd.f32 %v8035_v45, %v11238_v50 }
 0x4ea   : > { %v8059_v9 = vadd.f32 %v8058_v47, %v11202_v58  ;;  %v6894_v63 = vpop.f32.mrb[124].mxu0  ;;  %v11279_v53 = vpop.f32.mrb[96].mxu1  ;;  %v3115_v58 = vadd.f32 %v3114_v42, %v11276_v14  ;;  %v11296_v8 = vadd.f32 %v11247_v26, %v3047_v20 }
 0x4eb   : > { %12861 = vst [vmem:[#allocation48_spill] sm:$0xff] %v11279_v53  ;;  %v6895_v52 = vpop.f32.mrb[125].mxu0  ;;  %v11281_v24 = vpop.f32.mrb[97].mxu1 }
 0x4ec   : > { %v6896_v6 = vadd.f32 %v6895_v52, %v6894_v63  ;;  %v6897_v49 = vpop.f32.mrb[126].mxu0  ;;  %v11287_v22 = vpop.f32.mrb[98].mxu1  ;;  %v3116_v53 = vadd.f32 %v3115_v58, %v11284_v61  ;;  %v11301_v52 = vadd.f32 %v11247_v26, %v3048_v33 }
 0x4ed   : > { %12862 = vst [vmem:[#allocation49_spill] sm:$0xff] %v11287_v22  ;;  %v6898_v46 = vpop.f32.mrb[127].mxu0  ;;  %v11289_v29 = vpop.f32.mrb[99].mxu1  ;;  %v3049_v22 = vadd.f32 %v8043_v16, %v11238_v50 }
 0x4ee   : > { %12863 = vst [vmem:[#allocation46_spill] sm:$0xff] %v11289_v29  ;;  %v8070_v5 = vadd.f32 %v6896_v6, %v11111_v40  ;;  %v6899_v47 = vadd.f32 %v6898_v46, %v6897_v49  ;;  %v3117_v40 = vadd.f32 %v3116_v53, %v11296_v8  ;;  %v3050_v6 = vadd.f32 %v8055_v23, %v11238_v50 }
 0x4ef   : > { %v11311_v58 = vadd.f32 %v11247_v26, %v3049_v22  ;;  %v3152_v53 = vmul.f32 %v11265_v2, %v11265_v2 }
 0x4f0   : > { %v8071_v39 = vadd.f32 %v8070_v5, %v11212_v25  ;;  %v8078_v63 = vadd.f32 %v6899_v47, %v11118_v57  ;;  %v3151_v25 = vmul.f32 %v11255_v11, %v11255_v11  ;;  %v3118_v57 = vadd.f32 %v3117_v40, %v11301_v52 }
 0x4f1   : > { %v11319_v23 = vadd.f32 %v11247_v26, %v3050_v6 }
 0x4f2   : > { %v6900_v42 = vpop.f32.mrb[128].mxu0  ;;  %v8079_v45 = vadd.f32 %v8078_v63, %v11216_v60  ;;  %v3150_v60 = vmul.f32 %v11260_v51, %v11260_v51  ;;  %v3119_v63 = vadd.f32 %v3118_v57, %v11311_v58 }
 0x4f3   : > { %v6901_v29 = vpop.f32.mrb[129].mxu0 }
 0x4f4   : > { %v6902_v49 = vadd.f32 %v6901_v29, %v6900_v42  ;;  %v6903_v20 = vpop.f32.mrb[130].mxu0  ;;  %v3051_v29 = vadd.f32 %v8063_v17, %v11238_v50  ;;  %v3182_v22 = vadd.f32 %v3151_v25, %v3150_v60  ;;  %v3154_v25 = vmul.f32 %v11284_v61, %v11284_v61 }
 0x4f5   : > { %v6904_v46 = vpop.f32.mrb[131].mxu0 }
 0x4f6   : > { %v8066_v16 = vadd.f32 %v6902_v49, %v11107_v0  ;;  %v6905_v33 = vadd.f32 %v6904_v46, %v6903_v20  ;;  %v3052_v0 = vadd.f32 %v8051_v34, %v11238_v50  ;;  %v3183_v49 = vadd.f32 %v3182_v22, %v3152_v53 }
 0x4f7   : > { %v3153_v20 = vmul.f32 %v11276_v14, %v11276_v14  ;;  %v3120_v46 = vadd.f32 %v3119_v63, %v11319_v23  ;;  %v11331_v17 = vadd.f32 %v11247_v26, %v3051_v29  ;;  %v3054_v29 = vadd.f32 %v8071_v39, %v11238_v50 }
 0x4f8   : > { %v8067_v5 = vadd.f32 %v8066_v16, %v11210_v19  ;;  %v8074_v47 = vadd.f32 %v6905_v33, %v11115_v27  ;;  %v11336_v34 = vadd.f32 %v11247_v26, %v3052_v0  ;;  %v3155_v63 = vmul.f32 %v11296_v8, %v11296_v8 }
 0x4f9   : > { %v3184_v33 = vadd.f32 %v3183_v49, %v3153_v20  ;;  %v3121_v53 = vadd.f32 %v3120_v46, %v11331_v17  ;;  %v3156_v49 = vmul.f32 %v11301_v52, %v11301_v52 }
 0x4fa   : > { %v8075_v42 = vadd.f32 %v8074_v47, %v11214_v55  ;;  %v6906_v40 = vpop.f32.mrb[132].mxu0  ;;  %v3053_v55 = vadd.f32 %v8059_v9, %v11238_v50 }
 0x4fb   : > { %v6907_v6 = vpop.f32.mrb[133].mxu0  ;;  %v3185_v22 = vadd.f32 %v3184_v33, %v3154_v25  ;;  %v3122_v0 = vadd.f32 %v3121_v53, %v11336_v34 }
 0x4fc   : > { %v6908_v19 = vadd.f32 %v6907_v6, %v6906_v40  ;;  %v6909_v27 = vpop.f32.mrb[134].mxu0  ;;  %v11348_v9 = vadd.f32 %v11247_v26, %v3053_v55  ;;  %v3055_v6 = vadd.f32 %v8079_v45, %v11238_v50 }
 0x4fd   : > { %v6910_v57 = vpop.f32.mrb[135].mxu0 }
 0x4fe   : > { %v8086_v16 = vadd.f32 %v6908_v19, %v11129_v1  ;;  %v6911_v60 = vadd.f32 %v6910_v57, %v6909_v27  ;;  %v3123_v25 = vadd.f32 %v3122_v0, %v11348_v9  ;;  %v3056_v57 = vadd.f32 %v8067_v5, %v11238_v50 }
 0x4ff   : > { %v11364_v53 = vadd.f32 %v11247_v26, %v3055_v6 }
 0x500   : > { %v8087_v47 = vadd.f32 %v8086_v16, %v11222_v7  ;;  %v8094_v40 = vadd.f32 %v6911_v60, %v11138_v32  ;;  %v11354_v7 = vadd.f32 %v11247_v26, %v3054_v29  ;;  %v3186_v32 = vadd.f32 %v3185_v22, %v3155_v63 }
 0x501   : > { %v3158_v22 = vmul.f32 %v11319_v23, %v11319_v23  ;;  %v11371_v5 = vadd.f32 %v11247_v26, %v3056_v57 }
 0x502   : > { %v6912_v1 = vpop.f32.mrb[136].mxu0  ;;  %v8095_v20 = vadd.f32 %v8094_v40, %v11226_v13  ;;  %v3187_v33 = vadd.f32 %v3186_v32, %v3156_v49  ;;  %v3157_v13 = vmul.f32 %v11311_v58, %v11311_v58  ;;  %v3124_v60 = vadd.f32 %v3123_v25, %v11354_v7 }
 0x503   : > { %v6913_v39 = vpop.f32.mrb[137].mxu0 }
 0x504   : > { %v6914_v46 = vadd.f32 %v6913_v39, %v6912_v1  ;;  %v6915_v19 = vpop.f32.mrb[138].mxu0  ;;  %v3188_v0 = vadd.f32 %v3187_v33, %v3157_v13  ;;  %v3125_v49 = vadd.f32 %v3124_v60, %v11364_v53  ;;  %v3058_v39 = vadd.f32 %v8087_v47, %v11238_v50 }
 0x505   : > { %v6916_v27 = vpop.f32.mrb[139].mxu0  ;;  %v3059_v57 = vadd.f32 %v8095_v20, %v11238_v50 }
 0x506   : > { %v8082_v55 = vadd.f32 %v6914_v46, %v11125_v28  ;;  %v6917_v16 = vadd.f32 %v6916_v27, %v6915_v19  ;;  %v3057_v28 = vadd.f32 %v8075_v42, %v11238_v50  ;;  %v3159_v46 = vmul.f32 %v11331_v17, %v11331_v17 }
 0x507   : > { %v3126_v32 = vadd.f32 %v3125_v49, %v11371_v5  ;;  %v3160_v27 = vmul.f32 %v11336_v34, %v11336_v34  ;;  %v11387_v47 = vadd.f32 %v11247_v26, %v3058_v39  ;;  %v11399_v20 = vadd.f32 %v11247_v26, %v3059_v57 }
 0x508   : > { %v8083_v45 = vadd.f32 %v8082_v55, %v11220_v44  ;;  %v8090_v29 = vadd.f32 %v6917_v16, %v11134_v48  ;;  %v3189_v48 = vadd.f32 %v3188_v0, %v3158_v22  ;;  %v11381_v42 = vadd.f32 %v11247_v26, %v3057_v28 }
 0x509   : > { %v3161_v22 = vmul.f32 %v11348_v9, %v11348_v9 }
 0x50a   : > { %v8091_v63 = vadd.f32 %v8090_v29, %v11224_v4  ;;  %v6918_v40 = vpop.f32.mrb[140].mxu0  ;;  %v3190_v16 = vadd.f32 %v3189_v48, %v3159_v46  ;;  %v3127_v13 = vadd.f32 %v3126_v32, %v11381_v42  ;;  %v3060_v60 = vadd.f32 %v8083_v45, %v11238_v50 }
 0x50b   : > { %v6919_v1 = vpop.f32.mrb[141].mxu0 }
 0x50c   : > { %v6920_v44 = vadd.f32 %v6919_v1, %v6918_v40  ;;  %v6921_v6 = vpop.f32.mrb[142].mxu0  ;;  %v3128_v0 = vadd.f32 %v3127_v13, %v11387_v47  ;;  %v11404_v45 = vadd.f32 %v11247_v26, %v3060_v60  ;;  %v3061_v39 = vadd.f32 %v8091_v63, %v11238_v50 }
 0x50d   : > { %v6922_v19 = vpop.f32.mrb[143].mxu0 }
 0x50e   : > { %v8102_v4 = vadd.f32 %v6920_v44, %v11147_v59  ;;  %v6923_v25 = vadd.f32 %v6922_v19, %v6921_v6  ;;  %v3191_v59 = vadd.f32 %v3190_v16, %v3160_v27  ;;  %v3129_v48 = vadd.f32 %v3128_v0, %v11399_v20 }
 0x50f   : > { %v3163_v27 = vmul.f32 %v11364_v53, %v11364_v53  ;;  %v11416_v63 = vadd.f32 %v11247_v26, %v3061_v39  ;;  %v3164_v16 = vmul.f32 %v11371_v5, %v11371_v5  ;;  %v3165_v0 = vmul.f32 %v11381_v42, %v11381_v42 }
 0x510   : > { %v8103_v55 = vadd.f32 %v8102_v4, %v11232_v35  ;;  %v8110_v33 = vadd.f32 %v6923_v25, %v11154_v38  ;;  %v3162_v38 = vmul.f32 %v11354_v7, %v11354_v7  ;;  %v3192_v6 = vadd.f32 %v3191_v59, %v3161_v22 }
 0x511   : > { %v3130_v25 = vadd.f32 %v3129_v48, %v11404_v45 }
 0x512   : > { %v6924_v29 = vpop.f32.mrb[144].mxu0  ;;  %v8111_v28 = vadd.f32 %v8110_v33, %v11236_v56  ;;  %v3062_v46 = vadd.f32 %v8103_v55, %v11238_v50  ;;  %v3193_v4 = vadd.f32 %v3192_v6, %v3162_v38 }
 0x513   : > { %v6925_v40 = vpop.f32.mrb[145].mxu0  ;;  %v3131_v59 = vadd.f32 %v3130_v25, %v11416_v63 }
 0x514   : > { %v6926_v35 = vadd.f32 %v6925_v40, %v6924_v29  ;;  %v6927_v1 = vpop.f32.mrb[146].mxu0  ;;  %v3194_v60 = vadd.f32 %v3193_v4, %v3163_v27 }
 0x515   : > { %v6928_v49 = vpop.f32.mrb[147].mxu0 }
 0x516   : > { %v8098_v44 = vadd.f32 %v6926_v35, %v11143_v41  ;;  %v6929_v56 = vadd.f32 %v6928_v49, %v6927_v1  ;;  %v3195_v40 = vadd.f32 %v3194_v60, %v3164_v16  ;;  %v3166_v49 = vmul.f32 %v11387_v47, %v11387_v47 }
 0x518   : > { %v8099_v19 = vadd.f32 %v8098_v44, %v11230_v43  ;;  %v8106_v32 = vadd.f32 %v6929_v56, %v11151_v15  ;;  %v11422_v43 = vadd.f32 %v11247_v26, %v3062_v46  ;;  %v3063_v15 = vadd.f32 %v8111_v28, %v11238_v50 }
 0x519   : > { %v3196_v6 = vadd.f32 %v3195_v40, %v3165_v0  ;;  %v3169_v0 = vmul.f32 %v11416_v63, %v11416_v63 }
 0x51a   : > { %v8107_v41 = vadd.f32 %v8106_v32, %v11234_v3  ;;  %v6930_v57 = vpop.f32.mrb[148].mxu0  ;;  %v3064_v22 = vadd.f32 %v8099_v19, %v11238_v50  ;;  %v3132_v1 = vadd.f32 %v3131_v59, %v11422_v43  ;;  %v11432_v38 = vadd.f32 %v11247_v26, %v3063_v15 }
 0x51b   : > { %v6931_v55 = vpop.f32.mrb[149].mxu0  ;;  %v3197_v27 = vadd.f32 %v3196_v6, %v3166_v49  ;;  %v3170_v49 = vmul.f32 %v11422_v43, %v11422_v43 }
 0x51c   : > { %v6932_v33 = vadd.f32 %v6931_v55, %v6930_v57  ;;  %v6933_v13 = vpop.f32.mrb[150].mxu0  ;;  %v11439_v44 = vadd.f32 %v11247_v26, %v3064_v22  ;;  %v3133_v19 = vadd.f32 %v3132_v1, %v11432_v38  ;;  %v3168_v55 = vmul.f32 %v11404_v45, %v11404_v45 }
 0x51d   : > { %v6934_v29 = vpop.f32.mrb[151].mxu0 }
 0x51e   : > { %v8118_v3 = vadd.f32 %v6932_v33, %v11165_v12  ;;  %v6935_v35 = vadd.f32 %v6934_v29, %v6933_v13  ;;  %v3065_v12 = vadd.f32 %v8107_v41, %v11238_v50  ;;  %v3134_v57 = vadd.f32 %v3133_v19, %v11439_v44 }
 0x520   : > { %v8119_v28 = vadd.f32 %v8118_v3, %v11252_v31  ;;  %v8126_v39 = vadd.f32 %v6935_v35, %v11174_v21  ;;  %v3167_v21 = vmul.f32 %v11399_v20, %v11399_v20  ;;  %v11449_v41 = vadd.f32 %v11247_v26, %v3065_v12 }
 0x522   : > { %v6936_v56 = vpop.f32.mrb[152].mxu0  ;;  %v8127_v48 = vadd.f32 %v8126_v39, %v11262_v18  ;;  %v3066_v32 = vadd.f32 %v8119_v28, %v11238_v50  ;;  %v3198_v29 = vadd.f32 %v3197_v27, %v3167_v21  ;;  %v3135_v59 = vadd.f32 %v3134_v57, %v11449_v41 }
 0x523   : > { %v6937_v46 = vpop.f32.mrb[153].mxu0  ;;  %v3172_v57 = vmul.f32 %v11439_v44, %v11439_v44 }
 0x524   : > { %v6938_v31 = vadd.f32 %v6937_v46, %v6936_v56  ;;  %v6939_v4 = vpop.f32.mrb[154].mxu0  ;;  %v11455_v15 = vadd.f32 %v11247_v26, %v3066_v32  ;;  %v3067_v33 = vadd.f32 %v8127_v48, %v11238_v50  ;;  %v3199_v40 = vadd.f32 %v3198_v29, %v3168_v55 }
 0x525   : > { %v6940_v25 = vpop.f32.mrb[155].mxu0 }
 0x526   : > { %v8114_v16 = vadd.f32 %v6938_v31, %v11161_v30  ;;  %v6941_v18 = vadd.f32 %v6940_v25, %v6939_v4  ;;  %v3136_v1 = vadd.f32 %v3135_v59, %v11455_v15  ;;  %v11467_v28 = vadd.f32 %v11247_v26, %v3067_v33 }
 0x527   : > { %v3200_v6 = vadd.f32 %v3199_v40, %v3169_v0  ;;  %v3171_v31 = vmul.f32 %v11432_v38, %v11432_v38  ;;  %v3173_v0 = vmul.f32 %v11449_v41, %v11449_v41 }
 0x528   : > { %v8115_v13 = vadd.f32 %v8114_v16, %v11250_v54  ;;  %v8122_v60 = vadd.f32 %v6941_v18, %v11170_v37  ;;  %v3137_v46 = vadd.f32 %v3136_v1, %v11467_v28  ;;  %v12864_v16 = vld [vmem:[#allocation46_spill] sm:$0xff] }
 0x529   : > { %v3201_v32 = vadd.f32 %v3200_v6, %v3170_v49  ;;  %v12867_v49 = vld [vmem:[#allocation45_spill] sm:$0xff] }
 0x52a   : > { %v3068_v22 = vadd.f32 %v8115_v13, %v11238_v50  ;;  %v8123_v30 = vadd.f32 %v8122_v60, %v11257_v36  ;;  %v6942_v3 = vpop.f32.mrb[156].mxu0  ;;  %v12868_v6 = vld [vmem:[#allocation49_spill] sm:$0xff] }
 0x52b   : > { %v6943_v35 = vpop.f32.mrb[157].mxu0 }
 0x52c   : > { %v6944_v54 = vadd.f32 %v6943_v35, %v6942_v3  ;;  %v6945_v37 = vpop.f32.mrb[158].mxu0  ;;  %v11472_v12 = vadd.f32 %v11247_v26, %v3068_v22  ;;  %v3069_v36 = vadd.f32 %v8123_v30, %v11238_v50  ;;  %v12865_v22 = vld [vmem:[#allocation44_spill] sm:$0xff] }
 0x52d   : > { %v6946_v39 = vpop.f32.mrb[159].mxu0 }
 0x52e   : > { %v8134_v56 = vadd.f32 %v6944_v54, %v11183_v10  ;;  %v6947_v48 = vadd.f32 %v6946_v39, %v6945_v37  ;;  %v3138_v27 = vadd.f32 %v3137_v46, %v11472_v12  ;;  %v11483_v21 = vadd.f32 %v11247_v26, %v3069_v36  ;;  %v12866_v54 = vld [vmem:[#allocation48_spill] sm:$0xff] }
 0x52f   : > { %v3174_v36 = vmul.f32 %v11455_v15, %v11455_v15 }
 0x530   : > { %v8135_v19 = vadd.f32 %v8134_v56, %v11281_v24  ;;  %v8142_v4 = vadd.f32 %v6947_v48, %v11190_v62  ;;  %v3202_v62 = vadd.f32 %v3201_v32, %v3171_v31  ;;  %v3139_v59 = vadd.f32 %v3138_v27, %v11483_v21 }
 0x531   : > { %v3175_v27 = vmul.f32 %v11467_v28, %v11467_v28 }
 0x532   : > { %v3070_v25 = vadd.f32 %v8135_v19, %v11238_v50  ;;  %v6948_v10 = vpop.f32.mrb[160].mxu0  ;;  %v8143_v18 = vadd.f32 %v8142_v4, %v12864_v16  ;;  %v3203_v40 = vadd.f32 %v3202_v62, %v3172_v57  ;;  %v3176_v57 = vmul.f32 %v11472_v12, %v11472_v12 }
 0x533   : > { %v6949_v24 = vpop.f32.mrb[161].mxu0 }
 0x534   : > { %v11490_v55 = vadd.f32 %v11247_v26, %v3070_v25  ;;  %v6950_v33 = vadd.f32 %v6949_v24, %v6948_v10  ;;  %v6951_v13 = vpop.f32.mrb[162].mxu0  ;;  %v3071_v60 = vadd.f32 %v8143_v18, %v11238_v50  ;;  %v3204_v46 = vadd.f32 %v3203_v40, %v3173_v0 }
 0x535   : > { %v6952_v29 = vpop.f32.mrb[163].mxu0 }
 0x536   : > { %v8130_v30 = vadd.f32 %v6950_v33, %v12865_v22  ;;  %v6953_v3 = vadd.f32 %v6952_v29, %v6951_v13  ;;  %v3140_v35 = vadd.f32 %v3139_v59, %v11490_v55  ;;  %v11499_v1 = vadd.f32 %v11247_v26, %v3071_v60 }
 0x537   : > { %v3205_v4 = vadd.f32 %v3204_v46, %v3174_v36  ;;  %v3178_v62 = vmul.f32 %v11490_v55, %v11490_v55  ;;  %v12872_v36 = vld [vmem:[#allocation56_spill] sm:$0xff]  ;;  %v12874_v46 = vld [vmem:[#allocation59_spill] sm:$0xff] }
 0x538   : > { %v8131_v37 = vadd.f32 %v8130_v30, %v12866_v54  ;;  %v8138_v39 = vadd.f32 %v6953_v3, %v12867_v49  ;;  %v3141_v19 = vadd.f32 %v3140_v35, %v11499_v1  ;;  %v3179_v22 = vmul.f32 %v11499_v1, %v11499_v1  ;;  %v12869_v35 = vld [vmem:[#allocation50_spill] sm:$0xff] }
 0x539   : > { %v3206_v18 = vadd.f32 %v3205_v4, %v3175_v27  ;;  %v12870_v54 = vmov 0.0   ;;  %v12876_v27 = vld [vmem:[#allocation42_spill] sm:$0xff] }
 0x53a   : > { %v3072_v56 = vadd.f32 %v8131_v37, %v11238_v50  ;;  %v8139_v48 = vadd.f32 %v8138_v39, %v12868_v6  ;;  %v12871_v39 = vmov 0.0|0.0   ;;  %v12873_v6 = vld [vmem:[#allocation58_spill] sm:$0xff] }
 0x53b   : > { %v3207_v33 = vadd.f32 %v3206_v18, %v3176_v57  ;;  %v12877_v57 = vld [vmem:[#allocation43_spill] sm:$0xff]  ;;  %v12878_v18 = vld [vmem:[#allocation53_spill] sm:$0xff] }
 0x53c   : > { %v11509_v32 = vadd.f32 %v11247_v26, %v3072_v56  ;;  %v3073_v31 = vadd.f32 %v8139_v48, %v11238_v50  ;;  %v3177_v50 = vmul.f32 %v11483_v21, %v11483_v21 }
 0x53e   : > { %v3142_v25 = vadd.f32 %v3141_v19, %v11509_v32  ;;  %v11516_v10 = vadd.f32 %v11247_v26, %v3073_v31  ;;  %v3208_v29 = vadd.f32 %v3207_v33, %v3177_v50  ;;  %v3180_v3 = vmul.f32 %v11509_v32, %v11509_v32  ;;  %v12875_v31 = vld [vmem:[#allocation60_spill] sm:$0xff]  ;;  %v8687_v50 = vld [vmem:[#allocation19 + $0x148] sm:$0xff]  }
 0x53f   : > { %v8686_v33 = vld [vmem:[#allocation19 + $0x140] sm:$0xff]  }
 0x540   : > { %v3143_v16 = vadd.f32 %v3142_v25, %v11516_v10  ;;  %v3209_v26 = vadd.f32 %v3208_v29, %v3178_v62  ;;  %v3181_v49 = vmul.f32 %v11516_v10, %v11516_v10  ;;  %7728 = vmatprep.subr.bf16.mxu1 %v8686_v33  ;;  %v8690_v62 = vld [vmem:[#allocation19 + $0x100] sm:$0xff]   ;;  %v8689_v29 = vld [vmem:[#allocation19 + $0x158] sm:$0xff]  }
 0x541   : > { %7729 = vmatpush3.bf16.msra.mxu1 %v8686_v33  ;;  %v3379_v33 = vld [vmem:[#allocation14] sm:$0x1] }
 0x542   : > { %v3144_v24 = vrot.slane %v3143_v16, 4  ;;  %v3210_v0 = vadd.f32 %v3209_v26, %v3179_v22  ;;  %7730 = vmatprep.subr.bf16.mxu1 %v8687_v50  ;;  %v8694_v26 = vld [vmem:[#allocation19 + $0xc8] sm:$0xff]   ;;  %v8695_v22 = vld [vmem:[#allocation19 + $0x110] sm:$0xff]  }
 0x544   : > { %v3145_v13 = vadd.f32 %v3144_v24, %v3143_v16  ;;  %v3211_v37 = vadd.f32 %v3210_v0, %v3180_v3  ;;  %v8698_v3 = vld [vmem:[#allocation19 + $0x118] sm:$0xff]   ;;  %v8696_v0 = vld [vmem:[#allocation19 + $0x168] sm:$0xff]  }
 0x545   : > { %7731 = vmatpush3.bf16.msra.mxu1 %v8687_v50 }
 0x546   : > { %v3146_v60 = vrot.slane %v3145_v13, 2  ;;  %v3212_v56 = vadd.f32 %v3211_v37, %v3181_v49  ;;  %v8702_v37 = vld [vmem:[#allocation19 + $0xe0] sm:$0xff]   ;;  %v8703_v49 = vld [vmem:[#allocation19 + $0x128] sm:$0xff]  }
 0x548   : > { %v3147_v59 = vadd.f32 %v3146_v60, %v3145_v13  ;;  %v3213_v48 = vrot.slane %v3212_v56, 4  ;;  %v8688_v13 = vld [vmem:[#allocation19 + $0x150] sm:$0xff]   ;;  %v8692_v60 = vld [vmem:[#allocation19 + $0xc0] sm:$0xff]  }
 0x549   : > { %7732 = vmatprep.subr.bf16.mxu1 %v8688_v13 }
 0x54a   : > { %v3148_v30 = vrot.slane %v3147_v59, 1  ;;  %v3214_v19 = vadd.f32 %v3213_v48, %v3212_v56  ;;  %7733 = vmatpush3.bf16.msra.mxu1 %v8688_v13  ;;  %v8705_v56 = vld [vmem:[#allocation19 + $0x130] sm:$0xff]  }
 0x54b   : > { %7734 = vmatprep.subr.bf16.mxu1 %v8689_v29  ;;  %v8707_v48 = vld [vmem:[#allocation19 + $0xf0] sm:$0xff]  }
 0x54c   : > { %v3149_v40 = vadd.f32 %v3148_v30, %v3147_v59  ;;  %v3215_v4 = vrot.slane %v3214_v19, 2  ;;  %v8693_v59 = vld [vmem:[#allocation19 + $0x108] sm:$0xff]   ;;  %v8697_v30 = vld [vmem:[#allocation19 + $0xd0] sm:$0xff]  }
 0x54e   : > { %7691 = vmatmul.mubr.f32.vlgmr.msra.gmra.mrb[2].mxu0 %v3149_v40  ;;  %v3216_v25 = vadd.f32 %v3215_v4, %v3214_v19  ;;  %7735 = vmatpush3.bf16.msra.mxu1 %v8689_v29  ;;  %v8691_v40 = vld [vmem:[#allocation19 + $0x160] sm:$0xff]   ;;  %v8709_v4 = vld [vmem:[#allocation19 + $0xf8] sm:$0xff]  }
 0x54f   : > { %7994 = vmatpush3.bf16.msra.mxu0 %v12869_v35  ;;  %7725 = vmatprep.mubr.msk.f32.mxu0 %vm9461_vm0, %v12870_v54  ;;  %v8699_v35 = vld [vmem:[#allocation19 + $0xd8] sm:$0xff]   ;;  %v8700_v54 = vld [vmem:[#allocation19 + $0x120] sm:$0xff]  }
 0x550   : > { %7995 = vmatprep.subr.bf16.mxu0 %v12871_v39  ;;  %v3217_v16 = vrot.slane %v3216_v25, 1  ;;  %7736 = vmatprep.subr.bf16.mxu1 %v8691_v40  ;;  %v12879_v29 = vld [vmem:[#allocation39_spill] sm:$0xff] }
 0x552   : > { %v3218_v24 = vadd.f32 %v3217_v16, %v3216_v25  ;;  %7737 = vmatpush3.bf16.msra.mxu1 %v8691_v40 }
 0x553   : > { %7997 = vmatpush3.bf16.msra.mxu0 %v12872_v36  ;;  %7738 = vmatprep.subr.bf16.mxu1 %v8696_v0  ;;  %v8704_v36 = vld [vmem:[#allocation19 + $0xe8] sm:$0xff]  }
 0x554   : > { %7998 = vmatprep.subr.bf16.mxu0 %v12871_v39 }
 0x556   : > { %7739 = vmatpush3.bf16.msra.mxu1 %v8696_v0 }
 0x557   : > { %8000 = vmatpush3.bf16.msra.mxu0 %v12873_v6  ;;  %v8706_v6 = vld [vmem:[#allocation19 + $0x178] sm:$0xff]  }
 0x558   : > { %8001 = vmatprep.subr.bf16.mxu0 %v12871_v39 }
 0x55b   : > { %8003 = vmatpush3.bf16.msra.mxu0 %v12874_v46  ;;  %v8708_v46 = vld [vmem:[#allocation19 + $0x138] sm:$0xff]  }
 0x55c   : > { %8004 = vmatprep.subr.bf16.mxu0 %v12871_v39 }
 0x55f   : > { %8006 = vmatpush3.bf16.msra.mxu0 %v12875_v31 }
 0x560   : > { %8007 = vmatprep.subr.bf16.mxu0 %v12871_v39 }
 0x563   : > { %8009 = vmatpush3.bf16.msra.mxu0 %v12876_v27  ;;  %v8710_v27 = vld [vmem:[#allocation19 + $0x40] sm:$0xff]  }
 0x564   : > { %8010 = vmatprep.subr.bf16.mxu0 %v12871_v39 }
 0x567   : > { %8012 = vmatpush3.bf16.msra.mxu0 %v12877_v57 }
 0x568   : > { %8013 = vmatprep.subr.bf16.mxu0 %v12871_v39  ;;  %v8701_v39 = vld [vmem:[#allocation19 + $0x170] sm:$0xff]  }
 0x569   : > { %7740 = vmatprep.subr.bf16.mxu1 %v8701_v39 }
 0x56a   : > { %7741 = vmatpush3.bf16.msra.mxu1 %v8701_v39 }
 0x56b   : > { %8015 = vmatpush3.bf16.msra.mxu0 %v12878_v18  ;;  %7742 = vmatprep.subr.bf16.mxu1 %v8706_v6 }
 0x56c   : > { %7012 = vmatprep.subr.bf16.mxu0 %v8690_v62  ;;  %v3381_v62 = vld [vmem:[#allocation16] sm:$0x1] }
 0x56e   : > { %7726 = vmatmul.mubr.f32.vlgmr.msra.gmra.mrb[164].mxu0 %v3218_v24  ;;  %7743 = vmatpush3.bf16.msra.mxu1 %v8706_v6 }
 0x56f   : > { %7013 = vmatpush3.bf16.msra.mxu0 %v8692_v60  ;;  %7148 = vmatprep.subr.bf16.mxu1 %v8710_v27 }
 0x570   : > { %7014 = vmatprep.subr.bf16.mxu0 %v8693_v59 }
 0x573   : > { %7015 = vmatpush3.bf16.msra.mxu0 %v8694_v26 }
 0x574   : > { %7016 = vmatprep.subr.bf16.mxu0 %v8695_v22 }
 0x577   : > { %7017 = vmatpush3.bf16.msra.mxu0 %v8697_v30 }
 0x578   : > { %7018 = vmatprep.subr.bf16.mxu0 %v8698_v3 }
 0x57b   : > { %7019 = vmatpush3.bf16.msra.mxu0 %v8699_v35 }
 0x57c   : > { %7020 = vmatprep.subr.bf16.mxu0 %v8700_v54 }
 0x57f   : > { %7021 = vmatpush3.bf16.msra.mxu0 %v8702_v37 }
 0x580   : > { %7022 = vmatprep.subr.bf16.mxu0 %v8703_v49 }
 0x583   : > { %7023 = vmatpush3.bf16.msra.mxu0 %v8704_v36 }
 0x584   : > { %7024 = vmatprep.subr.bf16.mxu0 %v8705_v56 }
 0x587   : > { %7025 = vmatpush3.bf16.msra.mxu0 %v8707_v48 }
 0x588   : > { %7026 = vmatprep.subr.bf16.mxu0 %v8708_v46 }
 0x58b   : > { %7027 = vmatpush3.bf16.msra.mxu0 %v8709_v4 }
 0x621   : > { %v3301_v19 = vpop.f32.mrb[2].mxu0 }
 0x622   : > { %v7692_v31 = vpop.f32.mrb[3].mxu0  ;;  %v3375_v25 = vmul.f32 %v3301_v19, %v3301_v19 }
 0x641   : > { %v3371_v57 = vpop.f32.mrb[164].mxu0 }
 0x642   : > { %v3376_v16 = vsub.f32 %v3371_v57, %v3375_v25  ;;  %v7727_v18 = vpop.f32.mrb[165].mxu0 }
 0x644   : > { %v3377_v24 = vadd.f32 1e-05, %v3376_v16 }
 0x646   : > { %8864 = vrsqrt.f32 %v3377_v24 }
 0x650   : > { %v8865_v50 = vpop.eup %8864 }
 0x651   : > { %v3380_v13 = vmul.f32 %v8865_v50, %v3379_v33 }
 0x653   : > { %v3382_v60 = vmul.f32 %v3380_v13, %v3301_v19  ;;  %v11549_v59 = vrot.slane %v3380_v13, %v12879_v29 }
 0x655   : > { %v3383_v26 = vsub.f32 %v3381_v62, %v3382_v60  ;;  %v3390_v22 = vmul.f32 %v11549_v59, %v11265_v2  ;;  %v3391_v30 = vmul.f32 %v11549_v59, %v11276_v14  ;;  %v3392_v3 = vmul.f32 %v11549_v59, %v11284_v61 }
 0x656   : > { %v3393_v40 = vmul.f32 %v11549_v59, %v11296_v8  ;;  %v3394_v0 = vmul.f32 %v11549_v59, %v11301_v52  ;;  %v3395_v54 = vmul.f32 %v11549_v59, %v11311_v58  ;;  %v3396_v2 = vmul.f32 %v11549_v59, %v11319_v23 }
 0x657   : > { %v11562_v35 = vrot.slane %v3383_v26, %v12879_v29  ;;  %v3397_v14 = vmul.f32 %v11549_v59, %v11331_v17  ;;  %v3398_v61 = vmul.f32 %v11549_v59, %v11336_v34  ;;  %v3399_v8 = vmul.f32 %v11549_v59, %v11348_v9 }
 0x658   : > { %v3400_v52 = vmul.f32 %v11549_v59, %v11354_v7  ;;  %v3401_v37 = vmul.f32 %v11549_v59, %v11364_v53  ;;  %v3402_v58 = vmul.f32 %v11549_v59, %v11371_v5  ;;  %v3403_v23 = vmul.f32 %v11549_v59, %v11381_v42 }
 0x659   : > { %v3404_v17 = vmul.f32 %v11549_v59, %v11387_v47  ;;  %v3405_v34 = vmul.f32 %v11549_v59, %v11399_v20  ;;  %v3406_v9 = vmul.f32 %v11549_v59, %v11404_v45  ;;  %v3407_v7 = vmul.f32 %v11549_v59, %v11416_v63 }
 0x65a   : > { %v3408_v53 = vmul.f32 %v11549_v59, %v11422_v43  ;;  %v3409_v5 = vmul.f32 %v11549_v59, %v11432_v38  ;;  %v3410_v42 = vmul.f32 %v11549_v59, %v11439_v44  ;;  %v3411_v47 = vmul.f32 %v11549_v59, %v11449_v41 }
 0x65b   : > { %v3412_v20 = vmul.f32 %v11549_v59, %v11455_v15  ;;  %v3413_v45 = vmul.f32 %v11549_v59, %v11467_v28  ;;  %v3414_v63 = vmul.f32 %v11549_v59, %v11472_v12  ;;  %v3415_v43 = vmul.f32 %v11549_v59, %v11483_v21 }
 0x65c   : > { %v3416_v38 = vmul.f32 %v11549_v59, %v11490_v55  ;;  %v3417_v44 = vmul.f32 %v11549_v59, %v11499_v1  ;;  %v3418_v41 = vmul.f32 %v11549_v59, %v11509_v32  ;;  %v3419_v15 = vmul.f32 %v11549_v59, %v11516_v10 }
 0x65d   : > { %v3428_v28 = vadd.f32 %v11562_v35, %v3390_v22  ;;  %v3429_v49 = vadd.f32 %v11562_v35, %v3391_v30  ;;  %v3430_v12 = vadd.f32 %v11562_v35, %v3392_v3  ;;  %v3431_v21 = vadd.f32 %v11562_v35, %v3393_v40 }
 0x65e   : > { %v3432_v39 = vadd.f32 %v11562_v35, %v3394_v0  ;;  %v3433_v55 = vadd.f32 %v11562_v35, %v3395_v54  ;;  %v3434_v1 = vadd.f32 %v11562_v35, %v3396_v2  ;;  %v3435_v36 = vadd.f32 %v11562_v35, %v3397_v14 }
 0x65f   : > { %v3436_v32 = vadd.f32 %v11562_v35, %v3398_v61  ;;  %v3437_v10 = vadd.f32 %v11562_v35, %v3399_v8  ;;  %v3438_v56 = vadd.f32 %v11562_v35, %v3400_v52  ;;  %v3439_v6 = vadd.f32 %v11562_v35, %v3401_v37 }
 0x660   : > { %v3440_v48 = vadd.f32 %v11562_v35, %v3402_v58  ;;  %v3441_v46 = vadd.f32 %v11562_v35, %v3403_v23  ;;  %v3442_v19 = vadd.f32 %v11562_v35, %v3404_v17  ;;  %v3443_v31 = vadd.f32 %v11562_v35, %v3405_v34 }
 0x661   : > { %v3444_v4 = vadd.f32 %v11562_v35, %v3406_v9  ;;  %v3445_v27 = vadd.f32 %v11562_v35, %v3407_v7  ;;  %v11633_v25 = vadd.f32 %v11562_v35, %v3408_v53  ;;  %v11636_v57 = vadd.f32 %v11562_v35, %v3409_v5 }
 0x662   : > { %v11639_v16 = vadd.f32 %v11562_v35, %v3410_v42  ;;  %v11642_v18 = vadd.f32 %v11562_v35, %v3411_v47  ;;  %v11645_v24 = vadd.f32 %v11562_v35, %v3412_v20  ;;  %v11648_v33 = vadd.f32 %v11562_v35, %v3413_v45 }
 0x663   : > { %v11651_v50 = vadd.f32 %v11562_v35, %v3414_v63  ;;  %v11654_v13 = vadd.f32 %v11562_v35, %v3415_v43  ;;  %v11657_v62 = vadd.f32 %v11562_v35, %v3416_v38  ;;  %v11660_v60 = vadd.f32 %v11562_v35, %v3417_v44 }
 0x664   : > { %v11663_v29 = vadd.f32 %v11562_v35, %v3418_v41  ;;  %v11666_v26 = vadd.f32 %v11562_v35, %v3419_v15  ;;  %v3460_v22 = vmul.f32 0.5, %v3428_v28  ;;  %v3461_v30 = vmul.f32 0.5, %v3429_v49 }
 0x665   : > { %v3388_v3 = vmul.f32 %v11549_v59, %v11260_v51  ;;  %v3462_v40 = vmul.f32 0.5, %v3430_v12  ;;  %v3389_v0 = vmul.f32 %v11549_v59, %v11255_v11  ;;  %v3463_v54 = vmul.f32 0.5, %v3431_v21 }
 0x666   : > { %8866 = vtanh.f32 %v3460_v22  ;;  %v11678_v61 = vmul.f32 0.5, %v3432_v39  ;;  %v11680_v8 = vmul.f32 0.5, %v3433_v55  ;;  %v11682_v51 = vmul.f32 0.5, %v3434_v1 }
 0x667   : > { %v11673_v2 = vadd.f32 %v11562_v35, %v3388_v3  ;;  %8868 = vtanh.f32 %v3461_v30  ;;  %v11676_v14 = vadd.f32 %v11562_v35, %v3389_v0  ;;  %v11684_v52 = vmul.f32 0.5, %v3435_v36 }
 0x668   : > { %8870 = vtanh.f32 %v3462_v40  ;;  %v11686_v11 = vmul.f32 0.5, %v3436_v32  ;;  %v11689_v59 = vmul.f32 0.5, %v3437_v10  ;;  %v11695_v17 = vmul.f32 0.5, %v3438_v56 }
 0x669   : > { %8872 = vtanh.f32 %v3463_v54  ;;  %v11698_v7 = vmul.f32 0.5, %v3439_v6  ;;  %v11700_v42 = vmul.f32 0.5, %v3440_v48  ;;  %v11702_v45 = vmul.f32 0.5, %v3441_v46 }
 0x66a   : > { %8874 = vtanh.f32 %v11678_v61  ;;  %v11704_v63 = vmul.f32 0.5, %v3442_v19  ;;  %v11709_v15 = vmul.f32 0.5, %v3443_v31  ;;  %v11712_v49 = vmul.f32 0.5, %v3444_v4  ;;  %v8729_v19 = vld [vmem:[#allocation19 + $0x1c0] sm:$0xff]  }
 0x66b   : > { %8876 = vtanh.f32 %v11680_v8  ;;  %v11715_v21 = vmul.f32 0.5, %v3445_v27  ;;  %v11719_v55 = vmul.f32 0.5, %v11633_v25  ;;  %v11725_v32 = vmul.f32 0.5, %v11636_v57  ;;  %7284 = vmatprep.subr.bf16.mxu0 %v8729_v19 }
 0x66c   : > { %8878 = vtanh.f32 %v11682_v51  ;;  %v11729_v56 = vmul.f32 0.5, %v11639_v16  ;;  %v11733_v6 = vmul.f32 0.5, %v11642_v18  ;;  %v11736_v48 = vmul.f32 0.5, %v11645_v24 }
 0x66d   : > { %8880 = vtanh.f32 %v11684_v52  ;;  %v11741_v25 = vmul.f32 0.5, %v11648_v33  ;;  %v11746_v24 = vmul.f32 0.5, %v11673_v2  ;;  %v11754_v3 = vmul.f32 0.5, %v11676_v14 }
 0x66e   : > { %8882 = vtanh.f32 %v11686_v11 }
 0x66f   : > { %8884 = vtanh.f32 %v11689_v59 }
 0x670   : > { %v8867_v35 = vpop.eup %8866  ;;  %8886 = vtanh.f32 %v11695_v17 }
 0x671   : > { %v8869_v37 = vpop.eup %8868  ;;  %v3524_v58 = vadd.f32 1.0, %v8867_v35  ;;  %8888 = vtanh.f32 %v11698_v7 }
 0x672   : > { %v8871_v23 = vpop.eup %8870  ;;  %v3525_v34 = vadd.f32 1.0, %v8869_v37  ;;  %8890 = vtanh.f32 %v11700_v42 }
 0x673   : > { %v8873_v9 = vpop.eup %8872  ;;  %v3526_v53 = vadd.f32 1.0, %v8871_v23  ;;  %v3556_v5 = vmul.f32 %v3524_v58, %v3460_v22  ;;  %8892 = vtanh.f32 %v11702_v45  ;;  %v11767_v58 = vmul.f32 0.5, %v11657_v62 }
 0x674   : > { %v3527_v47 = vadd.f32 1.0, %v8873_v9  ;;  %v3557_v20 = vmul.f32 %v3525_v34, %v3461_v30  ;;  %v8875_v41 = vpop.eup %8874  ;;  %8894 = vtanh.f32 %v11704_v63  ;;  %v11749_v30 = vmul.f32 0.5, %v11651_v50 }
 0x675   : > { %v3558_v43 = vmul.f32 %v3526_v53, %v3462_v40  ;;  %v8877_v28 = vpop.eup %8876  ;;  %8896 = vtanh.f32 %v11709_v15  ;;  %v3528_v46 = vadd.f32 1.0, %v8875_v41  ;;  %v11761_v50 = vmul.f32 0.5, %v11654_v13 }
 0x676   : > { %v3559_v38 = vmul.f32 %v3527_v47, %v3463_v54  ;;  %v11707_v44 = vpack.c.bf16 %v3557_v20, %v3556_v5  ;;  %v8879_v12 = vpop.eup %8878  ;;  %8898 = vtanh.f32 %v11712_v49  ;;  %v3529_v31 = vadd.f32 1.0, %v8877_v28 }
 0x677   : > { %v8881_v39 = vpop.eup %8880  ;;  %8900 = vtanh.f32 %v11715_v21  ;;  %v3530_v4 = vadd.f32 1.0, %v8879_v12  ;;  %v3560_v33 = vmul.f32 %v3528_v46, %v11678_v61  ;;  %v11789_v46 = vmul.f32 0.5, %v11663_v29 }
 0x678   : > { %v11722_v1 = vpack.c.bf16 %v3559_v38, %v3558_v43  ;;  %v8883_v36 = vpop.eup %8882  ;;  %8902 = vtanh.f32 %v11719_v55  ;;  %v3531_v27 = vadd.f32 1.0, %v8881_v39  ;;  %v3561_v0 = vmul.f32 %v3529_v31, %v11680_v8 }
 0x679   : > { %v8885_v10 = vpop.eup %8884  ;;  %8904 = vtanh.f32 %v11725_v32  ;;  %v3532_v57 = vadd.f32 1.0, %v8883_v36  ;;  %v3562_v54 = vmul.f32 %v3530_v4, %v11682_v51  ;;  %v11771_v51 = vmul.f32 0.5, %v11660_v60 }
 0x67a   : > { %v3533_v16 = vadd.f32 1.0, %v8885_v10  ;;  %v8887_v18 = vpop.eup %8886  ;;  %8906 = vtanh.f32 %v11729_v56  ;;  %v3563_v2 = vmul.f32 %v3531_v27, %v11684_v52 }
 0x67b   : > { %v8889_v22 = vpop.eup %8888  ;;  %8908 = vtanh.f32 %v11733_v6  ;;  %v3564_v61 = vmul.f32 %v3532_v57, %v11686_v11  ;;  %v3534_v23 = vadd.f32 1.0, %v8887_v18  ;;  %v3613_v18 = vshll.u32 %v11707_v44, 16 }
 0x67c   : > { %v8891_v40 = vpop.eup %8890  ;;  %8910 = vtanh.f32 %v11736_v48  ;;  %v3565_v14 = vmul.f32 %v3533_v16, %v11689_v59  ;;  %v3535_v52 = vadd.f32 1.0, %v8889_v22  ;;  %v11775_v59 = vpack.c.bf16 %v3561_v0, %v3560_v33 }
 0x67d   : > { %v8893_v35 = vpop.eup %8892  ;;  %8912 = vtanh.f32 %v11741_v25  ;;  %v3536_v13 = vadd.f32 1.0, %v8891_v40  ;;  %v11777_v9 = vpack.c.bf16 %v3563_v2, %v3562_v54  ;;  %v3566_v60 = vmul.f32 %v3534_v23, %v11695_v17 }
 0x67e   : > { %v8895_v37 = vpop.eup %8894  ;;  %8914 = vtanh.f32 %v11746_v24  ;;  %v3537_v11 = vadd.f32 1.0, %v8893_v35  ;;  %v11780_v53 = vpack.c.bf16 %v3565_v14, %v3564_v61  ;;  %v3567_v38 = vmul.f32 %v3535_v52, %v11698_v7 }
 0x67f   : > { %v8897_v8 = vpop.eup %8896  ;;  %8916 = vtanh.f32 %v11754_v3  ;;  %v3538_v20 = vadd.f32 1.0, %v8895_v37  ;;  %v3568_v28 = vmul.f32 %v3536_v13, %v11700_v42  ;;  %v11796_v42 = vmul.f32 0.5, %v11666_v26 }
 0x680   : > { %v8899_v34 = vpop.eup %8898  ;;  %8918 = vtanh.f32 %v11749_v30  ;;  %v3539_v43 = vadd.f32 1.0, %v8897_v8  ;;  %v3569_v12 = vmul.f32 %v3537_v11, %v11702_v45  ;;  %v11793_v7 = vpack.c.bf16 %v3567_v38, %v3566_v60 }
 0x681   : > { %v8901_v62 = vpop.eup %8900  ;;  %8920 = vtanh.f32 %v11761_v50  ;;  %v3540_v36 = vadd.f32 1.0, %v8899_v34  ;;  %v3570_v27 = vmul.f32 %v3538_v20, %v11704_v63  ;;  %v3610_v45 = vshrl.u32 %v11707_v44, 16 }
 0x682   : > { %v8903_v5 = vpop.eup %8902  ;;  %8922 = vtanh.f32 %v11767_v58  ;;  %v3541_v19 = vadd.f32 1.0, %v8901_v62  ;;  %v3571_v57 = vmul.f32 %v3539_v43, %v11709_v15  ;;  %v11800_v29 = vpack.c.bf16 %v3569_v12, %v3568_v28 }
 0x683   : > { %v8905_v47 = vpop.eup %8904  ;;  %8924 = vtanh.f32 %v11771_v51  ;;  %v3542_v17 = vadd.f32 1.0, %v8903_v5  ;;  %v3572_v40 = vmul.f32 %v3540_v36, %v11712_v49  ;;  %v3620_v63 = vshll.u32 %v11722_v1, 16 }
 0x684   : > { %v8907_v41 = vpop.eup %8906  ;;  %v3543_v4 = vadd.f32 1.0, %v8905_v47  ;;  %v3573_v2 = vmul.f32 %v3541_v19, %v11715_v21  ;;  %v11808_v8 = vpack.c.bf16 %v3571_v57, %v3570_v27  ;;  %8926 = vtanh.f32 %v11789_v46 }
 0x685   : > { %v8909_v39 = vpop.eup %8908  ;;  %v3544_v33 = vadd.f32 1.0, %v8907_v41  ;;  %v3574_v26 = vmul.f32 %v3542_v17, %v11719_v55  ;;  %v3739_v21 = vrot.slane %v3613_v18, 1  ;;  %8928 = vtanh.f32 %v11796_v42 }
 0x686   : > { %v8911_v10 = vpop.eup %8910  ;;  %v3545_v54 = vadd.f32 1.0, %v8909_v39  ;;  %v3575_v37 = vmul.f32 %v3543_v4, %v11725_v32  ;;  %v3617_v32 = vshrl.u32 %v11722_v1, 16  ;;  %v11822_v60 = vpack.c.bf16 %v3573_v2, %v3572_v40  ;;  %v8711_v40 = vld [vmem:[#allocation19] sm:$0xff]  }
 0x687   : > { %v8913_v31 = vpop.eup %8912  ;;  %v3546_v14 = vadd.f32 1.0, %v8911_v10  ;;  %v3576_v55 = vmul.f32 %v3544_v33, %v11729_v56  ;;  %v3627_v10 = vshll.u32 %v11775_v59, 16 }
 0x688   : > { %v8915_v16 = vpop.eup %8914  ;;  %v3547_v49 = vadd.f32 1.0, %v8913_v31  ;;  %v3577_v62 = vmul.f32 %v3545_v54, %v11733_v6  ;;  %v11825_v43 = vpack.c.bf16 %v3575_v37, %v3574_v26  ;;  %v3740_v6 = vor.u32 %v3739_v21, %v3610_v45  ;;  %v8730_v54 = vld [vmem:[#allocation19 + $0x180] sm:$0xff]  }
 0x689   : > { %v8917_v22 = vpop.eup %8916  ;;  %v3522_v0 = vadd.f32 1.0, %v8915_v16  ;;  %v3578_v20 = vmul.f32 %v3546_v14, %v11736_v48  ;;  %v3634_v48 = vshll.u32 %v11777_v9, 16  ;;  %v3743_v26 = vrot.slane %v3627_v10, 1 }
 0x68a   : > { %v8919_v15 = vpop.eup %8918  ;;  %v3523_v35 = vadd.f32 1.0, %v8917_v22  ;;  %v3579_v56 = vmul.f32 %v3547_v49, %v11741_v25  ;;  %v11838_v31 = vpack.c.bf16 %v3577_v62, %v3576_v55  ;;  %v11845_v33 = vsel %vm10760_vm6, %v3740_v6, 0  ;;  %v8732_v55 = vld [vmem:[#allocation19 + $0x188] sm:$0xff]   ;;  %v8733_v62 = vld [vmem:[#allocation19 + $0x1d0] sm:$0xff]  }
 0x68b   : > { %v8921_v61 = vpop.eup %8920  ;;  %v3554_v23 = vmul.f32 %v3522_v0, %v11746_v24  ;;  %v3741_v24 = vrot.slane %v3620_v63, 1  ;;  %v3548_v11 = vadd.f32 1.0, %v8919_v15  ;;  %v3631_v21 = vshrl.u32 %v11777_v9, 16  ;;  %v12883_v22 = vld [vmem:[#allocation38_spill] sm:$0xff] }
 0x68c   : > { %v8923_v52 = vpop.eup %8922  ;;  %v3555_v13 = vmul.f32 %v3523_v35, %v11754_v3  ;;  %v3549_v3 = vadd.f32 1.0, %v8921_v61  ;;  %v11841_v16 = vpack.c.bf16 %v3579_v56, %v3578_v20  ;;  %v8731_v35 = vld [vmem:[#allocation19 + $0x1c8] sm:$0xff]  }
 0x68d   : > { %v8925_v34 = vpop.eup %8924  ;;  %v3550_v47 = vadd.f32 1.0, %v8923_v52  ;;  %v3742_v12 = vor.u32 %v3741_v24, %v3617_v32  ;;  %v3580_v19 = vmul.f32 %v3548_v11, %v11749_v30  ;;  %v8713_v52 = vld [vmem:[#allocation19 + $0x8] sm:$0xff]   ;;  %v3641_v11 = vshll.u32 %v11780_v53, 16 }
 0x68e   : > { %v11820_v5 = vpack.c.bf16 %v3555_v13, %v3554_v23  ;;  %v3551_v38 = vadd.f32 1.0, %v8925_v34  ;;  %v3581_v25 = vmul.f32 %v3549_v3, %v11761_v50  ;;  %v8927_v0 = vpop.eup %8926  ;;  %v3624_v23 = vshrl.u32 %v11775_v59, 16  ;;  %v8714_v34 = vld [vmem:[#allocation19 + $0x50] sm:$0xff]  }
 0x68f   : > { %v3582_v17 = vmul.f32 %v3550_v47, %v11767_v58  ;;  %v3612_v58 = vrot.slane %v3610_v45, 7  ;;  %v8929_v2 = vpop.eup %8928  ;;  %v11863_v61 = vsel %vm10760_vm6, %v3742_v12, 0  ;;  %v3745_v45 = vrot.slane %v3634_v48, 1  ;;  %v8734_v12 = vld [vmem:[#allocation19 + $0x190] sm:$0xff]  }
 0x690   : > { %4082 = vmatprep.mubr.bf16.mxu0 %v11820_v5  ;;  %v3603_v41 = vshrl.u32 %v11820_v5, 16  ;;  %v3606_v28 = vshll.u32 %v11820_v5, 16  ;;  %v3583_v4 = vmul.f32 %v3551_v38, %v11771_v51  ;;  %v8712_v51 = vld [vmem:[#allocation19 + $0x48] sm:$0xff]   ;;  %v11867_v14 = vpack.c.bf16 %v3581_v25, %v3580_v19 }
 0x691   : > { %v3552_v49 = vadd.f32 1.0, %v8927_v0  ;;  %v3615_v13 = vor.u32 %v3613_v18, %v3612_v58  ;;  %v3744_v24 = vor.u32 %v3743_v26, %v3624_v23  ;;  %v3746_v3 = vor.u32 %v3745_v45, %v3631_v21  ;;  %v8715_v18 = vld [vmem:[#allocation19 + $0x10] sm:$0xff]   ;;  %v8720_v45 = vld [vmem:[#allocation19 + $0x68] sm:$0xff]  }
 0x692   : > { %v3605_v39 = vrot.slane %v3603_v41, 7  ;;  %v3737_v36 = vrot.slane %v3606_v28, 1  ;;  %v11869_v37 = vpack.c.bf16 %v3583_v4, %v3582_v17  ;;  %v3648_v47 = vshll.u32 %v11793_v7, 16  ;;  %v8717_v17 = vld [vmem:[#allocation19 + $0x18] sm:$0xff]  }
 0x693   : > { %v3553_v20 = vadd.f32 1.0, %v8929_v2  ;;  %v3584_v38 = vmul.f32 %v3552_v49, %v11789_v46  ;;  %v11883_v56 = vsel %vm10232_vm3, 0, %v3615_v13  ;;  %v11891_v46 = vsel %vm10760_vm6, %v3744_v24, 0 }
 0x694   : > { %v3608_v27 = vor.u32 %v3606_v28, %v3605_v39  ;;  %v3738_v57 = vor.u32 %v3737_v36, %v3603_v41  ;;  %v3619_v41 = vrot.slane %v3617_v32, 7  ;;  %v8716_v28 = vld [vmem:[#allocation19 + $0x58] sm:$0xff]   ;;  %v3747_v39 = vrot.slane %v3641_v11, 1 }
 0x695   : > { %v3585_v6 = vmul.f32 %v3553_v20, %v11796_v42  ;;  %v8735_v36 = vld [vmem:[#allocation19 + $0x1d8] sm:$0xff]   ;;  %v11899_v42 = vsel %vm10760_vm6, %v3746_v3, 0  ;;  %v3749_v32 = vrot.slane %v3648_v47, 1  ;;  %v3638_v25 = vshrl.u32 %v11780_v53, 16 }
 0x696   : > { %v11849_v30 = vsel %vm10232_vm3, 0, %v3608_v27  ;;  %v11853_v50 = vsel %vm10760_vm6, %v3738_v57, 0  ;;  %v3622_v4 = vor.u32 %v3620_v63, %v3619_v41  ;;  %v3645_v27 = vshrl.u32 %v11793_v7, 16  ;;  %v8718_v57 = vld [vmem:[#allocation19 + $0x60] sm:$0xff]  }
 0x697   : > { %4083 = vmatmul.mubr.bf16.vlgmr.msra.gmra.mrb[168].mxu0 %v11849_v30  ;;  %7744 = vmatprep.mubr.bf16.mxu1 %v11853_v50  ;;  %v11903_v19 = vpack.c.bf16 %v3585_v6, %v3584_v38  ;;  %v3748_v0 = vor.u32 %v3747_v39, %v3638_v25  ;;  %v3655_v58 = vshll.u32 %v11800_v29, 16  ;;  %v3662_v2 = vshll.u32 %v11808_v8, 16  ;;  %v8719_v63 = vld [vmem:[#allocation19 + $0x20] sm:$0xff]   ;;  %v8722_v38 = vld [vmem:[#allocation19 + $0x70] sm:$0xff]  }
 0x698   : > { %4090 = vmatprep.mubr.bf16.mxu0 %v11707_v44  ;;  %7745 = vmatmul.mubr.bf16.vlgmr.msra.gmra.mrb[100].mxu1 %v11845_v33  ;;  %v11918_v26 = vsel %vm10232_vm3, 0, %v3622_v4  ;;  %v3652_v24 = vshrl.u32 %v11800_v29, 16  ;;  %v3659_v20 = vshrl.u32 %v11808_v8, 16  ;;  %v8742_v6 = vld [vmem:[#allocation19 + $0x1f0] sm:$0xff]   ;;  %v3676_v39 = vshll.u32 %v11825_v43, 16 }
 0x699   : > { %7149 = vmatpush3.bf16.msra.mxu1 %v8711_v40  ;;  %7748 = vmatprep.mubr.bf16.mxu1 %v11863_v61  ;;  %v8736_v40 = vld [vmem:[#allocation19 + $0x198] sm:$0xff]   ;;  %v11923_v49 = vsel %vm10760_vm6, %v3748_v0, 0  ;;  %v3751_v13 = vrot.slane %v3655_v58, 1  ;;  %v8743_v4 = vld [vmem:[#allocation19 + $0x1b0] sm:$0xff]  }
 0x69a   : > { %7150 = vmatprep.subr.bf16.mxu1 %v8712_v51  ;;  %7285 = vmatpush3.bf16.msra.mxu0 %v8730_v54  ;;  %v8738_v51 = vld [vmem:[#allocation19 + $0x1e0] sm:$0xff]   ;;  %v3750_v54 = vor.u32 %v3749_v32, %v3645_v27  ;;  %v3633_v32 = vrot.slane %v3631_v21, 7  ;;  %v8744_v0 = vld [vmem:[#allocation19 + $0x1f8] sm:$0xff]  }
 0x69b   : > { %7286 = vmatprep.subr.bf16.mxu0 %v8731_v35  ;;  %v3626_v35 = vrot.slane %v3624_v23, 7  ;;  %v3752_v41 = vor.u32 %v3751_v13, %v3652_v24  ;;  %v8745_v13 = vld [vmem:[#allocation19 + $0x1b8] sm:$0xff]  }
 0x69c   : > { %v11931_v23 = vsel %vm10760_vm6, %v3750_v54, 0  ;;  %v3666_v54 = vshrl.u32 %v11822_v60, 16 }
 0x69d   : > { %7151 = vmatpush3.bf16.msra.mxu1 %v8713_v52  ;;  %v8739_v52 = vld [vmem:[#allocation19 + $0x1a0] sm:$0xff]   ;;  %v3629_v3 = vor.u32 %v3627_v10, %v3626_v35  ;;  %v8723_v10 = vld [vmem:[#allocation19 + $0x30] sm:$0xff]   ;;  %v3636_v35 = vor.u32 %v3634_v48, %v3633_v32  ;;  %v3687_v32 = vshrl.u32 %v11841_v16, 16 }
 0x69e   : > { %7152 = vmatprep.subr.bf16.mxu1 %v8714_v34  ;;  %7287 = vmatpush3.bf16.msra.mxu0 %v8732_v55  ;;  %v8740_v34 = vld [vmem:[#allocation19 + $0x1e8] sm:$0xff]   ;;  %v3753_v55 = vrot.slane %v3662_v2, 1 }
 0x69f   : > { %4091 = vmatmul.mubr.bf16.gmra.mrb[172].mxu0 %v11883_v56  ;;  %7288 = vmatprep.subr.bf16.mxu0 %v8733_v62  ;;  %v8721_v62 = vld [vmem:[#allocation19 + $0x28] sm:$0xff]   ;;  %v11982_v48 = vsel %vm10232_vm3, 0, %v3636_v35 }
 0x6a0   : > { %4098 = vmatprep.mubr.bf16.mxu0 %v11722_v1  ;;  %7749 = vmatmul.mubr.bf16.gmra.mrb[104].mxu1 %v11891_v46 }
 0x6a1   : > { %7752 = vmatprep.mubr.bf16.mxu1 %v11899_v42  ;;  %7153 = vmatpush3.bf16.msra.mxu1 %v8715_v18  ;;  %v8741_v18 = vld [vmem:[#allocation19 + $0x1a8] sm:$0xff]  }
 0x6a2   : > { %7154 = vmatprep.subr.bf16.mxu1 %v8716_v28  ;;  %7289 = vmatpush3.bf16.msra.mxu0 %v8734_v12  ;;  %v3669_v28 = vshll.u32 %v11822_v60, 16  ;;  %v3754_v12 = vor.u32 %v3753_v55, %v3659_v20  ;;  %v3683_v55 = vshll.u32 %v11838_v31, 16 }
 0x6a3   : > { %7290 = vmatprep.subr.bf16.mxu0 %v8735_v36  ;;  %v11948_v36 = vsel %vm10232_vm3, 0, %v3629_v3  ;;  %v3690_v3 = vshll.u32 %v11841_v16, 16 }
 0x6a4   : > { %v11963_v21 = vsel %vm10760_vm6, %v3754_v12, 0  ;;  %v3680_v12 = vshrl.u32 %v11838_v31, 16 }
 0x6a5   : > { %7155 = vmatpush3.bf16.msra.mxu1 %v8717_v17  ;;  %v8724_v17 = vld [vmem:[#allocation19 + $0x78] sm:$0xff]  }
 0x6a6   : > { %7156 = vmatprep.subr.bf16.mxu1 %v8718_v57  ;;  %7291 = vmatpush3.bf16.msra.mxu0 %v8736_v40  ;;  %v11955_v57 = vsel %vm10760_vm6, %v3752_v41, 0  ;;  %v3755_v40 = vrot.slane %v3669_v28, 1  ;;  %v3759_v41 = vrot.slane %v3683_v55, 1 }
 0x6a7   : > { %4099 = vmatmul.mubr.bf16.gmra.mrb[176].mxu0 %v11918_v26  ;;  %7292 = vmatprep.subr.bf16.mxu0 %v8738_v51  ;;  %v3757_v51 = vrot.slane %v3676_v39, 1 }
 0x6a8   : > { %4106 = vmatprep.mubr.bf16.mxu0 %v11775_v59  ;;  %7753 = vmatmul.mubr.bf16.gmra.mrb[108].mxu1 %v11923_v49 }
 0x6a9   : > { %7756 = vmatprep.mubr.bf16.mxu1 %v11931_v23  ;;  %7157 = vmatpush3.bf16.msra.mxu1 %v8719_v63  ;;  %v8725_v63 = vld [vmem:[#allocation19 + $0x38] sm:$0xff]  }
 0x6aa   : > { %7158 = vmatprep.subr.bf16.mxu1 %v8720_v45  ;;  %7293 = vmatpush3.bf16.msra.mxu0 %v8739_v52  ;;  %v3673_v45 = vshrl.u32 %v11825_v43, 16  ;;  %v11972_v52 = vld [vmem:[#allocation19 + $0x80] sm:$0xff]  }
 0x6ab   : > { %7294 = vmatprep.subr.bf16.mxu0 %v8740_v34  ;;  %v3756_v34 = vor.u32 %v3755_v40, %v3666_v54 }
 0x6ad   : > { %7159 = vmatpush3.bf16.msra.mxu1 %v8721_v62  ;;  %v3758_v62 = vor.u32 %v3757_v51, %v3673_v45 }
 0x6ae   : > { %7160 = vmatprep.subr.bf16.mxu1 %v8722_v38  ;;  %7295 = vmatpush3.bf16.msra.mxu0 %v8741_v18  ;;  %v3640_v38 = vrot.slane %v3638_v25, 7  ;;  %v11990_v18 = vsel %vm10760_vm6, %v3756_v34, 0  ;;  %v3761_v25 = vrot.slane %v3690_v3, 1  ;;  %v3694_v34 = vshrl.u32 %v11867_v14, 16 }
 0x6af   : > { %4107 = vmatmul.mubr.bf16.gmra.mrb[180].mxu0 %v11948_v36  ;;  %7296 = vmatprep.subr.bf16.mxu0 %v8742_v6  ;;  %v11998_v6 = vsel %vm10760_vm6, %v3758_v62, 0 }
 0x6b0   : > { %4114 = vmatprep.mubr.bf16.mxu0 %v11777_v9  ;;  %7757 = vmatmul.mubr.bf16.gmra.mrb[112].mxu1 %v11955_v57  ;;  %v3762_v40 = vor.u32 %v3761_v25, %v3687_v32  ;;  %v12756_v25 = vshll.u32 %v11903_v19, 16 }
 0x6b1   : > { %7760 = vmatprep.mubr.bf16.mxu1 %v11963_v21  ;;  %7161 = vmatpush3.bf16.msra.mxu1 %v8723_v10  ;;  %v3643_v10 = vor.u32 %v3641_v11, %v3640_v38  ;;  %v3701_v38 = vshrl.u32 %v11869_v37, 16 }
 0x6b2   : > { %7162 = vmatprep.subr.bf16.mxu1 %v8724_v17  ;;  %7297 = vmatpush3.bf16.msra.mxu0 %v8743_v4  ;;  %v3760_v17 = vor.u32 %v3759_v41, %v3680_v12  ;;  %v3697_v4 = vshll.u32 %v11867_v14, 16 }
 0x6b3   : > { %7298 = vmatprep.subr.bf16.mxu0 %v8744_v0  ;;  %v3704_v0 = vshll.u32 %v11869_v37, 16  ;;  %v12015_v51 = vsel %vm10232_vm3, 0, %v3643_v10 }
 0x6b4   : > { %v12022_v11 = vsel %vm10760_vm6, %v3760_v17, 0  ;;  %v3763_v35 = vrot.slane %v3697_v4, 1 }
 0x6b5   : > { %7163 = vmatpush3.bf16.msra.mxu1 %v8725_v63  ;;  %v3647_v63 = vrot.slane %v3645_v27, 7  ;;  %v3765_v27 = vrot.slane %v3704_v0, 1 }
 0x6b6   : > { %7776 = vmatprep.subr.bf16.mxu1 %v11972_v52  ;;  %7299 = vmatpush3.bf16.msra.mxu0 %v8745_v13  ;;  %v12030_v13 = vsel %vm10760_vm6, %v3762_v40, 0  ;;  %v3764_v41 = vor.u32 %v3763_v35, %v3694_v34  ;;  %v3654_v40 = vrot.slane %v3652_v24, 7  ;;  %v3846_v24 = vshrl.u32 %v11903_v19, 16 }
 0x6b7   : > { %4115 = vmatmul.mubr.bf16.gmra.mrb[184].mxu0 %v11982_v48  ;;  %v3650_v62 = vor.u32 %v3648_v47, %v3647_v63  ;;  %v3766_v10 = vor.u32 %v3765_v27, %v3701_v38  ;;  %v3854_v63 = vrot.slane %v12756_v25, 1  ;;  %v3661_v25 = vrot.slane %v3659_v20, 7 }
 0x6b8   : > { %4122 = vmatprep.mubr.bf16.mxu0 %v11780_v53  ;;  %7761 = vmatmul.mubr.bf16.gmra.mrb[116].mxu1 %v11990_v18  ;;  %v12053_v47 = vsel %vm10760_vm6, %v3764_v41, 0  ;;  %v3657_v27 = vor.u32 %v3655_v58, %v3654_v40  ;;  %v12882_v58 = vmov 0   ;;  %v3668_v20 = vrot.slane %v3666_v54, 7 }
 0x6b9   : > { %7764 = vmatprep.mubr.bf16.mxu1 %v11998_v6  ;;  %v12046_v17 = vsel %vm10232_vm3, 0, %v3650_v62  ;;  %v12061_v35 = vsel %vm10760_vm6, %v3766_v10, 0  ;;  %v3855_v62 = vor.u32 %v3854_v63, %v3846_v24  ;;  %v3664_v40 = vor.u32 %v3662_v2, %v3661_v25  ;;  %v8728_v25 = vld [vmem:[#allocation19 + $0x90] sm:$0xff]  }
 0x6ba   : > { %v12071_v41 = vsel %vm10232_vm3, 0, %v3657_v27  ;;  %v8727_v27 = vld [vmem:[#allocation19 + $0x88] sm:$0xff]   ;;  %v3671_v2 = vor.u32 %v3669_v28, %v3668_v20  ;;  %v8746_v28 = vld [vmem:[#allocation19 + $0xa0] sm:$0xff]  }
 0x6bb   : > { %v12078_v10 = vsel %vm10760_vm6, %v3855_v62, 0  ;;  %v12087_v63 = vsel %vm10232_vm3, 0, %v3664_v40  ;;  %v3675_v62 = vrot.slane %v3673_v45, 7  ;;  %v8737_v40 = vld [vmem:[#allocation19 + $0x98] sm:$0xff]   ;;  %v8747_v20 = vld [vmem:[#allocation19 + $0xa8] sm:$0xff]  }
 0x6bc   : > { %v12100_v54 = vsel %vm10232_vm3, 0, %v3671_v2  ;;  %v8749_v2 = vld [vmem:[#allocation19 + $0xb8] sm:$0xff]  }
 0x6bf   : > { %4123 = vmatmul.mubr.bf16.gmra.mrb[188].mxu0 %v12015_v51 }
 0x6c0   : > { %4130 = vmatprep.mubr.bf16.mxu0 %v11793_v7  ;;  %7765 = vmatmul.mubr.bf16.gmra.mrb[120].mxu1 %v12022_v11 }
 0x6c1   : > { %7768 = vmatprep.mubr.bf16.mxu1 %v12030_v13 }
 0x6c7   : > { %4131 = vmatmul.mubr.bf16.gmra.mrb[192].mxu0 %v12046_v17 }
 0x6c8   : > { %4138 = vmatprep.mubr.bf16.mxu0 %v11800_v29  ;;  %7769 = vmatmul.mubr.bf16.gmra.mrb[124].mxu1 %v12053_v47 }
 0x6c9   : > { %7772 = vmatprep.mubr.bf16.mxu1 %v12061_v35 }
 0x6cf   : > { %4139 = vmatmul.mubr.bf16.gmra.mrb[196].mxu0 %v12071_v41 }
 0x6d0   : > { %4146 = vmatprep.mubr.bf16.mxu0 %v11808_v8  ;;  %7773 = vmatmul.mubr.bf16.gmra.mrb[128].mxu1 %v12078_v10 }
 0x6d1   : > { %4548 = vmatprep.mubr.bf16.mxu1 %v12882_v58 }
 0x6d7   : > { %4147 = vmatmul.mubr.bf16.gmra.mrb[200].mxu0 %v12087_v63 }
 0x6d8   : > { %4154 = vmatprep.mubr.bf16.mxu0 %v11822_v60  ;;  %4549 = vmatmul.mubr.bf16.vlgmr.msra.gmra.mrb[132].mxu1 %v12883_v22 }
 0x6d9   : > { %7777 = vmatpush3.bf16.msra.mxu1 %v11972_v52  ;;  %4556 = vmatprep.mubr.bf16.mxu1 %v11820_v5  ;;  %v3678_v5 = vor.u32 %v3676_v39, %v3675_v62  ;;  %v3682_v52 = vrot.slane %v3680_v12, 7  ;;  %v8748_v39 = vld [vmem:[#allocation19 + $0xb0] sm:$0xff]   ;;  %v3696_v62 = vrot.slane %v3694_v34, 7  ;;  %v3703_v34 = vrot.slane %v3701_v38, 7 }
 0x6da   : > { %7778 = vmatprep.subr.bf16.mxu1 %v8727_v27  ;;  %v12884_v38 = vshll.u32 %v11903_v19, 16 }
 0x6db   : > { %v12112_v45 = vsel %vm10232_vm3, 0, %v3678_v5  ;;  %v3706_v5 = vor.u32 %v3704_v0, %v3703_v34 }
 0x6dd   : > { %7779 = vmatpush3.bf16.msra.mxu1 %v8727_v27  ;;  %v3689_v27 = vrot.slane %v3687_v32, 7 }
 0x6de   : > { %7780 = vmatprep.subr.bf16.mxu1 %v8728_v25 }
 0x6df   : > { %4155 = vmatmul.mubr.bf16.gmra.mrb[204].mxu0 %v12100_v54 }
 0x6e0   : > { %4162 = vmatprep.mubr.bf16.mxu0 %v11825_v43  ;;  %4557 = vmatmul.mubr.bf16.gmra.mrb[136].mxu1 %v11849_v30  ;;  %v3685_v30 = vor.u32 %v3683_v55, %v3682_v52  ;;  %v3692_v55 = vor.u32 %v3690_v3, %v3689_v27  ;;  %v3699_v3 = vor.u32 %v3697_v4, %v3696_v62  ;;  %v12163_v4 = vsel %vm10232_vm3, 0, %v3706_v5 }
 0x6e1   : > { %4564 = vmatprep.mubr.bf16.mxu1 %v11707_v44  ;;  %7781 = vmatpush3.bf16.msra.mxu1 %v8728_v25  ;;  %v12134_v25 = vld [vmem:[#allocation19 + $0x200] sm:$0xff]  }
 0x6e2   : > { %7782 = vmatprep.subr.bf16.mxu1 %v8737_v40  ;;  %v12124_v12 = vsel %vm10232_vm3, 0, %v3685_v30  ;;  %v12138_v32 = vsel %vm10232_vm3, 0, %v3692_v55 }
 0x6e5   : > { %7783 = vmatpush3.bf16.msra.mxu1 %v8737_v40  ;;  %v12151_v40 = vsel %vm10232_vm3, 0, %v3699_v3 }
 0x6e6   : > { %7784 = vmatprep.subr.bf16.mxu1 %v8746_v28 }
 0x6e7   : > { %4163 = vmatmul.mubr.bf16.gmra.mrb[208].mxu0 %v12112_v45 }
 0x6e8   : > { %4170 = vmatprep.mubr.bf16.mxu0 %v11838_v31  ;;  %4565 = vmatmul.mubr.bf16.gmra.mrb[140].mxu1 %v11883_v56 }
 0x6e9   : > { %4572 = vmatprep.mubr.bf16.mxu1 %v11722_v1  ;;  %7785 = vmatpush3.bf16.msra.mxu1 %v8746_v28  ;;  %v3848_v28 = vrot.slane %v3846_v24, 7 }
 0x6ea   : > { %7786 = vmatprep.subr.bf16.mxu1 %v8747_v20 }
 0x6eb   : > { %v3851_v52 = vor.u32 %v12884_v38, %v3848_v28  ;;  %v8759_v38 = vld [vmem:[#allocation22 + $0x8] sm:$0xff]  }
 0x6ed   : > { %7787 = vmatpush3.bf16.msra.mxu1 %v8747_v20  ;;  %v12175_v0 = vsel %vm10232_vm3, 0, %v3851_v52 }
 0x6ee   : > { %7788 = vmatprep.subr.bf16.mxu1 %v8748_v39 }
 0x6ef   : > { %4171 = vmatmul.mubr.bf16.gmra.mrb[212].mxu0 %v12124_v12 }
 0x6f0   : > { %4178 = vmatprep.mubr.bf16.mxu0 %v11841_v16  ;;  %4573 = vmatmul.mubr.bf16.gmra.mrb[144].mxu1 %v11918_v26 }
 0x6f1   : > { %4580 = vmatprep.mubr.bf16.mxu1 %v11775_v59  ;;  %7789 = vmatpush3.bf16.msra.mxu1 %v8748_v39 }
 0x6f2   : > { %7790 = vmatprep.subr.bf16.mxu1 %v8749_v2 }
 0x6f5   : > { %7791 = vmatpush3.bf16.msra.mxu1 %v8749_v2 }
 0x6f6   : > { %7824 = vmatprep.subr.bf16.mxu1 %v12134_v25 }
 0x6f7   : > { %4179 = vmatmul.mubr.bf16.gmra.mrb[216].mxu0 %v12138_v32 }
 0x6f8   : > { %4186 = vmatprep.mubr.bf16.mxu0 %v11867_v14  ;;  %4581 = vmatmul.mubr.bf16.gmra.mrb[148].mxu1 %v11948_v36 }
 0x6f9   : > { %4588 = vmatprep.mubr.bf16.mxu1 %v11777_v9 }
 0x6ff   : > { %4187 = vmatmul.mubr.bf16.gmra.mrb[220].mxu0 %v12151_v40 }
 0x700   : > { %4194 = vmatprep.mubr.bf16.mxu0 %v11869_v37  ;;  %4589 = vmatmul.mubr.bf16.gmra.mrb[152].mxu1 %v11982_v48 }
 0x701   : > { %4596 = vmatprep.mubr.bf16.mxu1 %v11780_v53 }
 0x707   : > { %4195 = vmatmul.mubr.bf16.gmra.mrb[224].mxu0 %v12163_v4 }
 0x708   : > { %4202 = vmatprep.mubr.bf16.mxu0 %v11903_v19  ;;  %4597 = vmatmul.mubr.bf16.gmra.mrb[156].mxu1 %v12015_v51 }
 0x709   : > { %4604 = vmatprep.mubr.bf16.mxu1 %v11793_v7 }
 0x70f   : > { %4203 = vmatmul.mubr.bf16.gmra.mrb[228].mxu0 %v12175_v0 }
 0x710   : > { %4605 = vmatmul.mubr.bf16.gmra.mrb[160].mxu1 %v12046_v17  ;;  %5062 = vmatprep.mubr.bf16.mxu0 %v11707_v44  ;;  %v12885_v44 = vld [vmem:[#allocation41_spill] sm:$0xff] }
 0x711   : > { %4612 = vmatprep.mubr.bf16.mxu1 %v11800_v29 }
 0x717   : > { %5063 = vmatmul.mubr.bf16.vlgmr.msra.gmra.mrb[232].mxu0 %v11883_v56  ;;  %v8757_v56 = vld [vmem:[#allocation19 + $0x238] sm:$0xff]  }
 0x718   : > { %4613 = vmatmul.mubr.bf16.gmra.mrb[164].mxu1 %v12071_v41  ;;  %5070 = vmatprep.mubr.bf16.mxu0 %v11722_v1  ;;  %v8751_v1 = vld [vmem:[#allocation19 + $0x208] sm:$0xff]  }
 0x719   : > { %4620 = vmatprep.mubr.bf16.mxu1 %v11808_v8 }
 0x71f   : > { %5071 = vmatmul.mubr.bf16.gmra.mrb[236].mxu0 %v11918_v26  ;;  %v8758_v26 = vld [vmem:[#allocation22] sm:$0xff]  }
 0x720   : > { %4621 = vmatmul.mubr.bf16.gmra.mrb[168].mxu1 %v12087_v63  ;;  %5078 = vmatprep.mubr.bf16.mxu0 %v11775_v59  ;;  %v8752_v59 = vld [vmem:[#allocation19 + $0x210] sm:$0xff]  }
 0x721   : > { %4628 = vmatprep.mubr.bf16.mxu1 %v11822_v60 }
 0x727   : > { %5079 = vmatmul.mubr.bf16.gmra.mrb[240].mxu0 %v11948_v36 }
 0x728   : > { %4629 = vmatmul.mubr.bf16.gmra.mrb[172].mxu1 %v12100_v54  ;;  %5086 = vmatprep.mubr.bf16.mxu0 %v11777_v9  ;;  %v8753_v9 = vld [vmem:[#allocation19 + $0x218] sm:$0xff]  }
 0x729   : > { %4636 = vmatprep.mubr.bf16.mxu1 %v11825_v43 }
 0x72f   : > { %5087 = vmatmul.mubr.bf16.gmra.mrb[244].mxu0 %v11982_v48 }
 0x730   : > { %4637 = vmatmul.mubr.bf16.gmra.mrb[176].mxu1 %v12112_v45  ;;  %5094 = vmatprep.mubr.bf16.mxu0 %v11780_v53  ;;  %v8754_v53 = vld [vmem:[#allocation19 + $0x220] sm:$0xff]  }
 0x731   : > { %4644 = vmatprep.mubr.bf16.mxu1 %v11838_v31 }
 0x737   : > { %5095 = vmatmul.mubr.bf16.gmra.mrb[248].mxu0 %v12015_v51 }
 0x738   : > { %4645 = vmatmul.mubr.bf16.gmra.mrb[180].mxu1 %v12124_v12  ;;  %5102 = vmatprep.mubr.bf16.mxu0 %v11793_v7  ;;  %v8755_v7 = vld [vmem:[#allocation19 + $0x228] sm:$0xff]  }
 0x739   : > { %4652 = vmatprep.mubr.bf16.mxu1 %v11841_v16 }
 0x73f   : > { %5103 = vmatmul.mubr.bf16.gmra.mrb[252].mxu0 %v12046_v17 }
 0x740   : > { %4653 = vmatmul.mubr.bf16.gmra.mrb[184].mxu1 %v12138_v32  ;;  %5110 = vmatprep.mubr.bf16.mxu0 %v11800_v29 }
 0x741   : > { %4660 = vmatprep.mubr.bf16.mxu1 %v11867_v14 }
 0x747   : > { %5111 = vmatmul.mubr.bf16.gmra.mrb[4].mxu0 %v12071_v41 }
 0x748   : > { %4661 = vmatmul.mubr.bf16.gmra.mrb[188].mxu1 %v12151_v40  ;;  %5118 = vmatprep.mubr.bf16.mxu0 %v11808_v8  ;;  %v8756_v8 = vld [vmem:[#allocation19 + $0x230] sm:$0xff]  }
 0x749   : > { %4668 = vmatprep.mubr.bf16.mxu1 %v11869_v37 }
 0x74f   : > { %5119 = vmatmul.mubr.bf16.gmra.mrb[8].mxu0 %v12087_v63 }
 0x750   : > { %4669 = vmatmul.mubr.bf16.gmra.mrb[192].mxu1 %v12163_v4  ;;  %5126 = vmatprep.mubr.bf16.mxu0 %v11822_v60 }
 0x751   : > { %7792 = vmatprep.mubr.bf16.mxu1 %v12885_v44 }
 0x757   : > { %5127 = vmatmul.mubr.bf16.gmra.mrb[12].mxu0 %v12100_v54 }
 0x758   : > { %7793 = vmatmul.mubr.bf16.vlgmr.msra.gmra.mrb[100].mxu1 %v11853_v50  ;;  %5134 = vmatprep.mubr.bf16.mxu0 %v11825_v43 }
 0x759   : > { %7825 = vmatpush3.bf16.msra.mxu1 %v12134_v25  ;;  %7796 = vmatprep.mubr.bf16.mxu1 %v11845_v33 }
 0x75a   : > { %7826 = vmatprep.subr.bf16.mxu1 %v8751_v1 }
 0x75d   : > { %7827 = vmatpush3.bf16.msra.mxu1 %v8751_v1 }
 0x75e   : > { %7828 = vmatprep.subr.bf16.mxu1 %v8752_v59 }
 0x75f   : > { %5135 = vmatmul.mubr.bf16.gmra.mrb[16].mxu0 %v12112_v45 }
 0x760   : > { %7797 = vmatmul.mubr.bf16.gmra.mrb[104].mxu1 %v11863_v61  ;;  %5142 = vmatprep.mubr.bf16.mxu0 %v11838_v31 }
 0x761   : > { %7800 = vmatprep.mubr.bf16.mxu1 %v11891_v46  ;;  %7829 = vmatpush3.bf16.msra.mxu1 %v8752_v59 }
 0x762   : > { %7830 = vmatprep.subr.bf16.mxu1 %v8753_v9 }
 0x765   : > { %7831 = vmatpush3.bf16.msra.mxu1 %v8753_v9 }
 0x766   : > { %7832 = vmatprep.subr.bf16.mxu1 %v8754_v53 }
 0x767   : > { %5143 = vmatmul.mubr.bf16.gmra.mrb[20].mxu0 %v12124_v12 }
 0x768   : > { %7801 = vmatmul.mubr.bf16.gmra.mrb[108].mxu1 %v11899_v42  ;;  %5150 = vmatprep.mubr.bf16.mxu0 %v11841_v16 }
 0x769   : > { %7804 = vmatprep.mubr.bf16.mxu1 %v11923_v49  ;;  %7833 = vmatpush3.bf16.msra.mxu1 %v8754_v53  ;;  %v8761_v53 = vld [vmem:[#allocation22 + $0x18] sm:$0xff]  }
 0x76a   : > { %v7028_v29 = vpop.f32.mrb[168].mxu0  ;;  %7834 = vmatprep.subr.bf16.mxu1 %v8755_v7 }
 0x76b   : > { %v7029_v60 = vpop.f32.mrb[169].mxu0 }
 0x76c   : > { %v12226_v43 = vadd.f32 %v7029_v60, %v7028_v29  ;;  %v7031_v31 = vpop.f32.mrb[170].mxu0 }
 0x76d   : > { %v7032_v15 = vpop.f32.mrb[171].mxu0  ;;  %7835 = vmatpush3.bf16.msra.mxu1 %v8755_v7 }
 0x76e   : > { %v12228_v50 = vadd.f32 %v7032_v15, %v7031_v31  ;;  %7836 = vmatprep.subr.bf16.mxu1 %v8756_v8  ;;  %v8763_v15 = vld [vmem:[#allocation22 + $0x28] sm:$0xff]  }
 0x76f   : > { %5151 = vmatmul.mubr.bf16.gmra.mrb[24].mxu0 %v12138_v32 }
 0x770   : > { %7805 = vmatmul.mubr.bf16.gmra.mrb[112].mxu1 %v11931_v23  ;;  %5158 = vmatprep.mubr.bf16.mxu0 %v11867_v14 }
 0x771   : > { %7808 = vmatprep.mubr.bf16.mxu1 %v11955_v57  ;;  %7837 = vmatpush3.bf16.msra.mxu1 %v8756_v8 }
 0x772   : > { %v7034_v16 = vpop.f32.mrb[172].mxu0  ;;  %7838 = vmatprep.subr.bf16.mxu1 %v8757_v56 }
 0x773   : > { %v7035_v36 = vpop.f32.mrb[173].mxu0 }
 0x774   : > { %v12234_v48 = vadd.f32 %v7035_v36, %v7034_v16  ;;  %v7037_v51 = vpop.f32.mrb[174].mxu0 }
 0x775   : > { %v7038_v17 = vpop.f32.mrb[175].mxu0  ;;  %7839 = vmatpush3.bf16.msra.mxu1 %v8757_v56 }
 0x776   : > { %v12236_v24 = vadd.f32 %v7038_v17, %v7037_v51  ;;  %7872 = vmatprep.subr.bf16.mxu1 %v8758_v26 }
 0x777   : > { %5159 = vmatmul.mubr.bf16.gmra.mrb[28].mxu0 %v12151_v40 }
 0x778   : > { %7809 = vmatmul.mubr.bf16.gmra.mrb[116].mxu1 %v11963_v21  ;;  %5166 = vmatprep.mubr.bf16.mxu0 %v11869_v37 }
 0x779   : > { %7812 = vmatprep.mubr.bf16.mxu1 %v11990_v18 }
 0x77a   : > { %v7040_v14 = vpop.f32.mrb[176].mxu0 }
 0x77b   : > { %v7041_v41 = vpop.f32.mrb[177].mxu0 }
 0x77c   : > { %v12242_v63 = vadd.f32 %v7041_v41, %v7040_v14  ;;  %v7043_v54 = vpop.f32.mrb[178].mxu0 }
 0x77d   : > { %v7044_v45 = vpop.f32.mrb[179].mxu0 }
 0x77e   : > { %v12244_v20 = vadd.f32 %v7044_v45, %v7043_v54 }
 0x77f   : > { %5167 = vmatmul.mubr.bf16.gmra.mrb[32].mxu0 %v12163_v4 }
 0x780   : > { %7813 = vmatmul.mubr.bf16.gmra.mrb[120].mxu1 %v11998_v6  ;;  %5174 = vmatprep.mubr.bf16.mxu0 %v11903_v19 }
 0x781   : > { %7816 = vmatprep.mubr.bf16.mxu1 %v12022_v11 }
 0x782   : > { %v7046_v30 = vpop.f32.mrb[180].mxu0 }
 0x783   : > { %v7047_v37 = vpop.f32.mrb[181].mxu0 }
 0x784   : > { %v12250_v39 = vadd.f32 %v7047_v37, %v7046_v30  ;;  %v7049_v12 = vpop.f32.mrb[182].mxu0 }
 0x785   : > { %v7050_v27 = vpop.f32.mrb[183].mxu0 }
 0x786   : > { %v12252_v2 = vadd.f32 %v7050_v27, %v7049_v12 }
 0x787   : > { %5175 = vmatmul.mubr.bf16.gmra.mrb[36].mxu0 %v12175_v0 }
 0x788   : > { %7817 = vmatmul.mubr.bf16.gmra.mrb[124].mxu1 %v12030_v13  ;;  %5182 = vmatprep.mubr.bf16.mxu0 %v12882_v58 }
 0x789   : > { %7820 = vmatprep.mubr.bf16.mxu1 %v12053_v47 }
 0x78a   : > { %v7052_v55 = vpop.f32.mrb[184].mxu0 }
 0x78b   : > { %v7053_v19 = vpop.f32.mrb[185].mxu0 }
 0x78c   : > { %v12258_v25 = vadd.f32 %v7053_v19, %v7052_v55  ;;  %v7055_v32 = vpop.f32.mrb[186].mxu0 }
 0x78d   : > { %v7056_v62 = vpop.f32.mrb[187].mxu0 }
 0x78e   : > { %v12260_v3 = vadd.f32 %v7056_v62, %v7055_v32 }
 0x78f   : > { %5183 = vmatmul.mubr.bf16.gmra.mrb[40].mxu0 %v12883_v22  ;;  %v8760_v22 = vld [vmem:[#allocation22 + $0x10] sm:$0xff]  }
 0x790   : > { %7821 = vmatmul.mubr.bf16.gmra.mrb[128].mxu1 %v12061_v35 }
 0x791   : > { %7840 = vmatprep.mubr.bf16.mxu1 %v11845_v33 }
 0x792   : > { %v7058_v40 = vpop.f32.mrb[188].mxu0 }
 0x793   : > { %v7059_v34 = vpop.f32.mrb[189].mxu0 }
 0x794   : > { %v12265_v5 = vadd.f32 %v7059_v34, %v7058_v40  ;;  %v7061_v58 = vpop.f32.mrb[190].mxu0 }
 0x795   : > { %v7062_v4 = vpop.f32.mrb[191].mxu0 }
 0x796   : > { %v12267_v28 = vadd.f32 %v7062_v4, %v7061_v58 }
 0x798   : > { %7841 = vmatmul.mubr.bf16.vlgmr.msra.gmra.mrb[100].mxu1 %v11863_v61 }
 0x799   : > { %7873 = vmatpush3.bf16.msra.mxu1 %v8758_v26  ;;  %7844 = vmatprep.mubr.bf16.mxu1 %v11891_v46  ;;  %v8762_v46 = vld [vmem:[#allocation22 + $0x20] sm:$0xff]  }
 0x79a   : > { %v7064_v52 = vpop.f32.mrb[192].mxu0  ;;  %7874 = vmatprep.subr.bf16.mxu1 %v8759_v38 }
 0x79b   : > { %v7065_v0 = vpop.f32.mrb[193].mxu0 }
 0x79c   : > { %v12271_v1 = vadd.f32 %v7065_v0, %v7064_v52  ;;  %v7067_v33 = vpop.f32.mrb[194].mxu0 }
 0x79d   : > { %v7068_v59 = vpop.f32.mrb[195].mxu0  ;;  %7875 = vmatpush3.bf16.msra.mxu1 %v8759_v38 }
 0x79e   : > { %v12273_v9 = vadd.f32 %v7068_v59, %v7067_v33  ;;  %7876 = vmatprep.subr.bf16.mxu1 %v8760_v22 }
 0x7a0   : > { %7845 = vmatmul.mubr.bf16.gmra.mrb[104].mxu1 %v11899_v42 }
 0x7a1   : > { %7848 = vmatprep.mubr.bf16.mxu1 %v11923_v49  ;;  %7877 = vmatpush3.bf16.msra.mxu1 %v8760_v22  ;;  %v8764_v49 = vld [vmem:[#allocation22 + $0x30] sm:$0xff]  }
 0x7a2   : > { %v7070_v61 = vpop.f32.mrb[196].mxu0  ;;  %7878 = vmatprep.subr.bf16.mxu1 %v8761_v53 }
 0x7a3   : > { %v7071_v7 = vpop.f32.mrb[197].mxu0 }
 0x7a4   : > { %v12277_v29 = vadd.f32 %v7071_v7, %v7070_v61  ;;  %v7073_v8 = vpop.f32.mrb[198].mxu0 }
 0x7a5   : > { %v7074_v60 = vpop.f32.mrb[199].mxu0  ;;  %7879 = vmatpush3.bf16.msra.mxu1 %v8761_v53 }
 0x7a6   : > { %v12279_v31 = vadd.f32 %v7074_v60, %v7073_v8  ;;  %7880 = vmatprep.subr.bf16.mxu1 %v8762_v46 }
 0x7a8   : > { %7849 = vmatmul.mubr.bf16.gmra.mrb[108].mxu1 %v11931_v23  ;;  %v8765_v23 = vld [vmem:[#allocation22 + $0x38] sm:$0xff]  }
 0x7a9   : > { %7852 = vmatprep.mubr.bf16.mxu1 %v11955_v57  ;;  %7881 = vmatpush3.bf16.msra.mxu1 %v8762_v46 }
 0x7aa   : > { %v7076_v42 = vpop.f32.mrb[200].mxu0  ;;  %7882 = vmatprep.subr.bf16.mxu1 %v8763_v15 }
 0x7ab   : > { %v7077_v56 = vpop.f32.mrb[201].mxu0  ;;  %v7164_v16 = vpop.f32.mrb[132].mxu1 }
 0x7ac   : > { %v12283_v26 = vadd.f32 %v7077_v56, %v7076_v42  ;;  %v7079_v36 = vpop.f32.mrb[202].mxu0  ;;  %v7165_v51 = vpop.f32.mrb[133].mxu1 }
 0x7ad   : > { %v7166_v17 = vadd.f32 %v7165_v51, %v7164_v16  ;;  %v7080_v14 = vpop.f32.mrb[203].mxu0  ;;  %v7167_v41 = vpop.f32.mrb[134].mxu1  ;;  %7883 = vmatpush3.bf16.msra.mxu1 %v8763_v15 }
 0x7ae   : > { %v12285_v54 = vadd.f32 %v7080_v14, %v7079_v36  ;;  %v7168_v45 = vpop.f32.mrb[135].mxu1  ;;  %7884 = vmatprep.subr.bf16.mxu1 %v8764_v49 }
 0x7af   : > { %v12288_v57 = vadd.f32 %v7166_v17, %v12226_v43  ;;  %v7169_v30 = vadd.f32 %v7168_v45, %v7167_v41 }
 0x7b0   : > { %7853 = vmatmul.mubr.bf16.gmra.mrb[112].mxu1 %v11963_v21 }
 0x7b1   : > { %v12292_v37 = vadd.f32 %v7169_v30, %v12228_v50  ;;  %7856 = vmatprep.mubr.bf16.mxu1 %v11990_v18  ;;  %7885 = vmatpush3.bf16.msra.mxu1 %v8764_v49 }
 0x7b2   : > { %v7082_v12 = vpop.f32.mrb[204].mxu0  ;;  %7886 = vmatprep.subr.bf16.mxu1 %v8765_v23 }
 0x7b3   : > { %v7083_v27 = vpop.f32.mrb[205].mxu0  ;;  %v7170_v55 = vpop.f32.mrb[136].mxu1 }
 0x7b4   : > { %v12295_v19 = vadd.f32 %v7083_v27, %v7082_v12  ;;  %v7085_v32 = vpop.f32.mrb[206].mxu0  ;;  %v7171_v62 = vpop.f32.mrb[137].mxu1 }
 0x7b5   : > { %v7172_v40 = vadd.f32 %v7171_v62, %v7170_v55  ;;  %v7086_v43 = vpop.f32.mrb[207].mxu0  ;;  %v7173_v34 = vpop.f32.mrb[138].mxu1  ;;  %7887 = vmatpush3.bf16.msra.mxu1 %v8765_v23 }
 0x7b6   : > { %v12297_v58 = vadd.f32 %v7086_v43, %v7085_v32  ;;  %v7174_v21 = vpop.f32.mrb[139].mxu1  ;;  %v8930_v32 = vld [vmem:[%s9994_s7] sm:$0xff]  }
 0x7b7   : > { %v12300_v50 = vadd.f32 %v7172_v40, %v12234_v48  ;;  %v7175_v18 = vadd.f32 %v7174_v21, %v7173_v34 }
 0x7b8   : > { %7857 = vmatmul.mubr.bf16.gmra.mrb[116].mxu1 %v11998_v6 }
 0x7b9   : > { %v12304_v4 = vadd.f32 %v7175_v18, %v12236_v24  ;;  %7860 = vmatprep.mubr.bf16.mxu1 %v12022_v11 }
 0x7ba   : > { %v7088_v38 = vpop.f32.mrb[208].mxu0 }
 0x7bb   : > { %v7089_v52 = vpop.f32.mrb[209].mxu0  ;;  %v7176_v22 = vpop.f32.mrb[140].mxu1 }
 0x7bc   : > { %v12307_v0 = vadd.f32 %v7089_v52, %v7088_v38  ;;  %v7091_v33 = vpop.f32.mrb[210].mxu0  ;;  %v7177_v59 = vpop.f32.mrb[141].mxu1 }
 0x7bd   : > { %v7178_v53 = vadd.f32 %v7177_v59, %v7176_v22  ;;  %v7092_v61 = vpop.f32.mrb[211].mxu0  ;;  %v7179_v46 = vpop.f32.mrb[142].mxu1  ;;  %v8931_v22 = vld [vmem:[%s9994_s7 + $0x8] sm:$0xff]  }
 0x7be   : > { %v12309_v48 = vadd.f32 %v7092_v61, %v7091_v33  ;;  %v7180_v7 = vpop.f32.mrb[143].mxu1 }
 0x7bf   : > { %v12312_v6 = vadd.f32 %v7178_v53, %v12242_v63  ;;  %v7181_v24 = vadd.f32 %v7180_v7, %v7179_v46  ;;  %v8932_v53 = vld [vmem:[%s9994_s7 + $0x10] sm:$0xff]  }
 0x7c0   : > { %7861 = vmatmul.mubr.bf16.gmra.mrb[120].mxu1 %v12030_v13 }
 0x7c1   : > { %v12316_v11 = vadd.f32 %v7181_v24, %v12244_v20  ;;  %7864 = vmatprep.mubr.bf16.mxu1 %v12053_v47 }
 0x7c2   : > { %v7094_v8 = vpop.f32.mrb[212].mxu0 }
 0x7c3   : > { %v7095_v60 = vpop.f32.mrb[213].mxu0  ;;  %v7182_v15 = vpop.f32.mrb[144].mxu1 }
 0x7c4   : > { %v12319_v42 = vadd.f32 %v7095_v60, %v7094_v8  ;;  %v7097_v49 = vpop.f32.mrb[214].mxu0  ;;  %v7183_v56 = vpop.f32.mrb[145].mxu1 }
 0x7c5   : > { %v7184_v16 = vadd.f32 %v7183_v56, %v7182_v15  ;;  %v7098_v36 = vpop.f32.mrb[215].mxu0  ;;  %v7185_v51 = vpop.f32.mrb[146].mxu1 }
 0x7c6   : > { %v12321_v63 = vadd.f32 %v7098_v36, %v7097_v49  ;;  %v7186_v17 = vpop.f32.mrb[147].mxu1 }
 0x7c7   : > { %v12324_v13 = vadd.f32 %v7184_v16, %v12250_v39  ;;  %v7187_v20 = vadd.f32 %v7186_v17, %v7185_v51  ;;  %v8933_v16 = vld [vmem:[%s9994_s7 + $0x18] sm:$0xff]  }
 0x7c8   : > { %7865 = vmatmul.mubr.bf16.gmra.mrb[124].mxu1 %v12061_v35 }
 0x7c9   : > { %v12328_v47 = vadd.f32 %v7187_v20, %v12252_v2  ;;  %7868 = vmatprep.mubr.bf16.mxu1 %v12078_v10 }
 0x7ca   : > { %v7100_v14 = vpop.f32.mrb[216].mxu0 }
 0x7cb   : > { %v7101_v41 = vpop.f32.mrb[217].mxu0  ;;  %v7188_v45 = vpop.f32.mrb[148].mxu1 }
 0x7cc   : > { %v12331_v23 = vadd.f32 %v7101_v41, %v7100_v14  ;;  %v7103_v30 = vpop.f32.mrb[218].mxu0  ;;  %v7189_v12 = vpop.f32.mrb[149].mxu1 }
 0x7cd   : > { %v7190_v27 = vadd.f32 %v7189_v12, %v7188_v45  ;;  %v7104_v55 = vpop.f32.mrb[219].mxu0  ;;  %v7191_v39 = vpop.f32.mrb[150].mxu1 }
 0x7ce   : > { %v12334_v62 = vadd.f32 %v7104_v55, %v7103_v30  ;;  %v7192_v35 = vpop.f32.mrb[151].mxu1 }
 0x7cf   : > { %v12337_v2 = vadd.f32 %v7190_v27, %v12258_v25  ;;  %v7193_v10 = vadd.f32 %v7192_v35, %v7191_v39  ;;  %v8935_v35 = vld [vmem:[%s9994_s7 + $0x28] sm:$0xff]  }
 0x7d0   : > { %7869 = vmatmul.mubr.bf16.gmra.mrb[128].mxu1 %v12885_v44 }
 0x7d1   : > { %v12341_v40 = vadd.f32 %v7193_v10, %v12260_v3  ;;  %7888 = vmatprep.mubr.bf16.mxu1 %v8930_v32 }
 0x7d2   : > { %v7106_v43 = vpop.f32.mrb[220].mxu0 }
 0x7d3   : > { %v7107_v34 = vpop.f32.mrb[221].mxu0  ;;  %v7194_v21 = vpop.f32.mrb[152].mxu1 }
 0x7d4   : > { %v12343_v18 = vadd.f32 %v7107_v34, %v7106_v43  ;;  %v7109_v38 = vpop.f32.mrb[222].mxu0  ;;  %v7195_v52 = vpop.f32.mrb[153].mxu1 }
 0x7d5   : > { %v7196_v33 = vadd.f32 %v7195_v52, %v7194_v21  ;;  %v7110_v59 = vpop.f32.mrb[223].mxu0  ;;  %v7197_v25 = vpop.f32.mrb[154].mxu1 }
 0x7d6   : > { %v12347_v61 = vadd.f32 %v7110_v59, %v7109_v38  ;;  %v7198_v44 = vpop.f32.mrb[155].mxu1 }
 0x7d7   : > { %v12350_v3 = vadd.f32 %v7196_v33, %v12265_v5  ;;  %v7199_v46 = vadd.f32 %v7198_v44, %v7197_v25  ;;  %v8934_v5 = vld [vmem:[%s9994_s7 + $0x20] sm:$0xff]  }
 0x7d8   : > { %7889 = vmatmul.mubr.bf16.vlgmr.msra.gmra.mrb[100].mxu1 %v8931_v22 }
 0x7d9   : > { %v12353_v7 = vadd.f32 %v7199_v46, %v12267_v28  ;;  %7892 = vmatprep.mubr.bf16.mxu1 %v8932_v53 }
 0x7da   : > { %v7112_v24 = vpop.f32.mrb[224].mxu0 }
 0x7db   : > { %v7113_v8 = vpop.f32.mrb[225].mxu0  ;;  %v7200_v60 = vpop.f32.mrb[156].mxu1 }
 0x7dc   : > { %v12355_v15 = vadd.f32 %v7113_v8, %v7112_v24  ;;  %v7115_v49 = vpop.f32.mrb[226].mxu0  ;;  %v7201_v56 = vpop.f32.mrb[157].mxu1  ;;  %v8937_v24 = vld [vmem:[%s9994_s7 + $0x38] sm:$0xff]  }
 0x7dd   : > { %v7202_v36 = vadd.f32 %v7201_v56, %v7200_v60  ;;  %v7116_v51 = vpop.f32.mrb[227].mxu0  ;;  %v7203_v17 = vpop.f32.mrb[158].mxu1  ;;  %v8938_v56 = vld [vmem:[%s9994_s7 + $0x40] sm:$0xff]  }
 0x7de   : > { %v12359_v20 = vadd.f32 %v7116_v51, %v7115_v49  ;;  %v7204_v14 = vpop.f32.mrb[159].mxu1 }
 0x7df   : > { %v12362_v28 = vadd.f32 %v7202_v36, %v12271_v1  ;;  %v7205_v41 = vadd.f32 %v7204_v14, %v7203_v17  ;;  %v8936_v1 = vld [vmem:[%s9994_s7 + $0x30] sm:$0xff]  }
 0x7e0   : > { %7893 = vmatmul.mubr.bf16.gmra.mrb[104].mxu1 %v8933_v16 }
 0x7e1   : > { %v12365_v45 = vadd.f32 %v7205_v41, %v12273_v9  ;;  %7896 = vmatprep.mubr.bf16.mxu1 %v8934_v5 }
 0x7e2   : > { %v7118_v30 = vpop.f32.mrb[228].mxu0 }
 0x7e3   : > { %v7119_v12 = vpop.f32.mrb[229].mxu0  ;;  %v7206_v27 = vpop.f32.mrb[160].mxu1 }
 0x7e4   : > { %v12367_v55 = vadd.f32 %v7119_v12, %v7118_v30  ;;  %v7121_v39 = vpop.f32.mrb[230].mxu0  ;;  %v7207_v32 = vpop.f32.mrb[161].mxu1 }
 0x7e5   : > { %v7208_v10 = vadd.f32 %v7207_v32, %v7206_v27  ;;  %v7122_v43 = vpop.f32.mrb[231].mxu0  ;;  %v7209_v34 = vpop.f32.mrb[162].mxu1 }
 0x7e6   : > { %v12371_v21 = vadd.f32 %v7122_v43, %v7121_v39  ;;  %v7210_v38 = vpop.f32.mrb[163].mxu1  ;;  %v8939_v39 = vld [vmem:[%s9994_s7 + $0x48] sm:$0xff]  }
 0x7e7   : > { %v12374_v9 = vadd.f32 %v7208_v10, %v12277_v29  ;;  %v7211_v52 = vadd.f32 %v7210_v38, %v7209_v34  ;;  %v8940_v10 = vld [vmem:[%s9994_s7 + $0x50] sm:$0xff]  }
 0x7e8   : > { %7897 = vmatmul.mubr.bf16.gmra.mrb[108].mxu1 %v8935_v35 }
 0x7e9   : > { %v12377_v22 = vadd.f32 %v7211_v52, %v12279_v31  ;;  %7900 = vmatprep.mubr.bf16.mxu1 %v8936_v1 }
 0x7ea   : > { %v7300_v33 = vpop.f32.mrb[232].mxu0 }
 0x7eb   : > { %v7212_v59 = vpop.f32.mrb[164].mxu1  ;;  %v7301_v25 = vpop.f32.mrb[233].mxu0 }
 0x7ec   : > { %v7302_v53 = vadd.f32 %v7301_v25, %v7300_v33  ;;  %v7213_v44 = vpop.f32.mrb[165].mxu1  ;;  %v7303_v46 = vpop.f32.mrb[234].mxu0 }
 0x7ed   : > { %v7214_v8 = vadd.f32 %v7213_v44, %v7212_v59  ;;  %v7215_v60 = vpop.f32.mrb[166].mxu1  ;;  %v7304_v49 = vpop.f32.mrb[235].mxu0 }
 0x7ee   : > { %v12382_v29 = vadd.f32 %v12288_v57, %v7302_v53  ;;  %v7305_v16 = vadd.f32 %v7304_v49, %v7303_v46  ;;  %v7216_v36 = vpop.f32.mrb[167].mxu1  ;;  %v8941_v46 = vld [vmem:[%s9994_s7 + $0x58] sm:$0xff]  }
 0x7ef   : > { %v12385_v31 = vadd.f32 %v7214_v8, %v12283_v26  ;;  %v7217_v51 = vadd.f32 %v7216_v36, %v7215_v60  ;;  %v8942_v60 = vld [vmem:[%s9994_s7 + $0x60] sm:$0xff]  }
 0x7f0   : > { %v12388_v17 = vadd.f32 %v12292_v37, %v7305_v16  ;;  %7901 = vmatmul.mubr.bf16.gmra.mrb[112].mxu1 %v8937_v24 }
 0x7f1   : > { %v12391_v5 = vadd.f32 %v7217_v51, %v12285_v54  ;;  %7904 = vmatprep.mubr.bf16.mxu1 %v8938_v56 }
 0x7f2   : > { %v7306_v14 = vpop.f32.mrb[236].mxu0 }
 0x7f3   : > { %v7218_v41 = vpop.f32.mrb[168].mxu1  ;;  %v7307_v30 = vpop.f32.mrb[237].mxu0 }
 0x7f4   : > { %v7308_v57 = vadd.f32 %v7307_v30, %v7306_v14  ;;  %v7219_v12 = vpop.f32.mrb[169].mxu1  ;;  %v7309_v27 = vpop.f32.mrb[238].mxu0 }
 0x7f5   : > { %v7220_v32 = vadd.f32 %v7219_v12, %v7218_v41  ;;  %v7221_v26 = vpop.f32.mrb[170].mxu1  ;;  %v7310_v35 = vpop.f32.mrb[239].mxu0 }
 0x7f6   : > { %v12396_v37 = vadd.f32 %v12300_v50, %v7308_v57  ;;  %v7311_v43 = vadd.f32 %v7310_v35, %v7309_v27  ;;  %v7222_v34 = vpop.f32.mrb[171].mxu1  ;;  %v8943_v27 = vld [vmem:[%s9994_s7 + $0x68] sm:$0xff]  }
 0x7f7   : > { %v12399_v54 = vadd.f32 %v7220_v32, %v12295_v19  ;;  %v7223_v1 = vadd.f32 %v7222_v34, %v7221_v26  ;;  %v8944_v26 = vld [vmem:[%s9994_s7 + $0x70] sm:$0xff]  }
 0x7f8   : > { %v12402_v38 = vadd.f32 %v12304_v4, %v7311_v43  ;;  %7905 = vmatmul.mubr.bf16.gmra.mrb[116].mxu1 %v8939_v39 }
 0x7f9   : > { %v12405_v52 = vadd.f32 %v7223_v1, %v12297_v58  ;;  %7908 = vmatprep.mubr.bf16.mxu1 %v8940_v10 }
 0x7fa   : > { %v7312_v33 = vpop.f32.mrb[240].mxu0 }
 0x7fb   : > { %v7224_v59 = vpop.f32.mrb[172].mxu1  ;;  %v7313_v25 = vpop.f32.mrb[241].mxu0 }
 0x7fc   : > { %v7314_v50 = vadd.f32 %v7313_v25, %v7312_v33  ;;  %v7225_v53 = vpop.f32.mrb[173].mxu1  ;;  %v7315_v44 = vpop.f32.mrb[242].mxu0 }
 0x7fd   : > { %v7226_v24 = vadd.f32 %v7225_v53, %v7224_v59  ;;  %v7227_v19 = vpop.f32.mrb[174].mxu1  ;;  %v7316_v8 = vpop.f32.mrb[243].mxu0 }
 0x7fe   : > { %v12410_v4 = vadd.f32 %v12312_v6, %v7314_v50  ;;  %v7317_v49 = vadd.f32 %v7316_v8, %v7315_v44  ;;  %v7228_v56 = vpop.f32.mrb[175].mxu1  ;;  %v8945_v44 = vld [vmem:[%s9994_s7 + $0x78] sm:$0xff]  }
 0x7ff   : > { %v12413_v58 = vadd.f32 %v7226_v24, %v12307_v0  ;;  %v7229_v16 = vadd.f32 %v7228_v56, %v7227_v19 }
 0x800   : > { %v12416_v36 = vadd.f32 %v12316_v11, %v7317_v49  ;;  %7909 = vmatmul.mubr.bf16.gmra.mrb[120].mxu1 %v8941_v46 }
 0x801   : > { %v12419_v51 = vadd.f32 %v7229_v16, %v12309_v48  ;;  %7912 = vmatprep.mubr.bf16.mxu1 %v8942_v60 }
 0x802   : > { %v7318_v14 = vpop.f32.mrb[244].mxu0 }
 0x803   : > { %v7230_v41 = vpop.f32.mrb[176].mxu1  ;;  %v7319_v30 = vpop.f32.mrb[245].mxu0 }
 0x804   : > { %v7320_v6 = vadd.f32 %v7319_v30, %v7318_v14  ;;  %v7231_v57 = vpop.f32.mrb[177].mxu1  ;;  %v7321_v12 = vpop.f32.mrb[246].mxu0 }
 0x805   : > { %v7232_v39 = vadd.f32 %v7231_v57, %v7230_v41  ;;  %v7233_v0 = vpop.f32.mrb[178].mxu1  ;;  %v7322_v32 = vpop.f32.mrb[247].mxu0 }
 0x806   : > { %v12424_v11 = vadd.f32 %v12324_v13, %v7320_v6  ;;  %v7323_v35 = vadd.f32 %v7322_v32, %v7321_v12  ;;  %v7234_v10 = vpop.f32.mrb[179].mxu1 }
 0x807   : > { %v12427_v48 = vadd.f32 %v7232_v39, %v12319_v42  ;;  %v7235_v43 = vadd.f32 %v7234_v10, %v7233_v0 }
 0x808   : > { %v12430_v34 = vadd.f32 %v12328_v47, %v7323_v35  ;;  %7913 = vmatmul.mubr.bf16.gmra.mrb[124].mxu1 %v8943_v27 }
 0x809   : > { %v12433_v1 = vadd.f32 %v7235_v43, %v12321_v63  ;;  %7916 = vmatprep.mubr.bf16.mxu1 %v8944_v26 }
 0x80a   : > { %v7324_v33 = vpop.f32.mrb[248].mxu0 }
 0x80b   : > { %v7236_v59 = vpop.f32.mrb[180].mxu1  ;;  %v7325_v25 = vpop.f32.mrb[249].mxu0 }
 0x80c   : > { %v7326_v50 = vadd.f32 %v7325_v25, %v7324_v33  ;;  %v7237_v13 = vpop.f32.mrb[181].mxu1  ;;  %v7327_v53 = vpop.f32.mrb[250].mxu0 }
 0x80d   : > { %v7238_v46 = vadd.f32 %v7237_v13, %v7236_v59  ;;  %v7239_v24 = vpop.f32.mrb[182].mxu1  ;;  %v7328_v42 = vpop.f32.mrb[251].mxu0 }
 0x80e   : > { %v12437_v19 = vadd.f32 %v12337_v2, %v7326_v50  ;;  %v7329_v47 = vadd.f32 %v7328_v42, %v7327_v53  ;;  %v7240_v8 = vpop.f32.mrb[183].mxu1 }
 0x80f   : > { %v12440_v60 = vadd.f32 %v7238_v46, %v12331_v23  ;;  %v7241_v63 = vadd.f32 %v7240_v8, %v7239_v24 }
 0x810   : > { %v12443_v49 = vadd.f32 %v12341_v40, %v7329_v47  ;;  %7917 = vmatmul.mubr.bf16.gmra.mrb[128].mxu1 %v8945_v44 }
 0x811   : > { %v12446_v56 = vadd.f32 %v7241_v63, %v12334_v62 }
 0x812   : > { %v7330_v16 = vpop.f32.mrb[252].mxu0 }
 0x813   : > { %v7242_v14 = vpop.f32.mrb[184].mxu1  ;;  %v7331_v41 = vpop.f32.mrb[253].mxu0 }
 0x814   : > { %v7332_v30 = vadd.f32 %v7331_v41, %v7330_v16  ;;  %v7243_v6 = vpop.f32.mrb[185].mxu1  ;;  %v7333_v2 = vpop.f32.mrb[254].mxu0 }
 0x815   : > { %v7244_v57 = vadd.f32 %v7243_v6, %v7242_v14  ;;  %v7245_v12 = vpop.f32.mrb[186].mxu1  ;;  %v7334_v27 = vpop.f32.mrb[255].mxu0 }
 0x816   : > { %v12449_v23 = vadd.f32 %v12350_v3, %v7332_v30  ;;  %v7335_v39 = vadd.f32 %v7334_v27, %v7333_v2  ;;  %v7246_v0 = vpop.f32.mrb[187].mxu1 }
 0x817   : > { %v12452_v40 = vadd.f32 %v7244_v57, %v12343_v18  ;;  %v7247_v32 = vadd.f32 %v7246_v0, %v7245_v12 }
 0x818   : > { %v12455_v62 = vadd.f32 %v12353_v7, %v7335_v39 }
 0x819   : > { %v12458_v26 = vadd.f32 %v7247_v32, %v12347_v61 }
 0x81a   : > { %v7336_v35 = vpop.f32.mrb[4].mxu0 }
 0x81b   : > { %v7248_v10 = vpop.f32.mrb[188].mxu1  ;;  %v7337_v43 = vpop.f32.mrb[5].mxu0 }
 0x81c   : > { %v7338_v33 = vadd.f32 %v7337_v43, %v7336_v35  ;;  %v7249_v59 = vpop.f32.mrb[189].mxu1  ;;  %v7339_v25 = vpop.f32.mrb[6].mxu0 }
 0x81d   : > { %v7250_v3 = vadd.f32 %v7249_v59, %v7248_v10  ;;  %v7251_v50 = vpop.f32.mrb[190].mxu1  ;;  %v7340_v13 = vpop.f32.mrb[7].mxu0 }
 0x81e   : > { %v12461_v53 = vadd.f32 %v12362_v28, %v7338_v33  ;;  %v7341_v18 = vadd.f32 %v7340_v13, %v7339_v25  ;;  %v7252_v44 = vpop.f32.mrb[191].mxu1 }
 0x81f   : > { %v12464_v7 = vadd.f32 %v7250_v3, %v12355_v15  ;;  %v7253_v46 = vadd.f32 %v7252_v44, %v7251_v50 }
 0x820   : > { %v12467_v61 = vadd.f32 %v12365_v45, %v7341_v18 }
 0x821   : > { %v12470_v24 = vadd.f32 %v7253_v46, %v12359_v20 }
 0x822   : > { %v7342_v42 = vpop.f32.mrb[8].mxu0 }
 0x823   : > { %v7254_v47 = vpop.f32.mrb[192].mxu1  ;;  %v7343_v8 = vpop.f32.mrb[9].mxu0 }
 0x824   : > { %v7344_v63 = vadd.f32 %v7343_v8, %v7342_v42  ;;  %v7255_v16 = vpop.f32.mrb[193].mxu1  ;;  %v7345_v14 = vpop.f32.mrb[10].mxu0 }
 0x825   : > { %v7256_v28 = vadd.f32 %v7255_v16, %v7254_v47  ;;  %v7257_v41 = vpop.f32.mrb[194].mxu1  ;;  %v7346_v30 = vpop.f32.mrb[11].mxu0 }
 0x826   : > { %v12473_v6 = vadd.f32 %v12374_v9, %v7344_v63  ;;  %v7347_v15 = vadd.f32 %v7346_v30, %v7345_v14  ;;  %v7258_v2 = vpop.f32.mrb[195].mxu1 }
 0x827   : > { %v12476_v45 = vadd.f32 %v7256_v28, %v12367_v55  ;;  %v7259_v57 = vadd.f32 %v7258_v2, %v7257_v41 }
 0x828   : > { %v12479_v20 = vadd.f32 %v12377_v22, %v7347_v15 }
 0x829   : > { %v12482_v12 = vadd.f32 %v7259_v57, %v12371_v21 }
 0x82a   : > { %v7348_v27 = vpop.f32.mrb[12].mxu0 }
 0x82b   : > { %v7349_v39 = vpop.f32.mrb[13].mxu0 }
 0x82c   : > { %v7350_v0 = vadd.f32 %v7349_v39, %v7348_v27  ;;  %v7351_v32 = vpop.f32.mrb[14].mxu0 }
 0x82d   : > { %v7352_v35 = vpop.f32.mrb[15].mxu0 }
 0x82e   : > { %v12485_v9 = vadd.f32 %v12385_v31, %v7350_v0  ;;  %v7353_v10 = vadd.f32 %v7352_v35, %v7351_v32 }
 0x830   : > { %v12488_v43 = vadd.f32 %v12391_v5, %v7353_v10 }
 0x832   : > { %v7354_v55 = vpop.f32.mrb[16].mxu0 }
 0x833   : > { %v7355_v33 = vpop.f32.mrb[17].mxu0 }
 0x834   : > { %v7356_v59 = vadd.f32 %v7355_v33, %v7354_v55  ;;  %v7357_v22 = vpop.f32.mrb[18].mxu0 }
 0x835   : > { %v7358_v25 = vpop.f32.mrb[19].mxu0 }
 0x836   : > { %v12491_v21 = vadd.f32 %v12399_v54, %v7356_v59  ;;  %v7359_v3 = vadd.f32 %v7358_v25, %v7357_v22 }
 0x838   : > { %v12494_v50 = vadd.f32 %v12405_v52, %v7359_v3 }
 0x83a   : > { %v7360_v13 = vpop.f32.mrb[20].mxu0 }
 0x83b   : > { %v7361_v18 = vpop.f32.mrb[21].mxu0 }
 0x83c   : > { %v7362_v31 = vadd.f32 %v7361_v18, %v7360_v13  ;;  %v7363_v44 = vpop.f32.mrb[22].mxu0 }
 0x83d   : > { %v7364_v46 = vpop.f32.mrb[23].mxu0 }
 0x83e   : > { %v12497_v5 = vadd.f32 %v12413_v58, %v7362_v31  ;;  %v7365_v42 = vadd.f32 %v7364_v46, %v7363_v44 }
 0x840   : > { %v12500_v47 = vadd.f32 %v12419_v51, %v7365_v42 }
 0x842   : > { %v7366_v8 = vpop.f32.mrb[24].mxu0 }
 0x843   : > { %v7367_v63 = vpop.f32.mrb[25].mxu0 }
 0x844   : > { %v7368_v54 = vadd.f32 %v7367_v63, %v7366_v8  ;;  %v7369_v16 = vpop.f32.mrb[26].mxu0 }
 0x845   : > { %v7370_v14 = vpop.f32.mrb[27].mxu0 }
 0x846   : > { %v12503_v52 = vadd.f32 %v12427_v48, %v7368_v54  ;;  %v7371_v28 = vadd.f32 %v7370_v14, %v7369_v16  ;;  %v12532_v54 = vld [vmem:[#allocation20] ss:$0 sm:$0xff]  ;;  %v12538_v16 = vld [vmem:[#allocation23] ss:$0 sm:$0xff] }
 0x847   : > { %v8146_v14 = vadd.f32 %v12396_v37, %v12532_v54  ;;  %v8166_v37 = vadd.f32 %v12424_v11, %v12532_v54 }
 0x848   : > { %v12506_v41 = vadd.f32 %v12433_v1, %v7371_v28 }
 0x849   : > { %v8167_v11 = vadd.f32 %v8166_v37, %v12538_v16 }
 0x84a   : > { %v7372_v30 = vpop.f32.mrb[28].mxu0 }
 0x84b   : > { %v7373_v15 = vpop.f32.mrb[29].mxu0 }
 0x84c   : > { %v7374_v58 = vadd.f32 %v7373_v15, %v7372_v30  ;;  %v7375_v2 = vpop.f32.mrb[30].mxu0 }
 0x84d   : > { %v7376_v57 = vpop.f32.mrb[31].mxu0 }
 0x84e   : > { %v12509_v51 = vadd.f32 %v12440_v60, %v7374_v58  ;;  %v7377_v27 = vadd.f32 %v7376_v57, %v7375_v2 }
 0x850   : > { %v12512_v39 = vadd.f32 %v12446_v56, %v7377_v27 }
 0x852   : > { %v7378_v0 = vpop.f32.mrb[32].mxu0 }
 0x853   : > { %v7379_v32 = vpop.f32.mrb[33].mxu0 }
 0x854   : > { %v7380_v48 = vadd.f32 %v7379_v32, %v7378_v0  ;;  %v7381_v35 = vpop.f32.mrb[34].mxu0 }
 0x855   : > { %v7382_v10 = vpop.f32.mrb[35].mxu0 }
 0x856   : > { %v12515_v1 = vadd.f32 %v12452_v40, %v7380_v48  ;;  %v7383_v55 = vadd.f32 %v7382_v10, %v7381_v35  ;;  %v8176_v35 = vadd.f32 %v12430_v34, %v12532_v54 }
 0x858   : > { %v12518_v33 = vadd.f32 %v12458_v26, %v7383_v55  ;;  %v8181_v55 = vadd.f32 %v12416_v36, %v12532_v54  ;;  %v8177_v34 = vadd.f32 %v8176_v35, %v12538_v16 }
 0x85a   : > { %v7384_v59 = vpop.f32.mrb[36].mxu0 }
 0x85b   : > { %v7385_v22 = vpop.f32.mrb[37].mxu0 }
 0x85c   : > { %v7386_v60 = vadd.f32 %v7385_v22, %v7384_v59  ;;  %v7387_v25 = vpop.f32.mrb[38].mxu0 }
 0x85d   : > { %v7388_v3 = vpop.f32.mrb[39].mxu0 }
 0x85e   : > { %v12521_v56 = vadd.f32 %v12464_v7, %v7386_v60  ;;  %v7389_v13 = vadd.f32 %v7388_v3, %v7387_v25  ;;  %v8156_v7 = vadd.f32 %v12402_v38, %v12532_v54  ;;  %v8182_v3 = vadd.f32 %v8181_v55, %v12538_v16 }
 0x860   : > { %v12524_v18 = vadd.f32 %v12470_v24, %v7389_v13  ;;  %v8161_v24 = vadd.f32 %v12388_v17, %v12532_v54  ;;  %v8157_v15 = vadd.f32 %v8156_v7, %v12538_v16 }
 0x862   : > { %v7390_v31 = vpop.f32.mrb[40].mxu0  ;;  %v8162_v38 = vadd.f32 %v8161_v24, %v12538_v16  ;;  %v8201_v24 = vadd.f32 %v12443_v49, %v12532_v54  ;;  %v8206_v49 = vadd.f32 %v12473_v6, %v12532_v54 }
 0x863   : > { %v7391_v44 = vpop.f32.mrb[41].mxu0 }
 0x864   : > { %v7392_v40 = vadd.f32 %v7391_v44, %v7390_v31  ;;  %v7393_v46 = vpop.f32.mrb[42].mxu0  ;;  %v8186_v44 = vadd.f32 %v12449_v23, %v12532_v54 }
 0x865   : > { %v7394_v42 = vpop.f32.mrb[43].mxu0 }
 0x866   : > { %v12527_v26 = vadd.f32 %v12476_v45, %v7392_v40  ;;  %v7395_v8 = vadd.f32 %v7394_v42, %v7393_v46  ;;  %v8151_v45 = vadd.f32 %v12382_v29, %v12532_v54  ;;  %v8171_v29 = vadd.f32 %v12410_v4, %v12532_v54 }
 0x867   : > { %v8191_v46 = vadd.f32 %v12437_v19, %v12532_v54 }
 0x868   : > { %v12530_v63 = vadd.f32 %v12482_v12, %v7395_v8  ;;  %v8172_v4 = vadd.f32 %v8171_v29, %v12538_v16  ;;  %v8196_v8 = vadd.f32 %v12455_v62, %v12532_v54  ;;  %v8202_v62 = vadd.f32 %v8201_v24, %v12538_v16 }
 0x869   : > { %v8251_v24 = vadd.f32 %v12497_v5, %v12532_v54 }
 0x86a   : > { %v8197_v19 = vadd.f32 %v8196_v8, %v12538_v16 }
 0x8ab   : > { %v7890_v28 = vpop.f32.mrb[100].mxu1 }
 0x8ac   : > { %v8147_v30 = vadd.f32 %v8146_v14, %v7890_v28  ;;  %v5624_v12 = vpop.f32.mrb[101].mxu1  ;;  %v8187_v14 = vadd.f32 %v8186_v44, %v12538_v16 }
 0x8ad   : > { %v8152_v58 = vadd.f32 %v8151_v45, %v5624_v12  ;;  %v7891_v2 = vpop.f32.mrb[102].mxu1  ;;  %v8192_v45 = vadd.f32 %v8191_v46, %v12538_v16 }
 0x8ae   : > { %v8148_v17 = vadd.f32 %v8147_v30, %v12538_v16  ;;  %v8158_v57 = vadd.f32 %v8157_v15, %v7891_v2  ;;  %v5627_v27 = vpop.f32.mrb[103].mxu1 }
 0x8af   : > { %v8153_v0 = vadd.f32 %v8152_v58, %v12538_v16  ;;  %v8163_v32 = vadd.f32 %v8162_v38, %v5627_v27  ;;  %v8216_v27 = vadd.f32 %v12479_v20, %v12532_v54 }
 0x8b0   : > { %v6449_v48 = vpack.c.bf16 %v8158_v57, %v8148_v17  ;;  %v8211_v17 = vadd.f32 %v12461_v53, %v12532_v54 }
 0x8b1   : > { %v6444_v10 = vpack.c.bf16 %v8163_v32, %v8153_v0  ;;  %v8221_v0 = vadd.f32 %v12467_v61, %v12532_v54  ;;  %v8207_v32 = vadd.f32 %v8206_v49, %v12538_v16  ;;  %v8217_v53 = vadd.f32 %v8216_v27, %v12538_v16 }
 0x8b2   : > { %6521 = vst [vmem:[%s12558_s3 + $0x8] sm:$0xff] %v6449_v48   ;;  %v8212_v48 = vadd.f32 %v8211_v17, %v12538_v16  ;;  %v8226_v61 = vadd.f32 %v12491_v21, %v12532_v54  ;;  %v8271_v17 = vadd.f32 %v12509_v51, %v12532_v54  ;;  %v8276_v27 = vadd.f32 %v12518_v33, %v12532_v54 }
 0x8b3   : > { %6445 = vst [vmem:[%s12558_s3] sm:$0xff] %v6444_v10   ;;  %v7894_v59 = vpop.f32.mrb[104].mxu1  ;;  %v8222_v20 = vadd.f32 %v8221_v0, %v12538_v16  ;;  %v8281_v0 = vadd.f32 %v12512_v39, %v12532_v54  ;;  %v8286_v39 = vadd.f32 %v12527_v26, %v12532_v54 }
 0x8b4   : > { %v8168_v22 = vadd.f32 %v8167_v11, %v7894_v59  ;;  %v5640_v60 = vpop.f32.mrb[105].mxu1  ;;  %v8277_v51 = vadd.f32 %v8276_v27, %v12538_v16 }
 0x8b5   : > { %v8173_v25 = vadd.f32 %v8172_v4, %v5640_v60  ;;  %v7895_v36 = vpop.f32.mrb[106].mxu1  ;;  %v8282_v33 = vadd.f32 %v8281_v0, %v12538_v16 }
 0x8b6   : > { %v8178_v13 = vadd.f32 %v8177_v34, %v7895_v36  ;;  %v5643_v31 = vpop.f32.mrb[107].mxu1  ;;  %v8236_v34 = vadd.f32 %v12494_v50, %v12532_v54  ;;  %v8241_v36 = vadd.f32 %v12488_v43, %v12532_v54  ;;  %v8246_v43 = vadd.f32 %v12503_v52, %v12532_v54 }
 0x8b7   : > { %v8183_v40 = vadd.f32 %v8182_v3, %v5643_v31  ;;  %v8227_v3 = vadd.f32 %v8226_v61, %v12538_v16  ;;  %v8296_v61 = vadd.f32 %v12530_v63, %v12532_v54 }
 0x8b8   : > { %v6459_v42 = vpack.c.bf16 %v8178_v13, %v8168_v22  ;;  %v8231_v22 = vadd.f32 %v12485_v9, %v12532_v54  ;;  %v8237_v9 = vadd.f32 %v8236_v34, %v12538_v16  ;;  %v8242_v50 = vadd.f32 %v8241_v36, %v12538_v16 }
 0x8b9   : > { %v6454_v7 = vpack.c.bf16 %v8183_v40, %v8173_v25  ;;  %v8297_v36 = vadd.f32 %v8296_v61, %v12538_v16 }
 0x8ba   : > { %6523 = vst [vmem:[%s12558_s3 + $0x18] sm:$0xff] %v6459_v42   ;;  %v8232_v31 = vadd.f32 %v8231_v22, %v12538_v16  ;;  %v8301_v22 = vadd.f32 %v12524_v18, %v12532_v54 }
 0x8bb   : > { %6522 = vst [vmem:[%s12558_s3 + $0x10] sm:$0xff] %v6454_v7   ;;  %v7898_v28 = vpop.f32.mrb[108].mxu1 }
 0x8bc   : > { %v8188_v23 = vadd.f32 %v8187_v14, %v7898_v28  ;;  %v5656_v30 = vpop.f32.mrb[109].mxu1  ;;  %v8256_v28 = vadd.f32 %v12506_v41, %v12532_v54 }
 0x8bd   : > { %v8193_v12 = vadd.f32 %v8192_v45, %v5656_v30  ;;  %v7899_v15 = vpop.f32.mrb[110].mxu1  ;;  %v8247_v30 = vadd.f32 %v8246_v43, %v12538_v16 }
 0x8be   : > { %v8198_v58 = vadd.f32 %v8197_v19, %v7899_v15  ;;  %v5659_v2 = vpop.f32.mrb[111].mxu1  ;;  %v8257_v5 = vadd.f32 %v8256_v28, %v12538_v16 }
 0x8bf   : > { %v8203_v38 = vadd.f32 %v8202_v62, %v5659_v2 }
 0x8c0   : > { %v6469_v57 = vpack.c.bf16 %v8198_v58, %v8188_v23  ;;  %v8261_v23 = vadd.f32 %v12500_v47, %v12532_v54  ;;  %v8266_v47 = vadd.f32 %v12515_v1, %v12532_v54 }
 0x8c1   : > { %v6464_v37 = vpack.c.bf16 %v8203_v38, %v8193_v12  ;;  %v8252_v12 = vadd.f32 %v8251_v24, %v12538_v16 }
 0x8c2   : > { %6525 = vst [vmem:[%s12558_s3 + $0x28] sm:$0xff] %v6469_v57   ;;  %v8262_v41 = vadd.f32 %v8261_v23, %v12538_v16 }
 0x8c3   : > { %6524 = vst [vmem:[%s12558_s3 + $0x20] sm:$0xff] %v6464_v37   ;;  %v7902_v29 = vpop.f32.mrb[112].mxu1 }
 0x8c4   : > { %v8208_v6 = vadd.f32 %v8207_v32, %v7902_v29  ;;  %v5672_v35 = vpop.f32.mrb[113].mxu1  ;;  %v8267_v32 = vadd.f32 %v8266_v47, %v12538_v16 }
 0x8c5   : > { %v8213_v10 = vadd.f32 %v8212_v48, %v5672_v35  ;;  %v7903_v55 = vpop.f32.mrb[114].mxu1  ;;  %v8272_v48 = vadd.f32 %v8271_v17, %v12538_v16 }
 0x8c6   : > { %v8218_v11 = vadd.f32 %v8217_v53, %v7903_v55  ;;  %v5675_v59 = vpop.f32.mrb[115].mxu1 }
 0x8c7   : > { %v8223_v4 = vadd.f32 %v8222_v20, %v5675_v59 }
 0x8c8   : > { %v6479_v60 = vpack.c.bf16 %v8218_v11, %v8208_v6  ;;  %v8291_v11 = vadd.f32 %v12521_v56, %v12532_v54 }
 0x8c9   : > { %v6474_v25 = vpack.c.bf16 %v8223_v4, %v8213_v10 }
 0x8ca   : > { %6527 = vst [vmem:[%s12558_s3 + $0x38] sm:$0xff] %v6479_v60   ;;  %v8287_v60 = vadd.f32 %v8286_v39, %v12538_v16  ;;  %v8292_v26 = vadd.f32 %v8291_v11, %v12538_v16 }
 0x8cb   : > { %6526 = vst [vmem:[%s12558_s3 + $0x30] sm:$0xff] %v6474_v25   ;;  %v7906_v13 = vpop.f32.mrb[116].mxu1 }
 0x8cc   : > { %v8228_v21 = vadd.f32 %v8227_v3, %v7906_v13  ;;  %v5688_v44 = vpop.f32.mrb[117].mxu1  ;;  %v8302_v13 = vadd.f32 %v8301_v22, %v12538_v16 }
 0x8cd   : > { %v8233_v40 = vadd.f32 %v8232_v31, %v5688_v44  ;;  %v7907_v46 = vpop.f32.mrb[118].mxu1 }
 0x8ce   : > { %v8238_v42 = vadd.f32 %v8237_v9, %v7907_v46  ;;  %v5691_v8 = vpop.f32.mrb[119].mxu1 }
 0x8cf   : > { %v8243_v7 = vadd.f32 %v8242_v50, %v5691_v8 }
 0x8d0   : > { %v6489_v14 = vpack.c.bf16 %v8238_v42, %v8228_v21 }
 0x8d1   : > { %v6484_v45 = vpack.c.bf16 %v8243_v7, %v8233_v40 }
 0x8d2   : > { %6529 = vst [vmem:[%s12558_s3 + $0x48] sm:$0xff] %v6489_v14  }
 0x8d3   : > { %6528 = vst [vmem:[%s12558_s3 + $0x40] sm:$0xff] %v6484_v45   ;;  %v7910_v19 = vpop.f32.mrb[120].mxu1 }
 0x8d4   : > { %v8248_v52 = vadd.f32 %v8247_v30, %v7910_v19  ;;  %v5704_v15 = vpop.f32.mrb[121].mxu1 }
 0x8d5   : > { %v8253_v62 = vadd.f32 %v8252_v12, %v5704_v15  ;;  %v7911_v58 = vpop.f32.mrb[122].mxu1 }
 0x8d6   : > { %v8258_v2 = vadd.f32 %v8257_v5, %v7911_v58  ;;  %v5707_v49 = vpop.f32.mrb[123].mxu1 }
 0x8d7   : > { %v8263_v38 = vadd.f32 %v8262_v41, %v5707_v49 }
 0x8d8   : > { %v6499_v57 = vpack.c.bf16 %v8258_v2, %v8248_v52 }
 0x8d9   : > { %v6494_v37 = vpack.c.bf16 %v8263_v38, %v8253_v62 }
 0x8da   : > { %6531 = vst [vmem:[%s12558_s3 + $0x58] sm:$0xff] %v6499_v57  }
 0x8db   : > { %6530 = vst [vmem:[%s12558_s3 + $0x50] sm:$0xff] %v6494_v37   ;;  %v7914_v29 = vpop.f32.mrb[124].mxu1 }
 0x8dc   : > { %v8268_v1 = vadd.f32 %v8267_v32, %v7914_v29  ;;  %v5720_v6 = vpop.f32.mrb[125].mxu1 }
 0x8dd   : > { %v8273_v35 = vadd.f32 %v8272_v48, %v5720_v6  ;;  %v7915_v53 = vpop.f32.mrb[126].mxu1 }
 0x8de   : > { %v8278_v10 = vadd.f32 %v8277_v51, %v7915_v53  ;;  %v5723_v55 = vpop.f32.mrb[127].mxu1 }
 0x8df   : > { %v8283_v20 = vadd.f32 %v8282_v33, %v5723_v55 }
 0x8e0   : > { %v6509_v59 = vpack.c.bf16 %v8278_v10, %v8268_v1 }
 0x8e1   : > { %v6504_v4 = vpack.c.bf16 %v8283_v20, %v8273_v35 }
 0x8e2   : > { %6533 = vst [vmem:[%s12558_s3 + $0x68] sm:$0xff] %v6509_v59  }
 0x8e3   : > { %6532 = vst [vmem:[%s12558_s3 + $0x60] sm:$0xff] %v6504_v4   ;;  %v7918_v34 = vpop.f32.mrb[128].mxu1 }
 0x8e4   : > { %v8288_v25 = vadd.f32 %v8287_v60, %v7918_v34  ;;  %v5736_v56 = vpop.f32.mrb[129].mxu1 }
 0x8e5   : > { %v8293_v3 = vadd.f32 %v8292_v26, %v5736_v56  ;;  %v7919_v63 = vpop.f32.mrb[130].mxu1 }
 0x8e6   : > { %v8298_v18 = vadd.f32 %v8297_v36, %v7919_v63  ;;  %v5739_v54 = vpop.f32.mrb[131].mxu1 }
 0x8e7   : > { %v8303_v31 = vadd.f32 %v8302_v13, %v5739_v54 }
 0x8e8   : > { %v6519_v21 = vpack.c.bf16 %v8298_v18, %v8288_v25 }
 0x8e9   : > { %v6514_v44 = vpack.c.bf16 %v8303_v31, %v8293_v3 }
 0x8ea   : > { %6535 = vst [vmem:[%s12558_s3 + $0x78] sm:$0xff] %v6519_v21  }
 0x8eb   : > { %6534 = vst [vmem:[%s12558_s3 + $0x70] sm:$0xff] %v6514_v44  }
 0x8ec   : > { %9355 = shalt.err (!%p9352_p2)
}
 0x8ed   : > { %s9356_s4 = scalar_lea.hbm %s12655_s0, 2048  ;;  %s9360_s9 = scalar_lea.hbm %s12886_s8, 4096 }
 0x8ee   : > { %p9357_p10 = scmp.ne.s32.totalorder %s12655_s0, %s9356_s4  ;;  %p9361_p7 = scmp.lt.u32.totalorder %s12655_s0, %s12886_s8 }
 0x8ef   : > { %p9362_p3 = scmp.lt.u32.totalorder %s9360_s9, %s9356_s4  ;;  %p9364_p12 = scmp.lt.u32.totalorder %s9356_s4, %s12655_s0 }
 0x8f0   : > { %p9358_p11 = pnand %p9357_p10, %p12887_p8 }
 0x8f1   : > { %p9363_p6 = por %p9362_p3, %p9361_p7 }
 0x8f2   : > { %p9359_p5 = pneg %p9358_p11 }
 0x8f3   : > { %p9365_p9 = por %p9364_p12, %p9363_p6 }
 0x8f5   : > { %p9366_p4 = pnand %p9365_p9, %p9359_p5 }
 0x8f7   : > { %9369 = shalt.err (!%p9366_p4)
}
 0x8f8   : > { %s9465_s28 = smov 64   ;;  %s9466_s23 = smov 4  }
 0x8f9   : > { %8484 = dma.vmem_to_hbm [thread:$0]  (%p12887_p8), %s12657_s27, 2048, %s12655_s0, %s5944_s1, %s9465_s28, %s9465_s28, %s9466_s23  }
 0x8fa PF: > { %s5972_s22 = sand.u32 1, %s9428_s29   ;;  %p12888_p1 = scmp.ne.s32.totalorder %s12788_s17, 0 }
 0x8fb   : > { %p12889_p13 = scmp.ge.s32.totalorder %s9440_s16, 2  ;;  %s5973_s19 = scalar_lea.sflag [#allocation4], %s5972_s22 }
 0x8fd   : > { %p8531_p0 = pnand %p12889_p13, %p12888_p1 }
 0x8ff   : > { %9423 = dma.done.wait (!%p8531_p0), %s5973_s19, 2048  }
 0x900   : > { %9425 = vsyncadd (!%p8531_p0), %s5973_s19, 4294965248  ;;  %p36_p2 = scmp.ge.s32.totalorder %s9874_s21, 4   ;;  %s12890_s29 = smov %s9432_s30 }
 0x901   : > { %s12891_s30 = smov %s9436_s15  ;;  %s12892_s15 = smov %s9885_s14 }
 0x902   : > { %s12893_s16 = smov %s9874_s21  ;;  %38 = sbr.rel (!%p36_p2) target bundleno = 26 (0x1a), region = 182 }
 0x909   :  { %5978 = vsyncpa [#allocation3], 1 }
 0x90a   :  { %5980 = vsyncpa [#allocation3 + $0x1], 1 }
 0x90b   :  { %5981 = vsyncpa [#allocation6], 1 }
 0x90c   :  { %5983 = vsyncpa [#allocation6 + $0x1], 1 }
 0x90d   :  { %5984 = vsyncpa [#allocation9], 1 }
 0x90e   :  { %5985 = vsyncpa [#allocation12], 1 }
 0x90f   :  { %5986 = vsyncpa [#allocation15], 1 }
 0x910   :  { %5987 = vsyncpa [#allocation18], 1 }
 0x911   :  { %5988 = vsyncpa [#allocation21], 1 }
 0x912   :  { %5989 = vsyncpa [#allocation24], 1 }
 0x913   :  { %5990 = vsyncpa [#allocation4], 1 }
 0x914   :  { %5992 = vsyncpa [#allocation4 + $0x1], 1 }

// kernel: tpu_custom_call.1
= control target key start
LH: loop header
LB: loop body
LE: loop exit
PB: predicated region body
PF: predicated region fallthrough
CT: control target
= control target key end

     0   :  { %s12703_s0 = inlined_call_operand.hbm [shape: bf16[2,16,16,128], index: 0, kind: input, shape index: {}]   ;;  %s12704_s1 = inlined_call_operand.hbm [shape: f32[2,1,128], index: 1, kind: input, shape index: {}]   ;;  %s12705_s2 = inlined_call_operand.hbm [shape: f32[1,128], index: 2, kind: input, shape index: {}]   ;;  %s12706_s3 = inlined_call_operand.hbm [shape: f32[1,128], index: 3, kind: input, shape index: {}]   ;;  %s12707_s4 = inlined_call_operand.hbm [shape: f32[128,128], index: 4, kind: input, shape index: {}]   ;;  %s12708_s5 = inlined_call_operand.hbm [shape: bf16[1152,128], index: 5, kind: input, shape index: {}]   ;;  %s12709_s6 = inlined_call_operand.hbm [shape: f32[1,128], index: 6, kind: input, shape index: {}]   ;;  %s12710_s7 = inlined_call_operand.hbm [shape: f32[1,128], index: 7, kind: input, shape index: {}]   ;;  %s12711_s8 = inlined_call_operand.hbm [shape: f32[1,128], index: 8, kind: input, shape index: {}]   ;;  %s12712_s9 = inlined_call_operand.hbm [shape: f32[128,128], index: 9, kind: input, shape index: {}]   ;;  %s12713_s10 = inlined_call_operand.hbm [shape: bf16[1152,128], index: 10, kind: input, shape index: {}]   ;;  %s12714_s11 = inlined_call_operand.hbm [shape: f32[1,128], index: 11, kind: input, shape index: {}]   ;;  %s12715_s12 = inlined_call_operand.hbm [shape: bf16[128,128], index: 12, kind: input, shape index: {}]   ;;  %s12716_s13 = inlined_call_operand.hbm [shape: f32[1,128], index: 13, kind: input, shape index: {}]   ;;  %s12717_s14 = inlined_call_operand.hbm [shape: bf16[2,16,16,128], index: 14, kind: output, shape index: {}]  }
   0x1   :  { %12757 = sst [smem:[#allocation61_spill]] %s12703_s0 }
   0x2   :  { %12758 = sst [smem:[#allocation62_spill]] %s12704_s1 }
   0x3   :  { %12759 = sst [smem:[#allocation63_spill]] %s12705_s2 }
   0x4   :  { %12760 = sst [smem:[#allocation64_spill]] %s12706_s3 }
   0x5   :  { %12761 = sst [smem:[#allocation65_spill]] %s12707_s4 }
   0x6   :  { %12762 = sst [smem:[#allocation66_spill]] %s12708_s5 }
   0x7   :  { %12763 = sst [smem:[#allocation67_spill]] %s12709_s6 }
   0x8   :  { %12764 = sst [smem:[#allocation68_spill]] %s12710_s7 }
   0x9   :  { %12765 = sst [smem:[#allocation69_spill]] %s12711_s8 }
   0xa   :  { %12766 = sst [smem:[#allocation70_spill]] %s12712_s9 }
   0xb   :  { %12767 = sst [smem:[#allocation71_spill]] %s12713_s10 }
   0xc   :  { %12768 = sst [smem:[#allocation72_spill]] %s12717_s14 }
   0xd   :  { %19 = vsyncpa [#allocation3], 0 }
   0xe   :  { %21 = vsyncpa [#allocation3 + $0x1], 0 }
   0xf   :  { %22 = vsyncpa [#allocation6], 0 }
  0x10   :  { %24 = vsyncpa [#allocation6 + $0x1], 0 }
  0x11   :  { %25 = vsyncpa [#allocation9], 0 }
  0x12   :  { %26 = vsyncpa [#allocation12], 0 }
  0x13   :  { %27 = vsyncpa [#allocation15], 0 }
  0x14   :  { %28 = vsyncpa [#allocation18], 0 }
  0x15   :  { %29 = vsyncpa [#allocation21], 0 }
  0x16   :  { %30 = vsyncpa [#allocation24], 0 }
  0x17   :  { %31 = vsyncpa [#allocation4], 0 }
  0x18   :  { %33 = vsyncpa [#allocation4 + $0x1], 0  ;;  %s9542_s29 = smov 0   ;;  %s9544_s30 = smov 0  }
  0x19   :  { %s9546_s15 = smov 0   ;;  %s9548_s16 = smov 0  }
  0x1a LB: > { %s9442_s17 = smov [#allocation7]   ;;  %s9563_s19 = sadd.s32 4294967295, %s9440_s16   ;;  %s9440_s16 = sphi %s9548_s16, %s12893_s16   ;;  %s9436_s15 = sphi %s9546_s15, %s12892_s15   ;;  %s9432_s30 = sphi %s9544_s30, %s12891_s30   ;;  %s9428_s29 = sphi %s9542_s29, %s12890_s29  }
  0x1b   : > { %s387_s18 = sshll.u32 %s9442_s17, 4  ;;  %p6165_p0 = scmp.ge.s32.totalorder %s9440_s16, 1  ;;  %s9568_s18 = int_to_ptr.vmem [resolvable:$true] %s387_s18 }
  0x1c   : > { %p12722_p1 = scmp.eq.s32.totalorder %s9563_s19, 0  ;;  %p374_p2 = scmp.lt.s32.totalorder %s9440_s16, 3 }
  0x1d   : > { %s9443_s21 = smov [#allocation8]   ;;  %s9444_s23 = smov [#allocation11]  }
  0x1e   : > { %p9570_p3 = pnand %p6165_p0, %p374_p2  ;;  %s398_s22 = sshll.u32 %s9443_s21, 4  ;;  %s9577_s22 = int_to_ptr.vmem [resolvable:$true] %s398_s22 }
  0x1f   : > { %s421_s24 = sshll.u32 %s9444_s23, 4  ;;  %s12772_s2 = sld [smem:[#allocation63_spill]]  ;;  %s9585_s24 = int_to_ptr.vmem [resolvable:$true] %s421_s24 }
  0x20   : > { %s12769_s20 = scalar_select %p9570_p3, 1, 0 }
  0x21   : > { %p8486_p5 = pneg %p9570_p3 }
  0x22   : > { %12770 = sst [smem:[#allocation36_spill]] %s12769_s20 }
  0x23   : > { %p9581_p6 = pnand %p8486_p5, %p12722_p1 }
  0x25   : > { %s8946_s28 = scalar_lea.hbm %s12772_s2, 16  ;;  %p9595_p8 = pneg %p9581_p6 }
  0x26   : > { %p8947_p7 = scmp.ne.s32.totalorder %s12772_s2, %s8946_s28  ;;  %p8953_p11 = scmp.lt.u32.totalorder %s8946_s28, %s12772_s2 }
  0x28   : > { %p8949_p9 = pnand %p9595_p8, %p8947_p7 }
  0x2a   : > { %p8950_p10 = pneg %p8949_p9 }
  0x2c   : > { %p8955_p12 = pnand %p8953_p11, %p8950_p10 }
  0x2e   : > { %8958 = shalt.err (!%p8955_p12)
}
  0x2f   : > { %s8959_s14 = scalar_lea.vmem %s9568_s18, 16  ;;  %s8966_s26 = scalar_lea.vmem %s9568_s18, 32 }
  0x30   : > { %p8960_p13 = scmp.ne.s32.totalorder %s9568_s18, %s8959_s14  ;;  %p8967_p5 = scmp.lt.s32.totalorder %s9568_s18, %s9568_s18 }
  0x31   : > { %p8968_p7 = scmp.lt.s32.totalorder %s8966_s26, %s8959_s14 }
  0x32   : > { %p8962_p0 = pnand %p8960_p13, %p9595_p8 }
  0x33   : > { %p8969_p9 = por %p8968_p7, %p8967_p5 }
  0x34   : > { %p8963_p2 = pneg %p8962_p0 }
  0x36   : > { %p8970_p4 = pnand %p8969_p9, %p8963_p2 }
  0x38   : > { %8973 = shalt.err (!%p8970_p4)
}
  0x39   : > { %8489 = dma.hbm_to_vmem [thread:$0]  (!%p9581_p6), %s12772_s2, 16, %s9568_s18, [#allocation6]  }
  0x3a   : > { %s12774_s3 = sld [smem:[#allocation64_spill]] }
  0x40   : > { %s8974_s23 = scalar_lea.hbm %s12774_s3, 16 }
  0x41   : > { %p8975_p10 = scmp.ne.s32.totalorder %s12774_s3, %s8974_s23  ;;  %p8981_p4 = scmp.lt.u32.totalorder %s8974_s23, %s12774_s3 }
  0x43   : > { %p8977_p11 = pnand %p8975_p10, %p9595_p8 }
  0x45   : > { %p8978_p12 = pneg %p8977_p11 }
  0x47   : > { %p8983_p13 = pnand %p8981_p4, %p8978_p12 }
  0x49   : > { %8986 = shalt.err (!%p8983_p13)
}
  0x4a   : > { %s8987_s18 = scalar_lea.vmem %s9577_s22, 16  ;;  %s8994_s0 = scalar_lea.vmem %s9577_s22, 32 }
  0x4b   : > { %p8988_p0 = scmp.ne.s32.totalorder %s9577_s22, %s8987_s18  ;;  %p8995_p7 = scmp.lt.s32.totalorder %s9577_s22, %s9577_s22 }
  0x4c   : > { %p8996_p9 = scmp.lt.s32.totalorder %s8994_s0, %s8987_s18 }
  0x4d   : > { %p8990_p2 = pnand %p8988_p0, %p9595_p8 }
  0x4e   : > { %p8997_p10 = por %p8996_p9, %p8995_p7 }
  0x4f   : > { %p8991_p5 = pneg %p8990_p2 }
  0x51   : > { %p8998_p11 = pnand %p8997_p10, %p8991_p5 }
  0x53   : > { %9001 = shalt.err (!%p8998_p11)
}
  0x54   : > { %8492 = dma.hbm_to_vmem [thread:$0]  (!%p9581_p6), %s12774_s3, 16, %s9577_s22, [#allocation9]  }
  0x55   : > { %s12775_s5 = sld [smem:[#allocation66_spill]] }
  0x5b   : > { %s9002_s17 = scalar_lea.hbm %s12775_s5, 9216 }
  0x5c   : > { %p9003_p12 = scmp.ne.s32.totalorder %s12775_s5, %s9002_s17  ;;  %p9009_p0 = scmp.lt.u32.totalorder %s9002_s17, %s12775_s5 }
  0x5e   : > { %p9005_p4 = pnand %p9003_p12, %p9595_p8 }
  0x60   : > { %p9006_p13 = pneg %p9005_p4 }
  0x62   : > { %p9011_p2 = pnand %p9009_p0, %p9006_p13 }
  0x64   : > { %9014 = shalt.err (!%p9011_p2)
}
  0x65   : > { %s9015_s22 = scalar_lea.vmem %s9585_s24, 9216  ;;  %p9023_p10 = scmp.lt.s32.totalorder %s9585_s24, %s9585_s24 }
  0x66   : > { %p9016_p5 = scmp.ne.s32.totalorder %s9585_s24, %s9015_s22  ;;  %p9024_p11 = scmp.lt.s32.totalorder %s9015_s22, %s9015_s22 }
  0x68   : > { %p9018_p7 = pnand %p9016_p5, %p9595_p8  ;;  %p9025_p12 = por %p9024_p11, %p9023_p10 }
  0x6a   : > { %p9019_p9 = pneg %p9018_p7 }
  0x6c   : > { %p9026_p4 = pnand %p9025_p12, %p9019_p9 }
  0x6e   : > { %9029 = shalt.err (!%p9026_p4)
}
  0x6f   : > { %s12724_s0 = smov 64   ;;  %s12726_s1 = smov 4  }
  0x70   : > { %8498 = dma.hbm_to_vmem [thread:$0]  (!%p9581_p6), %s12775_s5, 9216, %s9585_s24, [#allocation12], %s12724_s0, %s12724_s0, %s12726_s1  }
  0x71   : > { %s9447_s28 = smov [#allocation14]   ;;  %s12776_s7 = sld [smem:[#allocation68_spill]] }
  0x72   : > { %s446_s17 = sshll.u32 %s9447_s28, 4  ;;  %s447_s17 = int_to_ptr.vmem [resolvable:$true] %s446_s17 }
  0x77   : > { %s9030_s26 = scalar_lea.hbm %s12776_s7, 16 }
  0x78   : > { %p9031_p13 = scmp.ne.s32.totalorder %s12776_s7, %s9030_s26  ;;  %p9037_p5 = scmp.lt.u32.totalorder %s9030_s26, %s12776_s7 }
  0x7a   : > { %p9033_p0 = pnand %p9031_p13, %p9595_p8 }
  0x7c   : > { %p9034_p2 = pneg %p9033_p0 }
  0x7e   : > { %p9039_p7 = pnand %p9037_p5, %p9034_p2 }
  0x80   : > { %9042 = shalt.err (!%p9039_p7)
}
  0x81   : > { %s9043_s24 = scalar_lea.vmem %s447_s17, 16  ;;  %s9050_s20 = scalar_lea.vmem %s447_s17, 32 }
  0x82   : > { %p9044_p9 = scmp.ne.s32.totalorder %s447_s17, %s9043_s24  ;;  %p9051_p12 = scmp.lt.s32.totalorder %s447_s17, %s447_s17 }
  0x83   : > { %p9052_p4 = scmp.lt.s32.totalorder %s9050_s20, %s9043_s24 }
  0x84   : > { %p9046_p10 = pnand %p9044_p9, %p9595_p8 }
  0x85   : > { %p9053_p1 = por %p9052_p4, %p9051_p12 }
  0x86   : > { %p9047_p11 = pneg %p9046_p10 }
  0x88   : > { %p9054_p3 = pnand %p9053_p1, %p9047_p11 }
  0x8a   : > { %9057 = shalt.err (!%p9054_p3)
}
  0x8b   : > { %8504 = dma.hbm_to_vmem [thread:$0]  (!%p9581_p6), %s12776_s7, 16, %s447_s17, [#allocation15]  }
  0x8c   : > { %s9448_s2 = smov [#allocation17]   ;;  %s9449_s23 = smov [#allocation20]  }
  0x8d   : > { %s467_s3 = sshll.u32 %s9448_s2, 4  ;;  %s494_s14 = sshll.u32 %s9449_s23, 4  ;;  %s468_s3 = int_to_ptr.vmem [resolvable:$true] %s467_s3  ;;  %s9685_s14 = int_to_ptr.vmem [resolvable:$true] %s494_s14 }
  0x8e   : > { %s12777_s9 = sld [smem:[#allocation70_spill]] }
  0x94   : > { %s9058_s22 = scalar_lea.hbm %s12777_s9, 2048 }
  0x95   : > { %p9059_p1 = scmp.ne.s32.totalorder %s12777_s9, %s9058_s22  ;;  %p9065_p0 = scmp.lt.u32.totalorder %s9058_s22, %s12777_s9 }
  0x97   : > { %p9061_p3 = pnand %p9059_p1, %p9595_p8 }
  0x99   : > { %p9062_p13 = pneg %p9061_p3 }
  0x9b   : > { %p9067_p2 = pnand %p9065_p0, %p9062_p13 }
  0x9d   : > { %9070 = shalt.err (!%p9067_p2)
}
  0x9e   : > { %s9071_s28 = scalar_lea.vmem %s468_s3, 2048  ;;  %p9079_p10 = scmp.lt.s32.totalorder %s468_s3, %s468_s3 }
  0x9f   : > { %p9072_p5 = scmp.ne.s32.totalorder %s468_s3, %s9071_s28  ;;  %p9080_p11 = scmp.lt.s32.totalorder %s9071_s28, %s9071_s28 }
  0xa1   : > { %p9074_p7 = pnand %p9072_p5, %p9595_p8  ;;  %p9081_p12 = por %p9080_p11, %p9079_p10 }
  0xa3   : > { %p9075_p9 = pneg %p9074_p7 }
  0xa5   : > { %p9082_p4 = pnand %p9081_p12, %p9075_p9 }
  0xa7   : > { %9085 = shalt.err (!%p9082_p4)
}
  0xa8   : > { %s9450_s2 = smov 128   ;;  %s9451_s23 = smov 8  }
  0xa9   : > { %8510 = dma.hbm_to_vmem [thread:$0]  (!%p9581_p6), %s12777_s9, 2048, %s468_s3, [#allocation18], %s9450_s2, %s9450_s2, %s9451_s23  }
  0xaa   : > { %s9086_s20 = scalar_lea.hbm %s12714_s11, 16 }
  0xab   : > { %p9087_p1 = scmp.ne.s32.totalorder %s12714_s11, %s9086_s20  ;;  %p9093_p0 = scmp.lt.u32.totalorder %s9086_s20, %s12714_s11 }
  0xad   : > { %p9089_p3 = pnand %p9087_p1, %p9595_p8 }
  0xaf   : > { %p9090_p13 = pneg %p9089_p3 }
  0xb1   : > { %p9095_p2 = pnand %p9093_p0, %p9090_p13 }
  0xb3   : > { %9098 = shalt.err (!%p9095_p2)
}
  0xb4   : > { %s9099_s3 = scalar_lea.vmem %s9685_s14, 16  ;;  %s9106_s26 = scalar_lea.vmem %s9685_s14, 32 }
  0xb5   : > { %p9100_p5 = scmp.ne.s32.totalorder %s9685_s14, %s9099_s3  ;;  %p9107_p10 = scmp.lt.s32.totalorder %s9685_s14, %s9685_s14 }
  0xb6   : > { %p9108_p11 = scmp.lt.s32.totalorder %s9106_s26, %s9099_s3 }
  0xb7   : > { %p9102_p7 = pnand %p9100_p5, %p9595_p8 }
  0xb8   : > { %p9109_p12 = por %p9108_p11, %p9107_p10 }
  0xb9   : > { %p9103_p9 = pneg %p9102_p7 }
  0xbb   : > { %p9110_p4 = pnand %p9109_p12, %p9103_p9 }
  0xbd   : > { %9113 = shalt.err (!%p9110_p4)
}
  0xbe   : > { %8516 = dma.hbm_to_vmem [thread:$0]  (!%p9581_p6), %s12714_s11, 16, %s9685_s14, [#allocation21]  }
  0xbf   : > { %s9452_s22 = smov [#allocation10]   ;;  %s9453_s20 = smov [#allocation13]  }
  0xc0   : > { %s408_s24 = sshll.u32 %s9452_s22, 4  ;;  %s435_s27 = sshll.u32 %s9453_s20, 4  ;;  %s409_s24 = int_to_ptr.vmem [resolvable:$true] %s408_s24  ;;  %s9732_s27 = int_to_ptr.vmem [resolvable:$true] %s435_s27 }
  0xc1   : > { %s12778_s4 = sld [smem:[#allocation65_spill]] }
  0xc7   : > { %s9114_s3 = scalar_lea.hbm %s12778_s4, 2048 }
  0xc8   : > { %p9115_p1 = scmp.ne.s32.totalorder %s12778_s4, %s9114_s3  ;;  %p9121_p0 = scmp.lt.u32.totalorder %s9114_s3, %s12778_s4 }
  0xca   : > { %p9117_p3 = pnand %p9115_p1, %p9595_p8 }
  0xcc   : > { %p9118_p13 = pneg %p9117_p3 }
  0xce   : > { %p9123_p2 = pnand %p9121_p0, %p9118_p13 }
  0xd0   : > { %9126 = shalt.err (!%p9123_p2)
}
  0xd1   : > { %s9127_s18 = scalar_lea.vmem %s409_s24, 2048  ;;  %p9135_p10 = scmp.lt.s32.totalorder %s409_s24, %s409_s24 }
  0xd2   : > { %p9128_p5 = scmp.ne.s32.totalorder %s409_s24, %s9127_s18  ;;  %p9136_p11 = scmp.lt.s32.totalorder %s9127_s18, %s9127_s18 }
  0xd4   : > { %p9130_p7 = pnand %p9128_p5, %p9595_p8  ;;  %p9137_p12 = por %p9136_p11, %p9135_p10 }
  0xd6   : > { %p9131_p9 = pneg %p9130_p7 }
  0xd8   : > { %p9138_p4 = pnand %p9137_p12, %p9131_p9 }
  0xda   : > { %9141 = shalt.err (!%p9138_p4)
}
  0xdb   : > { %8495 = dma.hbm_to_vmem [thread:$0]  (!%p9581_p6), %s12778_s4, 2048, %s409_s24, [#allocation9], %s9450_s2, %s9450_s2, %s9451_s23  }
  0xdc   : > { %s12779_s6 = sld [smem:[#allocation67_spill]] }
  0xe2   : > { %s9142_s28 = scalar_lea.hbm %s12779_s6, 16 }
  0xe3   : > { %p9143_p1 = scmp.ne.s32.totalorder %s12779_s6, %s9142_s28  ;;  %p9149_p0 = scmp.lt.u32.totalorder %s9142_s28, %s12779_s6 }
  0xe5   : > { %p9145_p3 = pnand %p9143_p1, %p9595_p8 }
  0xe7   : > { %p9146_p13 = pneg %p9145_p3 }
  0xe9   : > { %p9151_p2 = pnand %p9149_p0, %p9146_p13 }
  0xeb   : > { %9154 = shalt.err (!%p9151_p2)
}
  0xec   : > { %s9155_s2 = scalar_lea.vmem %s9732_s27, 16  ;;  %s9162_s23 = scalar_lea.vmem %s9732_s27, 32 }
  0xed   : > { %p9156_p5 = scmp.ne.s32.totalorder %s9732_s27, %s9155_s2  ;;  %p9163_p10 = scmp.lt.s32.totalorder %s9732_s27, %s9732_s27 }
  0xee   : > { %p9164_p11 = scmp.lt.s32.totalorder %s9162_s23, %s9155_s2 }
  0xef   : > { %p9158_p7 = pnand %p9156_p5, %p9595_p8 }
  0xf0   : > { %p9165_p12 = por %p9164_p11, %p9163_p10 }
  0xf1   : > { %p9159_p9 = pneg %p9158_p7 }
  0xf3   : > { %p9166_p4 = pnand %p9165_p12, %p9159_p9 }
  0xf5   : > { %9169 = shalt.err (!%p9166_p4)
}
  0xf6   : > { %8501 = dma.hbm_to_vmem [thread:$0]  (!%p9581_p6), %s12779_s6, 16, %s9732_s27, [#allocation12]  }
  0xf7   : > { %s9454_s1 = smov [#allocation16]   ;;  %s9455_s20 = smov [#allocation19]  }
  0xf8   : > { %s457_s22 = sshll.u32 %s9454_s1, 4  ;;  %s480_s17 = sshll.u32 %s9455_s20, 4  ;;  %s458_s22 = int_to_ptr.vmem [resolvable:$true] %s457_s22  ;;  %s9779_s17 = int_to_ptr.vmem [resolvable:$true] %s480_s17 }
  0xf9   : > { %s12780_s8 = sld [smem:[#allocation69_spill]] }
  0xff   : > { %s9170_s26 = scalar_lea.hbm %s12780_s8, 16 }
 0x100   : > { %p9171_p1 = scmp.ne.s32.totalorder %s12780_s8, %s9170_s26  ;;  %p9177_p0 = scmp.lt.u32.totalorder %s9170_s26, %s12780_s8 }
 0x102   : > { %p9173_p3 = pnand %p9171_p1, %p9595_p8 }
 0x104   : > { %p9174_p13 = pneg %p9173_p3 }
 0x106   : > { %p9179_p2 = pnand %p9177_p0, %p9174_p13 }
 0x108   : > { %9182 = shalt.err (!%p9179_p2)
}
 0x109   : > { %s9183_s23 = scalar_lea.vmem %s458_s22, 16  ;;  %s9190_s24 = scalar_lea.vmem %s458_s22, 32 }
 0x10a   : > { %p9184_p5 = scmp.ne.s32.totalorder %s458_s22, %s9183_s23  ;;  %p9191_p10 = scmp.lt.s32.totalorder %s458_s22, %s458_s22 }
 0x10b   : > { %p9192_p11 = scmp.lt.s32.totalorder %s9190_s24, %s9183_s23 }
 0x10c   : > { %p9186_p7 = pnand %p9184_p5, %p9595_p8 }
 0x10d   : > { %p9193_p12 = por %p9192_p11, %p9191_p10 }
 0x10e   : > { %p9187_p9 = pneg %p9186_p7 }
 0x110   : > { %p9194_p4 = pnand %p9193_p12, %p9187_p9 }
 0x112   : > { %9197 = shalt.err (!%p9194_p4)
}
 0x113   : > { %8507 = dma.hbm_to_vmem [thread:$0]  (!%p9581_p6), %s12780_s8, 16, %s458_s22, [#allocation15]  }
 0x114   : > { %s12781_s10 = sld [smem:[#allocation71_spill]] }
 0x11a   : > { %s9198_s3 = scalar_lea.hbm %s12781_s10, 9216 }
 0x11b   : > { %p9199_p1 = scmp.ne.s32.totalorder %s12781_s10, %s9198_s3  ;;  %p9205_p0 = scmp.lt.u32.totalorder %s9198_s3, %s12781_s10 }
 0x11d   : > { %p9201_p3 = pnand %p9199_p1, %p9595_p8 }
 0x11f   : > { %p9202_p13 = pneg %p9201_p3 }
 0x121   : > { %p9207_p2 = pnand %p9205_p0, %p9202_p13 }
 0x123   : > { %9210 = shalt.err (!%p9207_p2)
}
 0x124   : > { %s9211_s22 = scalar_lea.vmem %s9779_s17, 9216  ;;  %p9219_p10 = scmp.lt.s32.totalorder %s9779_s17, %s9779_s17 }
 0x125   : > { %p9212_p5 = scmp.ne.s32.totalorder %s9779_s17, %s9211_s22  ;;  %p9220_p11 = scmp.lt.s32.totalorder %s9211_s22, %s9211_s22 }
 0x127   : > { %p9214_p7 = pnand %p9212_p5, %p9595_p8  ;;  %p9221_p12 = por %p9220_p11, %p9219_p10 }
 0x129   : > { %p9215_p9 = pneg %p9214_p7 }
 0x12b   : > { %p9222_p4 = pnand %p9221_p12, %p9215_p9 }
 0x12d   : > { %9225 = shalt.err (!%p9222_p4)
}
 0x12e   : > { %s12782_s27 = smov 4   ;;  %s12783_s23 = smov 64  }
 0x12f   : > { %8513 = dma.hbm_to_vmem [thread:$0]  (!%p9581_p6), %s12781_s10, 9216, %s9779_s17, [#allocation18], %s12783_s23, %s12783_s23, %s12782_s27  }
 0x130   : > { %s9456_s1 = smov [#allocation22]   ;;  %s9457_s28 = smov [#allocation23]  }
 0x131   : > { %s504_s20 = sshll.u32 %s9456_s1, 4  ;;  %s518_s3 = sshll.u32 %s9457_s28, 4  ;;  %s505_s20 = int_to_ptr.vmem [resolvable:$true] %s504_s20  ;;  %s9825_s3 = int_to_ptr.vmem [resolvable:$true] %s518_s3 }
 0x132   : > { %s9226_s14 = scalar_lea.hbm %s12715_s12, 1024 }
 0x133   : > { %p9227_p1 = scmp.ne.s32.totalorder %s12715_s12, %s9226_s14  ;;  %p9233_p0 = scmp.lt.u32.totalorder %s9226_s14, %s12715_s12 }
 0x135   : > { %p9229_p3 = pnand %p9227_p1, %p9595_p8 }
 0x137   : > { %p9230_p13 = pneg %p9229_p3 }
 0x139   : > { %p9235_p2 = pnand %p9233_p0, %p9230_p13 }
 0x13b   : > { %9238 = shalt.err (!%p9235_p2)
}
 0x13c   : > { %s9239_s18 = scalar_lea.vmem %s505_s20, 1024  ;;  %p9247_p10 = scmp.lt.s32.totalorder %s505_s20, %s505_s20 }
 0x13d   : > { %p9240_p5 = scmp.ne.s32.totalorder %s505_s20, %s9239_s18  ;;  %p9248_p11 = scmp.lt.s32.totalorder %s9239_s18, %s9239_s18 }
 0x13f   : > { %p9242_p7 = pnand %p9240_p5, %p9595_p8  ;;  %p9249_p12 = por %p9248_p11, %p9247_p10 }
 0x141   : > { %p9243_p9 = pneg %p9242_p7 }
 0x143   : > { %p9250_p4 = pnand %p9249_p12, %p9243_p9 }
 0x145   : > { %9253 = shalt.err (!%p9250_p4)
}
 0x146   : > { %8519 = dma.hbm_to_vmem [thread:$0]  (!%p9581_p6), %s12715_s12, 1024, %s505_s20, [#allocation21], %s12783_s23, %s12783_s23, %s12782_s27  }
 0x147   : > { %s9254_s14 = scalar_lea.hbm %s12716_s13, 16 }
 0x148   : > { %p9255_p1 = scmp.ne.s32.totalorder %s12716_s13, %s9254_s14  ;;  %p9261_p0 = scmp.lt.u32.totalorder %s9254_s14, %s12716_s13 }
 0x14a   : > { %p9257_p3 = pnand %p9255_p1, %p9595_p8 }
 0x14c   : > { %p9258_p13 = pneg %p9257_p3 }
 0x14e   : > { %p9263_p2 = pnand %p9261_p0, %p9258_p13 }
 0x150   : > { %9266 = shalt.err (!%p9263_p2)
}
 0x151   : > { %s9267_s20 = scalar_lea.vmem %s9825_s3, 16  ;;  %s9274_s18 = scalar_lea.vmem %s9825_s3, 32 }
 0x152   : > { %p9268_p5 = scmp.ne.s32.totalorder %s9825_s3, %s9267_s20  ;;  %p9275_p10 = scmp.lt.s32.totalorder %s9825_s3, %s9825_s3 }
 0x153   : > { %p9276_p11 = scmp.lt.s32.totalorder %s9274_s18, %s9267_s20 }
 0x154   : > { %p9270_p7 = pnand %p9268_p5, %p9595_p8 }
 0x155   : > { %p9277_p12 = por %p9276_p11, %p9275_p10 }
 0x156   : > { %p9271_p9 = pneg %p9270_p7 }
 0x158   : > { %p9278_p4 = pnand %p9277_p12, %p9271_p9 }
 0x15a   : > { %9281 = shalt.err (!%p9278_p4)
}
 0x15b   : > { %8522 = dma.hbm_to_vmem [thread:$0]  (!%p9581_p6), %s12716_s13, 16, %s9825_s3, [#allocation24]  }
 0x15c   : > { %s6164_s25 = sadd.s32 4294967294, %s9440_s16   ;;  %s9874_s21 = sadd.s32 1, %s9440_s16  }
 0x15d   : > { %s43_s26 = ssub.s32 %s9440_s16, %s9874_s21  ;;  %s46_s0 = sadd.s32 1, %s9436_s15 }
 0x15e   : > { %p44_p8 = scmp.eq.s32.totalorder %s43_s26, 0  ;;  %p53_p1 = scmp.ne.s32.totalorder %s9436_s15, %s9432_s30 }
 0x15f   : > { %p54_p3 = scmp.eq.s32.totalorder %s9440_s16, 0  ;;  %p59_p13 = scmp.ne.s32.totalorder %s9432_s30, %s9428_s29 }
 0x160   : > { %s9885_s14 = scalar_select %p44_p8, %s9436_s15, %s46_s0  }
 0x161   : > { %p9887_p0 = por %p54_p3, %p53_p1  ;;  %p12785_p2 = scmp.eq.s32.totalorder %s9563_s19, 0 }
 0x162   : > { %p361_p5 = scmp.eq.s32.totalorder %s9563_s19, 1  ;;  %p367_p7 = scmp.eq.s32.totalorder %s6164_s25, 1 }
 0x163   : > { %p9893_p6 = por %p12785_p2, %p59_p13  ;;  %p8546_p9 = scmp.lt.s32.totalorder %s9440_s16, 2 }
 0x164   : > { %s9900_s22 = sand.u32 1, %s9436_s15   ;;  %p9902_p10 = por %p361_p5, %p53_p1 }
 0x165   : > { %s12786_s3 = scalar_select %p9893_p6, 1, 0 }
 0x166   : > { %s12787_s24 = scalar_select %p9902_p10, 1, 0 }
 0x167   : > { %p9906_p11 = por %p367_p7, %p59_p13  ;;  %s6179_s20 = sshll.u32 %s9900_s22, 7 }
 0x168   : > { %s6407_s18 = sshll.u32 %s9440_s16, 11  ;;  %s12789_s26 = sld [smem:[#allocation61_spill]] }
 0x169   : > { %s12788_s17 = scalar_select %p9906_p11, 1, 0 }
 0x16a   : > { %s533_s25 = scalar_lea.vmem [#allocation2], %s6179_s20  ;;  %p9921_p12 = pnand %p8546_p9, %p9887_p0 }
 0x16b   : > { %s540_s4 = sshll.u32 %s533_s25, 4  ;;  %s530_s7 = scalar_lea.sflag [#allocation3], %s9900_s22  ;;  %s9917_s4 = int_to_ptr.vmem [resolvable:$true] %s540_s4 }
 0x16c   : > { %p9284_p8 = pneg %p9921_p12 }
 0x16e   : > { %s9915_s0 = scalar_lea.hbm %s12789_s26, %s6407_s18  ;;  %s9287_s2 = scalar_lea.hbm %s12789_s26, 4096 }
 0x16f   : > { %s9282_s1 = scalar_lea.hbm %s9915_s0, 2048  ;;  %p9288_p13 = scmp.lt.u32.totalorder %s9915_s0, %s12789_s26 }
 0x170   : > { %p9283_p4 = scmp.ne.s32.totalorder %s9915_s0, %s9282_s1  ;;  %p9289_p0 = scmp.lt.u32.totalorder %s9287_s2, %s9282_s1 }
 0x171   : > { %p9291_p5 = scmp.lt.u32.totalorder %s9282_s1, %s9915_s0 }
 0x172   : > { %p9285_p1 = pnand %p9284_p8, %p9283_p4  ;;  %p9290_p2 = por %p9289_p0, %p9288_p13 }
 0x174   : > { %p9286_p3 = pneg %p9285_p1  ;;  %p9292_p7 = por %p9291_p5, %p9290_p2 }
 0x176   : > { %p9293_p9 = pnand %p9292_p7, %p9286_p3 }
 0x178   : > { %9296 = shalt.err (!%p9293_p9)
}
 0x179   : > { %s9297_s6 = scalar_lea.vmem %s9917_s4, 2048  ;;  %s9458_s20 = smov [#allocation2]  }
 0x17a   : > { %p9298_p4 = scmp.ne.s32.totalorder %s9917_s4, %s9297_s6  ;;  %s9302_s18 = sshll.u32 %s9458_s20, 4  ;;  %s9303_s18 = int_to_ptr.vmem [resolvable:$false] %s9302_s18 }
 0x17b   : > { %s9304_s28 = scalar_lea.vmem %s9303_s18, 4096  ;;  %p9305_p10 = scmp.lt.s32.totalorder %s9917_s4, %s9303_s18 }
 0x17c   : > { %p9300_p1 = pnand %p9298_p4, %p9284_p8  ;;  %p9306_p13 = scmp.lt.s32.totalorder %s9304_s28, %s9297_s6 }
 0x17e   : > { %p9301_p11 = pneg %p9300_p1  ;;  %p9307_p0 = por %p9306_p13, %p9305_p10 }
 0x180   : > { %p9308_p2 = pnand %p9307_p0, %p9301_p11 }
 0x182   : > { %9311 = shalt.err (!%p9308_p2)
}
 0x183   : > { %8526 = dma.hbm_to_vmem [thread:$0]  (!%p9921_p12), %s9915_s0, 2048, %s9917_s4, %s530_s7, %s12783_s23, %s12783_s23, %s12782_s27  }
 0x184   : > { %s6182_s1 = sshll.u32 %s9440_s16, 4  ;;  %s553_s2 = scalar_lea.vmem [#allocation5], %s9900_s22 }
 0x185   : > { %s560_s6 = sshll.u32 %s553_s2, 4  ;;  %s12791_s18 = sld [smem:[#allocation62_spill]]  ;;  %s561_s6 = int_to_ptr.vmem [resolvable:$true] %s560_s6 }
 0x186   : > { %s12792_s8 = sand.u32 1, %s9440_s16  }
 0x187   : > { %s551_s9 = scalar_lea.sflag [#allocation6], %s12792_s8 }
 0x18b   : > { %s9962_s28 = scalar_lea.hbm %s12791_s18, %s6182_s1  ;;  %s9317_s27 = scalar_lea.hbm %s12791_s18, 32 }
 0x18c   : > { %s9312_s10 = scalar_lea.hbm %s9962_s28, 16  ;;  %p9318_p5 = scmp.lt.u32.totalorder %s9962_s28, %s12791_s18 }
 0x18d   : > { %p9313_p10 = scmp.ne.s32.totalorder %s9962_s28, %s9312_s10  ;;  %p9319_p7 = scmp.lt.u32.totalorder %s9317_s27, %s9312_s10 }
 0x18e   : > { %p9321_p4 = scmp.lt.u32.totalorder %s9312_s10, %s9962_s28 }
 0x18f   : > { %p9315_p11 = pnand %p9313_p10, %p9284_p8  ;;  %p9320_p9 = por %p9319_p7, %p9318_p5 }
 0x191   : > { %p9316_p3 = pneg %p9315_p11  ;;  %p9322_p1 = por %p9321_p4, %p9320_p9 }
 0x193   : > { %p9323_p13 = pnand %p9322_p1, %p9316_p3 }
 0x195   : > { %9326 = shalt.err (!%p9323_p13)
}
 0x196   : > { %s9327_s8 = scalar_lea.vmem %s561_s6, 16  ;;  %s9459_s0 = smov [#allocation5]  }
 0x197   : > { %p9328_p0 = scmp.ne.s32.totalorder %s561_s6, %s9327_s8  ;;  %s9332_s1 = sshll.u32 %s9459_s0, 4  ;;  %s9333_s1 = int_to_ptr.vmem [resolvable:$false] %s9332_s1 }
 0x198   : > { %s9334_s2 = scalar_lea.vmem %s9333_s1, 32  ;;  %p9335_p11 = scmp.lt.s32.totalorder %s561_s6, %s9333_s1 }
 0x199   : > { %p9330_p2 = pnand %p9328_p0, %p9284_p8  ;;  %p9336_p6 = scmp.lt.s32.totalorder %s9334_s2, %s9327_s8 }
 0x19b   : > { %p9331_p10 = pneg %p9330_p2  ;;  %p9337_p5 = por %p9336_p6, %p9335_p11 }
 0x19d   : > { %p9338_p7 = pnand %p9337_p5, %p9331_p10 }
 0x19f   : > { %9341 = shalt.err (!%p9338_p7)
}
 0x1a0   : > { %8529 = dma.hbm_to_vmem [thread:$0]  (!%p9921_p12), %s9962_s28, 16, %s561_s6, %s551_s9  }
 0x1a1   : > { %s12793_s10 = sld [smem:[#allocation36_spill]] }
 0x1a7   : > { %p12794_p3 = scmp.ne.s32.totalorder %s12793_s10, 0 }
 0x1a9   : > { %569 = sbr.rel (%p12794_p3) target bundleno = 2298 (0x8fa), region = 76 }
 0x1b0   : > { %s9988_s25 = sand.u32 1, %s9432_s30   ;;  %p12795_p6 = scmp.ne.s32.totalorder %s12786_s3, 0 }
 0x1b1   : > { %s6184_s20 = sshll.u32 %s9988_s25, 7  ;;  %s572_s4 = scalar_lea.sflag [#allocation3], %s9988_s25 }
 0x1b2   : > { %s9994_s7 = scalar_lea.vmem [#allocation2], %s6184_s20 }
 0x1b3   : > { %9387 = dma.done.wait (%p12795_p6), %s572_s4, 2048  }
 0x1b4   : > { %9389 = vsyncadd (%p12795_p6), %s572_s4, 4294965248  ;;  %s580_s5 = sand.u32 1, %s9563_s19   ;;  %s583_s6 = scalar_lea.vmem [#allocation5], %s9988_s25 }
 0x1b5   : > { %s581_s9 = scalar_lea.sflag [#allocation6], %s580_s5 }
 0x1b6   : > { %9391 = dma.done.wait (%p12795_p6), %s581_s9, 16  }
 0x1b7   : > { %9393 = vsyncadd (%p12795_p6), %s581_s9, 4294967280  ;;  %p12796_p12 = scmp.eq.s32.totalorder %s9563_s19, 0 }
 0x1b9   : > { %9395 = dma.done.wait (%p12796_p12), [#allocation6], 16   ;;  %p12797_p8 = pmov %p12796_p12 }
 0x1bb   : > { %9397 = vsyncadd (%p12797_p8), [#allocation6], 4294967280  ;;  %p12798_p9 = pmov %p12797_p8 }
 0x1bc   : > { %p12799_p4 = pmov %p12797_p8 }
 0x1bd   : > { %9399 = dma.done.wait (%p12798_p9), [#allocation9], 2064  }
 0x1be   : > { %9401 = vsyncadd (%p12799_p4), [#allocation9], 4294965232  ;;  %p12800_p1 = pmov %p12799_p4 }
 0x1c0   : > { %9403 = dma.done.wait (%p12800_p1), [#allocation12], 9232   ;;  %p12801_p13 = pmov %p12800_p1 }
 0x1c1   : > { %p12802_p0 = pmov %p12800_p1 }
 0x1c2   : > { %9405 = vsyncadd (%p12801_p13), [#allocation12], 4294958064 }
 0x1c3   : > { %9407 = dma.done.wait (%p12802_p0), [#allocation15], 32   ;;  %p12803_p2 = pmov %p12802_p0 }
 0x1c4   : > { %p12804_p10 = pmov %p12802_p0 }
 0x1c5   : > { %9409 = vsyncadd (%p12803_p2), [#allocation15], 4294967264 }
 0x1c6   : > { %9411 = dma.done.wait (%p12804_p10), [#allocation18], 11264   ;;  %p12805_p11 = pmov %p12802_p0 }
 0x1c7   : > { %p12806_p5 = pmov %p12802_p0 }
 0x1c8   : > { %9413 = vsyncadd (%p12805_p11), [#allocation18], 4294956032 }
 0x1c9   : > { %9415 = dma.done.wait (%p12806_p5), [#allocation21], 1040   ;;  %p12807_p7 = pmov %p12802_p0 }
 0x1ca   : > { %p12808_p3 = pmov %p12802_p0 }
 0x1cb   : > { %9417 = vsyncadd (%p12807_p7), [#allocation21], 4294966256 }
 0x1cc   : > { %9419 = dma.done.wait (%p12808_p3), [#allocation24], 16   ;;  %p12809_p6 = pmov %p12802_p0 }
 0x1cd   : > { %v12735_v0 = vmov 0.0|0.0   ;;  %vm9461_vm0 = vmmov 0   ;;  %v12730_v1 = vmov 0.0   ;;  %v851_v2 = vld [vmem:[#allocation10] sm:$0xff]  ;;  %v852_v3 = vld [vmem:[#allocation10 + $0x8] sm:$0xff]  ;;  %v853_v4 = vld [vmem:[#allocation10 + $0x10] sm:$0xff] }
 0x1ce   : > { %9421 = vsyncadd (%p12809_p6), [#allocation24], 4294967280  ;;  %7920 = vmatprep.subr.bf16.mxu0 %v12735_v0  ;;  %7944 = vmatprep.subr.bf16.mxu1 %v12735_v0  ;;  %v7921_v5 = vpack.c.bf16 %v852_v3, %v851_v2  ;;  %v854_v6 = vld [vmem:[#allocation10 + $0x18] sm:$0xff]  ;;  %v855_v8 = vld [vmem:[#allocation10 + $0x20] sm:$0xff]  ;;  %vm1362_vm1 = vcmask 1040384   ;;  %vm1429_vm4 = vcmask 1047552  }
 0x1cf   : > { %7476 = vmatprep.mubr.msk.f32.mxu0 %vm9461_vm0, %v12730_v1  ;;  %7511 = vmatprep.mubr.msk.f32.mxu1 %vm9461_vm0, %v12730_v1  ;;  %v7924_v7 = vpack.c.bf16 %v854_v6, %v853_v4  ;;  %v856_v9 = vld [vmem:[#allocation10 + $0x28] sm:$0xff]  ;;  %v681_v11 = vld [vmem:[%s9994_s7] sm:$0xff]   ;;  %v857_v12 = vld [vmem:[#allocation10 + $0x30] sm:$0xff]  ;;  %vm1363_vm2 = vsmask.f32 256  ;;  %s12558_s3 = scalar_lea.vmem [#allocation25], %s6184_s20 }
 0x1d0   : > { %7922 = vmatpush3.bf16.msra.mxu0 %v7921_v5  ;;  %7946 = vmatpush3.bf16.msra.mxu1 %v7921_v5  ;;  %v7927_v10 = vpack.c.bf16 %v856_v9, %v855_v8  ;;  %v858_v13 = vld [vmem:[#allocation10 + $0x38] sm:$0xff]  ;;  %v683_v14 = vld [vmem:[%s9994_s7 + $0x8] sm:$0xff]   ;;  %v10046_v17 = vunpack.c.l.bf16 %v681_v11  ;;  %v10048_v18 = vunpack.c.h.bf16 %v681_v11  ;;  %v685_v20 = vld [vmem:[%s9994_s7 + $0x10] sm:$0xff]   ;;  %vm1430_vm5 = vsmask.f32 7424  ;;  %s6440_s28 = sshll.u32 %s9563_s19, 11 }
 0x1d1   : > { %7923 = vmatprep.subr.bf16.mxu0 %v12735_v0  ;;  %7947 = vmatprep.subr.bf16.mxu1 %v12735_v0  ;;  %v859_v15 = vld [vmem:[#allocation10 + $0x40] sm:$0xff]  ;;  %v860_v16 = vld [vmem:[#allocation10 + $0x48] sm:$0xff]  ;;  %v7930_v19 = vpack.c.bf16 %v858_v13, %v857_v12  ;;  %v10053_v21 = vunpack.c.l.bf16 %v683_v14  ;;  %v861_v22 = vld [vmem:[#allocation10 + $0x50] sm:$0xff]  ;;  %v10055_v24 = vunpack.c.h.bf16 %v683_v14  ;;  %v10062_v28 = vunpack.c.l.bf16 %v685_v20  ;;  %s5957_s27 = sshll.u32 %s12558_s3, 4  ;;  %s12886_s8 = sld [smem:[#allocation72_spill]]  ;;  %s12657_s27 = int_to_ptr.vmem [resolvable:$true] %s5957_s27 }
 0x1d2   : > { %v862_v23 = vld [vmem:[#allocation10 + $0x58] sm:$0xff]  ;;  %v745_v25 = vadd.f32 %v10048_v18, %v10046_v17  ;;  %v7933_v26 = vpack.c.bf16 %v860_v16, %v859_v15  ;;  %v863_v30 = vld [vmem:[#allocation10 + $0x60] sm:$0xff]  ;;  %v864_v31 = vld [vmem:[#allocation10 + $0x68] sm:$0xff]  ;;  %v10065_v32 = vunpack.c.h.bf16 %v685_v20  ;;  %v782_v38 = vmul.f32 %v10046_v17, %v10046_v17  ;;  %s5944_s1 = scalar_lea.sflag [#allocation4], %s9988_s25  ;;  %s9342_s19 = scalar_lea.vmem %s12657_s27, 2048 }
 0x1d3   : > { %v687_v27 = vld [vmem:[%s9994_s7 + $0x18] sm:$0xff]   ;;  %v7936_v34 = vpack.c.bf16 %v862_v23, %v861_v22  ;;  %v689_v35 = vld [vmem:[%s9994_s7 + $0x20] sm:$0xff]   ;;  %v783_v39 = vmul.f32 %v10048_v18, %v10048_v18  ;;  %v7939_v44 = vpack.c.bf16 %v864_v31, %v863_v30  ;;  %v691_v45 = vld [vmem:[%s9994_s7 + $0x28] sm:$0xff]   ;;  %v784_v46 = vmul.f32 %v10053_v21, %v10053_v21  ;;  %p9343_p12 = scmp.ne.s32.totalorder %s12657_s27, %s9342_s19  ;;  %p12887_p8 = scmp.ne.s32.totalorder %s12787_s24, 0 }
 0x1d4   : > { %7925 = vmatpush3.bf16.msra.mxu0 %v7924_v7  ;;  %7949 = vmatpush3.bf16.msra.mxu1 %v7924_v7  ;;  %v746_v29 = vadd.f32 %v745_v25, %v10053_v21  ;;  %v10071_v36 = vunpack.c.l.bf16 %v687_v27  ;;  %v865_v40 = vld [vmem:[#allocation10 + $0x70] sm:$0xff]  ;;  %v866_v41 = vld [vmem:[#allocation10 + $0x78] sm:$0xff]  ;;  %v10078_v42 = vunpack.c.h.bf16 %v687_v27  ;;  %v10086_v47 = vunpack.c.l.bf16 %v689_v35  ;;  %v699_v22 = vld [vmem:[%s9994_s7 + $0x48] sm:$0xff]   ;;  %s9464_s2 = smov [#allocation25]  }
 0x1d5   : > { %7926 = vmatprep.subr.bf16.mxu0 %v12735_v0  ;;  %7950 = vmatprep.subr.bf16.mxu1 %v12735_v0  ;;  %v785_v49 = vmul.f32 %v10055_v24, %v10055_v24  ;;  %v814_v50 = vadd.f32 %v783_v39, %v782_v38  ;;  %v10091_v51 = vunpack.c.h.bf16 %v689_v35  ;;  %v7942_v53 = vpack.c.bf16 %v866_v41, %v865_v40  ;;  %v693_v54 = vld [vmem:[%s9994_s7 + $0x30] sm:$0xff]   ;;  %v695_v63 = vld [vmem:[%s9994_s7 + $0x38] sm:$0xff]   ;;  %vm10232_vm3 = vmand %vm1362_vm1, %vm1363_vm2  ;;  %p9344_p9 = pnand %p9343_p12, %p12887_p8  ;;  %s9346_s10 = sshll.u32 %s9464_s2, 4  ;;  %s9347_s10 = int_to_ptr.vmem [resolvable:$false] %s9346_s10 }
 0x1d6   : > { %v747_v33 = vadd.f32 %v746_v29, %v10055_v24  ;;  %v786_v55 = vmul.f32 %v10062_v28, %v10062_v28  ;;  %v10099_v57 = vunpack.c.l.bf16 %v691_v45  ;;  %v787_v59 = vmul.f32 %v10065_v32, %v10065_v32  ;;  %vm10760_vm6 = vmand %vm1429_vm4, %vm1430_vm5  ;;  %v8664_v1 = vld [vmem:[#allocation11 + $0x1c8] sm:$0xff]   ;;  %s9348_s20 = scalar_lea.vmem %s9347_s10, 4096  ;;  %p9349_p1 = scmp.lt.s32.totalorder %s12657_s27, %s9347_s10 }
 0x1d7   : > { %v815_v56 = vadd.f32 %v814_v50, %v784_v46  ;;  %v10104_v61 = vunpack.c.h.bf16 %v691_v45  ;;  %v788_v2 = vmul.f32 %v10071_v36, %v10071_v36  ;;  %v10110_v4 = vunpack.c.l.bf16 %v693_v54  ;;  %v703_v45 = vld [vmem:[%s9994_s7 + $0x58] sm:$0xff]   ;;  %s12655_s0 = scalar_lea.hbm %s12886_s8, %s6440_s28  ;;  %p9345_p4 = pneg %p9344_p9 }
 0x1d8   : > { %7928 = vmatpush3.bf16.msra.mxu0 %v7927_v10  ;;  %7952 = vmatpush3.bf16.msra.mxu1 %v7927_v10  ;;  %v748_v37 = vadd.f32 %v747_v33, %v10062_v28  ;;  %v789_v6 = vmul.f32 %v10078_v42, %v10078_v42  ;;  %v10115_v8 = vunpack.c.h.bf16 %v693_v54  ;;  %v697_v10 = vld [vmem:[%s9994_s7 + $0x40] sm:$0xff]   ;;  %v790_v11 = vmul.f32 %v10086_v47, %v10086_v47  ;;  %p9350_p13 = scmp.lt.s32.totalorder %s9348_s20, %s9342_s19 }
 0x1d9   : > { %7929 = vmatprep.subr.bf16.mxu0 %v12735_v0  ;;  %7953 = vmatprep.subr.bf16.mxu1 %v12735_v0  ;;  %v816_v60 = vadd.f32 %v815_v56, %v785_v49  ;;  %v10121_v13 = vunpack.c.l.bf16 %v695_v63  ;;  %v791_v15 = vmul.f32 %v10091_v51, %v10091_v51  ;;  %v792_v23 = vmul.f32 %v10099_v57, %v10099_v57  ;;  %v705_v56 = vld [vmem:[%s9994_s7 + $0x60] sm:$0xff]  }
 0x1da   : > { %v749_v43 = vadd.f32 %v748_v37, %v10065_v32  ;;  %v793_v29 = vmul.f32 %v10104_v61, %v10104_v61  ;;  %v10137_v31 = vunpack.c.h.bf16 %v697_v10  ;;  %v794_v35 = vmul.f32 %v10110_v4, %v10110_v4  ;;  %p9351_p0 = por %p9350_p13, %p9349_p1 }
 0x1db   : > { %v817_v3 = vadd.f32 %v816_v60, %v786_v55  ;;  %v10143_v38 = vunpack.c.l.bf16 %v699_v22  ;;  %v795_v40 = vmul.f32 %v10115_v8, %v10115_v8  ;;  %v796_v46 = vmul.f32 %v10121_v13, %v10121_v13 }
 0x1dc   : > { %7931 = vmatpush3.bf16.msra.mxu0 %v7930_v19  ;;  %7955 = vmatpush3.bf16.msra.mxu1 %v7930_v19  ;;  %v750_v48 = vadd.f32 %v749_v43, %v10071_v36  ;;  %v10126_v19 = vunpack.c.h.bf16 %v695_v63  ;;  %v10148_v43 = vunpack.c.h.bf16 %v699_v22  ;;  %v10165_v60 = vunpack.c.l.bf16 %v703_v45  ;;  %p9352_p2 = pnand %p9351_p0, %p9345_p4 }
 0x1dd   : > { %7932 = vmatprep.subr.bf16.mxu0 %v12735_v0  ;;  %7956 = vmatprep.subr.bf16.mxu1 %v12735_v0  ;;  %v818_v7 = vadd.f32 %v817_v3, %v787_v59  ;;  %v799_v63 = vmul.f32 %v10137_v31, %v10137_v31  ;;  %v10170_v3 = vunpack.c.h.bf16 %v703_v45 }
 0x1de   : > { %v751_v52 = vadd.f32 %v750_v48, %v10078_v42 }
 0x1df   : > { %v819_v12 = vadd.f32 %v818_v7, %v788_v2  ;;  %v800_v7 = vmul.f32 %v10143_v38, %v10143_v38 }
 0x1e0   : > { %7934 = vmatpush3.bf16.msra.mxu0 %v7933_v26  ;;  %7958 = vmatpush3.bf16.msra.mxu1 %v7933_v26  ;;  %v752_v58 = vadd.f32 %v751_v52, %v10086_v47  ;;  %v10132_v26 = vunpack.c.l.bf16 %v697_v10  ;;  %v797_v52 = vmul.f32 %v10126_v19, %v10126_v19  ;;  %v10176_v10 = vunpack.c.l.bf16 %v705_v56 }
 0x1e1   : > { %7935 = vmatprep.subr.bf16.mxu0 %v12735_v0  ;;  %7959 = vmatprep.subr.bf16.mxu1 %v12735_v0  ;;  %v820_v16 = vadd.f32 %v819_v12, %v789_v6  ;;  %v707_v6 = vld [vmem:[%s9994_s7 + $0x68] sm:$0xff]   ;;  %v801_v12 = vmul.f32 %v10148_v43, %v10148_v43 }
 0x1e2   : > { %v753_v62 = vadd.f32 %v752_v58, %v10091_v51  ;;  %v798_v58 = vmul.f32 %v10132_v26, %v10132_v26 }
 0x1e3   : > { %v821_v25 = vadd.f32 %v820_v16, %v790_v11 }
 0x1e4   : > { %7937 = vmatpush3.bf16.msra.mxu0 %v7936_v34  ;;  %7961 = vmatpush3.bf16.msra.mxu1 %v7936_v34  ;;  %v754_v5 = vadd.f32 %v753_v62, %v10099_v57  ;;  %v701_v34 = vld [vmem:[%s9994_s7 + $0x50] sm:$0xff]  }
 0x1e5   : > { %7938 = vmatprep.subr.bf16.mxu0 %v12735_v0  ;;  %7962 = vmatprep.subr.bf16.mxu1 %v12735_v0  ;;  %v822_v30 = vadd.f32 %v821_v25, %v791_v15  ;;  %v10154_v49 = vunpack.c.l.bf16 %v701_v34  ;;  %v10159_v54 = vunpack.c.h.bf16 %v701_v34  ;;  %v10181_v15 = vunpack.c.h.bf16 %v705_v56 }
 0x1e6   : > { %v755_v9 = vadd.f32 %v754_v5, %v10104_v61  ;;  %v10187_v25 = vunpack.c.l.bf16 %v707_v6 }
 0x1e7   : > { %v823_v37 = vadd.f32 %v822_v30, %v792_v23  ;;  %v802_v22 = vmul.f32 %v10154_v49, %v10154_v49  ;;  %v807_v56 = vmul.f32 %v10181_v15, %v10181_v15 }
 0x1e8   : > { %7940 = vmatpush3.bf16.msra.mxu0 %v7939_v44  ;;  %7964 = vmatpush3.bf16.msra.mxu1 %v7939_v44  ;;  %v756_v14 = vadd.f32 %v755_v9, %v10110_v4 }
 0x1e9   : > { %7941 = vmatprep.subr.bf16.mxu0 %v12735_v0  ;;  %7965 = vmatprep.subr.bf16.mxu1 %v12735_v0  ;;  %v824_v41 = vadd.f32 %v823_v37, %v793_v29  ;;  %v803_v29 = vmul.f32 %v10159_v54, %v10159_v54  ;;  %v804_v37 = vmul.f32 %v10165_v60, %v10165_v60 }
 0x1ea   : > { %v757_v20 = vadd.f32 %v756_v14, %v10115_v8 }
 0x1eb   : > { %v825_v48 = vadd.f32 %v824_v41, %v794_v35  ;;  %v711_v35 = vld [vmem:[%s9994_s7 + $0x78] sm:$0xff]  }
 0x1ec   : > { %7943 = vmatpush3.bf16.msra.mxu0 %v7942_v53  ;;  %7967 = vmatpush3.bf16.msra.mxu1 %v7942_v53  ;;  %v758_v27 = vadd.f32 %v757_v20, %v10121_v13  ;;  %v709_v20 = vld [vmem:[%s9994_s7 + $0x70] sm:$0xff]  }
 0x1ed   : > { %v826_v53 = vadd.f32 %v825_v48, %v795_v40  ;;  %v10198_v40 = vunpack.c.l.bf16 %v709_v20 }
 0x1ee   : > { %v759_v33 = vadd.f32 %v758_v27, %v10126_v19 }
 0x1ef   : > { %v827_v59 = vadd.f32 %v826_v53, %v796_v46  ;;  %v10203_v46 = vunpack.c.h.bf16 %v709_v20  ;;  %v10208_v53 = vunpack.c.l.bf16 %v711_v35 }
 0x1f0   : > { %v760_v39 = vadd.f32 %v759_v33, %v10132_v26  ;;  %v10192_v33 = vunpack.c.h.bf16 %v707_v6 }
 0x1f1   : > { %v828_v2 = vadd.f32 %v827_v59, %v797_v52  ;;  %v10213_v59 = vunpack.c.h.bf16 %v711_v35 }
 0x1f2   : > { %v761_v44 = vadd.f32 %v760_v39, %v10137_v31  ;;  %v809_v6 = vmul.f32 %v10192_v33, %v10192_v33 }
 0x1f3   : > { %v829_v9 = vadd.f32 %v828_v2, %v798_v58 }
 0x1f4   : > { %v762_v50 = vadd.f32 %v761_v44, %v10143_v38  ;;  %v805_v44 = vmul.f32 %v10170_v3, %v10170_v3 }
 0x1f5   : > { %v830_v14 = vadd.f32 %v829_v9, %v799_v63  ;;  %v808_v63 = vmul.f32 %v10187_v25, %v10187_v25 }
 0x1f6   : > { %v763_v55 = vadd.f32 %v762_v50, %v10148_v43  ;;  %v806_v50 = vmul.f32 %v10176_v10, %v10176_v10 }
 0x1f7   : > { %v831_v23 = vadd.f32 %v830_v14, %v800_v7 }
 0x1f8   : > { %v764_v62 = vadd.f32 %v763_v55, %v10154_v49 }
 0x1f9   : > { %v832_v30 = vadd.f32 %v831_v23, %v801_v12  ;;  %v812_v23 = vmul.f32 %v10208_v53, %v10208_v53 }
 0x1fa   : > { %v765_v5 = vadd.f32 %v764_v62, %v10159_v54 }
 0x1fb   : > { %v833_v39 = vadd.f32 %v832_v30, %v802_v22  ;;  %v813_v30 = vmul.f32 %v10213_v59, %v10213_v59 }
 0x1fc   : > { %v766_v11 = vadd.f32 %v765_v5, %v10165_v60 }
 0x1fd   : > { %v834_v45 = vadd.f32 %v833_v39, %v803_v29 }
 0x1fe   : > { %v767_v16 = vadd.f32 %v766_v11, %v10170_v3  ;;  %v810_v11 = vmul.f32 %v10198_v40, %v10198_v40 }
 0x1ff   : > { %v835_v52 = vadd.f32 %v834_v45, %v804_v37 }
 0x200   : > { %v768_v27 = vadd.f32 %v767_v16, %v10176_v10  ;;  %v811_v16 = vmul.f32 %v10203_v46, %v10203_v46 }
 0x201   : > { %v836_v58 = vadd.f32 %v835_v52, %v805_v44 }
 0x202   : > { %v769_v34 = vadd.f32 %v768_v27, %v10181_v15 }
 0x203   : > { %v837_v2 = vadd.f32 %v836_v58, %v806_v50  ;;  %v8614_v58 = vld [vmem:[#allocation11 + $0x40] sm:$0xff]  }
 0x204   : > { %v770_v41 = vadd.f32 %v769_v34, %v10187_v25  ;;  %6706 = vmatprep.subr.bf16.mxu1 %v8614_v58  ;;  %v8642_v58 = vld [vmem:[#allocation11 + $0x130] sm:$0xff]  }
 0x205   : > { %v838_v7 = vadd.f32 %v837_v2, %v807_v56  ;;  %v8617_v2 = vld [vmem:[#allocation11 + $0x8] sm:$0xff]  }
 0x206   : > { %v771_v48 = vadd.f32 %v770_v41, %v10192_v33 }
 0x207   : > { %v839_v12 = vadd.f32 %v838_v7, %v808_v63  ;;  %v8616_v63 = vld [vmem:[#allocation11 + $0x48] sm:$0xff]   ;;  %v8619_v7 = vld [vmem:[#allocation11 + $0xc0] sm:$0xff]  }
 0x208   : > { %v772_v55 = vadd.f32 %v771_v48, %v10198_v40 }
 0x209   : > { %v840_v20 = vadd.f32 %v839_v12, %v809_v6  ;;  %v8620_v6 = vld [vmem:[#allocation11 + $0x50] sm:$0xff]   ;;  %v8623_v12 = vld [vmem:[#allocation11 + $0xc8] sm:$0xff]  }
 0x20a   : > { %v773_v62 = vadd.f32 %v772_v55, %v10203_v46 }
 0x20b   : > { %v841_v27 = vadd.f32 %v840_v20, %v810_v11  ;;  %v8622_v11 = vld [vmem:[#allocation11 + $0x108] sm:$0xff]   ;;  %v8626_v20 = vld [vmem:[#allocation11 + $0x110] sm:$0xff]  }
 0x20c   : > { %v774_v5 = vadd.f32 %v773_v62, %v10208_v53  ;;  %v8615_v62 = vld [vmem:[#allocation11] sm:$0xff]  }
 0x20d   : > { %v842_v34 = vadd.f32 %v841_v27, %v811_v16  ;;  %v8625_v16 = vld [vmem:[#allocation11 + $0x18] sm:$0xff]   ;;  %v8627_v27 = vld [vmem:[#allocation11 + $0xd0] sm:$0xff]  }
 0x20e   : > { %v775_v9 = vadd.f32 %v774_v5, %v10213_v59  ;;  %v8618_v5 = vld [vmem:[#allocation11 + $0x100] sm:$0xff]  }
 0x20f   : > { %v843_v37 = vadd.f32 %v842_v34, %v812_v23  ;;  %6570 = vmatprep.subr.bf16.mxu0 %v8618_v5  ;;  %v8628_v23 = vld [vmem:[#allocation11 + $0x60] sm:$0xff]   ;;  %v8632_v34 = vld [vmem:[#allocation11 + $0x68] sm:$0xff]   ;;  %v8644_v5 = vld [vmem:[#allocation11 + $0x138] sm:$0xff]  }
 0x210   : > { %v776_v14 = vrot.slane %v775_v9, 4 }
 0x211   : > { %v844_v41 = vadd.f32 %v843_v37, %v813_v30  ;;  %v8630_v30 = vld [vmem:[#allocation11 + $0x118] sm:$0xff]   ;;  %v8633_v37 = vld [vmem:[#allocation11 + $0x28] sm:$0xff]  }
 0x212   : > { %v777_v22 = vadd.f32 %v776_v14, %v775_v9  ;;  %v8621_v9 = vld [vmem:[#allocation11 + $0x10] sm:$0xff]   ;;  %v8624_v14 = vld [vmem:[#allocation11 + $0x58] sm:$0xff]  }
 0x213   : > { %v845_v45 = vrot.slane %v844_v41, 4 }
 0x214   : > { %v778_v29 = vrot.slane %v777_v22, 2 }
 0x215   : > { %v846_v48 = vadd.f32 %v845_v45, %v844_v41  ;;  %v8636_v41 = vld [vmem:[#allocation11 + $0x70] sm:$0xff]  }
 0x216   : > { %v779_v35 = vadd.f32 %v778_v29, %v777_v22  ;;  %v12732_v22 = vmov 0   ;;  %v8629_v29 = vld [vmem:[#allocation11 + $0x20] sm:$0xff]   ;;  %v8637_v45 = vld [vmem:[#allocation11 + $0x30] sm:$0xff]  }
 0x217   : > { %v847_v50 = vrot.slane %v846_v48, 2 }
 0x218   : > { %v780_v39 = vrot.slane %v779_v35, 1 }
 0x219   : > { %v848_v52 = vadd.f32 %v847_v50, %v846_v48  ;;  %v8638_v48 = vld [vmem:[#allocation11 + $0x128] sm:$0xff]   ;;  %v8640_v50 = vld [vmem:[#allocation11 + $0x78] sm:$0xff]  }
 0x21a   : > { %v781_v44 = vadd.f32 %v780_v39, %v779_v35  ;;  %v8631_v35 = vld [vmem:[#allocation11 + $0xd8] sm:$0xff]   ;;  %v8634_v39 = vld [vmem:[#allocation11 + $0x120] sm:$0xff]  }
 0x21b   : > { %v849_v55 = vrot.slane %v848_v52, 1 }
 0x21c   : > { %7477 = vmatmul.mubr.f32.vlgmr.msra.gmra.mrb[0].mxu0 %v781_v44  ;;  %v8635_v44 = vld [vmem:[#allocation11 + $0xe0] sm:$0xff]  }
 0x21d   : > { %v850_v56 = vadd.f32 %v849_v55, %v848_v52  ;;  %6571 = vmatpush3.bf16.msra.mxu0 %v8619_v7  ;;  %v8639_v52 = vld [vmem:[#allocation11 + $0xe8] sm:$0xff]   ;;  %v8641_v55 = vld [vmem:[#allocation11 + $0x38] sm:$0xff]   ;;  %v10241_v7 = vld [vmem:[#allocation11 + $0x140] sm:$0xff]  }
 0x21e   : > { %6572 = vmatprep.subr.bf16.mxu0 %v8622_v11 }
 0x21f   : > { %7512 = vmatmul.mubr.f32.vlgmr.msra.gmra.mrb[0].mxu1 %v850_v56  ;;  %v1237_v56 = vrot.slane %v12732_v22, 7 }
 0x220   : > { %6707 = vmatpush3.bf16.msra.mxu1 %v8615_v62  ;;  %2199 = vmatprep.mubr.bf16.mxu1 %v12732_v22  ;;  %v12810_v62 = vmov 0 }
 0x221   : > { %6708 = vmatprep.subr.bf16.mxu1 %v8616_v63  ;;  %6573 = vmatpush3.bf16.msra.mxu0 %v8623_v12  ;;  %v12811_v62 = vsel %vm10232_vm3, 4294967295, %v12810_v62  ;;  %v8643_v63 = vld [vmem:[#allocation11 + $0xf0] sm:$0xff]  }
 0x222   : > { %6574 = vmatprep.subr.bf16.mxu0 %v8626_v20  ;;  %12812 = vst [vmem:[#allocation37_spill] sm:$0xff] %v12811_v62 }
 0x224   : > { %6709 = vmatpush3.bf16.msra.mxu1 %v8617_v2  ;;  %v10238_v2 = vsel %vm10232_vm3, 0, %v1237_v56 }
 0x225   : > { %6710 = vmatprep.subr.bf16.mxu1 %v8620_v6  ;;  %6575 = vmatpush3.bf16.msra.mxu0 %v8627_v27  ;;  %12813 = vst [vmem:[#allocation38_spill] sm:$0xff] %v10238_v2  ;;  %v8645_v6 = vld [vmem:[#allocation11 + $0xf8] sm:$0xff]  }
 0x226   : > { %6576 = vmatprep.subr.bf16.mxu0 %v8630_v30  ;;  %v1016_v30 = vlaneseq }
 0x228   : > { %6711 = vmatpush3.bf16.msra.mxu1 %v8621_v9  ;;  %v8651_v9 = vld [vmem:[#allocation11 + $0x80] sm:$0xff]  }
 0x229   : > { %6712 = vmatprep.subr.bf16.mxu1 %v8624_v14  ;;  %6577 = vmatpush3.bf16.msra.mxu0 %v8631_v35  ;;  %v1011_v35 = vld [vmem:[#allocation7] sm:$0x1] }
 0x22a   : > { %6578 = vmatprep.subr.bf16.mxu0 %v8634_v39  ;;  %v8655_v39 = vld [vmem:[#allocation11 + $0x90] sm:$0xff]  }
 0x22c   : > { %6713 = vmatpush3.bf16.msra.mxu1 %v8625_v16  ;;  %v8653_v16 = vld [vmem:[#allocation11 + $0x88] sm:$0xff]  }
 0x22d   : > { %6714 = vmatprep.subr.bf16.mxu1 %v8628_v23  ;;  %6579 = vmatpush3.bf16.msra.mxu0 %v8635_v44 }
 0x22e   : > { %6580 = vmatprep.subr.bf16.mxu0 %v8638_v48 }
 0x230   : > { %6715 = vmatpush3.bf16.msra.mxu1 %v8629_v29 }
 0x231   : > { %6716 = vmatprep.subr.bf16.mxu1 %v8632_v34  ;;  %6581 = vmatpush3.bf16.msra.mxu0 %v8639_v52  ;;  %v1017_v34 = vshrl.u32 %v1016_v30, 7 }
 0x232   : > { %6582 = vmatprep.subr.bf16.mxu0 %v8642_v58 }
 0x234   : > { %6717 = vmatpush3.bf16.msra.mxu1 %v8633_v37  ;;  %v10244_v37 = vsub.s32 0, %v1017_v34 }
 0x235   : > { %6718 = vmatprep.subr.bf16.mxu1 %v8636_v41  ;;  %6583 = vmatpush3.bf16.msra.mxu0 %v8643_v63 }
 0x236   : > { %6584 = vmatprep.subr.bf16.mxu0 %v8644_v5  ;;  %12814 = vst [vmem:[#allocation39_spill] sm:$0xff] %v10244_v37 }
 0x238   : > { %6719 = vmatpush3.bf16.msra.mxu1 %v8637_v45  ;;  %v1013_v45 = vld [vmem:[#allocation8] sm:$0x1] }
 0x239   : > { %6720 = vmatprep.subr.bf16.mxu1 %v8640_v50  ;;  %6585 = vmatpush3.bf16.msra.mxu0 %v8645_v6 }
 0x23a   : > { %7514 = vmatprep.subr.bf16.mxu0 %v10241_v7 }
 0x23c   : > { %6721 = vmatpush3.bf16.msra.mxu1 %v8641_v55 }
 0x23d   : > { %7562 = vmatprep.subr.bf16.mxu1 %v8651_v9 }
 0x23f   : > { %2200 = vmatmul.mubr.bf16.vlgmr.msra.gmra.mrb[4].mxu1 %v10238_v2 }
 0x240   : > { %7563 = vmatpush3.bf16.msra.mxu1 %v8651_v9 }
 0x241   : > { %7564 = vmatprep.subr.bf16.mxu1 %v8653_v16 }
 0x244   : > { %7565 = vmatpush3.bf16.msra.mxu1 %v8653_v16 }
 0x245   : > { %7566 = vmatprep.subr.bf16.mxu1 %v8655_v39 }
 0x248   : > { %7567 = vmatpush3.bf16.msra.mxu1 %v8655_v39 }
 0x2ef   : > { %v933_v11 = vpop.f32.mrb[0].mxu0 }
 0x2f0   : > { %v7478_v12 = vpop.f32.mrb[1].mxu0  ;;  %v1007_v14 = vmul.f32 %v933_v11, %v933_v11 }
 0x2f2   : > { %v1003_v20 = vpop.f32.mrb[0].mxu1 }
 0x2f3   : > { %v1008_v23 = vsub.f32 %v1003_v20, %v1007_v14  ;;  %v7513_v27 = vpop.f32.mrb[1].mxu1 }
 0x2f5   : > { %v1009_v29 = vadd.f32 1e-05, %v1008_v23 }
 0x2f7   : > { %8798 = vrsqrt.f32 %v1009_v29 }
 0x301   : > { %v8799_v41 = vpop.eup %8798 }
 0x302   : > { %v1012_v44 = vmul.f32 %v8799_v41, %v1011_v35 }
 0x304   : > { %v1014_v48 = vmul.f32 %v1012_v44, %v933_v11  ;;  %v10247_v50 = vrot.slane %v1012_v44, %v10244_v37  ;;  %v8656_v11 = vld [vmem:[#allocation11 + $0x98] sm:$0xff]  }
 0x305   : > { %7568 = vmatprep.subr.bf16.mxu1 %v8656_v11 }
 0x306   : > { %v1015_v52 = vsub.f32 %v1013_v45, %v1014_v48  ;;  %v1020_v55 = vmul.f32 %v10247_v50, %v10046_v17  ;;  %v1021_v56 = vmul.f32 %v10247_v50, %v10048_v18  ;;  %v1022_v58 = vmul.f32 %v10247_v50, %v10053_v21  ;;  %7569 = vmatpush3.bf16.msra.mxu1 %v8656_v11 }
 0x307   : > { %v1023_v63 = vmul.f32 %v10247_v50, %v10055_v24  ;;  %v1024_v5 = vmul.f32 %v10247_v50, %v10062_v28  ;;  %v1025_v9 = vmul.f32 %v10247_v50, %v10065_v32  ;;  %v1026_v17 = vmul.f32 %v10247_v50, %v10071_v36 }
 0x308   : > { %v10260_v6 = vrot.slane %v1015_v52, %v10244_v37  ;;  %v1027_v18 = vmul.f32 %v10247_v50, %v10078_v42  ;;  %v1028_v21 = vmul.f32 %v10247_v50, %v10086_v47  ;;  %v1029_v24 = vmul.f32 %v10247_v50, %v10091_v51  ;;  %v8657_v52 = vld [vmem:[#allocation11 + $0xa0] sm:$0xff]  }
 0x309   : > { %v1030_v28 = vmul.f32 %v10247_v50, %v10099_v57  ;;  %v1031_v12 = vmul.f32 %v10247_v50, %v10104_v61  ;;  %v1032_v27 = vmul.f32 %v10247_v50, %v10110_v4  ;;  %v1033_v35 = vmul.f32 %v10247_v50, %v10115_v8  ;;  %7570 = vmatprep.subr.bf16.mxu1 %v8657_v52 }
 0x30a   : > { %v1058_v32 = vadd.f32 %v10260_v6, %v1020_v55  ;;  %v1059_v36 = vadd.f32 %v10260_v6, %v1021_v56  ;;  %v1060_v14 = vadd.f32 %v10260_v6, %v1022_v58  ;;  %v1061_v42 = vadd.f32 %v10260_v6, %v1023_v63  ;;  %v8658_v58 = vld [vmem:[#allocation11 + $0xa8] sm:$0xff]   ;;  %7571 = vmatpush3.bf16.msra.mxu1 %v8657_v52 }
 0x30b   : > { %v1062_v47 = vadd.f32 %v10260_v6, %v1024_v5  ;;  %v1063_v16 = vadd.f32 %v10260_v6, %v1025_v9  ;;  %v1064_v51 = vadd.f32 %v10260_v6, %v1026_v17  ;;  %v1065_v57 = vadd.f32 %v10260_v6, %v1027_v18  ;;  %7572 = vmatprep.subr.bf16.mxu1 %v8658_v58 }
 0x30c   : > { %v10284_v20 = vmul.f32 0.5, %v1058_v32  ;;  %v10286_v61 = vmul.f32 0.5, %v1059_v36  ;;  %v10288_v23 = vmul.f32 0.5, %v1060_v14  ;;  %v10292_v29 = vmul.f32 0.5, %v1061_v42  ;;  %v8660_v14 = vld [vmem:[#allocation11 + $0xb0] sm:$0xff]  }
 0x30d   : > { %v10294_v30 = vmul.f32 0.5, %v1062_v47  ;;  %v10296_v34 = vmul.f32 0.5, %v1063_v16  ;;  %v1066_v39 = vadd.f32 %v10260_v6, %v1028_v21  ;;  %v1067_v41 = vadd.f32 %v10260_v6, %v1029_v24 }
 0x30e   : > { %8800 = vtanh.f32 %v10284_v20  ;;  %v1068_v44 = vadd.f32 %v10260_v6, %v1030_v28  ;;  %v1069_v4 = vadd.f32 %v10260_v6, %v1031_v12  ;;  %v1070_v45 = vadd.f32 %v10260_v6, %v1032_v27  ;;  %7573 = vmatpush3.bf16.msra.mxu1 %v8658_v58 }
 0x30f   : > { %8802 = vtanh.f32 %v10286_v61  ;;  %v1071_v48 = vadd.f32 %v10260_v6, %v1033_v35  ;;  %v10309_v8 = vmul.f32 0.5, %v1064_v51  ;;  %v10311_v55 = vmul.f32 0.5, %v1065_v57  ;;  %v8661_v57 = vld [vmem:[#allocation11 + $0xb8] sm:$0xff]   ;;  %7574 = vmatprep.subr.bf16.mxu1 %v8660_v14 }
 0x310   : > { %8804 = vtanh.f32 %v10288_v23  ;;  %v10313_v56 = vmul.f32 0.5, %v1066_v39  ;;  %v10316_v63 = vmul.f32 0.5, %v1067_v41  ;;  %v10318_v5 = vmul.f32 0.5, %v1068_v44 }
 0x311   : > { %8806 = vtanh.f32 %v10292_v29  ;;  %v10320_v9 = vmul.f32 0.5, %v1069_v4  ;;  %v1034_v17 = vmul.f32 %v10247_v50, %v10121_v13  ;;  %v1035_v18 = vmul.f32 %v10247_v50, %v10126_v19 }
 0x312   : > { %8808 = vtanh.f32 %v10294_v30  ;;  %v1036_v11 = vmul.f32 %v10247_v50, %v10132_v26  ;;  %v1037_v21 = vmul.f32 %v10247_v50, %v10137_v31  ;;  %v1038_v24 = vmul.f32 %v10247_v50, %v10143_v38  ;;  %7575 = vmatpush3.bf16.msra.mxu1 %v8660_v14 }
 0x313   : > { %8810 = vtanh.f32 %v10296_v34  ;;  %v1039_v28 = vmul.f32 %v10247_v50, %v10148_v43  ;;  %v1072_v13 = vadd.f32 %v10260_v6, %v1034_v17  ;;  %v1073_v19 = vadd.f32 %v10260_v6, %v1035_v18  ;;  %7576 = vmatprep.subr.bf16.mxu1 %v8661_v57 }
 0x314   : > { %8812 = vtanh.f32 %v10309_v8  ;;  %v1074_v26 = vadd.f32 %v10260_v6, %v1036_v11  ;;  %v1075_v12 = vadd.f32 %v10260_v6, %v1037_v21  ;;  %v10343_v31 = vadd.f32 %v10260_v6, %v1038_v24 }
 0x315   : > { %8814 = vtanh.f32 %v10311_v55  ;;  %v10346_v38 = vadd.f32 %v10260_v6, %v1039_v28  ;;  %v10349_v43 = vmul.f32 0.5, %v1070_v45  ;;  %v10352_v32 = vmul.f32 0.5, %v1071_v48 }
 0x316   : > { %8816 = vtanh.f32 %v10313_v56  ;;  %v10354_v36 = vmul.f32 0.5, %v1072_v13  ;;  %v10357_v47 = vmul.f32 0.5, %v1073_v19  ;;  %v1040_v16 = vmul.f32 %v10247_v50, %v10154_v49  ;;  %7577 = vmatpush3.bf16.msra.mxu1 %v8661_v57 }
 0x317   : > { %8818 = vtanh.f32 %v10316_v63  ;;  %v1041_v51 = vmul.f32 %v10247_v50, %v10159_v54  ;;  %v10364_v39 = vmul.f32 0.5, %v1074_v26  ;;  %v1042_v41 = vmul.f32 %v10247_v50, %v10165_v60 }
 0x318   : > { %v8801_v42 = vpop.eup %8800  ;;  %8820 = vtanh.f32 %v10318_v5  ;;  %v10370_v49 = vadd.f32 %v10260_v6, %v1040_v16  ;;  %v10381_v11 = vmul.f32 0.5, %v1075_v12 }
 0x319   : > { %v8803_v27 = vpop.eup %8802  ;;  %v1154_v35 = vadd.f32 1.0, %v8801_v42  ;;  %8822 = vtanh.f32 %v10320_v9  ;;  %v10373_v54 = vadd.f32 %v10260_v6, %v1041_v51  ;;  %v10378_v60 = vadd.f32 %v10260_v6, %v1042_v41 }
 0x31a   : > { %v8805_v44 = vpop.eup %8804  ;;  %v1155_v4 = vadd.f32 1.0, %v8803_v27  ;;  %8824 = vtanh.f32 %v10349_v43 }
 0x31b   : > { %v8807_v45 = vpop.eup %8806  ;;  %v1186_v48 = vmul.f32 %v1154_v35, %v10284_v20  ;;  %v1156_v52 = vadd.f32 1.0, %v8805_v44  ;;  %8826 = vtanh.f32 %v10352_v32  ;;  %v1043_v20 = vmul.f32 %v10247_v50, %v10170_v3 }
 0x31c   : > { %v8809_v58 = vpop.eup %8808  ;;  %v1187_v17 = vmul.f32 %v1155_v4, %v10286_v61  ;;  %v1157_v18 = vadd.f32 1.0, %v8807_v45  ;;  %8828 = vtanh.f32 %v10354_v36 }
 0x31d   : > { %v8811_v21 = vpop.eup %8810  ;;  %v1188_v24 = vmul.f32 %v1156_v52, %v10288_v23  ;;  %v1158_v28 = vadd.f32 1.0, %v8809_v58  ;;  %8830 = vtanh.f32 %v10357_v47  ;;  %v10394_v23 = vadd.f32 %v10260_v6, %v1043_v20 }
 0x31e   : > { %v8813_v13 = vpop.eup %8812  ;;  %v10387_v19 = vpack.c.bf16 %v1187_v17, %v1186_v48  ;;  %v1189_v26 = vmul.f32 %v1157_v18, %v10292_v29  ;;  %v1159_v14 = vadd.f32 1.0, %v8811_v21  ;;  %8832 = vtanh.f32 %v10364_v39 }
 0x31f   : > { %v8815_v61 = vpop.eup %8814  ;;  %v1190_v12 = vmul.f32 %v1158_v28, %v10294_v30  ;;  %v1160_v42 = vadd.f32 1.0, %v8813_v13  ;;  %8834 = vtanh.f32 %v10381_v11  ;;  %v10409_v48 = vmul.f32 0.5, %v10343_v31  ;;  %v8647_v13 = vld [vmem:[#allocation11 + $0x148] sm:$0xff]  }
 0x320   : > { %v8817_v16 = vpop.eup %8816  ;;  %1733 = vmatprep.mubr.bf16.mxu0 %v10387_v19  ;;  %2207 = vmatprep.mubr.bf16.mxu1 %v10387_v19  ;;  %v1242_v3 = vshrl.u32 %v10387_v19, 16  ;;  %v10399_v29 = vpack.c.bf16 %v1189_v26, %v1188_v24  ;;  %v1191_v51 = vmul.f32 %v1159_v14, %v10296_v34  ;;  %v1161_v57 = vadd.f32 1.0, %v8815_v61 }
 0x321   : > { %v8819_v30 = vpop.eup %8818  ;;  %v1192_v27 = vmul.f32 %v1160_v42, %v10309_v8  ;;  %v1162_v35 = vadd.f32 1.0, %v8817_v16  ;;  %v1245_v4 = vshll.u32 %v10387_v19, 16  ;;  %8836 = vtanh.f32 %v10409_v48 }
 0x322   : > { %v8821_v41 = vpop.eup %8820  ;;  %v1244_v44 = vrot.slane %v1242_v3, 7  ;;  %v1249_v45 = vshrl.u32 %v10399_v29, 16  ;;  %v10411_v34 = vpack.c.bf16 %v1191_v51, %v1190_v12  ;;  %v1193_v58 = vmul.f32 %v1161_v57, %v10311_v55 }
 0x323   : > { %v8823_v52 = vpop.eup %8822  ;;  %v1163_v17 = vadd.f32 1.0, %v8819_v30  ;;  %v1194_v8 = vmul.f32 %v1162_v35, %v10313_v56  ;;  %v1164_v24 = vadd.f32 1.0, %v8821_v41 }
 0x324   : > { %v8825_v18 = vpop.eup %8824  ;;  %v1247_v21 = vor.u32 %v1245_v4, %v1244_v44  ;;  %v1165_v28 = vadd.f32 1.0, %v8823_v52  ;;  %v10417_v26 = vpack.c.bf16 %v1193_v58, %v1192_v27  ;;  %v1251_v55 = vrot.slane %v1249_v45, 7 }
 0x325   : > { %v8827_v20 = vpop.eup %8826  ;;  %v1195_v31 = vmul.f32 %v1163_v17, %v10316_v63  ;;  %v1196_v56 = vmul.f32 %v1164_v24, %v10318_v5  ;;  %v1252_v63 = vshll.u32 %v10399_v29, 16  ;;  %v1166_v30 = vadd.f32 1.0, %v8825_v18 }
 0x326   : > { %v1366_v14 = vsel %vm10232_vm3, 0, %v1247_v21  ;;  %v1197_v61 = vmul.f32 %v1165_v28, %v10320_v9  ;;  %v8829_v12 = vpop.eup %8828  ;;  %v1167_v5 = vadd.f32 1.0, %v8827_v20  ;;  %v8648_v9 = vld [vmem:[#allocation11 + $0x150] sm:$0xff]   ;;  %v1256_v41 = vshrl.u32 %v10411_v34, 16 }
 0x327   : > { %1734 = vmatmul.mubr.bf16.vlgmr.msra.gmra.mrb[4].mxu0 %v1366_v14  ;;  %2208 = vmatmul.mubr.bf16.gmra.mrb[8].mxu1 %v1366_v14  ;;  %v10426_v42 = vpack.c.bf16 %v1195_v31, %v1194_v8  ;;  %v8831_v16 = vpop.eup %8830  ;;  %v1254_v35 = vor.u32 %v1252_v63, %v1251_v55  ;;  %v1168_v52 = vadd.f32 1.0, %v8829_v12  ;;  %v10441_v58 = vmul.f32 0.5, %v10346_v38 }
 0x328   : > { %7515 = vmatpush3.bf16.msra.mxu0 %v10241_v7  ;;  %1741 = vmatprep.mubr.bf16.mxu0 %v10399_v29  ;;  %v10432_v51 = vpack.c.bf16 %v1197_v61, %v1196_v56  ;;  %v8833_v57 = vpop.eup %8832  ;;  %v1198_v7 = vmul.f32 %v1166_v30, %v10349_v43  ;;  %v1199_v44 = vmul.f32 %v1167_v5, %v10352_v32  ;;  %v1169_v8 = vadd.f32 1.0, %v8831_v16  ;;  %v8649_v32 = vld [vmem:[#allocation11 + $0x158] sm:$0xff]   ;;  %v8650_v61 = vld [vmem:[#allocation11 + $0x160] sm:$0xff]  }
 0x329   : > { %2215 = vmatprep.mubr.bf16.mxu1 %v10399_v29  ;;  %7516 = vmatprep.subr.bf16.mxu0 %v8647_v13  ;;  %v8835_v27 = vpop.eup %8834  ;;  %v1170_v18 = vadd.f32 1.0, %v8833_v57  ;;  %v1200_v21 = vmul.f32 %v1168_v52, %v10354_v36  ;;  %v10447_v28 = vmul.f32 0.5, %v10370_v49  ;;  %v10451_v43 = vsel %vm10232_vm3, 0, %v1254_v35 }
 0x32a   : > { %v10443_v17 = vpack.c.bf16 %v1199_v44, %v1198_v7  ;;  %v1171_v24 = vadd.f32 1.0, %v8835_v27  ;;  %v1258_v38 = vrot.slane %v1256_v41, 7  ;;  %v1201_v20 = vmul.f32 %v1169_v8, %v10357_v47 }
 0x32b   : > { %v1202_v36 = vmul.f32 %v1170_v18, %v10364_v39  ;;  %8838 = vtanh.f32 %v10441_v58  ;;  %v10462_v49 = vmul.f32 0.5, %v10373_v54  ;;  %v1259_v31 = vshll.u32 %v10411_v34, 16  ;;  %v8837_v55 = vpop.eup %8836 }
 0x32c   : > { %7517 = vmatpush3.bf16.msra.mxu0 %v8647_v13  ;;  %v1203_v13 = vmul.f32 %v1171_v24, %v10381_v11  ;;  %v1263_v47 = vshrl.u32 %v10417_v26, 16  ;;  %v10468_v14 = vpack.c.bf16 %v1201_v20, %v1200_v21  ;;  %8840 = vtanh.f32 %v10447_v28  ;;  %v8654_v20 = vld [vmem:[#allocation11 + $0x170] sm:$0xff]  }
 0x32d   : > { %7518 = vmatprep.subr.bf16.mxu0 %v8648_v9  ;;  %v10474_v11 = vmul.f32 0.5, %v10378_v60  ;;  %v10477_v54 = vmul.f32 0.5, %v10394_v23  ;;  %v1261_v56 = vor.u32 %v1259_v31, %v1258_v38  ;;  %v1044_v12 = vmul.f32 %v10247_v50, %v10176_v10 }
 0x32e   : > { %v10470_v39 = vpack.c.bf16 %v1203_v13, %v1202_v36  ;;  %v1383_v16 = vrot.slane %v1245_v4, 1  ;;  %8842 = vtanh.f32 %v10462_v49  ;;  %v1045_v60 = vmul.f32 %v10247_v50, %v10181_v15 }
 0x32f   : > { %1742 = vmatmul.mubr.bf16.gmra.mrb[8].mxu0 %v10451_v43  ;;  %2216 = vmatmul.mubr.bf16.gmra.mrb[12].mxu1 %v10451_v43  ;;  %v1265_v23 = vrot.slane %v1263_v47, 7  ;;  %v1266_v30 = vshll.u32 %v10417_v26, 16  ;;  %8844 = vtanh.f32 %v10474_v11  ;;  %v1082_v5 = vadd.f32 %v10260_v6, %v1044_v12 }
 0x330   : > { %1749 = vmatprep.mubr.bf16.mxu0 %v10411_v34  ;;  %2223 = vmatprep.mubr.bf16.mxu1 %v10411_v34  ;;  %v1172_v57 = vadd.f32 1.0, %v8837_v55  ;;  %8846 = vtanh.f32 %v10477_v54  ;;  %v1083_v10 = vadd.f32 %v10260_v6, %v1045_v60  ;;  %v1046_v4 = vmul.f32 %v10247_v50, %v10187_v25 }
 0x331   : > { %7519 = vmatpush3.bf16.msra.mxu0 %v8648_v9  ;;  %v10499_v15 = vsel %vm10232_vm3, 0, %v1261_v56  ;;  %v8652_v9 = vld [vmem:[#allocation11 + $0x168] sm:$0xff]   ;;  %v10501_v27 = vmul.f32 0.5, %v1082_v5  ;;  %v1047_v35 = vmul.f32 %v10247_v50, %v10192_v33  ;;  %v1048_v7 = vmul.f32 %v10247_v50, %v10198_v40 }
 0x332   : > { %7520 = vmatprep.subr.bf16.mxu0 %v8649_v32  ;;  %v1270_v25 = vshrl.u32 %v10426_v42, 16  ;;  %v10510_v44 = vmul.f32 0.5, %v1083_v10  ;;  %v1084_v52 = vadd.f32 %v10260_v6, %v1046_v4  ;;  %v1049_v8 = vmul.f32 %v10247_v50, %v10203_v46 }
 0x333   : > { %v1268_v33 = vor.u32 %v1266_v30, %v1265_v23  ;;  %8848 = vtanh.f32 %v10501_v27  ;;  %v1085_v40 = vadd.f32 %v10260_v6, %v1047_v35  ;;  %v1086_v18 = vadd.f32 %v10260_v6, %v1048_v7  ;;  %v8659_v7 = vld [vmem:[#allocation11 + $0x178] sm:$0xff]  }
 0x334   : > { %v1204_v24 = vmul.f32 %v1172_v57, %v10409_v48  ;;  %8850 = vtanh.f32 %v10510_v44  ;;  %v10524_v46 = vmul.f32 0.5, %v1084_v52  ;;  %v1087_v38 = vadd.f32 %v10260_v6, %v1049_v8 }
 0x335   : > { %7521 = vmatpush3.bf16.msra.mxu0 %v8649_v32  ;;  %v8839_v21 = vpop.eup %8838  ;;  %v10527_v36 = vmul.f32 0.5, %v1085_v40  ;;  %v10529_v13 = vmul.f32 0.5, %v1086_v18  ;;  %v1050_v55 = vmul.f32 %v10247_v50, %v10208_v53  ;;  %v1272_v48 = vrot.slane %v1270_v25, 7 }
 0x336   : > { %7522 = vmatprep.subr.bf16.mxu0 %v8650_v61  ;;  %v1173_v32 = vadd.f32 1.0, %v8839_v21  ;;  %v8841_v56 = vpop.eup %8840  ;;  %8852 = vtanh.f32 %v10524_v46  ;;  %v1051_v12 = vmul.f32 %v10247_v50, %v10213_v59  ;;  %v10545_v53 = vsel %vm10232_vm3, 0, %v1268_v33 }
 0x337   : > { %1750 = vmatmul.mubr.bf16.gmra.mrb[12].mxu0 %v10499_v15  ;;  %2224 = vmatmul.mubr.bf16.gmra.mrb[16].mxu1 %v10499_v15  ;;  %v1174_v23 = vadd.f32 1.0, %v8841_v56  ;;  %8854 = vtanh.f32 %v10527_v36  ;;  %v1088_v5 = vadd.f32 %v10260_v6, %v1050_v55  ;;  %v10551_v59 = vor.u32 %v1383_v16, %v1242_v3  ;;  %v10563_v3 = vld [vmem:[#allocation11 + $0x200] sm:$0xff]  }
 0x338   : > { %1757 = vmatprep.mubr.bf16.mxu0 %v10417_v26  ;;  %2231 = vmatprep.mubr.bf16.mxu1 %v10417_v26  ;;  %v1205_v60 = vmul.f32 %v1173_v32, %v10441_v58  ;;  %v8843_v57 = vpop.eup %8842  ;;  %8856 = vtanh.f32 %v10529_v13  ;;  %v1089_v10 = vadd.f32 %v10260_v6, %v1051_v12  ;;  %v1277_v16 = vshrl.u32 %v10432_v51, 16 }
 0x339   : > { %7523 = vmatpush3.bf16.msra.mxu0 %v8650_v61  ;;  %v10536_v61 = vmul.f32 0.5, %v1087_v38  ;;  %v8845_v50 = vpop.eup %8844  ;;  %v1175_v4 = vadd.f32 1.0, %v8843_v57  ;;  %v1206_v35 = vmul.f32 %v1174_v23, %v10447_v28  ;;  %v1273_v28 = vshll.u32 %v10426_v42, 16  ;;  %7610 = vmatprep.subr.bf16.mxu1 %v10563_v3 }
 0x33a   : > { %7524 = vmatprep.subr.bf16.mxu0 %v8652_v9  ;;  %v10553_v58 = vpack.c.bf16 %v1205_v60, %v1204_v24  ;;  %v8847_v52 = vpop.eup %8846  ;;  %v1176_v6 = vadd.f32 1.0, %v8845_v50  ;;  %v10561_v19 = vmul.f32 0.5, %v1089_v10  ;;  %v1385_v18 = vrot.slane %v1252_v63, 1 }
 0x33b   : > { %8858 = vtanh.f32 %v10536_v61  ;;  %v1207_v8 = vmul.f32 %v1175_v4, %v10462_v49  ;;  %v1177_v33 = vadd.f32 1.0, %v8847_v52  ;;  %v1387_v21 = vrot.slane %v1259_v31, 1 }
 0x33c   : > { %v1208_v40 = vmul.f32 %v1176_v6, %v10474_v11  ;;  %v1275_v38 = vor.u32 %v1273_v28, %v1272_v48  ;;  %v8662_v11 = vld [vmem:[#allocation11 + $0x1c0] sm:$0xff]   ;;  %v10583_v63 = vor.u32 %v1385_v18, %v1249_v45  ;;  %v1389_v56 = vrot.slane %v1266_v30, 1 }
 0x33d   : > { %7525 = vmatpush3.bf16.msra.mxu0 %v8652_v9  ;;  %v10559_v9 = vmul.f32 0.5, %v1088_v5  ;;  %v8849_v24 = vpop.eup %8848  ;;  %v10577_v32 = vpack.c.bf16 %v1207_v8, %v1206_v35  ;;  %v1209_v49 = vmul.f32 %v1177_v33, %v10477_v54  ;;  %v10587_v31 = vor.u32 %v1387_v21, %v1256_v41 }
 0x33e   : > { %7526 = vmatprep.subr.bf16.mxu0 %v8654_v20  ;;  %v1178_v55 = vadd.f32 1.0, %v8849_v24  ;;  %v1279_v54 = vrot.slane %v1277_v16, 7  ;;  %v10598_v45 = vsel %vm10232_vm3, 0, %v1275_v38  ;;  %v1280_v41 = vshll.u32 %v10432_v51, 16 }
 0x33f   : > { %1758 = vmatmul.mubr.bf16.gmra.mrb[16].mxu0 %v10545_v53  ;;  %2232 = vmatmul.mubr.bf16.gmra.mrb[20].mxu1 %v10545_v53  ;;  %8860 = vtanh.f32 %v10559_v9  ;;  %v10593_v48 = vpack.c.bf16 %v1209_v49, %v1208_v40  ;;  %v1284_v57 = vshrl.u32 %v10443_v17, 16  ;;  %v10607_v4 = vor.u32 %v1389_v56, %v1263_v47 }
 0x340   : > { %1765 = vmatprep.mubr.bf16.mxu0 %v10426_v42  ;;  %2239 = vmatprep.mubr.bf16.mxu1 %v10426_v42  ;;  %8862 = vtanh.f32 %v10561_v19  ;;  %v1210_v23 = vmul.f32 %v1178_v55, %v10501_v27  ;;  %v1391_v6 = vrot.slane %v1273_v28, 1  ;;  %v1287_v24 = vshll.u32 %v10443_v17, 16 }
 0x341   : > { %7527 = vmatpush3.bf16.msra.mxu0 %v8654_v20  ;;  %v8851_v20 = vpop.eup %8850  ;;  %v1286_v47 = vrot.slane %v1284_v57, 7  ;;  %v1294_v28 = vshll.u32 %v10468_v14, 16  ;;  %v1301_v55 = vshll.u32 %v10470_v39, 16 }
 0x342   : > { %7528 = vmatprep.subr.bf16.mxu0 %v8659_v7  ;;  %v8853_v12 = vpop.eup %8852  ;;  %v1179_v60 = vadd.f32 1.0, %v8851_v20 }
 0x343   : > { %v8855_v5 = vpop.eup %8854  ;;  %v1180_v50 = vadd.f32 1.0, %v8853_v12 }
 0x344   : > { %v8857_v30 = vpop.eup %8856  ;;  %v1211_v10 = vmul.f32 %v1179_v60, %v10510_v44  ;;  %v1181_v27 = vadd.f32 1.0, %v8855_v5  ;;  %v1315_v5 = vshll.u32 %v10577_v32, 16 }
 0x345   : > { %7529 = vmatpush3.bf16.msra.mxu0 %v8659_v7  ;;  %v8859_v35 = vpop.eup %8858  ;;  %v1282_v7 = vor.u32 %v1280_v41, %v1279_v54  ;;  %v1182_v52 = vadd.f32 1.0, %v8857_v30  ;;  %v1212_v33 = vmul.f32 %v1180_v50, %v10524_v46  ;;  %v10623_v46 = vor.u32 %v1391_v6, %v1270_v25 }
 0x346   : > { %6842 = vmatprep.subr.bf16.mxu0 %v8662_v11  ;;  %v10611_v8 = vpack.c.bf16 %v1211_v10, %v1210_v23  ;;  %v1213_v44 = vmul.f32 %v1181_v27, %v10527_v36  ;;  %v1183_v40 = vadd.f32 1.0, %v8859_v35  ;;  %v1393_v36 = vrot.slane %v1280_v41, 1 }
 0x347   : > { %1766 = vmatmul.mubr.bf16.gmra.mrb[20].mxu0 %v10598_v45  ;;  %2240 = vmatmul.mubr.bf16.gmra.mrb[24].mxu1 %v10598_v45  ;;  %v1214_v18 = vmul.f32 %v1182_v52, %v10529_v13  ;;  %v10627_v13 = vsel %vm10232_vm3, 0, %v1282_v7  ;;  %v1308_v54 = vshll.u32 %v10553_v58, 16  ;;  %v1289_v25 = vor.u32 %v1287_v24, %v1286_v47 }
 0x348   : > { %1773 = vmatprep.mubr.bf16.mxu0 %v10432_v51  ;;  %2247 = vmatprep.mubr.bf16.mxu1 %v10432_v51  ;;  %v10617_v38 = vpack.c.bf16 %v1213_v44, %v1212_v33  ;;  %v1215_v49 = vmul.f32 %v1183_v40, %v10536_v61  ;;  %v10636_v60 = vor.u32 %v1393_v36, %v1277_v16  ;;  %v1291_v23 = vshrl.u32 %v10468_v14, 16 }
 0x349   : > { %v8861_v21 = vpop.eup %8860  ;;  %v1298_v41 = vshrl.u32 %v10470_v39, 16  ;;  %v1395_v30 = vrot.slane %v1287_v24, 1  ;;  %v1397_v16 = vrot.slane %v1294_v28, 1  ;;  %v1322_v10 = vshll.u32 %v10593_v48, 16 }
 0x34a   : > { %v8863_v11 = vpop.eup %8862  ;;  %v1184_v20 = vadd.f32 1.0, %v8861_v21  ;;  %v10630_v56 = vpack.c.bf16 %v1215_v49, %v1214_v18  ;;  %v1329_v50 = vshll.u32 %v10611_v8, 16  ;;  %v1336_v27 = vshll.u32 %v10617_v38, 16 }
 0x34b   : > { %v1185_v61 = vadd.f32 1.0, %v8863_v11  ;;  %v1399_v35 = vrot.slane %v1301_v55, 1  ;;  %v10651_v52 = vor.u32 %v1395_v30, %v1284_v57  ;;  %v10653_v6 = vor.u32 %v1397_v16, %v1291_v23 }
 0x34c   : > { %v1216_v12 = vmul.f32 %v1184_v20, %v10559_v9  ;;  %v1401_v33 = vrot.slane %v1308_v54, 1  ;;  %v1305_v44 = vshrl.u32 %v10553_v58, 16  ;;  %v1403_v18 = vrot.slane %v1315_v5, 1 }
 0x34d   : > { %v1217_v9 = vmul.f32 %v1185_v61, %v10561_v19  ;;  %v1312_v19 = vshrl.u32 %v10577_v32, 16  ;;  %v10657_v40 = vor.u32 %v1399_v35, %v1298_v41  ;;  %v10661_v21 = vsel %vm10232_vm3, 0, %v1289_v25 }
 0x34e   : > { %v1293_v47 = vrot.slane %v1291_v23, 7  ;;  %v1319_v24 = vshrl.u32 %v10593_v48, 16  ;;  %v10664_v49 = vor.u32 %v1401_v33, %v1305_v44  ;;  %v1326_v11 = vshrl.u32 %v10611_v8, 16 }
 0x34f   : > { %1774 = vmatmul.mubr.bf16.gmra.mrb[24].mxu0 %v10627_v13  ;;  %2248 = vmatmul.mubr.bf16.gmra.mrb[28].mxu1 %v10627_v13  ;;  %v10649_v7 = vpack.c.bf16 %v1217_v9, %v1216_v12  ;;  %v10666_v57 = vor.u32 %v1403_v18, %v1312_v19  ;;  %v1405_v20 = vrot.slane %v1322_v10, 1  ;;  %v1407_v36 = vrot.slane %v1329_v50, 1 }
 0x350   : > { %1781 = vmatprep.mubr.bf16.mxu0 %v10443_v17  ;;  %2255 = vmatprep.mubr.bf16.mxu1 %v10443_v17  ;;  %v1409_v61 = vrot.slane %v1336_v27, 1  ;;  %v1333_v12 = vshrl.u32 %v10617_v38, 16  ;;  %v1296_v30 = vor.u32 %v1294_v28, %v1293_v47  ;;  %v1300_v35 = vrot.slane %v1298_v41, 7 }
 0x351   : > { %v10680_v25 = vor.u32 %v1405_v20, %v1319_v24  ;;  %v10682_v23 = vor.u32 %v1407_v36, %v1326_v11  ;;  %v1307_v20 = vrot.slane %v1305_v44, 7  ;;  %v1314_v47 = vrot.slane %v1312_v19, 7 }
 0x352   : > { %v10684_v9 = vor.u32 %v1409_v61, %v1333_v12  ;;  %v10688_v16 = vsel %vm10232_vm3, 0, %v1296_v30  ;;  %v1303_v33 = vor.u32 %v1301_v55, %v1300_v35  ;;  %v6722_v55 = vpop.f32.mrb[4].mxu1  ;;  %v1321_v30 = vrot.slane %v1319_v24, 7 }
 0x353   : > { %v1310_v28 = vor.u32 %v1308_v54, %v1307_v20  ;;  %v1317_v44 = vor.u32 %v1315_v5, %v1314_v47  ;;  %v6723_v36 = vpop.f32.mrb[5].mxu1  ;;  %v1328_v24 = vrot.slane %v1326_v11, 7 }
 0x354   : > { %v10696_v18 = vsel %vm10232_vm3, 0, %v1303_v33  ;;  %v10710_v61 = vadd.f32 %v6723_v36, %v6722_v55  ;;  %v6725_v19 = vpop.f32.mrb[6].mxu1  ;;  %v1324_v5 = vor.u32 %v1322_v10, %v1321_v30  ;;  %v1335_v10 = vrot.slane %v1333_v12, 7 }
 0x355   : > { %v10704_v41 = vsel %vm10232_vm3, 0, %v1310_v28  ;;  %v10714_v54 = vsel %vm10232_vm3, 0, %v1317_v44  ;;  %v6726_v35 = vpop.f32.mrb[7].mxu1  ;;  %v1331_v28 = vor.u32 %v1329_v50, %v1328_v24  ;;  %v1340_v55 = vshrl.u32 %v10630_v56, 16 }
 0x356   : > { %v10720_v33 = vadd.f32 %v6726_v35, %v6725_v19  ;;  %v10726_v20 = vsel %vm10232_vm3, 0, %v1324_v5  ;;  %v1338_v11 = vor.u32 %v1336_v27, %v1335_v10  ;;  %v1343_v44 = vshll.u32 %v10630_v56, 16 }
 0x357   : > { %1782 = vmatmul.mubr.bf16.gmra.mrb[28].mxu0 %v10661_v21  ;;  %2256 = vmatmul.mubr.bf16.gmra.mrb[32].mxu1 %v10661_v21  ;;  %v10736_v47 = vsel %vm10232_vm3, 0, %v1331_v28  ;;  %v1342_v12 = vrot.slane %v1340_v55, 7  ;;  %v1381_v27 = vrot.slane %v12732_v22, 1  ;;  %v12734_v30 = vshrl.u32 %v10649_v7, 16  ;;  %v8678_v22 = vld [vmem:[#allocation11 + $0x220] sm:$0xff]  }
 0x358   : > { %1789 = vmatprep.mubr.bf16.mxu0 %v10468_v14  ;;  %2263 = vmatprep.mubr.bf16.mxu1 %v10468_v14  ;;  %v10747_v50 = vsel %vm10232_vm3, 0, %v1338_v11  ;;  %v12815_v19 = vmov 0  ;;  %v1500_v28 = vshll.u32 %v10649_v7, 16 }
 0x359   : > { %v1345_v36 = vor.u32 %v1343_v44, %v1342_v12  ;;  %v12816_v19 = vsel %vm10760_vm6, 4294967295, %v12815_v19  ;;  %v10766_v35 = vsel %vm10760_vm6, %v1381_v27, 0  ;;  %v1499_v24 = vrot.slane %v12734_v30, 7  ;;  %v8671_v27 = vld [vmem:[#allocation11 + $0x208] sm:$0xff]   ;;  %v8668_v30 = vld [vmem:[#allocation11 + $0x1d8] sm:$0xff]  }
 0x35a   : > { %12817 = vst [vmem:[#allocation40_spill] sm:$0xff] %v12816_v19  ;;  %12818 = vst [vmem:[#allocation41_spill] sm:$0xff] %v10766_v35  ;;  %v1433_v12 = vsel %vm10760_vm6, %v10551_v59, 0  ;;  %v10799_v59 = vsel %vm10760_vm6, %v10587_v31, 0  ;;  %v8666_v31 = vld [vmem:[#allocation11 + $0x1d0] sm:$0xff]  }
 0x35b   : > { %v10770_v5 = vsel %vm10232_vm3, 0, %v1345_v36  ;;  %v1502_v10 = vor.u32 %v1500_v28, %v1499_v24  ;;  %v10792_v36 = vsel %vm10760_vm6, %v10583_v63, 0  ;;  %v8674_v24 = vld [vmem:[#allocation11 + $0x210] sm:$0xff]   ;;  %v8675_v63 = vld [vmem:[#allocation11 + $0x218] sm:$0xff]  }
 0x35d   : > { %v10783_v11 = vsel %vm10232_vm3, 0, %v1502_v10  ;;  %v8663_v10 = vld [vmem:[#allocation11 + $0x180] sm:$0xff]  }
 0x35f   : > { %1790 = vmatmul.mubr.bf16.gmra.mrb[32].mxu0 %v10688_v16  ;;  %2264 = vmatmul.mubr.bf16.gmra.mrb[36].mxu1 %v10688_v16 }
 0x360   : > { %1797 = vmatprep.mubr.bf16.mxu0 %v10470_v39  ;;  %2271 = vmatprep.mubr.bf16.mxu1 %v10470_v39 }
 0x367   : > { %1798 = vmatmul.mubr.bf16.gmra.mrb[36].mxu0 %v10696_v18  ;;  %2272 = vmatmul.mubr.bf16.gmra.mrb[40].mxu1 %v10696_v18 }
 0x368   : > { %1805 = vmatprep.mubr.bf16.mxu0 %v10553_v58  ;;  %2279 = vmatprep.mubr.bf16.mxu1 %v10553_v58 }
 0x36f   : > { %1806 = vmatmul.mubr.bf16.gmra.mrb[40].mxu0 %v10704_v41  ;;  %2280 = vmatmul.mubr.bf16.gmra.mrb[44].mxu1 %v10704_v41 }
 0x370   : > { %1813 = vmatprep.mubr.bf16.mxu0 %v10577_v32  ;;  %2287 = vmatprep.mubr.bf16.mxu1 %v10577_v32 }
 0x377   : > { %1814 = vmatmul.mubr.bf16.gmra.mrb[44].mxu0 %v10714_v54  ;;  %2288 = vmatmul.mubr.bf16.gmra.mrb[48].mxu1 %v10714_v54 }
 0x378   : > { %1821 = vmatprep.mubr.bf16.mxu0 %v10593_v48  ;;  %2295 = vmatprep.mubr.bf16.mxu1 %v10593_v48 }
 0x37f   : > { %1822 = vmatmul.mubr.bf16.gmra.mrb[48].mxu0 %v10726_v20  ;;  %2296 = vmatmul.mubr.bf16.gmra.mrb[52].mxu1 %v10726_v20 }
 0x380   : > { %1829 = vmatprep.mubr.bf16.mxu0 %v10611_v8  ;;  %2303 = vmatprep.mubr.bf16.mxu1 %v10611_v8 }
 0x387   : > { %1830 = vmatmul.mubr.bf16.gmra.mrb[52].mxu0 %v10736_v47  ;;  %2304 = vmatmul.mubr.bf16.gmra.mrb[56].mxu1 %v10736_v47 }
 0x388   : > { %1837 = vmatprep.mubr.bf16.mxu0 %v10617_v38  ;;  %2311 = vmatprep.mubr.bf16.mxu1 %v10617_v38 }
 0x38f   : > { %1838 = vmatmul.mubr.bf16.gmra.mrb[56].mxu0 %v10747_v50  ;;  %2312 = vmatmul.mubr.bf16.gmra.mrb[60].mxu1 %v10747_v50 }
 0x390   : > { %1845 = vmatprep.mubr.bf16.mxu0 %v10630_v56  ;;  %2319 = vmatprep.mubr.bf16.mxu1 %v10630_v56 }
 0x397   : > { %1846 = vmatmul.mubr.bf16.gmra.mrb[60].mxu0 %v10770_v5  ;;  %2320 = vmatmul.mubr.bf16.gmra.mrb[64].mxu1 %v10770_v5 }
 0x398   : > { %1853 = vmatprep.mubr.bf16.mxu0 %v10649_v7  ;;  %7578 = vmatprep.mubr.bf16.mxu1 %v10766_v35 }
 0x39f   : > { %1854 = vmatmul.mubr.bf16.gmra.mrb[64].mxu0 %v10783_v11  ;;  %7579 = vmatmul.mubr.bf16.vlgmr.msra.gmra.mrb[68].mxu1 %v1433_v12 }
 0x3a0   : > { %7530 = vmatprep.mubr.bf16.mxu0 %v1433_v12  ;;  %7582 = vmatprep.mubr.bf16.mxu1 %v10792_v36  ;;  %v8665_v12 = vld [vmem:[#allocation11 + $0x188] sm:$0xff]  }
 0x3a1   : > { %7611 = vmatpush3.bf16.msra.mxu1 %v10563_v3  ;;  %v10807_v3 = vsel %vm10760_vm6, %v10607_v4, 0  ;;  %v8679_v4 = vld [vmem:[#allocation11 + $0x228] sm:$0xff]  }
 0x3a2   : > { %7612 = vmatprep.subr.bf16.mxu1 %v8671_v27 }
 0x3a5   : > { %7613 = vmatpush3.bf16.msra.mxu1 %v8671_v27  ;;  %v8667_v27 = vld [vmem:[#allocation11 + $0x190] sm:$0xff]  }
 0x3a6   : > { %7614 = vmatprep.subr.bf16.mxu1 %v8674_v24 }
 0x3a7   : > { %7531 = vmatmul.mubr.bf16.vlgmr.msra.gmra.mrb[68].mxu0 %v10792_v36  ;;  %7583 = vmatmul.mubr.bf16.gmra.mrb[72].mxu1 %v10799_v59 }
 0x3a8   : > { %6843 = vmatpush3.bf16.msra.mxu0 %v8663_v10  ;;  %7534 = vmatprep.mubr.bf16.mxu0 %v10799_v59  ;;  %v10813_v10 = vsel %vm10760_vm6, %v10623_v46, 0  ;;  %v8672_v46 = vld [vmem:[#allocation11 + $0x1e0] sm:$0xff]  }
 0x3a9   : > { %7586 = vmatprep.mubr.bf16.mxu1 %v10807_v3  ;;  %6844 = vmatprep.subr.bf16.mxu0 %v8664_v1  ;;  %v10820_v1 = vsel %vm10760_vm6, %v10636_v60, 0  ;;  %v10827_v60 = vsel %vm10760_vm6, %v10651_v52, 0  ;;  %v8680_v52 = vld [vmem:[#allocation11 + $0x1f0] sm:$0xff]  }
 0x3aa   : > { %7615 = vmatpush3.bf16.msra.mxu1 %v8674_v24  ;;  %v8669_v24 = vld [vmem:[#allocation11 + $0x198] sm:$0xff]  }
 0x3ab   : > { %7616 = vmatprep.subr.bf16.mxu1 %v8675_v63 }
 0x3ac   : > { %6845 = vmatpush3.bf16.msra.mxu0 %v8665_v12  ;;  %v8682_v12 = vld [vmem:[#allocation11 + $0x230] sm:$0xff]  }
 0x3ad   : > { %6846 = vmatprep.subr.bf16.mxu0 %v8666_v31  ;;  %v8676_v31 = vld [vmem:[#allocation11 + $0x1e8] sm:$0xff]  }
 0x3ae   : > { %7617 = vmatpush3.bf16.msra.mxu1 %v8675_v63  ;;  %v8673_v63 = vld [vmem:[#allocation11 + $0x1a0] sm:$0xff]  }
 0x3af   : > { %7535 = vmatmul.mubr.bf16.gmra.mrb[72].mxu0 %v10807_v3  ;;  %7587 = vmatmul.mubr.bf16.gmra.mrb[76].mxu1 %v10813_v10 }
 0x3b0   : > { %7538 = vmatprep.mubr.bf16.mxu0 %v10813_v10  ;;  %7590 = vmatprep.mubr.bf16.mxu1 %v10820_v1 }
 0x3b1   : > { %6847 = vmatpush3.bf16.msra.mxu0 %v8667_v27  ;;  %7618 = vmatprep.subr.bf16.mxu1 %v8678_v22  ;;  %v8677_v27 = vld [vmem:[#allocation11 + $0x1a8] sm:$0xff]  }
 0x3b2   : > { %6848 = vmatprep.subr.bf16.mxu0 %v8668_v30  ;;  %7619 = vmatpush3.bf16.msra.mxu1 %v8678_v22  ;;  %v1440_v22 = vsel %vm10760_vm6, %v10653_v6, 0  ;;  %v8683_v30 = vld [vmem:[#allocation11 + $0x238] sm:$0xff]  }
 0x3b3   : > { %7620 = vmatprep.subr.bf16.mxu1 %v8679_v4  ;;  %v8684_v6 = vld [vmem:[#allocation11 + $0x1f8] sm:$0xff]  }
 0x3b5   : > { %6849 = vmatpush3.bf16.msra.mxu0 %v8669_v24  ;;  %v1441_v24 = vsel %vm10760_vm6, %v10657_v40, 0  ;;  %v1444_v40 = vsel %vm10760_vm6, %v10680_v25, 0 }
 0x3b6   : > { %6850 = vmatprep.subr.bf16.mxu0 %v8672_v46  ;;  %7621 = vmatpush3.bf16.msra.mxu1 %v8679_v4  ;;  %v8681_v4 = vld [vmem:[#allocation11 + $0x1b0] sm:$0xff]   ;;  %v1442_v46 = vsel %vm10760_vm6, %v10664_v49, 0  ;;  %v1445_v49 = vsel %vm10760_vm6, %v10682_v23, 0  ;;  %v1505_v23 = vrot.slane %v1500_v28, 1 }
 0x3b7   : > { %7539 = vmatmul.mubr.bf16.gmra.mrb[76].mxu0 %v10820_v1  ;;  %7591 = vmatmul.mubr.bf16.gmra.mrb[80].mxu1 %v10827_v60 }
 0x3b8   : > { %7542 = vmatprep.mubr.bf16.mxu0 %v10827_v60  ;;  %7594 = vmatprep.mubr.bf16.mxu1 %v1440_v22 }
 0x3b9   : > { %6851 = vmatpush3.bf16.msra.mxu0 %v8673_v63  ;;  %7622 = vmatprep.subr.bf16.mxu1 %v8682_v12  ;;  %v8685_v63 = vld [vmem:[#allocation11 + $0x1b8] sm:$0xff]  }
 0x3ba   : > { %6852 = vmatprep.subr.bf16.mxu0 %v8676_v31  ;;  %7623 = vmatpush3.bf16.msra.mxu1 %v8682_v12  ;;  %v1443_v12 = vsel %vm10760_vm6, %v10666_v57, 0  ;;  %v1411_v31 = vrot.slane %v1343_v44, 1  ;;  %v1446_v57 = vsel %vm10760_vm6, %v10684_v9, 0  ;;  %v12819_v9 = vshrl.u32 %v10649_v7, 16 }
 0x3bb   : > { %7624 = vmatprep.subr.bf16.mxu1 %v8683_v30 }
 0x3bc   : > { %v1412_v25 = vor.u32 %v1411_v31, %v1340_v55  ;;  %v1506_v44 = vor.u32 %v1505_v23, %v12819_v9 }
 0x3bd   : > { %6853 = vmatpush3.bf16.msra.mxu0 %v8677_v27 }
 0x3be   : > { %6854 = vmatprep.subr.bf16.mxu0 %v8680_v52  ;;  %7625 = vmatpush3.bf16.msra.mxu1 %v8683_v30  ;;  %v10860_v30 = vsel %vm10760_vm6, %v1412_v25, 0  ;;  %v10871_v55 = vsel %vm10760_vm6, %v1506_v44, 0 }
 0x3bf   : > { %7543 = vmatmul.mubr.bf16.gmra.mrb[80].mxu0 %v1440_v22  ;;  %7595 = vmatmul.mubr.bf16.gmra.mrb[84].mxu1 %v1441_v24 }
 0x3c0   : > { %7546 = vmatprep.mubr.bf16.mxu0 %v1441_v24  ;;  %7598 = vmatprep.mubr.bf16.mxu1 %v1442_v46 }
 0x3c1   : > { %6855 = vmatpush3.bf16.msra.mxu0 %v8681_v4 }
 0x3c2   : > { %6856 = vmatprep.subr.bf16.mxu0 %v8684_v6 }
 0x3c5   : > { %6857 = vmatpush3.bf16.msra.mxu0 %v8685_v63 }
 0x3c6   : > { %7968 = vmatprep.subr.bf16.mxu0 %v12735_v0 }
 0x3c7   : > { %7547 = vmatmul.mubr.bf16.gmra.mrb[84].mxu0 %v1442_v46  ;;  %7599 = vmatmul.mubr.bf16.gmra.mrb[88].mxu1 %v1443_v12 }
 0x3c8   : > { %7550 = vmatprep.mubr.bf16.mxu0 %v1443_v12  ;;  %7602 = vmatprep.mubr.bf16.mxu1 %v1444_v40 }
 0x3cf   : > { %7551 = vmatmul.mubr.bf16.gmra.mrb[88].mxu0 %v1444_v40  ;;  %7603 = vmatmul.mubr.bf16.gmra.mrb[92].mxu1 %v1445_v49 }
 0x3d0   : > { %7554 = vmatprep.mubr.bf16.mxu0 %v1445_v49  ;;  %7606 = vmatprep.mubr.bf16.mxu1 %v1446_v57 }
 0x3d7   : > { %7555 = vmatmul.mubr.bf16.gmra.mrb[92].mxu0 %v1446_v57  ;;  %7607 = vmatmul.mubr.bf16.gmra.mrb[96].mxu1 %v10860_v30 }
 0x3d8   : > { %7558 = vmatprep.mubr.bf16.mxu0 %v10860_v30  ;;  %7626 = vmatprep.mubr.bf16.mxu1 %v10792_v36 }
 0x3df   : > { %7559 = vmatmul.mubr.bf16.gmra.mrb[96].mxu0 %v10871_v55  ;;  %7627 = vmatmul.mubr.bf16.vlgmr.msra.gmra.mrb[68].mxu1 %v10799_v59 }
 0x3e0   : > { %2713 = vmatprep.mubr.bf16.mxu0 %v10399_v29  ;;  %7630 = vmatprep.mubr.bf16.mxu1 %v10807_v3 }
 0x3e7   : > { %2714 = vmatmul.mubr.bf16.vlgmr.msra.gmra.mrb[100].mxu0 %v10451_v43  ;;  %7631 = vmatmul.mubr.bf16.gmra.mrb[72].mxu1 %v10813_v10 }
 0x3e8   : > { %2721 = vmatprep.mubr.bf16.mxu0 %v10411_v34  ;;  %7634 = vmatprep.mubr.bf16.mxu1 %v10820_v1 }
 0x3ef   : > { %2722 = vmatmul.mubr.bf16.gmra.mrb[104].mxu0 %v10499_v15  ;;  %7635 = vmatmul.mubr.bf16.gmra.mrb[76].mxu1 %v10827_v60 }
 0x3f0   : > { %2729 = vmatprep.mubr.bf16.mxu0 %v10417_v26  ;;  %7638 = vmatprep.mubr.bf16.mxu1 %v1440_v22 }
 0x3f7   : > { %2730 = vmatmul.mubr.bf16.gmra.mrb[108].mxu0 %v10545_v53  ;;  %7639 = vmatmul.mubr.bf16.gmra.mrb[80].mxu1 %v1441_v24 }
 0x3f8   : > { %2737 = vmatprep.mubr.bf16.mxu0 %v10426_v42  ;;  %7642 = vmatprep.mubr.bf16.mxu1 %v1442_v46 }
 0x3fa   : > { %v6586_v29 = vpop.f32.mrb[4].mxu0  ;;  %v6728_v43 = vpop.f32.mrb[8].mxu1 }
 0x3fb   : > { %v6587_v28 = vpop.f32.mrb[5].mxu0  ;;  %v6729_v36 = vpop.f32.mrb[9].mxu1 }
 0x3fc   : > { %v10886_v34 = vadd.f32 %v6729_v36, %v6728_v43  ;;  %v6589_v59 = vpop.f32.mrb[6].mxu0  ;;  %v6731_v3 = vpop.f32.mrb[10].mxu1  ;;  %v10888_v15 = vadd.f32 %v6587_v28, %v6586_v29 }
 0x3fd   : > { %v6590_v10 = vpop.f32.mrb[7].mxu0  ;;  %v6732_v1 = vpop.f32.mrb[11].mxu1 }
 0x3fe   : > { %v10890_v26 = vadd.f32 %v6732_v1, %v6731_v3  ;;  %v10892_v60 = vadd.f32 %v6590_v10, %v6589_v59 }
 0x3ff   : > { %2738 = vmatmul.mubr.bf16.gmra.mrb[112].mxu0 %v10598_v45  ;;  %7643 = vmatmul.mubr.bf16.gmra.mrb[84].mxu1 %v1443_v12 }
 0x400   : > { %2745 = vmatprep.mubr.bf16.mxu0 %v10432_v51  ;;  %7646 = vmatprep.mubr.bf16.mxu1 %v1444_v40 }
 0x402   : > { %v6592_v42 = vpop.f32.mrb[8].mxu0  ;;  %v6734_v53 = vpop.f32.mrb[12].mxu1 }
 0x403   : > { %v6593_v22 = vpop.f32.mrb[9].mxu0  ;;  %v6735_v27 = vpop.f32.mrb[13].mxu1 }
 0x404   : > { %v10896_v52 = vadd.f32 %v6735_v27, %v6734_v53  ;;  %v6595_v4 = vpop.f32.mrb[10].mxu0  ;;  %v6737_v24 = vpop.f32.mrb[14].mxu1  ;;  %v10898_v6 = vadd.f32 %v6593_v22, %v6592_v42 }
 0x405   : > { %v6596_v46 = vpop.f32.mrb[11].mxu0  ;;  %v6738_v63 = vpop.f32.mrb[15].mxu1 }
 0x406   : > { %v10900_v31 = vadd.f32 %v6738_v63, %v6737_v24  ;;  %v10902_v25 = vadd.f32 %v6596_v46, %v6595_v4 }
 0x407   : > { %2746 = vmatmul.mubr.bf16.gmra.mrb[116].mxu0 %v10627_v13  ;;  %7647 = vmatmul.mubr.bf16.gmra.mrb[88].mxu1 %v1445_v49 }
 0x408   : > { %2753 = vmatprep.mubr.bf16.mxu0 %v10443_v17  ;;  %7650 = vmatprep.mubr.bf16.mxu1 %v1446_v57 }
 0x40a   : > { %v6598_v51 = vpop.f32.mrb[12].mxu0  ;;  %v6740_v45 = vpop.f32.mrb[16].mxu1 }
 0x40b   : > { %v6599_v12 = vpop.f32.mrb[13].mxu0  ;;  %v6741_v40 = vpop.f32.mrb[17].mxu1 }
 0x40c   : > { %v10906_v23 = vadd.f32 %v6741_v40, %v6740_v45  ;;  %v6601_v9 = vpop.f32.mrb[14].mxu0  ;;  %v6743_v44 = vpop.f32.mrb[18].mxu1  ;;  %v10908_v29 = vadd.f32 %v6599_v12, %v6598_v51 }
 0x40d   : > { %v6602_v43 = vpop.f32.mrb[15].mxu0  ;;  %v6744_v28 = vpop.f32.mrb[19].mxu1 }
 0x40e   : > { %v10910_v36 = vadd.f32 %v6744_v28, %v6743_v44  ;;  %v10912_v59 = vadd.f32 %v6602_v43, %v6601_v9 }
 0x40f   : > { %2754 = vmatmul.mubr.bf16.gmra.mrb[120].mxu0 %v10661_v21  ;;  %7651 = vmatmul.mubr.bf16.gmra.mrb[92].mxu1 %v10860_v30 }
 0x410   : > { %2761 = vmatprep.mubr.bf16.mxu0 %v10468_v14  ;;  %7654 = vmatprep.mubr.bf16.mxu1 %v10871_v55 }
 0x412   : > { %v6604_v17 = vpop.f32.mrb[16].mxu0  ;;  %v6746_v13 = vpop.f32.mrb[20].mxu1 }
 0x413   : > { %v6605_v49 = vpop.f32.mrb[17].mxu0  ;;  %v6747_v57 = vpop.f32.mrb[21].mxu1 }
 0x414   : > { %v10918_v3 = vadd.f32 %v6747_v57, %v6746_v13  ;;  %v6607_v10 = vpop.f32.mrb[18].mxu0  ;;  %v6749_v1 = vpop.f32.mrb[22].mxu1  ;;  %v10920_v42 = vadd.f32 %v6605_v49, %v6604_v17 }
 0x415   : > { %v6608_v53 = vpop.f32.mrb[19].mxu0  ;;  %v6750_v22 = vpop.f32.mrb[23].mxu1 }
 0x416   : > { %v10922_v27 = vadd.f32 %v6750_v22, %v6749_v1  ;;  %v10924_v21 = vadd.f32 %v6608_v53, %v6607_v10 }
 0x417   : > { %2762 = vmatmul.mubr.bf16.gmra.mrb[124].mxu0 %v10688_v16  ;;  %7655 = vmatmul.mubr.bf16.gmra.mrb[96].mxu1 %v10766_v35 }
 0x418   : > { %2769 = vmatprep.mubr.bf16.mxu0 %v10470_v39 }
 0x41a   : > { %v6610_v14 = vpop.f32.mrb[20].mxu0  ;;  %v6752_v30 = vpop.f32.mrb[24].mxu1 }
 0x41b   : > { %v6611_v55 = vpop.f32.mrb[21].mxu0  ;;  %v6753_v4 = vpop.f32.mrb[25].mxu1 }
 0x41c   : > { %v10929_v24 = vadd.f32 %v6753_v4, %v6752_v30  ;;  %v6613_v46 = vpop.f32.mrb[22].mxu0  ;;  %v6755_v63 = vpop.f32.mrb[26].mxu1  ;;  %v10931_v51 = vadd.f32 %v6611_v55, %v6610_v14 }
 0x41d   : > { %v6614_v45 = vpop.f32.mrb[23].mxu0  ;;  %v6756_v12 = vpop.f32.mrb[27].mxu1 }
 0x41e   : > { %v10933_v40 = vadd.f32 %v6756_v12, %v6755_v63  ;;  %v10935_v9 = vadd.f32 %v6614_v45, %v6613_v46 }
 0x41f   : > { %2770 = vmatmul.mubr.bf16.gmra.mrb[128].mxu0 %v10696_v18 }
 0x420   : > { %2777 = vmatprep.mubr.bf16.mxu0 %v10553_v58 }
 0x422   : > { %v6616_v39 = vpop.f32.mrb[24].mxu0  ;;  %v6758_v16 = vpop.f32.mrb[28].mxu1 }
 0x423   : > { %v6617_v44 = vpop.f32.mrb[25].mxu0  ;;  %v6759_v43 = vpop.f32.mrb[29].mxu1 }
 0x424   : > { %v10939_v28 = vadd.f32 %v6759_v43, %v6758_v16  ;;  %v6619_v17 = vpop.f32.mrb[26].mxu0  ;;  %v6761_v13 = vpop.f32.mrb[30].mxu1  ;;  %v10941_v49 = vadd.f32 %v6617_v44, %v6616_v39 }
 0x425   : > { %v6620_v57 = vpop.f32.mrb[27].mxu0  ;;  %v6762_v10 = vpop.f32.mrb[31].mxu1 }
 0x426   : > { %v10943_v1 = vadd.f32 %v6762_v10, %v6761_v13  ;;  %v10945_v53 = vadd.f32 %v6620_v57, %v6619_v17 }
 0x427   : > { %2778 = vmatmul.mubr.bf16.gmra.mrb[132].mxu0 %v10704_v41 }
 0x428   : > { %2785 = vmatprep.mubr.bf16.mxu0 %v10577_v32 }
 0x42a   : > { %v6622_v58 = vpop.f32.mrb[28].mxu0  ;;  %v6764_v18 = vpop.f32.mrb[32].mxu1 }
 0x42b   : > { %v6623_v22 = vpop.f32.mrb[29].mxu0  ;;  %v6765_v14 = vpop.f32.mrb[33].mxu1 }
 0x42c   : > { %v10949_v30 = vadd.f32 %v6765_v14, %v6764_v18  ;;  %v6625_v55 = vpop.f32.mrb[30].mxu0  ;;  %v6767_v4 = vpop.f32.mrb[34].mxu1  ;;  %v10951_v46 = vadd.f32 %v6623_v22, %v6622_v58 }
 0x42d   : > { %v6626_v63 = vpop.f32.mrb[31].mxu0  ;;  %v6768_v45 = vpop.f32.mrb[35].mxu1 }
 0x42e   : > { %v10953_v12 = vadd.f32 %v6768_v45, %v6767_v4  ;;  %v10955_v39 = vadd.f32 %v6626_v63, %v6625_v55 }
 0x42f   : > { %2786 = vmatmul.mubr.bf16.gmra.mrb[136].mxu0 %v10714_v54 }
 0x430   : > { %2793 = vmatprep.mubr.bf16.mxu0 %v10593_v48 }
 0x432   : > { %v6628_v32 = vpop.f32.mrb[32].mxu0  ;;  %v6770_v41 = vpop.f32.mrb[36].mxu1 }
 0x433   : > { %v6629_v16 = vpop.f32.mrb[33].mxu0  ;;  %v6771_v44 = vpop.f32.mrb[37].mxu1 }
 0x434   : > { %v10959_v43 = vadd.f32 %v6771_v44, %v6770_v41  ;;  %v6631_v17 = vpop.f32.mrb[34].mxu0  ;;  %v6773_v13 = vpop.f32.mrb[38].mxu1  ;;  %v10961_v57 = vadd.f32 %v6629_v16, %v6628_v32 }
 0x435   : > { %v6632_v10 = vpop.f32.mrb[35].mxu0  ;;  %v6774_v58 = vpop.f32.mrb[39].mxu1 }
 0x436   : > { %v10963_v18 = vadd.f32 %v6774_v58, %v6773_v13  ;;  %v10965_v22 = vadd.f32 %v6632_v10, %v6631_v17 }
 0x437   : > { %2794 = vmatmul.mubr.bf16.gmra.mrb[140].mxu0 %v10726_v20 }
 0x438   : > { %2801 = vmatprep.mubr.bf16.mxu0 %v10611_v8 }
 0x43a   : > { %v6634_v48 = vpop.f32.mrb[36].mxu0  ;;  %v6776_v54 = vpop.f32.mrb[40].mxu1 }
 0x43b   : > { %v6635_v14 = vpop.f32.mrb[37].mxu0  ;;  %v6777_v55 = vpop.f32.mrb[41].mxu1 }
 0x43c   : > { %v10969_v4 = vadd.f32 %v6777_v55, %v6776_v54  ;;  %v6637_v63 = vpop.f32.mrb[38].mxu0  ;;  %v6779_v45 = vpop.f32.mrb[42].mxu1  ;;  %v10971_v32 = vadd.f32 %v6635_v14, %v6634_v48 }
 0x43d   : > { %v6638_v41 = vpop.f32.mrb[39].mxu0  ;;  %v6780_v16 = vpop.f32.mrb[43].mxu1 }
 0x43e   : > { %v10973_v44 = vadd.f32 %v6780_v16, %v6779_v45  ;;  %v10975_v17 = vadd.f32 %v6638_v41, %v6637_v63 }
 0x43f   : > { %2802 = vmatmul.mubr.bf16.gmra.mrb[144].mxu0 %v10736_v47 }
 0x440   : > { %2809 = vmatprep.mubr.bf16.mxu0 %v10617_v38 }
 0x442   : > { %v6640_v8 = vpop.f32.mrb[40].mxu0  ;;  %v6782_v20 = vpop.f32.mrb[44].mxu1 }
 0x443   : > { %v6641_v13 = vpop.f32.mrb[41].mxu0  ;;  %v6783_v10 = vpop.f32.mrb[45].mxu1 }
 0x444   : > { %v10979_v58 = vadd.f32 %v6783_v10, %v6782_v20  ;;  %v6643_v54 = vpop.f32.mrb[42].mxu0  ;;  %v6785_v55 = vpop.f32.mrb[46].mxu1  ;;  %v10981_v48 = vadd.f32 %v6641_v13, %v6640_v8 }
 0x445   : > { %v6644_v14 = vpop.f32.mrb[43].mxu0  ;;  %v6786_v0 = vpop.f32.mrb[47].mxu1 }
 0x446   : > { %12820 = vst [vmem:[#allocation42_spill] sm:$0xff] %v10979_v58  ;;  %v10983_v45 = vadd.f32 %v6786_v0, %v6785_v55  ;;  %v10985_v63 = vadd.f32 %v6644_v14, %v6643_v54 }
 0x447   : > { %2810 = vmatmul.mubr.bf16.gmra.mrb[148].mxu0 %v10747_v50 }
 0x448   : > { %12821 = vst [vmem:[#allocation43_spill] sm:$0xff] %v10983_v45  ;;  %2817 = vmatprep.mubr.bf16.mxu0 %v10630_v56 }
 0x44a   : > { %v6646_v38 = vpop.f32.mrb[44].mxu0  ;;  %v6788_v47 = vpop.f32.mrb[48].mxu1 }
 0x44b   : > { %v6647_v41 = vpop.f32.mrb[45].mxu0  ;;  %v6789_v16 = vpop.f32.mrb[49].mxu1 }
 0x44c   : > { %v10989_v20 = vadd.f32 %v6647_v41, %v6646_v38  ;;  %v10991_v10 = vadd.f32 %v6789_v16, %v6788_v47  ;;  %v6649_v8 = vpop.f32.mrb[46].mxu0  ;;  %v6791_v13 = vpop.f32.mrb[50].mxu1 }
 0x44d   : > { %v6650_v35 = vpop.f32.mrb[47].mxu0  ;;  %v6792_v62 = vpop.f32.mrb[51].mxu1 }
 0x44e   : > { %v10993_v0 = vadd.f32 %v6650_v35, %v6649_v8  ;;  %v10995_v54 = vadd.f32 %v6792_v62, %v6791_v13 }
 0x44f   : > { %2818 = vmatmul.mubr.bf16.gmra.mrb[152].mxu0 %v10770_v5  ;;  %v12826_v5 = vmov 0  }
 0x450   : > { %12822 = vst [vmem:[#allocation44_spill] sm:$0xff] %v10993_v0  ;;  %12823 = vst [vmem:[#allocation45_spill] sm:$0xff] %v10995_v54  ;;  %2825 = vmatprep.mubr.bf16.mxu0 %v10649_v7  ;;  %v3222_v0 = vld [vmem:[#allocation17 + $0x18] sm:$0xff] }
 0x452   : > { %v6652_v56 = vpop.f32.mrb[48].mxu0  ;;  %v6794_v50 = vpop.f32.mrb[52].mxu1 }
 0x453   : > { %v6653_v55 = vpop.f32.mrb[49].mxu0  ;;  %v6795_v14 = vpop.f32.mrb[53].mxu1 }
 0x454   : > { %v10999_v38 = vadd.f32 %v6653_v55, %v6652_v56  ;;  %v11001_v47 = vadd.f32 %v6795_v14, %v6794_v50  ;;  %v6655_v41 = vpop.f32.mrb[50].mxu0  ;;  %v6797_v16 = vpop.f32.mrb[54].mxu1  ;;  %v3219_v56 = vld [vmem:[#allocation17] sm:$0xff]  ;;  %v3220_v55 = vld [vmem:[#allocation17 + $0x8] sm:$0xff] }
 0x455   : > { %v6656_v19 = vpop.f32.mrb[51].mxu0  ;;  %v6798_v37 = vpop.f32.mrb[55].mxu1 }
 0x456   : > { %12824 = vst [vmem:[#allocation46_spill] sm:$0xff] %v11001_v47  ;;  %v11003_v35 = vadd.f32 %v6656_v19, %v6655_v41  ;;  %v11005_v62 = vadd.f32 %v6798_v37, %v6797_v16  ;;  %v11013_v19 = vpack.c.bf16 %v3220_v55, %v3219_v56 }
 0x457   : > { %2826 = vmatmul.mubr.bf16.gmra.mrb[156].mxu0 %v10783_v11 }
 0x458   : > { %12825 = vst [vmem:[#allocation47_spill] sm:$0xff] %v11005_v62  ;;  %2833 = vmatprep.mubr.bf16.mxu0 %v12826_v5  ;;  %12829 = vst [vmem:[#allocation50_spill] sm:$0xff] %v11013_v19  ;;  %7970 = vmatpush3.bf16.msra.mxu0 %v11013_v19  ;;  %v12832_v5 = vmov 0.0|0.0  }
 0x459   : > { %7971 = vmatprep.subr.bf16.mxu0 %v12832_v5 }
 0x45a   : > { %v6658_v7 = vpop.f32.mrb[52].mxu0  ;;  %v6800_v8 = vpop.f32.mrb[56].mxu1 }
 0x45b   : > { %v6659_v13 = vpop.f32.mrb[53].mxu0  ;;  %v6801_v45 = vpop.f32.mrb[57].mxu1 }
 0x45c   : > { %v11009_v50 = vadd.f32 %v6659_v13, %v6658_v7  ;;  %v11011_v14 = vadd.f32 %v6801_v45, %v6800_v8  ;;  %v6661_v47 = vpop.f32.mrb[54].mxu0  ;;  %v6803_v54 = vpop.f32.mrb[58].mxu1  ;;  %v12833_v7 = vmov 0.0  }
 0x45d   : > { %v6662_v37 = vpop.f32.mrb[55].mxu0  ;;  %v6804_v41 = vpop.f32.mrb[59].mxu1 }
 0x45e   : > { %12827 = vst [vmem:[#allocation48_spill] sm:$0xff] %v11009_v50  ;;  %12828 = vst [vmem:[#allocation49_spill] sm:$0xff] %v11011_v14  ;;  %v11015_v16 = vadd.f32 %v6662_v37, %v6661_v47  ;;  %v11017_v11 = vadd.f32 %v6804_v41, %v6803_v54  ;;  %v3221_v50 = vld [vmem:[#allocation17 + $0x10] sm:$0xff] }
 0x45f   : > { %2834 = vmatmul.mubr.bf16.gmra.mrb[160].mxu0 %v10238_v2 }
 0x460   : > { %12830 = vst [vmem:[#allocation51_spill] sm:$0xff] %v11015_v16  ;;  %12831 = vst [vmem:[#allocation52_spill] sm:$0xff] %v11017_v11  ;;  %7690 = vmatprep.mubr.msk.f32.mxu0 %vm9461_vm0, %v12833_v7 }
 0x462   : > { %v6664_v45 = vpop.f32.mrb[56].mxu0  ;;  %v6806_v8 = vpop.f32.mrb[60].mxu1 }
 0x463   : > { %v6665_v13 = vpop.f32.mrb[57].mxu0  ;;  %v6807_v56 = vpop.f32.mrb[61].mxu1 }
 0x464   : > { %v11024_v55 = vadd.f32 %v6665_v13, %v6664_v45  ;;  %v11026_v62 = vadd.f32 %v6807_v56, %v6806_v8  ;;  %v6667_v47 = vpop.f32.mrb[58].mxu0  ;;  %v6809_v54 = vpop.f32.mrb[62].mxu1  ;;  %v11036_v56 = vpack.c.bf16 %v3222_v0, %v3221_v50 }
 0x465   : > { %v6668_v37 = vpop.f32.mrb[59].mxu0  ;;  %v6810_v41 = vpop.f32.mrb[63].mxu1 }
 0x466   : > { %12834 = vst [vmem:[#allocation53_spill] sm:$0xff] %v11024_v55  ;;  %12835 = vst [vmem:[#allocation54_spill] sm:$0xff] %v11026_v62  ;;  %v11028_v19 = vadd.f32 %v6668_v37, %v6667_v47  ;;  %v11030_v2 = vadd.f32 %v6810_v41, %v6809_v54  ;;  %7973 = vmatpush3.bf16.msra.mxu0 %v11036_v56 }
 0x467   : > { %12837 = vst [vmem:[#allocation56_spill] sm:$0xff] %v11036_v56  ;;  %7974 = vmatprep.subr.bf16.mxu0 %v12832_v5 }
 0x468   : > { %12836 = vst [vmem:[#allocation55_spill] sm:$0xff] %v11030_v2 }
 0x46a   : > { %v6670_v11 = vpop.f32.mrb[60].mxu0  ;;  %v6812_v16 = vpop.f32.mrb[64].mxu1 }
 0x46b   : > { %v6671_v14 = vpop.f32.mrb[61].mxu0  ;;  %v6813_v7 = vpop.f32.mrb[65].mxu1 }
 0x46c   : > { %v11032_v58 = vadd.f32 %v6671_v14, %v6670_v11  ;;  %v11034_v45 = vadd.f32 %v6813_v7, %v6812_v16  ;;  %v6673_v8 = vpop.f32.mrb[62].mxu0  ;;  %v6815_v13 = vpop.f32.mrb[66].mxu1 }
 0x46d   : > { %v6674_v62 = vpop.f32.mrb[63].mxu0  ;;  %v6816_v55 = vpop.f32.mrb[67].mxu1 }
 0x46e   : > { %v11038_v47 = vadd.f32 %v6674_v62, %v6673_v8  ;;  %v11040_v54 = vadd.f32 %v6816_v55, %v6815_v13  ;;  %v3223_v62 = vld [vmem:[#allocation17 + $0x20] sm:$0xff]  ;;  %v3224_v8 = vld [vmem:[#allocation17 + $0x28] sm:$0xff] }
 0x46f   : > { %v11050_v56 = vpack.c.bf16 %v3224_v8, %v3223_v62 }
 0x470   : > { %12838 = vst [vmem:[#allocation57_spill] sm:$0xff] %v11040_v54 }
 0x471   : > { %12839 = vst [vmem:[#allocation58_spill] sm:$0xff] %v11050_v56  ;;  %7976 = vmatpush3.bf16.msra.mxu0 %v11050_v56 }
 0x472   : > { %v6676_v37 = vpop.f32.mrb[64].mxu0  ;;  %7977 = vmatprep.subr.bf16.mxu0 %v12832_v5 }
 0x473   : > { %v6677_v41 = vpop.f32.mrb[65].mxu0 }
 0x474   : > { %v11044_v14 = vadd.f32 %v6677_v41, %v6676_v37  ;;  %v6679_v16 = vpop.f32.mrb[66].mxu0 }
 0x475   : > { %v6680_v11 = vpop.f32.mrb[67].mxu0 }
 0x476   : > { %v11046_v7 = vadd.f32 %v6680_v11, %v6679_v16 }
 0x47a   : > { %v7532_v0 = vpop.f32.mrb[68].mxu0 }
 0x47b   : > { %v1905_v50 = vadd.f32 %v7532_v0, %v10898_v6  ;;  %v1896_v2 = vpop.f32.mrb[69].mxu0 }
 0x47c   : > { %v1897_v55 = vadd.f32 %v10888_v15, %v1896_v2  ;;  %v7533_v13 = vpop.f32.mrb[70].mxu0 }
 0x47d   : > { %v11053_v54 = vadd.f32 %v10886_v34, %v1905_v50  ;;  %v1908_v37 = vadd.f32 %v7533_v13, %v10902_v25  ;;  %v1899_v41 = vpop.f32.mrb[71].mxu0 }
 0x47e   : > { %v11057_v16 = vadd.f32 %v10710_v61, %v1897_v55  ;;  %v1900_v11 = vadd.f32 %v10892_v60, %v1899_v41 }
 0x47f   : > { %v11062_v6 = vadd.f32 %v10890_v26, %v1908_v37  ;;  %v3226_v37 = vld [vmem:[#allocation17 + $0x38] sm:$0xff] }
 0x480   : > { %v11066_v2 = vadd.f32 %v10720_v33, %v1900_v11 }
 0x482   : > { %v7536_v34 = vpop.f32.mrb[72].mxu0 }
 0x483   : > { %v1921_v15 = vadd.f32 %v7536_v34, %v10920_v42  ;;  %v1912_v25 = vpop.f32.mrb[73].mxu0 }
 0x484   : > { %v1913_v0 = vadd.f32 %v10908_v29, %v1912_v25  ;;  %v7537_v61 = vpop.f32.mrb[74].mxu0 }
 0x485   : > { %v11071_v50 = vadd.f32 %v10906_v23, %v1921_v15  ;;  %v1924_v60 = vadd.f32 %v7537_v61, %v10924_v21  ;;  %v1915_v62 = vpop.f32.mrb[75].mxu0  ;;  %v3225_v23 = vld [vmem:[#allocation17 + $0x30] sm:$0xff] }
 0x486   : > { %v11075_v26 = vadd.f32 %v10896_v52, %v1913_v0  ;;  %v1916_v8 = vadd.f32 %v10912_v59, %v1915_v62  ;;  %v11086_v11 = vpack.c.bf16 %v3226_v37, %v3225_v23 }
 0x487   : > { %v11079_v33 = vadd.f32 %v10910_v36, %v1924_v60 }
 0x488   : > { %v11082_v42 = vadd.f32 %v10900_v31, %v1916_v8  ;;  %12840 = vst [vmem:[#allocation59_spill] sm:$0xff] %v11086_v11  ;;  %7979 = vmatpush3.bf16.msra.mxu0 %v11086_v11 }
 0x489   : > { %7980 = vmatprep.subr.bf16.mxu0 %v12832_v5 }
 0x48a   : > { %v7540_v55 = vpop.f32.mrb[76].mxu0 }
 0x48b   : > { %v1937_v29 = vadd.f32 %v7540_v55, %v10941_v49  ;;  %v1928_v13 = vpop.f32.mrb[77].mxu0  ;;  %v3228_v55 = vld [vmem:[#allocation17 + $0x48] sm:$0xff] }
 0x48c   : > { %v1929_v21 = vadd.f32 %v10931_v51, %v1928_v13  ;;  %v7541_v41 = vpop.f32.mrb[78].mxu0 }
 0x48d   : > { %v11089_v52 = vadd.f32 %v10929_v24, %v1937_v29  ;;  %v1940_v36 = vadd.f32 %v7541_v41, %v10945_v53  ;;  %v1931_v59 = vpop.f32.mrb[79].mxu0 }
 0x48e   : > { %v11093_v31 = vadd.f32 %v10918_v3, %v1929_v21  ;;  %v1932_v34 = vadd.f32 %v10935_v9, %v1931_v59 }
 0x48f   : > { %v11098_v49 = vadd.f32 %v10933_v40, %v1940_v36 }
 0x490   : > { %v11102_v51 = vadd.f32 %v10922_v27, %v1932_v34  ;;  %v12843_v34 = vld [vmem:[#allocation44_spill] sm:$0xff] }
 0x492   : > { %v7544_v24 = vpop.f32.mrb[80].mxu0 }
 0x493   : > { %v1953_v15 = vadd.f32 %v7544_v24, %v10961_v57  ;;  %v1944_v53 = vpop.f32.mrb[81].mxu0 }
 0x494   : > { %v1945_v25 = vadd.f32 %v10951_v46, %v1944_v53  ;;  %v7545_v3 = vpop.f32.mrb[82].mxu0  ;;  %v12845_v53 = vld [vmem:[#allocation43_spill] sm:$0xff] }
 0x495   : > { %v11107_v0 = vadd.f32 %v10949_v30, %v1953_v15  ;;  %v1956_v9 = vadd.f32 %v7545_v3, %v10965_v22  ;;  %v1947_v61 = vpop.f32.mrb[83].mxu0  ;;  %v3227_v30 = vld [vmem:[#allocation17 + $0x40] sm:$0xff] }
 0x496   : > { %v11111_v40 = vadd.f32 %v10939_v28, %v1945_v25  ;;  %v1948_v60 = vadd.f32 %v10955_v39, %v1947_v61  ;;  %v11122_v13 = vpack.c.bf16 %v3228_v55, %v3227_v30  ;;  %v3230_v61 = vld [vmem:[#allocation17 + $0x58] sm:$0xff] }
 0x497   : > { %v11115_v27 = vadd.f32 %v10953_v12, %v1956_v9 }
 0x498   : > { %v11118_v57 = vadd.f32 %v10943_v1, %v1948_v60  ;;  %12841 = vst [vmem:[#allocation60_spill] sm:$0xff] %v11122_v13  ;;  %7982 = vmatpush3.bf16.msra.mxu0 %v11122_v13  ;;  %v12847_v60 = vld [vmem:[#allocation48_spill] sm:$0xff] }
 0x499   : > { %7983 = vmatprep.subr.bf16.mxu0 %v12832_v5 }
 0x49a   : > { %v7548_v62 = vpop.f32.mrb[84].mxu0 }
 0x49b   : > { %v1969_v46 = vadd.f32 %v7548_v62, %v10981_v48  ;;  %v1960_v8 = vpop.f32.mrb[85].mxu0 }
 0x49c   : > { %v1961_v22 = vadd.f32 %v10971_v32, %v1960_v8  ;;  %v7549_v29 = vpop.f32.mrb[86].mxu0  ;;  %v12849_v8 = vld [vmem:[#allocation49_spill] sm:$0xff] }
 0x49d   : > { %v11125_v28 = vadd.f32 %v10969_v4, %v1969_v46  ;;  %v1972_v12 = vadd.f32 %v7549_v29, %v10985_v63  ;;  %v1963_v39 = vpop.f32.mrb[87].mxu0  ;;  %v12850_v29 = vld [vmem:[#allocation46_spill] sm:$0xff] }
 0x49e   : > { %v11129_v1 = vadd.f32 %v10959_v43, %v1961_v22  ;;  %v1964_v23 = vadd.f32 %v10975_v17, %v1963_v39  ;;  %v12851_v39 = vld [vmem:[#allocation51_spill] sm:$0xff] }
 0x49f   : > { %v11134_v48 = vadd.f32 %v10973_v44, %v1972_v12  ;;  %v12842_v44 = vld [vmem:[#allocation42_spill] sm:$0xff] }
 0x4a0   : > { %v11138_v32 = vadd.f32 %v10963_v18, %v1964_v23  ;;  %v12844_v18 = vld [vmem:[#allocation45_spill] sm:$0xff] }
 0x4a2   : > { %v7552_v4 = vpop.f32.mrb[88].mxu0 }
 0x4a3   : > { %v1985_v37 = vadd.f32 %v7552_v4, %v10999_v38  ;;  %v1976_v63 = vpop.f32.mrb[89].mxu0  ;;  %v12852_v4 = vld [vmem:[#allocation52_spill] sm:$0xff] }
 0x4a4   : > { %v1977_v21 = vadd.f32 %v10989_v20, %v1976_v63  ;;  %v7553_v43 = vpop.f32.mrb[90].mxu0  ;;  %v12846_v20 = vld [vmem:[#allocation53_spill] sm:$0xff]  ;;  %v12853_v63 = vld [vmem:[#allocation47_spill] sm:$0xff] }
 0x4a5   : > { %v11143_v41 = vadd.f32 %v10991_v10, %v1985_v37  ;;  %v1988_v17 = vadd.f32 %v7553_v43, %v11003_v35  ;;  %v1979_v36 = vpop.f32.mrb[91].mxu0  ;;  %v3229_v10 = vld [vmem:[#allocation17 + $0x50] sm:$0xff] }
 0x4a6   : > { %v11147_v59 = vadd.f32 %v12842_v44, %v1977_v21  ;;  %v1980_v24 = vadd.f32 %v12843_v34, %v1979_v36  ;;  %v11158_v46 = vpack.c.bf16 %v3230_v61, %v3229_v10 }
 0x4a7   : > { %v11151_v15 = vadd.f32 %v12844_v18, %v1988_v17 }
 0x4a8   : > { %v11154_v38 = vadd.f32 %v12845_v53, %v1980_v24  ;;  %12848 = vst [vmem:[#allocation42_spill] sm:$0xff] %v11158_v46  ;;  %7985 = vmatpush3.bf16.msra.mxu0 %v11158_v46 }
 0x4a9   : > { %7986 = vmatprep.subr.bf16.mxu0 %v12832_v5 }
 0x4aa   : > { %v7556_v25 = vpop.f32.mrb[92].mxu0 }
 0x4ab   : > { %v2001_v3 = vadd.f32 %v7556_v25, %v12846_v20  ;;  %v1992_v9 = vpop.f32.mrb[93].mxu0 }
 0x4ac   : > { %v1993_v35 = vadd.f32 %v12847_v60, %v1992_v9  ;;  %v7557_v62 = vpop.f32.mrb[94].mxu0  ;;  %v12855_v9 = vld [vmem:[#allocation54_spill] sm:$0xff]  ;;  %v12856_v60 = vld [vmem:[#allocation57_spill] sm:$0xff] }
 0x4ad   : > { %v11161_v30 = vadd.f32 %v12849_v8, %v2001_v3  ;;  %v2004_v55 = vadd.f32 %v7557_v62, %v11028_v19  ;;  %v1995_v22 = vpop.f32.mrb[95].mxu0 }
 0x4ae   : > { %v11165_v12 = vadd.f32 %v12850_v29, %v1993_v35  ;;  %v1996_v23 = vadd.f32 %v12851_v39, %v1995_v22  ;;  %v12858_v35 = vld [vmem:[#allocation55_spill] sm:$0xff]  ;;  %v3231_v22 = vld [vmem:[#allocation17 + $0x60] sm:$0xff]  ;;  %v3232_v29 = vld [vmem:[#allocation17 + $0x68] sm:$0xff] }
 0x4af   : > { %v11170_v37 = vadd.f32 %v12852_v4, %v2004_v55  ;;  %v11192_v4 = vpack.c.bf16 %v3232_v29, %v3231_v22 }
 0x4b0   : > { %v11174_v21 = vadd.f32 %v12853_v63, %v1996_v23 }
 0x4b1   : > { %12859 = vst [vmem:[#allocation43_spill] sm:$0xff] %v11192_v4  ;;  %7988 = vmatpush3.bf16.msra.mxu0 %v11192_v4 }
 0x4b2   : > { %v7560_v43 = vpop.f32.mrb[96].mxu0  ;;  %v7628_v17 = vpop.f32.mrb[68].mxu1  ;;  %7989 = vmatprep.subr.bf16.mxu0 %v12832_v5 }
 0x4b3   : > { %v2017_v19 = vadd.f32 %v7560_v43, %v11044_v14  ;;  %v2008_v36 = vpop.f32.mrb[97].mxu0  ;;  %v2876_v44 = vpop.f32.mrb[69].mxu1 }
 0x4b4   : > { %v2009_v34 = vadd.f32 %v11032_v58, %v2008_v36  ;;  %v7561_v24 = vpop.f32.mrb[98].mxu0  ;;  %v7629_v18 = vpop.f32.mrb[70].mxu1 }
 0x4b5   : > { %v11179_v53 = vadd.f32 %v11034_v45, %v2017_v19  ;;  %v2020_v25 = vadd.f32 %v7561_v24, %v11046_v7  ;;  %v2011_v20 = vpop.f32.mrb[99].mxu0  ;;  %v2879_v3 = vpop.f32.mrb[71].mxu1 }
 0x4b6   : > { %v11183_v10 = vadd.f32 %v12855_v9, %v2009_v34  ;;  %v2012_v61 = vadd.f32 %v11038_v47, %v2011_v20 }
 0x4b7   : > { %12854 = vst [vmem:[#allocation44_spill] sm:$0xff] %v11179_v53  ;;  %v11187_v14 = vadd.f32 %v12856_v60, %v2020_v25 }
 0x4b8   : > { %v11190_v62 = vadd.f32 %v12858_v35, %v2012_v61 }
 0x4b9   : > { %12857 = vst [vmem:[#allocation45_spill] sm:$0xff] %v11187_v14 }
 0x4ba   : > { %v6858_v58 = vpop.f32.mrb[100].mxu0  ;;  %v7632_v8 = vpop.f32.mrb[72].mxu1 }
 0x4bb   : > { %v6859_v55 = vpop.f32.mrb[101].mxu0  ;;  %v2892_v45 = vpop.f32.mrb[73].mxu1 }
 0x4bc   : > { %v6860_v7 = vadd.f32 %v6859_v55, %v6858_v58  ;;  %v6861_v39 = vpop.f32.mrb[102].mxu0  ;;  %v7633_v23 = vpop.f32.mrb[74].mxu1  ;;  %v3234_v55 = vld [vmem:[#allocation17 + $0x78] sm:$0xff] }
 0x4bd   : > { %v6862_v63 = vpop.f32.mrb[103].mxu0  ;;  %v2895_v43 = vpop.f32.mrb[75].mxu1 }
 0x4be   : > { %v8022_v47 = vadd.f32 %v6860_v7, %v11057_v16  ;;  %v6863_v19 = vadd.f32 %v6862_v63, %v6861_v39  ;;  %v3233_v16 = vld [vmem:[#allocation17 + $0x70] sm:$0xff] }
 0x4bf   : > { %v11204_v7 = vpack.c.bf16 %v3234_v55, %v3233_v16 }
 0x4c0   : > { %v11197_v36 = vadd.f32 %v8022_v47, %v2876_v44  ;;  %v8030_v34 = vadd.f32 %v6863_v19, %v11066_v2 }
 0x4c1   : > { %12860 = vst [vmem:[#allocation53_spill] sm:$0xff] %v11204_v7  ;;  %7991 = vmatpush3.bf16.msra.mxu0 %v11204_v7 }
 0x4c2   : > { %v8031_v24 = vadd.f32 %v8030_v34, %v2879_v3  ;;  %v6864_v25 = vpop.f32.mrb[104].mxu0  ;;  %v11200_v20 = vpop.f32.mrb[76].mxu1  ;;  %7992 = vmatprep.subr.bf16.mxu0 %v12832_v5 }
 0x4c3   : > { %v6865_v9 = vpop.f32.mrb[105].mxu0  ;;  %v2908_v61 = vpop.f32.mrb[77].mxu1 }
 0x4c4   : > { %v6866_v60 = vadd.f32 %v6865_v9, %v6864_v25  ;;  %v6867_v35 = vpop.f32.mrb[106].mxu0  ;;  %v11202_v58 = vpop.f32.mrb[78].mxu1 }
 0x4c5   : > { %v6868_v22 = vpop.f32.mrb[107].mxu0  ;;  %v2911_v29 = vpop.f32.mrb[79].mxu1 }
 0x4c6   : > { %v8018_v44 = vadd.f32 %v6866_v60, %v11053_v54  ;;  %v6869_v39 = vadd.f32 %v6868_v22, %v6867_v35 }
 0x4c8   : > { %v8019_v2 = vadd.f32 %v8018_v44, %v7628_v17  ;;  %v8026_v3 = vadd.f32 %v6869_v39, %v11062_v6 }
 0x4ca   : > { %v8027_v63 = vadd.f32 %v8026_v3, %v7629_v18  ;;  %v6870_v47 = vpop.f32.mrb[108].mxu0  ;;  %v11210_v19 = vpop.f32.mrb[80].mxu1 }
 0x4cb   : > { %v6871_v34 = vpop.f32.mrb[109].mxu0  ;;  %v11212_v25 = vpop.f32.mrb[81].mxu1 }
 0x4cc   : > { %v6872_v9 = vadd.f32 %v6871_v34, %v6870_v47  ;;  %v6873_v16 = vpop.f32.mrb[110].mxu0  ;;  %v11214_v55 = vpop.f32.mrb[82].mxu1 }
 0x4cd   : > { %v6874_v54 = vpop.f32.mrb[111].mxu0  ;;  %v11216_v60 = vpop.f32.mrb[83].mxu1 }
 0x4ce   : > { %v8038_v17 = vadd.f32 %v6872_v9, %v11075_v26  ;;  %v6875_v35 = vadd.f32 %v6874_v54, %v6873_v16 }
 0x4d0   : > { %v8039_v6 = vadd.f32 %v8038_v17, %v2892_v45  ;;  %v8046_v22 = vadd.f32 %v6875_v35, %v11082_v42 }
 0x4d2   : > { %v6876_v18 = vpop.f32.mrb[112].mxu0  ;;  %v11220_v44 = vpop.f32.mrb[84].mxu1  ;;  %v8047_v39 = vadd.f32 %v8046_v22, %v2895_v43 }
 0x4d3   : > { %v6877_v3 = vpop.f32.mrb[113].mxu0  ;;  %v11222_v7 = vpop.f32.mrb[85].mxu1 }
 0x4d4   : > { %v6878_v47 = vadd.f32 %v6877_v3, %v6876_v18  ;;  %v6879_v34 = vpop.f32.mrb[114].mxu0  ;;  %v11224_v4 = vpop.f32.mrb[86].mxu1 }
 0x4d5   : > { %v6880_v46 = vpop.f32.mrb[115].mxu0  ;;  %v11226_v13 = vpop.f32.mrb[87].mxu1 }
 0x4d6   : > { %v8034_v26 = vadd.f32 %v6878_v47, %v11071_v50  ;;  %v6881_v9 = vadd.f32 %v6880_v46, %v6879_v34  ;;  %v11238_v50 = vld [vmem:[#allocation13] ss:$0 sm:$0xff] }
 0x4d7   : > { %v3042_v47 = vadd.f32 %v11197_v36, %v11238_v50 }
 0x4d8   : > { %v8035_v45 = vadd.f32 %v8034_v26, %v7632_v8  ;;  %v8042_v42 = vadd.f32 %v6881_v9, %v11079_v33  ;;  %v3043_v8 = vadd.f32 %v8031_v24, %v11238_v50  ;;  %v11247_v26 = vld [vmem:[%s583_s6] ss:$0 sm:$0xff]  ;;  %v3044_v9 = vadd.f32 %v8019_v2, %v11238_v50 }
 0x4da   : > { %v8043_v16 = vadd.f32 %v8042_v42, %v7633_v23  ;;  %v6882_v54 = vpop.f32.mrb[116].mxu0  ;;  %v11230_v43 = vpop.f32.mrb[88].mxu1  ;;  %v11265_v2 = vadd.f32 %v11247_v26, %v3044_v9 }
 0x4db   : > { %v6883_v17 = vpop.f32.mrb[117].mxu0  ;;  %v11232_v35 = vpop.f32.mrb[89].mxu1 }
 0x4dc   : > { %v6884_v22 = vadd.f32 %v6883_v17, %v6882_v54  ;;  %v6885_v18 = vpop.f32.mrb[118].mxu0  ;;  %v11234_v3 = vpop.f32.mrb[90].mxu1 }
 0x4dd   : > { %v6886_v11 = vpop.f32.mrb[119].mxu0  ;;  %v11236_v56 = vpop.f32.mrb[91].mxu1 }
 0x4de   : > { %v8054_v46 = vadd.f32 %v6884_v22, %v11093_v31  ;;  %v6887_v33 = vadd.f32 %v6886_v11, %v6885_v18  ;;  %v11255_v11 = vadd.f32 %v11247_v26, %v3043_v8  ;;  %v3046_v8 = vadd.f32 %v8039_v6, %v11238_v50 }
 0x4e0   : > { %v8055_v23 = vadd.f32 %v8054_v46, %v2908_v61  ;;  %v8062_v34 = vadd.f32 %v6887_v33, %v11102_v51  ;;  %v11260_v51 = vadd.f32 %v11247_v26, %v3042_v47 }
 0x4e2   : > { %v6888_v42 = vpop.f32.mrb[120].mxu0  ;;  %v11250_v54 = vpop.f32.mrb[92].mxu1  ;;  %v8063_v17 = vadd.f32 %v8062_v34, %v2911_v29  ;;  %v3045_v29 = vadd.f32 %v8027_v63, %v11238_v50 }
 0x4e3   : > { %v6889_v5 = vpop.f32.mrb[121].mxu0  ;;  %v11252_v31 = vpop.f32.mrb[93].mxu1 }
 0x4e4   : > { %v6890_v24 = vadd.f32 %v6889_v5, %v6888_v42  ;;  %v6891_v61 = vpop.f32.mrb[122].mxu0  ;;  %v11257_v36 = vpop.f32.mrb[94].mxu1  ;;  %v3113_v5 = vadd.f32 %v11255_v11, %v11260_v51  ;;  %v11276_v14 = vadd.f32 %v11247_v26, %v3045_v29 }
 0x4e5   : > { %v6892_v22 = vpop.f32.mrb[123].mxu0  ;;  %v11262_v18 = vpop.f32.mrb[95].mxu1 }
 0x4e6   : > { %v8050_v46 = vadd.f32 %v6890_v24, %v11089_v52  ;;  %v6893_v33 = vadd.f32 %v6892_v22, %v6891_v61  ;;  %v3114_v42 = vadd.f32 %v3113_v5, %v11265_v2  ;;  %v11284_v61 = vadd.f32 %v11247_v26, %v3046_v8 }
 0x4e8   : > { %v8051_v34 = vadd.f32 %v8050_v46, %v11200_v20  ;;  %v8058_v47 = vadd.f32 %v6893_v33, %v11098_v49  ;;  %v3047_v20 = vadd.f32 %v8047_v39, %v11238_v50  ;;  %v3048_v33 = vadd.f32 %v8035_v45, %v11238_v50 }
 0x4ea   : > { %v8059_v9 = vadd.f32 %v8058_v47, %v11202_v58  ;;  %v6894_v63 = vpop.f32.mrb[124].mxu0  ;;  %v11279_v53 = vpop.f32.mrb[96].mxu1  ;;  %v3115_v58 = vadd.f32 %v3114_v42, %v11276_v14  ;;  %v11296_v8 = vadd.f32 %v11247_v26, %v3047_v20 }
 0x4eb   : > { %12861 = vst [vmem:[#allocation48_spill] sm:$0xff] %v11279_v53  ;;  %v6895_v52 = vpop.f32.mrb[125].mxu0  ;;  %v11281_v24 = vpop.f32.mrb[97].mxu1 }
 0x4ec   : > { %v6896_v6 = vadd.f32 %v6895_v52, %v6894_v63  ;;  %v6897_v49 = vpop.f32.mrb[126].mxu0  ;;  %v11287_v22 = vpop.f32.mrb[98].mxu1  ;;  %v3116_v53 = vadd.f32 %v3115_v58, %v11284_v61  ;;  %v11301_v52 = vadd.f32 %v11247_v26, %v3048_v33 }
 0x4ed   : > { %12862 = vst [vmem:[#allocation49_spill] sm:$0xff] %v11287_v22  ;;  %v6898_v46 = vpop.f32.mrb[127].mxu0  ;;  %v11289_v29 = vpop.f32.mrb[99].mxu1  ;;  %v3049_v22 = vadd.f32 %v8043_v16, %v11238_v50 }
 0x4ee   : > { %12863 = vst [vmem:[#allocation46_spill] sm:$0xff] %v11289_v29  ;;  %v8070_v5 = vadd.f32 %v6896_v6, %v11111_v40  ;;  %v6899_v47 = vadd.f32 %v6898_v46, %v6897_v49  ;;  %v3117_v40 = vadd.f32 %v3116_v53, %v11296_v8  ;;  %v3050_v6 = vadd.f32 %v8055_v23, %v11238_v50 }
 0x4ef   : > { %v11311_v58 = vadd.f32 %v11247_v26, %v3049_v22  ;;  %v3152_v53 = vmul.f32 %v11265_v2, %v11265_v2 }
 0x4f0   : > { %v8071_v39 = vadd.f32 %v8070_v5, %v11212_v25  ;;  %v8078_v63 = vadd.f32 %v6899_v47, %v11118_v57  ;;  %v3151_v25 = vmul.f32 %v11255_v11, %v11255_v11  ;;  %v3118_v57 = vadd.f32 %v3117_v40, %v11301_v52 }
 0x4f1   : > { %v11319_v23 = vadd.f32 %v11247_v26, %v3050_v6 }
 0x4f2   : > { %v6900_v42 = vpop.f32.mrb[128].mxu0  ;;  %v8079_v45 = vadd.f32 %v8078_v63, %v11216_v60  ;;  %v3150_v60 = vmul.f32 %v11260_v51, %v11260_v51  ;;  %v3119_v63 = vadd.f32 %v3118_v57, %v11311_v58 }
 0x4f3   : > { %v6901_v29 = vpop.f32.mrb[129].mxu0 }
 0x4f4   : > { %v6902_v49 = vadd.f32 %v6901_v29, %v6900_v42  ;;  %v6903_v20 = vpop.f32.mrb[130].mxu0  ;;  %v3051_v29 = vadd.f32 %v8063_v17, %v11238_v50  ;;  %v3182_v22 = vadd.f32 %v3151_v25, %v3150_v60  ;;  %v3154_v25 = vmul.f32 %v11284_v61, %v11284_v61 }
 0x4f5   : > { %v6904_v46 = vpop.f32.mrb[131].mxu0 }
 0x4f6   : > { %v8066_v16 = vadd.f32 %v6902_v49, %v11107_v0  ;;  %v6905_v33 = vadd.f32 %v6904_v46, %v6903_v20  ;;  %v3052_v0 = vadd.f32 %v8051_v34, %v11238_v50  ;;  %v3183_v49 = vadd.f32 %v3182_v22, %v3152_v53 }
 0x4f7   : > { %v3153_v20 = vmul.f32 %v11276_v14, %v11276_v14  ;;  %v3120_v46 = vadd.f32 %v3119_v63, %v11319_v23  ;;  %v11331_v17 = vadd.f32 %v11247_v26, %v3051_v29  ;;  %v3054_v29 = vadd.f32 %v8071_v39, %v11238_v50 }
 0x4f8   : > { %v8067_v5 = vadd.f32 %v8066_v16, %v11210_v19  ;;  %v8074_v47 = vadd.f32 %v6905_v33, %v11115_v27  ;;  %v11336_v34 = vadd.f32 %v11247_v26, %v3052_v0  ;;  %v3155_v63 = vmul.f32 %v11296_v8, %v11296_v8 }
 0x4f9   : > { %v3184_v33 = vadd.f32 %v3183_v49, %v3153_v20  ;;  %v3121_v53 = vadd.f32 %v3120_v46, %v11331_v17  ;;  %v3156_v49 = vmul.f32 %v11301_v52, %v11301_v52 }
 0x4fa   : > { %v8075_v42 = vadd.f32 %v8074_v47, %v11214_v55  ;;  %v6906_v40 = vpop.f32.mrb[132].mxu0  ;;  %v3053_v55 = vadd.f32 %v8059_v9, %v11238_v50 }
 0x4fb   : > { %v6907_v6 = vpop.f32.mrb[133].mxu0  ;;  %v3185_v22 = vadd.f32 %v3184_v33, %v3154_v25  ;;  %v3122_v0 = vadd.f32 %v3121_v53, %v11336_v34 }
 0x4fc   : > { %v6908_v19 = vadd.f32 %v6907_v6, %v6906_v40  ;;  %v6909_v27 = vpop.f32.mrb[134].mxu0  ;;  %v11348_v9 = vadd.f32 %v11247_v26, %v3053_v55  ;;  %v3055_v6 = vadd.f32 %v8079_v45, %v11238_v50 }
 0x4fd   : > { %v6910_v57 = vpop.f32.mrb[135].mxu0 }
 0x4fe   : > { %v8086_v16 = vadd.f32 %v6908_v19, %v11129_v1  ;;  %v6911_v60 = vadd.f32 %v6910_v57, %v6909_v27  ;;  %v3123_v25 = vadd.f32 %v3122_v0, %v11348_v9  ;;  %v3056_v57 = vadd.f32 %v8067_v5, %v11238_v50 }
 0x4ff   : > { %v11364_v53 = vadd.f32 %v11247_v26, %v3055_v6 }
 0x500   : > { %v8087_v47 = vadd.f32 %v8086_v16, %v11222_v7  ;;  %v8094_v40 = vadd.f32 %v6911_v60, %v11138_v32  ;;  %v11354_v7 = vadd.f32 %v11247_v26, %v3054_v29  ;;  %v3186_v32 = vadd.f32 %v3185_v22, %v3155_v63 }
 0x501   : > { %v3158_v22 = vmul.f32 %v11319_v23, %v11319_v23  ;;  %v11371_v5 = vadd.f32 %v11247_v26, %v3056_v57 }
 0x502   : > { %v6912_v1 = vpop.f32.mrb[136].mxu0  ;;  %v8095_v20 = vadd.f32 %v8094_v40, %v11226_v13  ;;  %v3187_v33 = vadd.f32 %v3186_v32, %v3156_v49  ;;  %v3157_v13 = vmul.f32 %v11311_v58, %v11311_v58  ;;  %v3124_v60 = vadd.f32 %v3123_v25, %v11354_v7 }
 0x503   : > { %v6913_v39 = vpop.f32.mrb[137].mxu0 }
 0x504   : > { %v6914_v46 = vadd.f32 %v6913_v39, %v6912_v1  ;;  %v6915_v19 = vpop.f32.mrb[138].mxu0  ;;  %v3188_v0 = vadd.f32 %v3187_v33, %v3157_v13  ;;  %v3125_v49 = vadd.f32 %v3124_v60, %v11364_v53  ;;  %v3058_v39 = vadd.f32 %v8087_v47, %v11238_v50 }
 0x505   : > { %v6916_v27 = vpop.f32.mrb[139].mxu0  ;;  %v3059_v57 = vadd.f32 %v8095_v20, %v11238_v50 }
 0x506   : > { %v8082_v55 = vadd.f32 %v6914_v46, %v11125_v28  ;;  %v6917_v16 = vadd.f32 %v6916_v27, %v6915_v19  ;;  %v3057_v28 = vadd.f32 %v8075_v42, %v11238_v50  ;;  %v3159_v46 = vmul.f32 %v11331_v17, %v11331_v17 }
 0x507   : > { %v3126_v32 = vadd.f32 %v3125_v49, %v11371_v5  ;;  %v3160_v27 = vmul.f32 %v11336_v34, %v11336_v34  ;;  %v11387_v47 = vadd.f32 %v11247_v26, %v3058_v39  ;;  %v11399_v20 = vadd.f32 %v11247_v26, %v3059_v57 }
 0x508   : > { %v8083_v45 = vadd.f32 %v8082_v55, %v11220_v44  ;;  %v8090_v29 = vadd.f32 %v6917_v16, %v11134_v48  ;;  %v3189_v48 = vadd.f32 %v3188_v0, %v3158_v22  ;;  %v11381_v42 = vadd.f32 %v11247_v26, %v3057_v28 }
 0x509   : > { %v3161_v22 = vmul.f32 %v11348_v9, %v11348_v9 }
 0x50a   : > { %v8091_v63 = vadd.f32 %v8090_v29, %v11224_v4  ;;  %v6918_v40 = vpop.f32.mrb[140].mxu0  ;;  %v3190_v16 = vadd.f32 %v3189_v48, %v3159_v46  ;;  %v3127_v13 = vadd.f32 %v3126_v32, %v11381_v42  ;;  %v3060_v60 = vadd.f32 %v8083_v45, %v11238_v50 }
 0x50b   : > { %v6919_v1 = vpop.f32.mrb[141].mxu0 }
 0x50c   : > { %v6920_v44 = vadd.f32 %v6919_v1, %v6918_v40  ;;  %v6921_v6 = vpop.f32.mrb[142].mxu0  ;;  %v3128_v0 = vadd.f32 %v3127_v13, %v11387_v47  ;;  %v11404_v45 = vadd.f32 %v11247_v26, %v3060_v60  ;;  %v3061_v39 = vadd.f32 %v8091_v63, %v11238_v50 }
 0x50d   : > { %v6922_v19 = vpop.f32.mrb[143].mxu0 }
 0x50e   : > { %v8102_v4 = vadd.f32 %v6920_v44, %v11147_v59  ;;  %v6923_v25 = vadd.f32 %v6922_v19, %v6921_v6  ;;  %v3191_v59 = vadd.f32 %v3190_v16, %v3160_v27  ;;  %v3129_v48 = vadd.f32 %v3128_v0, %v11399_v20 }
 0x50f   : > { %v3163_v27 = vmul.f32 %v11364_v53, %v11364_v53  ;;  %v11416_v63 = vadd.f32 %v11247_v26, %v3061_v39  ;;  %v3164_v16 = vmul.f32 %v11371_v5, %v11371_v5  ;;  %v3165_v0 = vmul.f32 %v11381_v42, %v11381_v42 }
 0x510   : > { %v8103_v55 = vadd.f32 %v8102_v4, %v11232_v35  ;;  %v8110_v33 = vadd.f32 %v6923_v25, %v11154_v38  ;;  %v3162_v38 = vmul.f32 %v11354_v7, %v11354_v7  ;;  %v3192_v6 = vadd.f32 %v3191_v59, %v3161_v22 }
 0x511   : > { %v3130_v25 = vadd.f32 %v3129_v48, %v11404_v45 }
 0x512   : > { %v6924_v29 = vpop.f32.mrb[144].mxu0  ;;  %v8111_v28 = vadd.f32 %v8110_v33, %v11236_v56  ;;  %v3062_v46 = vadd.f32 %v8103_v55, %v11238_v50  ;;  %v3193_v4 = vadd.f32 %v3192_v6, %v3162_v38 }
 0x513   : > { %v6925_v40 = vpop.f32.mrb[145].mxu0  ;;  %v3131_v59 = vadd.f32 %v3130_v25, %v11416_v63 }
 0x514   : > { %v6926_v35 = vadd.f32 %v6925_v40, %v6924_v29  ;;  %v6927_v1 = vpop.f32.mrb[146].mxu0  ;;  %v3194_v60 = vadd.f32 %v3193_v4, %v3163_v27 }
 0x515   : > { %v6928_v49 = vpop.f32.mrb[147].mxu0 }
 0x516   : > { %v8098_v44 = vadd.f32 %v6926_v35, %v11143_v41  ;;  %v6929_v56 = vadd.f32 %v6928_v49, %v6927_v1  ;;  %v3195_v40 = vadd.f32 %v3194_v60, %v3164_v16  ;;  %v3166_v49 = vmul.f32 %v11387_v47, %v11387_v47 }
 0x518   : > { %v8099_v19 = vadd.f32 %v8098_v44, %v11230_v43  ;;  %v8106_v32 = vadd.f32 %v6929_v56, %v11151_v15  ;;  %v11422_v43 = vadd.f32 %v11247_v26, %v3062_v46  ;;  %v3063_v15 = vadd.f32 %v8111_v28, %v11238_v50 }
 0x519   : > { %v3196_v6 = vadd.f32 %v3195_v40, %v3165_v0  ;;  %v3169_v0 = vmul.f32 %v11416_v63, %v11416_v63 }
 0x51a   : > { %v8107_v41 = vadd.f32 %v8106_v32, %v11234_v3  ;;  %v6930_v57 = vpop.f32.mrb[148].mxu0  ;;  %v3064_v22 = vadd.f32 %v8099_v19, %v11238_v50  ;;  %v3132_v1 = vadd.f32 %v3131_v59, %v11422_v43  ;;  %v11432_v38 = vadd.f32 %v11247_v26, %v3063_v15 }
 0x51b   : > { %v6931_v55 = vpop.f32.mrb[149].mxu0  ;;  %v3197_v27 = vadd.f32 %v3196_v6, %v3166_v49  ;;  %v3170_v49 = vmul.f32 %v11422_v43, %v11422_v43 }
 0x51c   : > { %v6932_v33 = vadd.f32 %v6931_v55, %v6930_v57  ;;  %v6933_v13 = vpop.f32.mrb[150].mxu0  ;;  %v11439_v44 = vadd.f32 %v11247_v26, %v3064_v22  ;;  %v3133_v19 = vadd.f32 %v3132_v1, %v11432_v38  ;;  %v3168_v55 = vmul.f32 %v11404_v45, %v11404_v45 }
 0x51d   : > { %v6934_v29 = vpop.f32.mrb[151].mxu0 }
 0x51e   : > { %v8118_v3 = vadd.f32 %v6932_v33, %v11165_v12  ;;  %v6935_v35 = vadd.f32 %v6934_v29, %v6933_v13  ;;  %v3065_v12 = vadd.f32 %v8107_v41, %v11238_v50  ;;  %v3134_v57 = vadd.f32 %v3133_v19, %v11439_v44 }
 0x520   : > { %v8119_v28 = vadd.f32 %v8118_v3, %v11252_v31  ;;  %v8126_v39 = vadd.f32 %v6935_v35, %v11174_v21  ;;  %v3167_v21 = vmul.f32 %v11399_v20, %v11399_v20  ;;  %v11449_v41 = vadd.f32 %v11247_v26, %v3065_v12 }
 0x522   : > { %v6936_v56 = vpop.f32.mrb[152].mxu0  ;;  %v8127_v48 = vadd.f32 %v8126_v39, %v11262_v18  ;;  %v3066_v32 = vadd.f32 %v8119_v28, %v11238_v50  ;;  %v3198_v29 = vadd.f32 %v3197_v27, %v3167_v21  ;;  %v3135_v59 = vadd.f32 %v3134_v57, %v11449_v41 }
 0x523   : > { %v6937_v46 = vpop.f32.mrb[153].mxu0  ;;  %v3172_v57 = vmul.f32 %v11439_v44, %v11439_v44 }
 0x524   : > { %v6938_v31 = vadd.f32 %v6937_v46, %v6936_v56  ;;  %v6939_v4 = vpop.f32.mrb[154].mxu0  ;;  %v11455_v15 = vadd.f32 %v11247_v26, %v3066_v32  ;;  %v3067_v33 = vadd.f32 %v8127_v48, %v11238_v50  ;;  %v3199_v40 = vadd.f32 %v3198_v29, %v3168_v55 }
 0x525   : > { %v6940_v25 = vpop.f32.mrb[155].mxu0 }
 0x526   : > { %v8114_v16 = vadd.f32 %v6938_v31, %v11161_v30  ;;  %v6941_v18 = vadd.f32 %v6940_v25, %v6939_v4  ;;  %v3136_v1 = vadd.f32 %v3135_v59, %v11455_v15  ;;  %v11467_v28 = vadd.f32 %v11247_v26, %v3067_v33 }
 0x527   : > { %v3200_v6 = vadd.f32 %v3199_v40, %v3169_v0  ;;  %v3171_v31 = vmul.f32 %v11432_v38, %v11432_v38  ;;  %v3173_v0 = vmul.f32 %v11449_v41, %v11449_v41 }
 0x528   : > { %v8115_v13 = vadd.f32 %v8114_v16, %v11250_v54  ;;  %v8122_v60 = vadd.f32 %v6941_v18, %v11170_v37  ;;  %v3137_v46 = vadd.f32 %v3136_v1, %v11467_v28  ;;  %v12864_v16 = vld [vmem:[#allocation46_spill] sm:$0xff] }
 0x529   : > { %v3201_v32 = vadd.f32 %v3200_v6, %v3170_v49  ;;  %v12867_v49 = vld [vmem:[#allocation45_spill] sm:$0xff] }
 0x52a   : > { %v3068_v22 = vadd.f32 %v8115_v13, %v11238_v50  ;;  %v8123_v30 = vadd.f32 %v8122_v60, %v11257_v36  ;;  %v6942_v3 = vpop.f32.mrb[156].mxu0  ;;  %v12868_v6 = vld [vmem:[#allocation49_spill] sm:$0xff] }
 0x52b   : > { %v6943_v35 = vpop.f32.mrb[157].mxu0 }
 0x52c   : > { %v6944_v54 = vadd.f32 %v6943_v35, %v6942_v3  ;;  %v6945_v37 = vpop.f32.mrb[158].mxu0  ;;  %v11472_v12 = vadd.f32 %v11247_v26, %v3068_v22  ;;  %v3069_v36 = vadd.f32 %v8123_v30, %v11238_v50  ;;  %v12865_v22 = vld [vmem:[#allocation44_spill] sm:$0xff] }
 0x52d   : > { %v6946_v39 = vpop.f32.mrb[159].mxu0 }
 0x52e   : > { %v8134_v56 = vadd.f32 %v6944_v54, %v11183_v10  ;;  %v6947_v48 = vadd.f32 %v6946_v39, %v6945_v37  ;;  %v3138_v27 = vadd.f32 %v3137_v46, %v11472_v12  ;;  %v11483_v21 = vadd.f32 %v11247_v26, %v3069_v36  ;;  %v12866_v54 = vld [vmem:[#allocation48_spill] sm:$0xff] }
 0x52f   : > { %v3174_v36 = vmul.f32 %v11455_v15, %v11455_v15 }
 0x530   : > { %v8135_v19 = vadd.f32 %v8134_v56, %v11281_v24  ;;  %v8142_v4 = vadd.f32 %v6947_v48, %v11190_v62  ;;  %v3202_v62 = vadd.f32 %v3201_v32, %v3171_v31  ;;  %v3139_v59 = vadd.f32 %v3138_v27, %v11483_v21 }
 0x531   : > { %v3175_v27 = vmul.f32 %v11467_v28, %v11467_v28 }
 0x532   : > { %v3070_v25 = vadd.f32 %v8135_v19, %v11238_v50  ;;  %v6948_v10 = vpop.f32.mrb[160].mxu0  ;;  %v8143_v18 = vadd.f32 %v8142_v4, %v12864_v16  ;;  %v3203_v40 = vadd.f32 %v3202_v62, %v3172_v57  ;;  %v3176_v57 = vmul.f32 %v11472_v12, %v11472_v12 }
 0x533   : > { %v6949_v24 = vpop.f32.mrb[161].mxu0 }
 0x534   : > { %v11490_v55 = vadd.f32 %v11247_v26, %v3070_v25  ;;  %v6950_v33 = vadd.f32 %v6949_v24, %v6948_v10  ;;  %v6951_v13 = vpop.f32.mrb[162].mxu0  ;;  %v3071_v60 = vadd.f32 %v8143_v18, %v11238_v50  ;;  %v3204_v46 = vadd.f32 %v3203_v40, %v3173_v0 }
 0x535   : > { %v6952_v29 = vpop.f32.mrb[163].mxu0 }
 0x536   : > { %v8130_v30 = vadd.f32 %v6950_v33, %v12865_v22  ;;  %v6953_v3 = vadd.f32 %v6952_v29, %v6951_v13  ;;  %v3140_v35 = vadd.f32 %v3139_v59, %v11490_v55  ;;  %v11499_v1 = vadd.f32 %v11247_v26, %v3071_v60 }
 0x537   : > { %v3205_v4 = vadd.f32 %v3204_v46, %v3174_v36  ;;  %v3178_v62 = vmul.f32 %v11490_v55, %v11490_v55  ;;  %v12872_v36 = vld [vmem:[#allocation56_spill] sm:$0xff]  ;;  %v12874_v46 = vld [vmem:[#allocation59_spill] sm:$0xff] }
 0x538   : > { %v8131_v37 = vadd.f32 %v8130_v30, %v12866_v54  ;;  %v8138_v39 = vadd.f32 %v6953_v3, %v12867_v49  ;;  %v3141_v19 = vadd.f32 %v3140_v35, %v11499_v1  ;;  %v3179_v22 = vmul.f32 %v11499_v1, %v11499_v1  ;;  %v12869_v35 = vld [vmem:[#allocation50_spill] sm:$0xff] }
 0x539   : > { %v3206_v18 = vadd.f32 %v3205_v4, %v3175_v27  ;;  %v12870_v54 = vmov 0.0   ;;  %v12876_v27 = vld [vmem:[#allocation42_spill] sm:$0xff] }
 0x53a   : > { %v3072_v56 = vadd.f32 %v8131_v37, %v11238_v50  ;;  %v8139_v48 = vadd.f32 %v8138_v39, %v12868_v6  ;;  %v12871_v39 = vmov 0.0|0.0   ;;  %v12873_v6 = vld [vmem:[#allocation58_spill] sm:$0xff] }
 0x53b   : > { %v3207_v33 = vadd.f32 %v3206_v18, %v3176_v57  ;;  %v12877_v57 = vld [vmem:[#allocation43_spill] sm:$0xff]  ;;  %v12878_v18 = vld [vmem:[#allocation53_spill] sm:$0xff] }
 0x53c   : > { %v11509_v32 = vadd.f32 %v11247_v26, %v3072_v56  ;;  %v3073_v31 = vadd.f32 %v8139_v48, %v11238_v50  ;;  %v3177_v50 = vmul.f32 %v11483_v21, %v11483_v21 }
 0x53e   : > { %v3142_v25 = vadd.f32 %v3141_v19, %v11509_v32  ;;  %v11516_v10 = vadd.f32 %v11247_v26, %v3073_v31  ;;  %v3208_v29 = vadd.f32 %v3207_v33, %v3177_v50  ;;  %v3180_v3 = vmul.f32 %v11509_v32, %v11509_v32  ;;  %v12875_v31 = vld [vmem:[#allocation60_spill] sm:$0xff]  ;;  %v8687_v50 = vld [vmem:[#allocation19 + $0x148] sm:$0xff]  }
 0x53f   : > { %v8686_v33 = vld [vmem:[#allocation19 + $0x140] sm:$0xff]  }
 0x540   : > { %v3143_v16 = vadd.f32 %v3142_v25, %v11516_v10  ;;  %v3209_v26 = vadd.f32 %v3208_v29, %v3178_v62  ;;  %v3181_v49 = vmul.f32 %v11516_v10, %v11516_v10  ;;  %7728 = vmatprep.subr.bf16.mxu1 %v8686_v33  ;;  %v8690_v62 = vld [vmem:[#allocation19 + $0x100] sm:$0xff]   ;;  %v8689_v29 = vld [vmem:[#allocation19 + $0x158] sm:$0xff]  }
 0x541   : > { %7729 = vmatpush3.bf16.msra.mxu1 %v8686_v33  ;;  %v3379_v33 = vld [vmem:[#allocation14] sm:$0x1] }
 0x542   : > { %v3144_v24 = vrot.slane %v3143_v16, 4  ;;  %v3210_v0 = vadd.f32 %v3209_v26, %v3179_v22  ;;  %7730 = vmatprep.subr.bf16.mxu1 %v8687_v50  ;;  %v8694_v26 = vld [vmem:[#allocation19 + $0xc8] sm:$0xff]   ;;  %v8695_v22 = vld [vmem:[#allocation19 + $0x110] sm:$0xff]  }
 0x544   : > { %v3145_v13 = vadd.f32 %v3144_v24, %v3143_v16  ;;  %v3211_v37 = vadd.f32 %v3210_v0, %v3180_v3  ;;  %v8698_v3 = vld [vmem:[#allocation19 + $0x118] sm:$0xff]   ;;  %v8696_v0 = vld [vmem:[#allocation19 + $0x168] sm:$0xff]  }
 0x545   : > { %7731 = vmatpush3.bf16.msra.mxu1 %v8687_v50 }
 0x546   : > { %v3146_v60 = vrot.slane %v3145_v13, 2  ;;  %v3212_v56 = vadd.f32 %v3211_v37, %v3181_v49  ;;  %v8702_v37 = vld [vmem:[#allocation19 + $0xe0] sm:$0xff]   ;;  %v8703_v49 = vld [vmem:[#allocation19 + $0x128] sm:$0xff]  }
 0x548   : > { %v3147_v59 = vadd.f32 %v3146_v60, %v3145_v13  ;;  %v3213_v48 = vrot.slane %v3212_v56, 4  ;;  %v8688_v13 = vld [vmem:[#allocation19 + $0x150] sm:$0xff]   ;;  %v8692_v60 = vld [vmem:[#allocation19 + $0xc0] sm:$0xff]  }
 0x549   : > { %7732 = vmatprep.subr.bf16.mxu1 %v8688_v13 }
 0x54a   : > { %v3148_v30 = vrot.slane %v3147_v59, 1  ;;  %v3214_v19 = vadd.f32 %v3213_v48, %v3212_v56  ;;  %7733 = vmatpush3.bf16.msra.mxu1 %v8688_v13  ;;  %v8705_v56 = vld [vmem:[#allocation19 + $0x130] sm:$0xff]  }
 0x54b   : > { %7734 = vmatprep.subr.bf16.mxu1 %v8689_v29  ;;  %v8707_v48 = vld [vmem:[#allocation19 + $0xf0] sm:$0xff]  }
 0x54c   : > { %v3149_v40 = vadd.f32 %v3148_v30, %v3147_v59  ;;  %v3215_v4 = vrot.slane %v3214_v19, 2  ;;  %v8693_v59 = vld [vmem:[#allocation19 + $0x108] sm:$0xff]   ;;  %v8697_v30 = vld [vmem:[#allocation19 + $0xd0] sm:$0xff]  }
 0x54e   : > { %7691 = vmatmul.mubr.f32.vlgmr.msra.gmra.mrb[2].mxu0 %v3149_v40  ;;  %v3216_v25 = vadd.f32 %v3215_v4, %v3214_v19  ;;  %7735 = vmatpush3.bf16.msra.mxu1 %v8689_v29  ;;  %v8691_v40 = vld [vmem:[#allocation19 + $0x160] sm:$0xff]   ;;  %v8709_v4 = vld [vmem:[#allocation19 + $0xf8] sm:$0xff]  }
 0x54f   : > { %7994 = vmatpush3.bf16.msra.mxu0 %v12869_v35  ;;  %7725 = vmatprep.mubr.msk.f32.mxu0 %vm9461_vm0, %v12870_v54  ;;  %v8699_v35 = vld [vmem:[#allocation19 + $0xd8] sm:$0xff]   ;;  %v8700_v54 = vld [vmem:[#allocation19 + $0x120] sm:$0xff]  }
 0x550   : > { %7995 = vmatprep.subr.bf16.mxu0 %v12871_v39  ;;  %v3217_v16 = vrot.slane %v3216_v25, 1  ;;  %7736 = vmatprep.subr.bf16.mxu1 %v8691_v40  ;;  %v12879_v29 = vld [vmem:[#allocation39_spill] sm:$0xff] }
 0x552   : > { %v3218_v24 = vadd.f32 %v3217_v16, %v3216_v25  ;;  %7737 = vmatpush3.bf16.msra.mxu1 %v8691_v40 }
 0x553   : > { %7997 = vmatpush3.bf16.msra.mxu0 %v12872_v36  ;;  %7738 = vmatprep.subr.bf16.mxu1 %v8696_v0  ;;  %v8704_v36 = vld [vmem:[#allocation19 + $0xe8] sm:$0xff]  }
 0x554   : > { %7998 = vmatprep.subr.bf16.mxu0 %v12871_v39 }
 0x556   : > { %7739 = vmatpush3.bf16.msra.mxu1 %v8696_v0 }
 0x557   : > { %8000 = vmatpush3.bf16.msra.mxu0 %v12873_v6  ;;  %v8706_v6 = vld [vmem:[#allocation19 + $0x178] sm:$0xff]  }
 0x558   : > { %8001 = vmatprep.subr.bf16.mxu0 %v12871_v39 }
 0x55b   : > { %8003 = vmatpush3.bf16.msra.mxu0 %v12874_v46  ;;  %v8708_v46 = vld [vmem:[#allocation19 + $0x138] sm:$0xff]  }
 0x55c   : > { %8004 = vmatprep.subr.bf16.mxu0 %v12871_v39 }
 0x55f   : > { %8006 = vmatpush3.bf16.msra.mxu0 %v12875_v31 }
 0x560   : > { %8007 = vmatprep.subr.bf16.mxu0 %v12871_v39 }
 0x563   : > { %8009 = vmatpush3.bf16.msra.mxu0 %v12876_v27  ;;  %v8710_v27 = vld [vmem:[#allocation19 + $0x40] sm:$0xff]  }
 0x564   : > { %8010 = vmatprep.subr.bf16.mxu0 %v12871_v39 }
 0x567   : > { %8012 = vmatpush3.bf16.msra.mxu0 %v12877_v57 }
 0x568   : > { %8013 = vmatprep.subr.bf16.mxu0 %v12871_v39  ;;  %v8701_v39 = vld [vmem:[#allocation19 + $0x170] sm:$0xff]  }
 0x569   : > { %7740 = vmatprep.subr.bf16.mxu1 %v8701_v39 }
 0x56a   : > { %7741 = vmatpush3.bf16.msra.mxu1 %v8701_v39 }
 0x56b   : > { %8015 = vmatpush3.bf16.msra.mxu0 %v12878_v18  ;;  %7742 = vmatprep.subr.bf16.mxu1 %v8706_v6 }
 0x56c   : > { %7012 = vmatprep.subr.bf16.mxu0 %v8690_v62  ;;  %v3381_v62 = vld [vmem:[#allocation16] sm:$0x1] }
 0x56e   : > { %7726 = vmatmul.mubr.f32.vlgmr.msra.gmra.mrb[164].mxu0 %v3218_v24  ;;  %7743 = vmatpush3.bf16.msra.mxu1 %v8706_v6 }
 0x56f   : > { %7013 = vmatpush3.bf16.msra.mxu0 %v8692_v60  ;;  %7148 = vmatprep.subr.bf16.mxu1 %v8710_v27 }
 0x570   : > { %7014 = vmatprep.subr.bf16.mxu0 %v8693_v59 }
 0x573   : > { %7015 = vmatpush3.bf16.msra.mxu0 %v8694_v26 }
 0x574   : > { %7016 = vmatprep.subr.bf16.mxu0 %v8695_v22 }
 0x577   : > { %7017 = vmatpush3.bf16.msra.mxu0 %v8697_v30 }
 0x578   : > { %7018 = vmatprep.subr.bf16.mxu0 %v8698_v3 }
 0x57b   : > { %7019 = vmatpush3.bf16.msra.mxu0 %v8699_v35 }
 0x57c   : > { %7020 = vmatprep.subr.bf16.mxu0 %v8700_v54 }
 0x57f   : > { %7021 = vmatpush3.bf16.msra.mxu0 %v8702_v37 }
 0x580   : > { %7022 = vmatprep.subr.bf16.mxu0 %v8703_v49 }
 0x583   : > { %7023 = vmatpush3.bf16.msra.mxu0 %v8704_v36 }
 0x584   : > { %7024 = vmatprep.subr.bf16.mxu0 %v8705_v56 }
 0x587   : > { %7025 = vmatpush3.bf16.msra.mxu0 %v8707_v48 }
 0x588   : > { %7026 = vmatprep.subr.bf16.mxu0 %v8708_v46 }
 0x58b   : > { %7027 = vmatpush3.bf16.msra.mxu0 %v8709_v4 }
 0x621   : > { %v3301_v19 = vpop.f32.mrb[2].mxu0 }
 0x622   : > { %v7692_v31 = vpop.f32.mrb[3].mxu0  ;;  %v3375_v25 = vmul.f32 %v3301_v19, %v3301_v19 }
 0x641   : > { %v3371_v57 = vpop.f32.mrb[164].mxu0 }
 0x642   : > { %v3376_v16 = vsub.f32 %v3371_v57, %v3375_v25  ;;  %v7727_v18 = vpop.f32.mrb[165].mxu0 }
 0x644   : > { %v3377_v24 = vadd.f32 1e-05, %v3376_v16 }
 0x646   : > { %8864 = vrsqrt.f32 %v3377_v24 }
 0x650   : > { %v8865_v50 = vpop.eup %8864 }
 0x651   : > { %v3380_v13 = vmul.f32 %v8865_v50, %v3379_v33 }
 0x653   : > { %v3382_v60 = vmul.f32 %v3380_v13, %v3301_v19  ;;  %v11549_v59 = vrot.slane %v3380_v13, %v12879_v29 }
 0x655   : > { %v3383_v26 = vsub.f32 %v3381_v62, %v3382_v60  ;;  %v3390_v22 = vmul.f32 %v11549_v59, %v11265_v2  ;;  %v3391_v30 = vmul.f32 %v11549_v59, %v11276_v14  ;;  %v3392_v3 = vmul.f32 %v11549_v59, %v11284_v61 }
 0x656   : > { %v3393_v40 = vmul.f32 %v11549_v59, %v11296_v8  ;;  %v3394_v0 = vmul.f32 %v11549_v59, %v11301_v52  ;;  %v3395_v54 = vmul.f32 %v11549_v59, %v11311_v58  ;;  %v3396_v2 = vmul.f32 %v11549_v59, %v11319_v23 }
 0x657   : > { %v11562_v35 = vrot.slane %v3383_v26, %v12879_v29  ;;  %v3397_v14 = vmul.f32 %v11549_v59, %v11331_v17  ;;  %v3398_v61 = vmul.f32 %v11549_v59, %v11336_v34  ;;  %v3399_v8 = vmul.f32 %v11549_v59, %v11348_v9 }
 0x658   : > { %v3400_v52 = vmul.f32 %v11549_v59, %v11354_v7  ;;  %v3401_v37 = vmul.f32 %v11549_v59, %v11364_v53  ;;  %v3402_v58 = vmul.f32 %v11549_v59, %v11371_v5  ;;  %v3403_v23 = vmul.f32 %v11549_v59, %v11381_v42 }
 0x659   : > { %v3404_v17 = vmul.f32 %v11549_v59, %v11387_v47  ;;  %v3405_v34 = vmul.f32 %v11549_v59, %v11399_v20  ;;  %v3406_v9 = vmul.f32 %v11549_v59, %v11404_v45  ;;  %v3407_v7 = vmul.f32 %v11549_v59, %v11416_v63 }
 0x65a   : > { %v3408_v53 = vmul.f32 %v11549_v59, %v11422_v43  ;;  %v3409_v5 = vmul.f32 %v11549_v59, %v11432_v38  ;;  %v3410_v42 = vmul.f32 %v11549_v59, %v11439_v44  ;;  %v3411_v47 = vmul.f32 %v11549_v59, %v11449_v41 }
 0x65b   : > { %v3412_v20 = vmul.f32 %v11549_v59, %v11455_v15  ;;  %v3413_v45 = vmul.f32 %v11549_v59, %v11467_v28  ;;  %v3414_v63 = vmul.f32 %v11549_v59, %v11472_v12  ;;  %v3415_v43 = vmul.f32 %v11549_v59, %v11483_v21 }
 0x65c   : > { %v3416_v38 = vmul.f32 %v11549_v59, %v11490_v55  ;;  %v3417_v44 = vmul.f32 %v11549_v59, %v11499_v1  ;;  %v3418_v41 = vmul.f32 %v11549_v59, %v11509_v32  ;;  %v3419_v15 = vmul.f32 %v11549_v59, %v11516_v10 }
 0x65d   : > { %v3428_v28 = vadd.f32 %v11562_v35, %v3390_v22  ;;  %v3429_v49 = vadd.f32 %v11562_v35, %v3391_v30  ;;  %v3430_v12 = vadd.f32 %v11562_v35, %v3392_v3  ;;  %v3431_v21 = vadd.f32 %v11562_v35, %v3393_v40 }
 0x65e   : > { %v3432_v39 = vadd.f32 %v11562_v35, %v3394_v0  ;;  %v3433_v55 = vadd.f32 %v11562_v35, %v3395_v54  ;;  %v3434_v1 = vadd.f32 %v11562_v35, %v3396_v2  ;;  %v3435_v36 = vadd.f32 %v11562_v35, %v3397_v14 }
 0x65f   : > { %v3436_v32 = vadd.f32 %v11562_v35, %v3398_v61  ;;  %v3437_v10 = vadd.f32 %v11562_v35, %v3399_v8  ;;  %v3438_v56 = vadd.f32 %v11562_v35, %v3400_v52  ;;  %v3439_v6 = vadd.f32 %v11562_v35, %v3401_v37 }
 0x660   : > { %v3440_v48 = vadd.f32 %v11562_v35, %v3402_v58  ;;  %v3441_v46 = vadd.f32 %v11562_v35, %v3403_v23  ;;  %v3442_v19 = vadd.f32 %v11562_v35, %v3404_v17  ;;  %v3443_v31 = vadd.f32 %v11562_v35, %v3405_v34 }
 0x661   : > { %v3444_v4 = vadd.f32 %v11562_v35, %v3406_v9  ;;  %v3445_v27 = vadd.f32 %v11562_v35, %v3407_v7  ;;  %v11633_v25 = vadd.f32 %v11562_v35, %v3408_v53  ;;  %v11636_v57 = vadd.f32 %v11562_v35, %v3409_v5 }
 0x662   : > { %v11639_v16 = vadd.f32 %v11562_v35, %v3410_v42  ;;  %v11642_v18 = vadd.f32 %v11562_v35, %v3411_v47  ;;  %v11645_v24 = vadd.f32 %v11562_v35, %v3412_v20  ;;  %v11648_v33 = vadd.f32 %v11562_v35, %v3413_v45 }
 0x663   : > { %v11651_v50 = vadd.f32 %v11562_v35, %v3414_v63  ;;  %v11654_v13 = vadd.f32 %v11562_v35, %v3415_v43  ;;  %v11657_v62 = vadd.f32 %v11562_v35, %v3416_v38  ;;  %v11660_v60 = vadd.f32 %v11562_v35, %v3417_v44 }
 0x664   : > { %v11663_v29 = vadd.f32 %v11562_v35, %v3418_v41  ;;  %v11666_v26 = vadd.f32 %v11562_v35, %v3419_v15  ;;  %v3460_v22 = vmul.f32 0.5, %v3428_v28  ;;  %v3461_v30 = vmul.f32 0.5, %v3429_v49 }
 0x665   : > { %v3388_v3 = vmul.f32 %v11549_v59, %v11260_v51  ;;  %v3462_v40 = vmul.f32 0.5, %v3430_v12  ;;  %v3389_v0 = vmul.f32 %v11549_v59, %v11255_v11  ;;  %v3463_v54 = vmul.f32 0.5, %v3431_v21 }
 0x666   : > { %8866 = vtanh.f32 %v3460_v22  ;;  %v11678_v61 = vmul.f32 0.5, %v3432_v39  ;;  %v11680_v8 = vmul.f32 0.5, %v3433_v55  ;;  %v11682_v51 = vmul.f32 0.5, %v3434_v1 }
 0x667   : > { %v11673_v2 = vadd.f32 %v11562_v35, %v3388_v3  ;;  %8868 = vtanh.f32 %v3461_v30  ;;  %v11676_v14 = vadd.f32 %v11562_v35, %v3389_v0  ;;  %v11684_v52 = vmul.f32 0.5, %v3435_v36 }
 0x668   : > { %8870 = vtanh.f32 %v3462_v40  ;;  %v11686_v11 = vmul.f32 0.5, %v3436_v32  ;;  %v11689_v59 = vmul.f32 0.5, %v3437_v10  ;;  %v11695_v17 = vmul.f32 0.5, %v3438_v56 }
 0x669   : > { %8872 = vtanh.f32 %v3463_v54  ;;  %v11698_v7 = vmul.f32 0.5, %v3439_v6  ;;  %v11700_v42 = vmul.f32 0.5, %v3440_v48  ;;  %v11702_v45 = vmul.f32 0.5, %v3441_v46 }
 0x66a   : > { %8874 = vtanh.f32 %v11678_v61  ;;  %v11704_v63 = vmul.f32 0.5, %v3442_v19  ;;  %v11709_v15 = vmul.f32 0.5, %v3443_v31  ;;  %v11712_v49 = vmul.f32 0.5, %v3444_v4  ;;  %v8729_v19 = vld [vmem:[#allocation19 + $0x1c0] sm:$0xff]  }
 0x66b   : > { %8876 = vtanh.f32 %v11680_v8  ;;  %v11715_v21 = vmul.f32 0.5, %v3445_v27  ;;  %v11719_v55 = vmul.f32 0.5, %v11633_v25  ;;  %v11725_v32 = vmul.f32 0.5, %v11636_v57  ;;  %7284 = vmatprep.subr.bf16.mxu0 %v8729_v19 }
 0x66c   : > { %8878 = vtanh.f32 %v11682_v51  ;;  %v11729_v56 = vmul.f32 0.5, %v11639_v16  ;;  %v11733_v6 = vmul.f32 0.5, %v11642_v18  ;;  %v11736_v48 = vmul.f32 0.5, %v11645_v24 }
 0x66d   : > { %8880 = vtanh.f32 %v11684_v52  ;;  %v11741_v25 = vmul.f32 0.5, %v11648_v33  ;;  %v11746_v24 = vmul.f32 0.5, %v11673_v2  ;;  %v11754_v3 = vmul.f32 0.5, %v11676_v14 }
 0x66e   : > { %8882 = vtanh.f32 %v11686_v11 }
 0x66f   : > { %8884 = vtanh.f32 %v11689_v59 }
 0x670   : > { %v8867_v35 = vpop.eup %8866  ;;  %8886 = vtanh.f32 %v11695_v17 }
 0x671   : > { %v8869_v37 = vpop.eup %8868  ;;  %v3524_v58 = vadd.f32 1.0, %v8867_v35  ;;  %8888 = vtanh.f32 %v11698_v7 }
 0x672   : > { %v8871_v23 = vpop.eup %8870  ;;  %v3525_v34 = vadd.f32 1.0, %v8869_v37  ;;  %8890 = vtanh.f32 %v11700_v42 }
 0x673   : > { %v8873_v9 = vpop.eup %8872  ;;  %v3526_v53 = vadd.f32 1.0, %v8871_v23  ;;  %v3556_v5 = vmul.f32 %v3524_v58, %v3460_v22  ;;  %8892 = vtanh.f32 %v11702_v45  ;;  %v11767_v58 = vmul.f32 0.5, %v11657_v62 }
 0x674   : > { %v3527_v47 = vadd.f32 1.0, %v8873_v9  ;;  %v3557_v20 = vmul.f32 %v3525_v34, %v3461_v30  ;;  %v8875_v41 = vpop.eup %8874  ;;  %8894 = vtanh.f32 %v11704_v63  ;;  %v11749_v30 = vmul.f32 0.5, %v11651_v50 }
 0x675   : > { %v3558_v43 = vmul.f32 %v3526_v53, %v3462_v40  ;;  %v8877_v28 = vpop.eup %8876  ;;  %8896 = vtanh.f32 %v11709_v15  ;;  %v3528_v46 = vadd.f32 1.0, %v8875_v41  ;;  %v11761_v50 = vmul.f32 0.5, %v11654_v13 }
 0x676   : > { %v3559_v38 = vmul.f32 %v3527_v47, %v3463_v54  ;;  %v11707_v44 = vpack.c.bf16 %v3557_v20, %v3556_v5  ;;  %v8879_v12 = vpop.eup %8878  ;;  %8898 = vtanh.f32 %v11712_v49  ;;  %v3529_v31 = vadd.f32 1.0, %v8877_v28 }
 0x677   : > { %v8881_v39 = vpop.eup %8880  ;;  %8900 = vtanh.f32 %v11715_v21  ;;  %v3530_v4 = vadd.f32 1.0, %v8879_v12  ;;  %v3560_v33 = vmul.f32 %v3528_v46, %v11678_v61  ;;  %v11789_v46 = vmul.f32 0.5, %v11663_v29 }
 0x678   : > { %v11722_v1 = vpack.c.bf16 %v3559_v38, %v3558_v43  ;;  %v8883_v36 = vpop.eup %8882  ;;  %8902 = vtanh.f32 %v11719_v55  ;;  %v3531_v27 = vadd.f32 1.0, %v8881_v39  ;;  %v3561_v0 = vmul.f32 %v3529_v31, %v11680_v8 }
 0x679   : > { %v8885_v10 = vpop.eup %8884  ;;  %8904 = vtanh.f32 %v11725_v32  ;;  %v3532_v57 = vadd.f32 1.0, %v8883_v36  ;;  %v3562_v54 = vmul.f32 %v3530_v4, %v11682_v51  ;;  %v11771_v51 = vmul.f32 0.5, %v11660_v60 }
 0x67a   : > { %v3533_v16 = vadd.f32 1.0, %v8885_v10  ;;  %v8887_v18 = vpop.eup %8886  ;;  %8906 = vtanh.f32 %v11729_v56  ;;  %v3563_v2 = vmul.f32 %v3531_v27, %v11684_v52 }
 0x67b   : > { %v8889_v22 = vpop.eup %8888  ;;  %8908 = vtanh.f32 %v11733_v6  ;;  %v3564_v61 = vmul.f32 %v3532_v57, %v11686_v11  ;;  %v3534_v23 = vadd.f32 1.0, %v8887_v18  ;;  %v3613_v18 = vshll.u32 %v11707_v44, 16 }
 0x67c   : > { %v8891_v40 = vpop.eup %8890  ;;  %8910 = vtanh.f32 %v11736_v48  ;;  %v3565_v14 = vmul.f32 %v3533_v16, %v11689_v59  ;;  %v3535_v52 = vadd.f32 1.0, %v8889_v22  ;;  %v11775_v59 = vpack.c.bf16 %v3561_v0, %v3560_v33 }
 0x67d   : > { %v8893_v35 = vpop.eup %8892  ;;  %8912 = vtanh.f32 %v11741_v25  ;;  %v3536_v13 = vadd.f32 1.0, %v8891_v40  ;;  %v11777_v9 = vpack.c.bf16 %v3563_v2, %v3562_v54  ;;  %v3566_v60 = vmul.f32 %v3534_v23, %v11695_v17 }
 0x67e   : > { %v8895_v37 = vpop.eup %8894  ;;  %8914 = vtanh.f32 %v11746_v24  ;;  %v3537_v11 = vadd.f32 1.0, %v8893_v35  ;;  %v11780_v53 = vpack.c.bf16 %v3565_v14, %v3564_v61  ;;  %v3567_v38 = vmul.f32 %v3535_v52, %v11698_v7 }
 0x67f   : > { %v8897_v8 = vpop.eup %8896  ;;  %8916 = vtanh.f32 %v11754_v3  ;;  %v3538_v20 = vadd.f32 1.0, %v8895_v37  ;;  %v3568_v28 = vmul.f32 %v3536_v13, %v11700_v42  ;;  %v11796_v42 = vmul.f32 0.5, %v11666_v26 }
 0x680   : > { %v8899_v34 = vpop.eup %8898  ;;  %8918 = vtanh.f32 %v11749_v30  ;;  %v3539_v43 = vadd.f32 1.0, %v8897_v8  ;;  %v3569_v12 = vmul.f32 %v3537_v11, %v11702_v45  ;;  %v11793_v7 = vpack.c.bf16 %v3567_v38, %v3566_v60 }
 0x681   : > { %v8901_v62 = vpop.eup %8900  ;;  %8920 = vtanh.f32 %v11761_v50  ;;  %v3540_v36 = vadd.f32 1.0, %v8899_v34  ;;  %v3570_v27 = vmul.f32 %v3538_v20, %v11704_v63  ;;  %v3610_v45 = vshrl.u32 %v11707_v44, 16 }
 0x682   : > { %v8903_v5 = vpop.eup %8902  ;;  %8922 = vtanh.f32 %v11767_v58  ;;  %v3541_v19 = vadd.f32 1.0, %v8901_v62  ;;  %v3571_v57 = vmul.f32 %v3539_v43, %v11709_v15  ;;  %v11800_v29 = vpack.c.bf16 %v3569_v12, %v3568_v28 }
 0x683   : > { %v8905_v47 = vpop.eup %8904  ;;  %8924 = vtanh.f32 %v11771_v51  ;;  %v3542_v17 = vadd.f32 1.0, %v8903_v5  ;;  %v3572_v40 = vmul.f32 %v3540_v36, %v11712_v49  ;;  %v3620_v63 = vshll.u32 %v11722_v1, 16 }
 0x684   : > { %v8907_v41 = vpop.eup %8906  ;;  %v3543_v4 = vadd.f32 1.0, %v8905_v47  ;;  %v3573_v2 = vmul.f32 %v3541_v19, %v11715_v21  ;;  %v11808_v8 = vpack.c.bf16 %v3571_v57, %v3570_v27  ;;  %8926 = vtanh.f32 %v11789_v46 }
 0x685   : > { %v8909_v39 = vpop.eup %8908  ;;  %v3544_v33 = vadd.f32 1.0, %v8907_v41  ;;  %v3574_v26 = vmul.f32 %v3542_v17, %v11719_v55  ;;  %v3739_v21 = vrot.slane %v3613_v18, 1  ;;  %8928 = vtanh.f32 %v11796_v42 }
 0x686   : > { %v8911_v10 = vpop.eup %8910  ;;  %v3545_v54 = vadd.f32 1.0, %v8909_v39  ;;  %v3575_v37 = vmul.f32 %v3543_v4, %v11725_v32  ;;  %v3617_v32 = vshrl.u32 %v11722_v1, 16  ;;  %v11822_v60 = vpack.c.bf16 %v3573_v2, %v3572_v40  ;;  %v8711_v40 = vld [vmem:[#allocation19] sm:$0xff]  }
 0x687   : > { %v8913_v31 = vpop.eup %8912  ;;  %v3546_v14 = vadd.f32 1.0, %v8911_v10  ;;  %v3576_v55 = vmul.f32 %v3544_v33, %v11729_v56  ;;  %v3627_v10 = vshll.u32 %v11775_v59, 16 }
 0x688   : > { %v8915_v16 = vpop.eup %8914  ;;  %v3547_v49 = vadd.f32 1.0, %v8913_v31  ;;  %v3577_v62 = vmul.f32 %v3545_v54, %v11733_v6  ;;  %v11825_v43 = vpack.c.bf16 %v3575_v37, %v3574_v26  ;;  %v3740_v6 = vor.u32 %v3739_v21, %v3610_v45  ;;  %v8730_v54 = vld [vmem:[#allocation19 + $0x180] sm:$0xff]  }
 0x689   : > { %v8917_v22 = vpop.eup %8916  ;;  %v3522_v0 = vadd.f32 1.0, %v8915_v16  ;;  %v3578_v20 = vmul.f32 %v3546_v14, %v11736_v48  ;;  %v3634_v48 = vshll.u32 %v11777_v9, 16  ;;  %v3743_v26 = vrot.slane %v3627_v10, 1 }
 0x68a   : > { %v8919_v15 = vpop.eup %8918  ;;  %v3523_v35 = vadd.f32 1.0, %v8917_v22  ;;  %v3579_v56 = vmul.f32 %v3547_v49, %v11741_v25  ;;  %v11838_v31 = vpack.c.bf16 %v3577_v62, %v3576_v55  ;;  %v11845_v33 = vsel %vm10760_vm6, %v3740_v6, 0  ;;  %v8732_v55 = vld [vmem:[#allocation19 + $0x188] sm:$0xff]   ;;  %v8733_v62 = vld [vmem:[#allocation19 + $0x1d0] sm:$0xff]  }
 0x68b   : > { %v8921_v61 = vpop.eup %8920  ;;  %v3554_v23 = vmul.f32 %v3522_v0, %v11746_v24  ;;  %v3741_v24 = vrot.slane %v3620_v63, 1  ;;  %v3548_v11 = vadd.f32 1.0, %v8919_v15  ;;  %v3631_v21 = vshrl.u32 %v11777_v9, 16  ;;  %v12883_v22 = vld [vmem:[#allocation38_spill] sm:$0xff] }
 0x68c   : > { %v8923_v52 = vpop.eup %8922  ;;  %v3555_v13 = vmul.f32 %v3523_v35, %v11754_v3  ;;  %v3549_v3 = vadd.f32 1.0, %v8921_v61  ;;  %v11841_v16 = vpack.c.bf16 %v3579_v56, %v3578_v20  ;;  %v8731_v35 = vld [vmem:[#allocation19 + $0x1c8] sm:$0xff]  }
 0x68d   : > { %v8925_v34 = vpop.eup %8924  ;;  %v3550_v47 = vadd.f32 1.0, %v8923_v52  ;;  %v3742_v12 = vor.u32 %v3741_v24, %v3617_v32  ;;  %v3580_v19 = vmul.f32 %v3548_v11, %v11749_v30  ;;  %v8713_v52 = vld [vmem:[#allocation19 + $0x8] sm:$0xff]   ;;  %v3641_v11 = vshll.u32 %v11780_v53, 16 }
 0x68e   : > { %v11820_v5 = vpack.c.bf16 %v3555_v13, %v3554_v23  ;;  %v3551_v38 = vadd.f32 1.0, %v8925_v34  ;;  %v3581_v25 = vmul.f32 %v3549_v3, %v11761_v50  ;;  %v8927_v0 = vpop.eup %8926  ;;  %v3624_v23 = vshrl.u32 %v11775_v59, 16  ;;  %v8714_v34 = vld [vmem:[#allocation19 + $0x50] sm:$0xff]  }
 0x68f   : > { %v3582_v17 = vmul.f32 %v3550_v47, %v11767_v58  ;;  %v3612_v58 = vrot.slane %v3610_v45, 7  ;;  %v8929_v2 = vpop.eup %8928  ;;  %v11863_v61 = vsel %vm10760_vm6, %v3742_v12, 0  ;;  %v3745_v45 = vrot.slane %v3634_v48, 1  ;;  %v8734_v12 = vld [vmem:[#allocation19 + $0x190] sm:$0xff]  }
 0x690   : > { %4082 = vmatprep.mubr.bf16.mxu0 %v11820_v5  ;;  %v3603_v41 = vshrl.u32 %v11820_v5, 16  ;;  %v3606_v28 = vshll.u32 %v11820_v5, 16  ;;  %v3583_v4 = vmul.f32 %v3551_v38, %v11771_v51  ;;  %v8712_v51 = vld [vmem:[#allocation19 + $0x48] sm:$0xff]   ;;  %v11867_v14 = vpack.c.bf16 %v3581_v25, %v3580_v19 }
 0x691   : > { %v3552_v49 = vadd.f32 1.0, %v8927_v0  ;;  %v3615_v13 = vor.u32 %v3613_v18, %v3612_v58  ;;  %v3744_v24 = vor.u32 %v3743_v26, %v3624_v23  ;;  %v3746_v3 = vor.u32 %v3745_v45, %v3631_v21  ;;  %v8715_v18 = vld [vmem:[#allocation19 + $0x10] sm:$0xff]   ;;  %v8720_v45 = vld [vmem:[#allocation19 + $0x68] sm:$0xff]  }
 0x692   : > { %v3605_v39 = vrot.slane %v3603_v41, 7  ;;  %v3737_v36 = vrot.slane %v3606_v28, 1  ;;  %v11869_v37 = vpack.c.bf16 %v3583_v4, %v3582_v17  ;;  %v3648_v47 = vshll.u32 %v11793_v7, 16  ;;  %v8717_v17 = vld [vmem:[#allocation19 + $0x18] sm:$0xff]  }
 0x693   : > { %v3553_v20 = vadd.f32 1.0, %v8929_v2  ;;  %v3584_v38 = vmul.f32 %v3552_v49, %v11789_v46  ;;  %v11883_v56 = vsel %vm10232_vm3, 0, %v3615_v13  ;;  %v11891_v46 = vsel %vm10760_vm6, %v3744_v24, 0 }
 0x694   : > { %v3608_v27 = vor.u32 %v3606_v28, %v3605_v39  ;;  %v3738_v57 = vor.u32 %v3737_v36, %v3603_v41  ;;  %v3619_v41 = vrot.slane %v3617_v32, 7  ;;  %v8716_v28 = vld [vmem:[#allocation19 + $0x58] sm:$0xff]   ;;  %v3747_v39 = vrot.slane %v3641_v11, 1 }
 0x695   : > { %v3585_v6 = vmul.f32 %v3553_v20, %v11796_v42  ;;  %v8735_v36 = vld [vmem:[#allocation19 + $0x1d8] sm:$0xff]   ;;  %v11899_v42 = vsel %vm10760_vm6, %v3746_v3, 0  ;;  %v3749_v32 = vrot.slane %v3648_v47, 1  ;;  %v3638_v25 = vshrl.u32 %v11780_v53, 16 }
 0x696   : > { %v11849_v30 = vsel %vm10232_vm3, 0, %v3608_v27  ;;  %v11853_v50 = vsel %vm10760_vm6, %v3738_v57, 0  ;;  %v3622_v4 = vor.u32 %v3620_v63, %v3619_v41  ;;  %v3645_v27 = vshrl.u32 %v11793_v7, 16  ;;  %v8718_v57 = vld [vmem:[#allocation19 + $0x60] sm:$0xff]  }
 0x697   : > { %4083 = vmatmul.mubr.bf16.vlgmr.msra.gmra.mrb[168].mxu0 %v11849_v30  ;;  %7744 = vmatprep.mubr.bf16.mxu1 %v11853_v50  ;;  %v11903_v19 = vpack.c.bf16 %v3585_v6, %v3584_v38  ;;  %v3748_v0 = vor.u32 %v3747_v39, %v3638_v25  ;;  %v3655_v58 = vshll.u32 %v11800_v29, 16  ;;  %v3662_v2 = vshll.u32 %v11808_v8, 16  ;;  %v8719_v63 = vld [vmem:[#allocation19 + $0x20] sm:$0xff]   ;;  %v8722_v38 = vld [vmem:[#allocation19 + $0x70] sm:$0xff]  }
 0x698   : > { %4090 = vmatprep.mubr.bf16.mxu0 %v11707_v44  ;;  %7745 = vmatmul.mubr.bf16.vlgmr.msra.gmra.mrb[100].mxu1 %v11845_v33  ;;  %v11918_v26 = vsel %vm10232_vm3, 0, %v3622_v4  ;;  %v3652_v24 = vshrl.u32 %v11800_v29, 16  ;;  %v3659_v20 = vshrl.u32 %v11808_v8, 16  ;;  %v8742_v6 = vld [vmem:[#allocation19 + $0x1f0] sm:$0xff]   ;;  %v3676_v39 = vshll.u32 %v11825_v43, 16 }
 0x699   : > { %7149 = vmatpush3.bf16.msra.mxu1 %v8711_v40  ;;  %7748 = vmatprep.mubr.bf16.mxu1 %v11863_v61  ;;  %v8736_v40 = vld [vmem:[#allocation19 + $0x198] sm:$0xff]   ;;  %v11923_v49 = vsel %vm10760_vm6, %v3748_v0, 0  ;;  %v3751_v13 = vrot.slane %v3655_v58, 1  ;;  %v8743_v4 = vld [vmem:[#allocation19 + $0x1b0] sm:$0xff]  }
 0x69a   : > { %7150 = vmatprep.subr.bf16.mxu1 %v8712_v51  ;;  %7285 = vmatpush3.bf16.msra.mxu0 %v8730_v54  ;;  %v8738_v51 = vld [vmem:[#allocation19 + $0x1e0] sm:$0xff]   ;;  %v3750_v54 = vor.u32 %v3749_v32, %v3645_v27  ;;  %v3633_v32 = vrot.slane %v3631_v21, 7  ;;  %v8744_v0 = vld [vmem:[#allocation19 + $0x1f8] sm:$0xff]  }
 0x69b   : > { %7286 = vmatprep.subr.bf16.mxu0 %v8731_v35  ;;  %v3626_v35 = vrot.slane %v3624_v23, 7  ;;  %v3752_v41 = vor.u32 %v3751_v13, %v3652_v24  ;;  %v8745_v13 = vld [vmem:[#allocation19 + $0x1b8] sm:$0xff]  }
 0x69c   : > { %v11931_v23 = vsel %vm10760_vm6, %v3750_v54, 0  ;;  %v3666_v54 = vshrl.u32 %v11822_v60, 16 }
 0x69d   : > { %7151 = vmatpush3.bf16.msra.mxu1 %v8713_v52  ;;  %v8739_v52 = vld [vmem:[#allocation19 + $0x1a0] sm:$0xff]   ;;  %v3629_v3 = vor.u32 %v3627_v10, %v3626_v35  ;;  %v8723_v10 = vld [vmem:[#allocation19 + $0x30] sm:$0xff]   ;;  %v3636_v35 = vor.u32 %v3634_v48, %v3633_v32  ;;  %v3687_v32 = vshrl.u32 %v11841_v16, 16 }
 0x69e   : > { %7152 = vmatprep.subr.bf16.mxu1 %v8714_v34  ;;  %7287 = vmatpush3.bf16.msra.mxu0 %v8732_v55  ;;  %v8740_v34 = vld [vmem:[#allocation19 + $0x1e8] sm:$0xff]   ;;  %v3753_v55 = vrot.slane %v3662_v2, 1 }
 0x69f   : > { %4091 = vmatmul.mubr.bf16.gmra.mrb[172].mxu0 %v11883_v56  ;;  %7288 = vmatprep.subr.bf16.mxu0 %v8733_v62  ;;  %v8721_v62 = vld [vmem:[#allocation19 + $0x28] sm:$0xff]   ;;  %v11982_v48 = vsel %vm10232_vm3, 0, %v3636_v35 }
 0x6a0   : > { %4098 = vmatprep.mubr.bf16.mxu0 %v11722_v1  ;;  %7749 = vmatmul.mubr.bf16.gmra.mrb[104].mxu1 %v11891_v46 }
 0x6a1   : > { %7752 = vmatprep.mubr.bf16.mxu1 %v11899_v42  ;;  %7153 = vmatpush3.bf16.msra.mxu1 %v8715_v18  ;;  %v8741_v18 = vld [vmem:[#allocation19 + $0x1a8] sm:$0xff]  }
 0x6a2   : > { %7154 = vmatprep.subr.bf16.mxu1 %v8716_v28  ;;  %7289 = vmatpush3.bf16.msra.mxu0 %v8734_v12  ;;  %v3669_v28 = vshll.u32 %v11822_v60, 16  ;;  %v3754_v12 = vor.u32 %v3753_v55, %v3659_v20  ;;  %v3683_v55 = vshll.u32 %v11838_v31, 16 }
 0x6a3   : > { %7290 = vmatprep.subr.bf16.mxu0 %v8735_v36  ;;  %v11948_v36 = vsel %vm10232_vm3, 0, %v3629_v3  ;;  %v3690_v3 = vshll.u32 %v11841_v16, 16 }
 0x6a4   : > { %v11963_v21 = vsel %vm10760_vm6, %v3754_v12, 0  ;;  %v3680_v12 = vshrl.u32 %v11838_v31, 16 }
 0x6a5   : > { %7155 = vmatpush3.bf16.msra.mxu1 %v8717_v17  ;;  %v8724_v17 = vld [vmem:[#allocation19 + $0x78] sm:$0xff]  }
 0x6a6   : > { %7156 = vmatprep.subr.bf16.mxu1 %v8718_v57  ;;  %7291 = vmatpush3.bf16.msra.mxu0 %v8736_v40  ;;  %v11955_v57 = vsel %vm10760_vm6, %v3752_v41, 0  ;;  %v3755_v40 = vrot.slane %v3669_v28, 1  ;;  %v3759_v41 = vrot.slane %v3683_v55, 1 }
 0x6a7   : > { %4099 = vmatmul.mubr.bf16.gmra.mrb[176].mxu0 %v11918_v26  ;;  %7292 = vmatprep.subr.bf16.mxu0 %v8738_v51  ;;  %v3757_v51 = vrot.slane %v3676_v39, 1 }
 0x6a8   : > { %4106 = vmatprep.mubr.bf16.mxu0 %v11775_v59  ;;  %7753 = vmatmul.mubr.bf16.gmra.mrb[108].mxu1 %v11923_v49 }
 0x6a9   : > { %7756 = vmatprep.mubr.bf16.mxu1 %v11931_v23  ;;  %7157 = vmatpush3.bf16.msra.mxu1 %v8719_v63  ;;  %v8725_v63 = vld [vmem:[#allocation19 + $0x38] sm:$0xff]  }
 0x6aa   : > { %7158 = vmatprep.subr.bf16.mxu1 %v8720_v45  ;;  %7293 = vmatpush3.bf16.msra.mxu0 %v8739_v52  ;;  %v3673_v45 = vshrl.u32 %v11825_v43, 16  ;;  %v11972_v52 = vld [vmem:[#allocation19 + $0x80] sm:$0xff]  }
 0x6ab   : > { %7294 = vmatprep.subr.bf16.mxu0 %v8740_v34  ;;  %v3756_v34 = vor.u32 %v3755_v40, %v3666_v54 }
 0x6ad   : > { %7159 = vmatpush3.bf16.msra.mxu1 %v8721_v62  ;;  %v3758_v62 = vor.u32 %v3757_v51, %v3673_v45 }
 0x6ae   : > { %7160 = vmatprep.subr.bf16.mxu1 %v8722_v38  ;;  %7295 = vmatpush3.bf16.msra.mxu0 %v8741_v18  ;;  %v3640_v38 = vrot.slane %v3638_v25, 7  ;;  %v11990_v18 = vsel %vm10760_vm6, %v3756_v34, 0  ;;  %v3761_v25 = vrot.slane %v3690_v3, 1  ;;  %v3694_v34 = vshrl.u32 %v11867_v14, 16 }
 0x6af   : > { %4107 = vmatmul.mubr.bf16.gmra.mrb[180].mxu0 %v11948_v36  ;;  %7296 = vmatprep.subr.bf16.mxu0 %v8742_v6  ;;  %v11998_v6 = vsel %vm10760_vm6, %v3758_v62, 0 }
 0x6b0   : > { %4114 = vmatprep.mubr.bf16.mxu0 %v11777_v9  ;;  %7757 = vmatmul.mubr.bf16.gmra.mrb[112].mxu1 %v11955_v57  ;;  %v3762_v40 = vor.u32 %v3761_v25, %v3687_v32  ;;  %v12756_v25 = vshll.u32 %v11903_v19, 16 }
 0x6b1   : > { %7760 = vmatprep.mubr.bf16.mxu1 %v11963_v21  ;;  %7161 = vmatpush3.bf16.msra.mxu1 %v8723_v10  ;;  %v3643_v10 = vor.u32 %v3641_v11, %v3640_v38  ;;  %v3701_v38 = vshrl.u32 %v11869_v37, 16 }
 0x6b2   : > { %7162 = vmatprep.subr.bf16.mxu1 %v8724_v17  ;;  %7297 = vmatpush3.bf16.msra.mxu0 %v8743_v4  ;;  %v3760_v17 = vor.u32 %v3759_v41, %v3680_v12  ;;  %v3697_v4 = vshll.u32 %v11867_v14, 16 }
 0x6b3   : > { %7298 = vmatprep.subr.bf16.mxu0 %v8744_v0  ;;  %v3704_v0 = vshll.u32 %v11869_v37, 16  ;;  %v12015_v51 = vsel %vm10232_vm3, 0, %v3643_v10 }
 0x6b4   : > { %v12022_v11 = vsel %vm10760_vm6, %v3760_v17, 0  ;;  %v3763_v35 = vrot.slane %v3697_v4, 1 }
 0x6b5   : > { %7163 = vmatpush3.bf16.msra.mxu1 %v8725_v63  ;;  %v3647_v63 = vrot.slane %v3645_v27, 7  ;;  %v3765_v27 = vrot.slane %v3704_v0, 1 }
 0x6b6   : > { %7776 = vmatprep.subr.bf16.mxu1 %v11972_v52  ;;  %7299 = vmatpush3.bf16.msra.mxu0 %v8745_v13  ;;  %v12030_v13 = vsel %vm10760_vm6, %v3762_v40, 0  ;;  %v3764_v41 = vor.u32 %v3763_v35, %v3694_v34  ;;  %v3654_v40 = vrot.slane %v3652_v24, 7  ;;  %v3846_v24 = vshrl.u32 %v11903_v19, 16 }
 0x6b7   : > { %4115 = vmatmul.mubr.bf16.gmra.mrb[184].mxu0 %v11982_v48  ;;  %v3650_v62 = vor.u32 %v3648_v47, %v3647_v63  ;;  %v3766_v10 = vor.u32 %v3765_v27, %v3701_v38  ;;  %v3854_v63 = vrot.slane %v12756_v25, 1  ;;  %v3661_v25 = vrot.slane %v3659_v20, 7 }
 0x6b8   : > { %4122 = vmatprep.mubr.bf16.mxu0 %v11780_v53  ;;  %7761 = vmatmul.mubr.bf16.gmra.mrb[116].mxu1 %v11990_v18  ;;  %v12053_v47 = vsel %vm10760_vm6, %v3764_v41, 0  ;;  %v3657_v27 = vor.u32 %v3655_v58, %v3654_v40  ;;  %v12882_v58 = vmov 0   ;;  %v3668_v20 = vrot.slane %v3666_v54, 7 }
 0x6b9   : > { %7764 = vmatprep.mubr.bf16.mxu1 %v11998_v6  ;;  %v12046_v17 = vsel %vm10232_vm3, 0, %v3650_v62  ;;  %v12061_v35 = vsel %vm10760_vm6, %v3766_v10, 0  ;;  %v3855_v62 = vor.u32 %v3854_v63, %v3846_v24  ;;  %v3664_v40 = vor.u32 %v3662_v2, %v3661_v25  ;;  %v8728_v25 = vld [vmem:[#allocation19 + $0x90] sm:$0xff]  }
 0x6ba   : > { %v12071_v41 = vsel %vm10232_vm3, 0, %v3657_v27  ;;  %v8727_v27 = vld [vmem:[#allocation19 + $0x88] sm:$0xff]   ;;  %v3671_v2 = vor.u32 %v3669_v28, %v3668_v20  ;;  %v8746_v28 = vld [vmem:[#allocation19 + $0xa0] sm:$0xff]  }
 0x6bb   : > { %v12078_v10 = vsel %vm10760_vm6, %v3855_v62, 0  ;;  %v12087_v63 = vsel %vm10232_vm3, 0, %v3664_v40  ;;  %v3675_v62 = vrot.slane %v3673_v45, 7  ;;  %v8737_v40 = vld [vmem:[#allocation19 + $0x98] sm:$0xff]   ;;  %v8747_v20 = vld [vmem:[#allocation19 + $0xa8] sm:$0xff]  }
 0x6bc   : > { %v12100_v54 = vsel %vm10232_vm3, 0, %v3671_v2  ;;  %v8749_v2 = vld [vmem:[#allocation19 + $0xb8] sm:$0xff]  }
 0x6bf   : > { %4123 = vmatmul.mubr.bf16.gmra.mrb[188].mxu0 %v12015_v51 }
 0x6c0   : > { %4130 = vmatprep.mubr.bf16.mxu0 %v11793_v7  ;;  %7765 = vmatmul.mubr.bf16.gmra.mrb[120].mxu1 %v12022_v11 }
 0x6c1   : > { %7768 = vmatprep.mubr.bf16.mxu1 %v12030_v13 }
 0x6c7   : > { %4131 = vmatmul.mubr.bf16.gmra.mrb[192].mxu0 %v12046_v17 }
 0x6c8   : > { %4138 = vmatprep.mubr.bf16.mxu0 %v11800_v29  ;;  %7769 = vmatmul.mubr.bf16.gmra.mrb[124].mxu1 %v12053_v47 }
 0x6c9   : > { %7772 = vmatprep.mubr.bf16.mxu1 %v12061_v35 }
 0x6cf   : > { %4139 = vmatmul.mubr.bf16.gmra.mrb[196].mxu0 %v12071_v41 }
 0x6d0   : > { %4146 = vmatprep.mubr.bf16.mxu0 %v11808_v8  ;;  %7773 = vmatmul.mubr.bf16.gmra.mrb[128].mxu1 %v12078_v10 }
 0x6d1   : > { %4548 = vmatprep.mubr.bf16.mxu1 %v12882_v58 }
 0x6d7   : > { %4147 = vmatmul.mubr.bf16.gmra.mrb[200].mxu0 %v12087_v63 }
 0x6d8   : > { %4154 = vmatprep.mubr.bf16.mxu0 %v11822_v60  ;;  %4549 = vmatmul.mubr.bf16.vlgmr.msra.gmra.mrb[132].mxu1 %v12883_v22 }
 0x6d9   : > { %7777 = vmatpush3.bf16.msra.mxu1 %v11972_v52  ;;  %4556 = vmatprep.mubr.bf16.mxu1 %v11820_v5  ;;  %v3678_v5 = vor.u32 %v3676_v39, %v3675_v62  ;;  %v3682_v52 = vrot.slane %v3680_v12, 7  ;;  %v8748_v39 = vld [vmem:[#allocation19 + $0xb0] sm:$0xff]   ;;  %v3696_v62 = vrot.slane %v3694_v34, 7  ;;  %v3703_v34 = vrot.slane %v3701_v38, 7 }
 0x6da   : > { %7778 = vmatprep.subr.bf16.mxu1 %v8727_v27  ;;  %v12884_v38 = vshll.u32 %v11903_v19, 16 }
 0x6db   : > { %v12112_v45 = vsel %vm10232_vm3, 0, %v3678_v5  ;;  %v3706_v5 = vor.u32 %v3704_v0, %v3703_v34 }
 0x6dd   : > { %7779 = vmatpush3.bf16.msra.mxu1 %v8727_v27  ;;  %v3689_v27 = vrot.slane %v3687_v32, 7 }
 0x6de   : > { %7780 = vmatprep.subr.bf16.mxu1 %v8728_v25 }
 0x6df   : > { %4155 = vmatmul.mubr.bf16.gmra.mrb[204].mxu0 %v12100_v54 }
 0x6e0   : > { %4162 = vmatprep.mubr.bf16.mxu0 %v11825_v43  ;;  %4557 = vmatmul.mubr.bf16.gmra.mrb[136].mxu1 %v11849_v30  ;;  %v3685_v30 = vor.u32 %v3683_v55, %v3682_v52  ;;  %v3692_v55 = vor.u32 %v3690_v3, %v3689_v27  ;;  %v3699_v3 = vor.u32 %v3697_v4, %v3696_v62  ;;  %v12163_v4 = vsel %vm10232_vm3, 0, %v3706_v5 }
 0x6e1   : > { %4564 = vmatprep.mubr.bf16.mxu1 %v11707_v44  ;;  %7781 = vmatpush3.bf16.msra.mxu1 %v8728_v25  ;;  %v12134_v25 = vld [vmem:[#allocation19 + $0x200] sm:$0xff]  }
 0x6e2   : > { %7782 = vmatprep.subr.bf16.mxu1 %v8737_v40  ;;  %v12124_v12 = vsel %vm10232_vm3, 0, %v3685_v30  ;;  %v12138_v32 = vsel %vm10232_vm3, 0, %v3692_v55 }
 0x6e5   : > { %7783 = vmatpush3.bf16.msra.mxu1 %v8737_v40  ;;  %v12151_v40 = vsel %vm10232_vm3, 0, %v3699_v3 }
 0x6e6   : > { %7784 = vmatprep.subr.bf16.mxu1 %v8746_v28 }
 0x6e7   : > { %4163 = vmatmul.mubr.bf16.gmra.mrb[208].mxu0 %v12112_v45 }
 0x6e8   : > { %4170 = vmatprep.mubr.bf16.mxu0 %v11838_v31  ;;  %4565 = vmatmul.mubr.bf16.gmra.mrb[140].mxu1 %v11883_v56 }
 0x6e9   : > { %4572 = vmatprep.mubr.bf16.mxu1 %v11722_v1  ;;  %7785 = vmatpush3.bf16.msra.mxu1 %v8746_v28  ;;  %v3848_v28 = vrot.slane %v3846_v24, 7 }
 0x6ea   : > { %7786 = vmatprep.subr.bf16.mxu1 %v8747_v20 }
 0x6eb   : > { %v3851_v52 = vor.u32 %v12884_v38, %v3848_v28  ;;  %v8759_v38 = vld [vmem:[#allocation22 + $0x8] sm:$0xff]  }
 0x6ed   : > { %7787 = vmatpush3.bf16.msra.mxu1 %v8747_v20  ;;  %v12175_v0 = vsel %vm10232_vm3, 0, %v3851_v52 }
 0x6ee   : > { %7788 = vmatprep.subr.bf16.mxu1 %v8748_v39 }
 0x6ef   : > { %4171 = vmatmul.mubr.bf16.gmra.mrb[212].mxu0 %v12124_v12 }
 0x6f0   : > { %4178 = vmatprep.mubr.bf16.mxu0 %v11841_v16  ;;  %4573 = vmatmul.mubr.bf16.gmra.mrb[144].mxu1 %v11918_v26 }
 0x6f1   : > { %4580 = vmatprep.mubr.bf16.mxu1 %v11775_v59  ;;  %7789 = vmatpush3.bf16.msra.mxu1 %v8748_v39 }
 0x6f2   : > { %7790 = vmatprep.subr.bf16.mxu1 %v8749_v2 }
 0x6f5   : > { %7791 = vmatpush3.bf16.msra.mxu1 %v8749_v2 }
 0x6f6   : > { %7824 = vmatprep.subr.bf16.mxu1 %v12134_v25 }
 0x6f7   : > { %4179 = vmatmul.mubr.bf16.gmra.mrb[216].mxu0 %v12138_v32 }
 0x6f8   : > { %4186 = vmatprep.mubr.bf16.mxu0 %v11867_v14  ;;  %4581 = vmatmul.mubr.bf16.gmra.mrb[148].mxu1 %v11948_v36 }
 0x6f9   : > { %4588 = vmatprep.mubr.bf16.mxu1 %v11777_v9 }
 0x6ff   : > { %4187 = vmatmul.mubr.bf16.gmra.mrb[220].mxu0 %v12151_v40 }
 0x700   : > { %4194 = vmatprep.mubr.bf16.mxu0 %v11869_v37  ;;  %4589 = vmatmul.mubr.bf16.gmra.mrb[152].mxu1 %v11982_v48 }
 0x701   : > { %4596 = vmatprep.mubr.bf16.mxu1 %v11780_v53 }
 0x707   : > { %4195 = vmatmul.mubr.bf16.gmra.mrb[224].mxu0 %v12163_v4 }
 0x708   : > { %4202 = vmatprep.mubr.bf16.mxu0 %v11903_v19  ;;  %4597 = vmatmul.mubr.bf16.gmra.mrb[156].mxu1 %v12015_v51 }
 0x709   : > { %4604 = vmatprep.mubr.bf16.mxu1 %v11793_v7 }
 0x70f   : > { %4203 = vmatmul.mubr.bf16.gmra.mrb[228].mxu0 %v12175_v0 }
 0x710   : > { %4605 = vmatmul.mubr.bf16.gmra.mrb[160].mxu1 %v12046_v17  ;;  %5062 = vmatprep.mubr.bf16.mxu0 %v11707_v44  ;;  %v12885_v44 = vld [vmem:[#allocation41_spill] sm:$0xff] }
 0x711   : > { %4612 = vmatprep.mubr.bf16.mxu1 %v11800_v29 }
 0x717   : > { %5063 = vmatmul.mubr.bf16.vlgmr.msra.gmra.mrb[232].mxu0 %v11883_v56  ;;  %v8757_v56 = vld [vmem:[#allocation19 + $0x238] sm:$0xff]  }
 0x718   : > { %4613 = vmatmul.mubr.bf16.gmra.mrb[164].mxu1 %v12071_v41  ;;  %5070 = vmatprep.mubr.bf16.mxu0 %v11722_v1  ;;  %v8751_v1 = vld [vmem:[#allocation19 + $0x208] sm:$0xff]  }
 0x719   : > { %4620 = vmatprep.mubr.bf16.mxu1 %v11808_v8 }
 0x71f   : > { %5071 = vmatmul.mubr.bf16.gmra.mrb[236].mxu0 %v11918_v26  ;;  %v8758_v26 = vld [vmem:[#allocation22] sm:$0xff]  }
 0x720   : > { %4621 = vmatmul.mubr.bf16.gmra.mrb[168].mxu1 %v12087_v63  ;;  %5078 = vmatprep.mubr.bf16.mxu0 %v11775_v59  ;;  %v8752_v59 = vld [vmem:[#allocation19 + $0x210] sm:$0xff]  }
 0x721   : > { %4628 = vmatprep.mubr.bf16.mxu1 %v11822_v60 }
 0x727   : > { %5079 = vmatmul.mubr.bf16.gmra.mrb[240].mxu0 %v11948_v36 }
 0x728   : > { %4629 = vmatmul.mubr.bf16.gmra.mrb[172].mxu1 %v12100_v54  ;;  %5086 = vmatprep.mubr.bf16.mxu0 %v11777_v9  ;;  %v8753_v9 = vld [vmem:[#allocation19 + $0x218] sm:$0xff]  }
 0x729   : > { %4636 = vmatprep.mubr.bf16.mxu1 %v11825_v43 }
 0x72f   : > { %5087 = vmatmul.mubr.bf16.gmra.mrb[244].mxu0 %v11982_v48 }
 0x730   : > { %4637 = vmatmul.mubr.bf16.gmra.mrb[176].mxu1 %v12112_v45  ;;  %5094 = vmatprep.mubr.bf16.mxu0 %v11780_v53  ;;  %v8754_v53 = vld [vmem:[#allocation19 + $0x220] sm:$0xff]  }
 0x731   : > { %4644 = vmatprep.mubr.bf16.mxu1 %v11838_v31 }
 0x737   : > { %5095 = vmatmul.mubr.bf16.gmra.mrb[248].mxu0 %v12015_v51 }
 0x738   : > { %4645 = vmatmul.mubr.bf16.gmra.mrb[180].mxu1 %v12124_v12  ;;  %5102 = vmatprep.mubr.bf16.mxu0 %v11793_v7  ;;  %v8755_v7 = vld [vmem:[#allocation19 + $0x228] sm:$0xff]  }
 0x739   : > { %4652 = vmatprep.mubr.bf16.mxu1 %v11841_v16 }
 0x73f   : > { %5103 = vmatmul.mubr.bf16.gmra.mrb[252].mxu0 %v12046_v17 }
 0x740   : > { %4653 = vmatmul.mubr.bf16.gmra.mrb[184].mxu1 %v12138_v32  ;;  %5110 = vmatprep.mubr.bf16.mxu0 %v11800_v29 }
 0x741   : > { %4660 = vmatprep.mubr.bf16.mxu1 %v11867_v14 }
 0x747   : > { %5111 = vmatmul.mubr.bf16.gmra.mrb[4].mxu0 %v12071_v41 }
 0x748   : > { %4661 = vmatmul.mubr.bf16.gmra.mrb[188].mxu1 %v12151_v40  ;;  %5118 = vmatprep.mubr.bf16.mxu0 %v11808_v8  ;;  %v8756_v8 = vld [vmem:[#allocation19 + $0x230] sm:$0xff]  }
 0x749   : > { %4668 = vmatprep.mubr.bf16.mxu1 %v11869_v37 }
 0x74f   : > { %5119 = vmatmul.mubr.bf16.gmra.mrb[8].mxu0 %v12087_v63 }
 0x750   : > { %4669 = vmatmul.mubr.bf16.gmra.mrb[192].mxu1 %v12163_v4  ;;  %5126 = vmatprep.mubr.bf16.mxu0 %v11822_v60 }
 0x751   : > { %7792 = vmatprep.mubr.bf16.mxu1 %v12885_v44 }
 0x757   : > { %5127 = vmatmul.mubr.bf16.gmra.mrb[12].mxu0 %v12100_v54 }
 0x758   : > { %7793 = vmatmul.mubr.bf16.vlgmr.msra.gmra.mrb[100].mxu1 %v11853_v50  ;;  %5134 = vmatprep.mubr.bf16.mxu0 %v11825_v43 }
 0x759   : > { %7825 = vmatpush3.bf16.msra.mxu1 %v12134_v25  ;;  %7796 = vmatprep.mubr.bf16.mxu1 %v11845_v33 }
 0x75a   : > { %7826 = vmatprep.subr.bf16.mxu1 %v8751_v1 }
 0x75d   : > { %7827 = vmatpush3.bf16.msra.mxu1 %v8751_v1 }
 0x75e   : > { %7828 = vmatprep.subr.bf16.mxu1 %v8752_v59 }
 0x75f   : > { %5135 = vmatmul.mubr.bf16.gmra.mrb[16].mxu0 %v12112_v45 }
 0x760   : > { %7797 = vmatmul.mubr.bf16.gmra.mrb[104].mxu1 %v11863_v61  ;;  %5142 = vmatprep.mubr.bf16.mxu0 %v11838_v31 }
 0x761   : > { %7800 = vmatprep.mubr.bf16.mxu1 %v11891_v46  ;;  %7829 = vmatpush3.bf16.msra.mxu1 %v8752_v59 }
 0x762   : > { %7830 = vmatprep.subr.bf16.mxu1 %v8753_v9 }
 0x765   : > { %7831 = vmatpush3.bf16.msra.mxu1 %v8753_v9 }
 0x766   : > { %7832 = vmatprep.subr.bf16.mxu1 %v8754_v53 }
 0x767   : > { %5143 = vmatmul.mubr.bf16.gmra.mrb[20].mxu0 %v12124_v12 }
 0x768   : > { %7801 = vmatmul.mubr.bf16.gmra.mrb[108].mxu1 %v11899_v42  ;;  %5150 = vmatprep.mubr.bf16.mxu0 %v11841_v16 }
 0x769   : > { %7804 = vmatprep.mubr.bf16.mxu1 %v11923_v49  ;;  %7833 = vmatpush3.bf16.msra.mxu1 %v8754_v53  ;;  %v8761_v53 = vld [vmem:[#allocation22 + $0x18] sm:$0xff]  }
 0x76a   : > { %v7028_v29 = vpop.f32.mrb[168].mxu0  ;;  %7834 = vmatprep.subr.bf16.mxu1 %v8755_v7 }
 0x76b   : > { %v7029_v60 = vpop.f32.mrb[169].mxu0 }
 0x76c   : > { %v12226_v43 = vadd.f32 %v7029_v60, %v7028_v29  ;;  %v7031_v31 = vpop.f32.mrb[170].mxu0 }
 0x76d   : > { %v7032_v15 = vpop.f32.mrb[171].mxu0  ;;  %7835 = vmatpush3.bf16.msra.mxu1 %v8755_v7 }
 0x76e   : > { %v12228_v50 = vadd.f32 %v7032_v15, %v7031_v31  ;;  %7836 = vmatprep.subr.bf16.mxu1 %v8756_v8  ;;  %v8763_v15 = vld [vmem:[#allocation22 + $0x28] sm:$0xff]  }
 0x76f   : > { %5151 = vmatmul.mubr.bf16.gmra.mrb[24].mxu0 %v12138_v32 }
 0x770   : > { %7805 = vmatmul.mubr.bf16.gmra.mrb[112].mxu1 %v11931_v23  ;;  %5158 = vmatprep.mubr.bf16.mxu0 %v11867_v14 }
 0x771   : > { %7808 = vmatprep.mubr.bf16.mxu1 %v11955_v57  ;;  %7837 = vmatpush3.bf16.msra.mxu1 %v8756_v8 }
 0x772   : > { %v7034_v16 = vpop.f32.mrb[172].mxu0  ;;  %7838 = vmatprep.subr.bf16.mxu1 %v8757_v56 }
 0x773   : > { %v7035_v36 = vpop.f32.mrb[173].mxu0 }
 0x774   : > { %v12234_v48 = vadd.f32 %v7035_v36, %v7034_v16  ;;  %v7037_v51 = vpop.f32.mrb[174].mxu0 }
 0x775   : > { %v7038_v17 = vpop.f32.mrb[175].mxu0  ;;  %7839 = vmatpush3.bf16.msra.mxu1 %v8757_v56 }
 0x776   : > { %v12236_v24 = vadd.f32 %v7038_v17, %v7037_v51  ;;  %7872 = vmatprep.subr.bf16.mxu1 %v8758_v26 }
 0x777   : > { %5159 = vmatmul.mubr.bf16.gmra.mrb[28].mxu0 %v12151_v40 }
 0x778   : > { %7809 = vmatmul.mubr.bf16.gmra.mrb[116].mxu1 %v11963_v21  ;;  %5166 = vmatprep.mubr.bf16.mxu0 %v11869_v37 }
 0x779   : > { %7812 = vmatprep.mubr.bf16.mxu1 %v11990_v18 }
 0x77a   : > { %v7040_v14 = vpop.f32.mrb[176].mxu0 }
 0x77b   : > { %v7041_v41 = vpop.f32.mrb[177].mxu0 }
 0x77c   : > { %v12242_v63 = vadd.f32 %v7041_v41, %v7040_v14  ;;  %v7043_v54 = vpop.f32.mrb[178].mxu0 }
 0x77d   : > { %v7044_v45 = vpop.f32.mrb[179].mxu0 }
 0x77e   : > { %v12244_v20 = vadd.f32 %v7044_v45, %v7043_v54 }
 0x77f   : > { %5167 = vmatmul.mubr.bf16.gmra.mrb[32].mxu0 %v12163_v4 }
 0x780   : > { %7813 = vmatmul.mubr.bf16.gmra.mrb[120].mxu1 %v11998_v6  ;;  %5174 = vmatprep.mubr.bf16.mxu0 %v11903_v19 }
 0x781   : > { %7816 = vmatprep.mubr.bf16.mxu1 %v12022_v11 }
 0x782   : > { %v7046_v30 = vpop.f32.mrb[180].mxu0 }
 0x783   : > { %v7047_v37 = vpop.f32.mrb[181].mxu0 }
 0x784   : > { %v12250_v39 = vadd.f32 %v7047_v37, %v7046_v30  ;;  %v7049_v12 = vpop.f32.mrb[182].mxu0 }
 0x785   : > { %v7050_v27 = vpop.f32.mrb[183].mxu0 }
 0x786   : > { %v12252_v2 = vadd.f32 %v7050_v27, %v7049_v12 }
 0x787   : > { %5175 = vmatmul.mubr.bf16.gmra.mrb[36].mxu0 %v12175_v0 }
 0x788   : > { %7817 = vmatmul.mubr.bf16.gmra.mrb[124].mxu1 %v12030_v13  ;;  %5182 = vmatprep.mubr.bf16.mxu0 %v12882_v58 }
 0x789   : > { %7820 = vmatprep.mubr.bf16.mxu1 %v12053_v47 }
 0x78a   : > { %v7052_v55 = vpop.f32.mrb[184].mxu0 }
 0x78b   : > { %v7053_v19 = vpop.f32.mrb[185].mxu0 }
 0x78c   : > { %v12258_v25 = vadd.f32 %v7053_v19, %v7052_v55  ;;  %v7055_v32 = vpop.f32.mrb[186].mxu0 }
 0x78d   : > { %v7056_v62 = vpop.f32.mrb[187].mxu0 }
 0x78e   : > { %v12260_v3 = vadd.f32 %v7056_v62, %v7055_v32 }
 0x78f   : > { %5183 = vmatmul.mubr.bf16.gmra.mrb[40].mxu0 %v12883_v22  ;;  %v8760_v22 = vld [vmem:[#allocation22 + $0x10] sm:$0xff]  }
 0x790   : > { %7821 = vmatmul.mubr.bf16.gmra.mrb[128].mxu1 %v12061_v35 }
 0x791   : > { %7840 = vmatprep.mubr.bf16.mxu1 %v11845_v33 }
 0x792   : > { %v7058_v40 = vpop.f32.mrb[188].mxu0 }
 0x793   : > { %v7059_v34 = vpop.f32.mrb[189].mxu0 }
 0x794   : > { %v12265_v5 = vadd.f32 %v7059_v34, %v7058_v40  ;;  %v7061_v58 = vpop.f32.mrb[190].mxu0 }
 0x795   : > { %v7062_v4 = vpop.f32.mrb[191].mxu0 }
 0x796   : > { %v12267_v28 = vadd.f32 %v7062_v4, %v7061_v58 }
 0x798   : > { %7841 = vmatmul.mubr.bf16.vlgmr.msra.gmra.mrb[100].mxu1 %v11863_v61 }
 0x799   : > { %7873 = vmatpush3.bf16.msra.mxu1 %v8758_v26  ;;  %7844 = vmatprep.mubr.bf16.mxu1 %v11891_v46  ;;  %v8762_v46 = vld [vmem:[#allocation22 + $0x20] sm:$0xff]  }
 0x79a   : > { %v7064_v52 = vpop.f32.mrb[192].mxu0  ;;  %7874 = vmatprep.subr.bf16.mxu1 %v8759_v38 }
 0x79b   : > { %v7065_v0 = vpop.f32.mrb[193].mxu0 }
 0x79c   : > { %v12271_v1 = vadd.f32 %v7065_v0, %v7064_v52  ;;  %v7067_v33 = vpop.f32.mrb[194].mxu0 }
 0x79d   : > { %v7068_v59 = vpop.f32.mrb[195].mxu0  ;;  %7875 = vmatpush3.bf16.msra.mxu1 %v8759_v38 }
 0x79e   : > { %v12273_v9 = vadd.f32 %v7068_v59, %v7067_v33  ;;  %7876 = vmatprep.subr.bf16.mxu1 %v8760_v22 }
 0x7a0   : > { %7845 = vmatmul.mubr.bf16.gmra.mrb[104].mxu1 %v11899_v42 }
 0x7a1   : > { %7848 = vmatprep.mubr.bf16.mxu1 %v11923_v49  ;;  %7877 = vmatpush3.bf16.msra.mxu1 %v8760_v22  ;;  %v8764_v49 = vld [vmem:[#allocation22 + $0x30] sm:$0xff]  }
 0x7a2   : > { %v7070_v61 = vpop.f32.mrb[196].mxu0  ;;  %7878 = vmatprep.subr.bf16.mxu1 %v8761_v53 }
 0x7a3   : > { %v7071_v7 = vpop.f32.mrb[197].mxu0 }
 0x7a4   : > { %v12277_v29 = vadd.f32 %v7071_v7, %v7070_v61  ;;  %v7073_v8 = vpop.f32.mrb[198].mxu0 }
 0x7a5   : > { %v7074_v60 = vpop.f32.mrb[199].mxu0  ;;  %7879 = vmatpush3.bf16.msra.mxu1 %v8761_v53 }
 0x7a6   : > { %v12279_v31 = vadd.f32 %v7074_v60, %v7073_v8  ;;  %7880 = vmatprep.subr.bf16.mxu1 %v8762_v46 }
 0x7a8   : > { %7849 = vmatmul.mubr.bf16.gmra.mrb[108].mxu1 %v11931_v23  ;;  %v8765_v23 = vld [vmem:[#allocation22 + $0x38] sm:$0xff]  }
 0x7a9   : > { %7852 = vmatprep.mubr.bf16.mxu1 %v11955_v57  ;;  %7881 = vmatpush3.bf16.msra.mxu1 %v8762_v46 }
 0x7aa   : > { %v7076_v42 = vpop.f32.mrb[200].mxu0  ;;  %7882 = vmatprep.subr.bf16.mxu1 %v8763_v15 }
 0x7ab   : > { %v7077_v56 = vpop.f32.mrb[201].mxu0  ;;  %v7164_v16 = vpop.f32.mrb[132].mxu1 }
 0x7ac   : > { %v12283_v26 = vadd.f32 %v7077_v56, %v7076_v42  ;;  %v7079_v36 = vpop.f32.mrb[202].mxu0  ;;  %v7165_v51 = vpop.f32.mrb[133].mxu1 }
 0x7ad   : > { %v7166_v17 = vadd.f32 %v7165_v51, %v7164_v16  ;;  %v7080_v14 = vpop.f32.mrb[203].mxu0  ;;  %v7167_v41 = vpop.f32.mrb[134].mxu1  ;;  %7883 = vmatpush3.bf16.msra.mxu1 %v8763_v15 }
 0x7ae   : > { %v12285_v54 = vadd.f32 %v7080_v14, %v7079_v36  ;;  %v7168_v45 = vpop.f32.mrb[135].mxu1  ;;  %7884 = vmatprep.subr.bf16.mxu1 %v8764_v49 }
 0x7af   : > { %v12288_v57 = vadd.f32 %v7166_v17, %v12226_v43  ;;  %v7169_v30 = vadd.f32 %v7168_v45, %v7167_v41 }
 0x7b0   : > { %7853 = vmatmul.mubr.bf16.gmra.mrb[112].mxu1 %v11963_v21 }
 0x7b1   : > { %v12292_v37 = vadd.f32 %v7169_v30, %v12228_v50  ;;  %7856 = vmatprep.mubr.bf16.mxu1 %v11990_v18  ;;  %7885 = vmatpush3.bf16.msra.mxu1 %v8764_v49 }
 0x7b2   : > { %v7082_v12 = vpop.f32.mrb[204].mxu0  ;;  %7886 = vmatprep.subr.bf16.mxu1 %v8765_v23 }
 0x7b3   : > { %v7083_v27 = vpop.f32.mrb[205].mxu0  ;;  %v7170_v55 = vpop.f32.mrb[136].mxu1 }
 0x7b4   : > { %v12295_v19 = vadd.f32 %v7083_v27, %v7082_v12  ;;  %v7085_v32 = vpop.f32.mrb[206].mxu0  ;;  %v7171_v62 = vpop.f32.mrb[137].mxu1 }
 0x7b5   : > { %v7172_v40 = vadd.f32 %v7171_v62, %v7170_v55  ;;  %v7086_v43 = vpop.f32.mrb[207].mxu0  ;;  %v7173_v34 = vpop.f32.mrb[138].mxu1  ;;  %7887 = vmatpush3.bf16.msra.mxu1 %v8765_v23 }
 0x7b6   : > { %v12297_v58 = vadd.f32 %v7086_v43, %v7085_v32  ;;  %v7174_v21 = vpop.f32.mrb[139].mxu1  ;;  %v8930_v32 = vld [vmem:[%s9994_s7] sm:$0xff]  }
 0x7b7   : > { %v12300_v50 = vadd.f32 %v7172_v40, %v12234_v48  ;;  %v7175_v18 = vadd.f32 %v7174_v21, %v7173_v34 }
 0x7b8   : > { %7857 = vmatmul.mubr.bf16.gmra.mrb[116].mxu1 %v11998_v6 }
 0x7b9   : > { %v12304_v4 = vadd.f32 %v7175_v18, %v12236_v24  ;;  %7860 = vmatprep.mubr.bf16.mxu1 %v12022_v11 }
 0x7ba   : > { %v7088_v38 = vpop.f32.mrb[208].mxu0 }
 0x7bb   : > { %v7089_v52 = vpop.f32.mrb[209].mxu0  ;;  %v7176_v22 = vpop.f32.mrb[140].mxu1 }
 0x7bc   : > { %v12307_v0 = vadd.f32 %v7089_v52, %v7088_v38  ;;  %v7091_v33 = vpop.f32.mrb[210].mxu0  ;;  %v7177_v59 = vpop.f32.mrb[141].mxu1 }
 0x7bd   : > { %v7178_v53 = vadd.f32 %v7177_v59, %v7176_v22  ;;  %v7092_v61 = vpop.f32.mrb[211].mxu0  ;;  %v7179_v46 = vpop.f32.mrb[142].mxu1  ;;  %v8931_v22 = vld [vmem:[%s9994_s7 + $0x8] sm:$0xff]  }
 0x7be   : > { %v12309_v48 = vadd.f32 %v7092_v61, %v7091_v33  ;;  %v7180_v7 = vpop.f32.mrb[143].mxu1 }
 0x7bf   : > { %v12312_v6 = vadd.f32 %v7178_v53, %v12242_v63  ;;  %v7181_v24 = vadd.f32 %v7180_v7, %v7179_v46  ;;  %v8932_v53 = vld [vmem:[%s9994_s7 + $0x10] sm:$0xff]  }
 0x7c0   : > { %7861 = vmatmul.mubr.bf16.gmra.mrb[120].mxu1 %v12030_v13 }
 0x7c1   : > { %v12316_v11 = vadd.f32 %v7181_v24, %v12244_v20  ;;  %7864 = vmatprep.mubr.bf16.mxu1 %v12053_v47 }
 0x7c2   : > { %v7094_v8 = vpop.f32.mrb[212].mxu0 }
 0x7c3   : > { %v7095_v60 = vpop.f32.mrb[213].mxu0  ;;  %v7182_v15 = vpop.f32.mrb[144].mxu1 }
 0x7c4   : > { %v12319_v42 = vadd.f32 %v7095_v60, %v7094_v8  ;;  %v7097_v49 = vpop.f32.mrb[214].mxu0  ;;  %v7183_v56 = vpop.f32.mrb[145].mxu1 }
 0x7c5   : > { %v7184_v16 = vadd.f32 %v7183_v56, %v7182_v15  ;;  %v7098_v36 = vpop.f32.mrb[215].mxu0  ;;  %v7185_v51 = vpop.f32.mrb[146].mxu1 }
 0x7c6   : > { %v12321_v63 = vadd.f32 %v7098_v36, %v7097_v49  ;;  %v7186_v17 = vpop.f32.mrb[147].mxu1 }
 0x7c7   : > { %v12324_v13 = vadd.f32 %v7184_v16, %v12250_v39  ;;  %v7187_v20 = vadd.f32 %v7186_v17, %v7185_v51  ;;  %v8933_v16 = vld [vmem:[%s9994_s7 + $0x18] sm:$0xff]  }
 0x7c8   : > { %7865 = vmatmul.mubr.bf16.gmra.mrb[124].mxu1 %v12061_v35 }
 0x7c9   : > { %v12328_v47 = vadd.f32 %v7187_v20, %v12252_v2  ;;  %7868 = vmatprep.mubr.bf16.mxu1 %v12078_v10 }
 0x7ca   : > { %v7100_v14 = vpop.f32.mrb[216].mxu0 }
 0x7cb   : > { %v7101_v41 = vpop.f32.mrb[217].mxu0  ;;  %v7188_v45 = vpop.f32.mrb[148].mxu1 }
 0x7cc   : > { %v12331_v23 = vadd.f32 %v7101_v41, %v7100_v14  ;;  %v7103_v30 = vpop.f32.mrb[218].mxu0  ;;  %v7189_v12 = vpop.f32.mrb[149].mxu1 }
 0x7cd   : > { %v7190_v27 = vadd.f32 %v7189_v12, %v7188_v45  ;;  %v7104_v55 = vpop.f32.mrb[219].mxu0  ;;  %v7191_v39 = vpop.f32.mrb[150].mxu1 }
 0x7ce   : > { %v12334_v62 = vadd.f32 %v7104_v55, %v7103_v30  ;;  %v7192_v35 = vpop.f32.mrb[151].mxu1 }
 0x7cf   : > { %v12337_v2 = vadd.f32 %v7190_v27, %v12258_v25  ;;  %v7193_v10 = vadd.f32 %v7192_v35, %v7191_v39  ;;  %v8935_v35 = vld [vmem:[%s9994_s7 + $0x28] sm:$0xff]  }
 0x7d0   : > { %7869 = vmatmul.mubr.bf16.gmra.mrb[128].mxu1 %v12885_v44 }
 0x7d1   : > { %v12341_v40 = vadd.f32 %v7193_v10, %v12260_v3  ;;  %7888 = vmatprep.mubr.bf16.mxu1 %v8930_v32 }
 0x7d2   : > { %v7106_v43 = vpop.f32.mrb[220].mxu0 }
 0x7d3   : > { %v7107_v34 = vpop.f32.mrb[221].mxu0  ;;  %v7194_v21 = vpop.f32.mrb[152].mxu1 }
 0x7d4   : > { %v12343_v18 = vadd.f32 %v7107_v34, %v7106_v43  ;;  %v7109_v38 = vpop.f32.mrb[222].mxu0  ;;  %v7195_v52 = vpop.f32.mrb[153].mxu1 }
 0x7d5   : > { %v7196_v33 = vadd.f32 %v7195_v52, %v7194_v21  ;;  %v7110_v59 = vpop.f32.mrb[223].mxu0  ;;  %v7197_v25 = vpop.f32.mrb[154].mxu1 }
 0x7d6   : > { %v12347_v61 = vadd.f32 %v7110_v59, %v7109_v38  ;;  %v7198_v44 = vpop.f32.mrb[155].mxu1 }
 0x7d7   : > { %v12350_v3 = vadd.f32 %v7196_v33, %v12265_v5  ;;  %v7199_v46 = vadd.f32 %v7198_v44, %v7197_v25  ;;  %v8934_v5 = vld [vmem:[%s9994_s7 + $0x20] sm:$0xff]  }
 0x7d8   : > { %7889 = vmatmul.mubr.bf16.vlgmr.msra.gmra.mrb[100].mxu1 %v8931_v22 }
 0x7d9   : > { %v12353_v7 = vadd.f32 %v7199_v46, %v12267_v28  ;;  %7892 = vmatprep.mubr.bf16.mxu1 %v8932_v53 }
 0x7da   : > { %v7112_v24 = vpop.f32.mrb[224].mxu0 }
 0x7db   : > { %v7113_v8 = vpop.f32.mrb[225].mxu0  ;;  %v7200_v60 = vpop.f32.mrb[156].mxu1 }
 0x7dc   : > { %v12355_v15 = vadd.f32 %v7113_v8, %v7112_v24  ;;  %v7115_v49 = vpop.f32.mrb[226].mxu0  ;;  %v7201_v56 = vpop.f32.mrb[157].mxu1  ;;  %v8937_v24 = vld [vmem:[%s9994_s7 + $0x38] sm:$0xff]  }
 0x7dd   : > { %v7202_v36 = vadd.f32 %v7201_v56, %v7200_v60  ;;  %v7116_v51 = vpop.f32.mrb[227].mxu0  ;;  %v7203_v17 = vpop.f32.mrb[158].mxu1  ;;  %v8938_v56 = vld [vmem:[%s9994_s7 + $0x40] sm:$0xff]  }
 0x7de   : > { %v12359_v20 = vadd.f32 %v7116_v51, %v7115_v49  ;;  %v7204_v14 = vpop.f32.mrb[159].mxu1 }
 0x7df   : > { %v12362_v28 = vadd.f32 %v7202_v36, %v12271_v1  ;;  %v7205_v41 = vadd.f32 %v7204_v14, %v7203_v17  ;;  %v8936_v1 = vld [vmem:[%s9994_s7 + $0x30] sm:$0xff]  }
 0x7e0   : > { %7893 = vmatmul.mubr.bf16.gmra.mrb[104].mxu1 %v8933_v16 }
 0x7e1   : > { %v12365_v45 = vadd.f32 %v7205_v41, %v12273_v9  ;;  %7896 = vmatprep.mubr.bf16.mxu1 %v8934_v5 }
 0x7e2   : > { %v7118_v30 = vpop.f32.mrb[228].mxu0 }
 0x7e3   : > { %v7119_v12 = vpop.f32.mrb[229].mxu0  ;;  %v7206_v27 = vpop.f32.mrb[160].mxu1 }
 0x7e4   : > { %v12367_v55 = vadd.f32 %v7119_v12, %v7118_v30  ;;  %v7121_v39 = vpop.f32.mrb[230].mxu0  ;;  %v7207_v32 = vpop.f32.mrb[161].mxu1 }
 0x7e5   : > { %v7208_v10 = vadd.f32 %v7207_v32, %v7206_v27  ;;  %v7122_v43 = vpop.f32.mrb[231].mxu0  ;;  %v7209_v34 = vpop.f32.mrb[162].mxu1 }
 0x7e6   : > { %v12371_v21 = vadd.f32 %v7122_v43, %v7121_v39  ;;  %v7210_v38 = vpop.f32.mrb[163].mxu1  ;;  %v8939_v39 = vld [vmem:[%s9994_s7 + $0x48] sm:$0xff]  }
 0x7e7   : > { %v12374_v9 = vadd.f32 %v7208_v10, %v12277_v29  ;;  %v7211_v52 = vadd.f32 %v7210_v38, %v7209_v34  ;;  %v8940_v10 = vld [vmem:[%s9994_s7 + $0x50] sm:$0xff]  }
 0x7e8   : > { %7897 = vmatmul.mubr.bf16.gmra.mrb[108].mxu1 %v8935_v35 }
 0x7e9   : > { %v12377_v22 = vadd.f32 %v7211_v52, %v12279_v31  ;;  %7900 = vmatprep.mubr.bf16.mxu1 %v8936_v1 }
 0x7ea   : > { %v7300_v33 = vpop.f32.mrb[232].mxu0 }
 0x7eb   : > { %v7212_v59 = vpop.f32.mrb[164].mxu1  ;;  %v7301_v25 = vpop.f32.mrb[233].mxu0 }
 0x7ec   : > { %v7302_v53 = vadd.f32 %v7301_v25, %v7300_v33  ;;  %v7213_v44 = vpop.f32.mrb[165].mxu1  ;;  %v7303_v46 = vpop.f32.mrb[234].mxu0 }
 0x7ed   : > { %v7214_v8 = vadd.f32 %v7213_v44, %v7212_v59  ;;  %v7215_v60 = vpop.f32.mrb[166].mxu1  ;;  %v7304_v49 = vpop.f32.mrb[235].mxu0 }
 0x7ee   : > { %v12382_v29 = vadd.f32 %v12288_v57, %v7302_v53  ;;  %v7305_v16 = vadd.f32 %v7304_v49, %v7303_v46  ;;  %v7216_v36 = vpop.f32.mrb[167].mxu1  ;;  %v8941_v46 = vld [vmem:[%s9994_s7 + $0x58] sm:$0xff]  }
 0x7ef   : > { %v12385_v31 = vadd.f32 %v7214_v8, %v12283_v26  ;;  %v7217_v51 = vadd.f32 %v7216_v36, %v7215_v60  ;;  %v8942_v60 = vld [vmem:[%s9994_s7 + $0x60] sm:$0xff]  }
 0x7f0   : > { %v12388_v17 = vadd.f32 %v12292_v37, %v7305_v16  ;;  %7901 = vmatmul.mubr.bf16.gmra.mrb[112].mxu1 %v8937_v24 }
 0x7f1   : > { %v12391_v5 = vadd.f32 %v7217_v51, %v12285_v54  ;;  %7904 = vmatprep.mubr.bf16.mxu1 %v8938_v56 }
 0x7f2   : > { %v7306_v14 = vpop.f32.mrb[236].mxu0 }
 0x7f3   : > { %v7218_v41 = vpop.f32.mrb[168].mxu1  ;;  %v7307_v30 = vpop.f32.mrb[237].mxu0 }
 0x7f4   : > { %v7308_v57 = vadd.f32 %v7307_v30, %v7306_v14  ;;  %v7219_v12 = vpop.f32.mrb[169].mxu1  ;;  %v7309_v27 = vpop.f32.mrb[238].mxu0 }
 0x7f5   : > { %v7220_v32 = vadd.f32 %v7219_v12, %v7218_v41  ;;  %v7221_v26 = vpop.f32.mrb[170].mxu1  ;;  %v7310_v35 = vpop.f32.mrb[239].mxu0 }
 0x7f6   : > { %v12396_v37 = vadd.f32 %v12300_v50, %v7308_v57  ;;  %v7311_v43 = vadd.f32 %v7310_v35, %v7309_v27  ;;  %v7222_v34 = vpop.f32.mrb[171].mxu1  ;;  %v8943_v27 = vld [vmem:[%s9994_s7 + $0x68] sm:$0xff]  }
 0x7f7   : > { %v12399_v54 = vadd.f32 %v7220_v32, %v12295_v19  ;;  %v7223_v1 = vadd.f32 %v7222_v34, %v7221_v26  ;;  %v8944_v26 = vld [vmem:[%s9994_s7 + $0x70] sm:$0xff]  }
 0x7f8   : > { %v12402_v38 = vadd.f32 %v12304_v4, %v7311_v43  ;;  %7905 = vmatmul.mubr.bf16.gmra.mrb[116].mxu1 %v8939_v39 }
 0x7f9   : > { %v12405_v52 = vadd.f32 %v7223_v1, %v12297_v58  ;;  %7908 = vmatprep.mubr.bf16.mxu1 %v8940_v10 }
 0x7fa   : > { %v7312_v33 = vpop.f32.mrb[240].mxu0 }
 0x7fb   : > { %v7224_v59 = vpop.f32.mrb[172].mxu1  ;;  %v7313_v25 = vpop.f32.mrb[241].mxu0 }
 0x7fc   : > { %v7314_v50 = vadd.f32 %v7313_v25, %v7312_v33  ;;  %v7225_v53 = vpop.f32.mrb[173].mxu1  ;;  %v7315_v44 = vpop.f32.mrb[242].mxu0 }
 0x7fd   : > { %v7226_v24 = vadd.f32 %v7225_v53, %v7224_v59  ;;  %v7227_v19 = vpop.f32.mrb[174].mxu1  ;;  %v7316_v8 = vpop.f32.mrb[243].mxu0 }
 0x7fe   : > { %v12410_v4 = vadd.f32 %v12312_v6, %v7314_v50  ;;  %v7317_v49 = vadd.f32 %v7316_v8, %v7315_v44  ;;  %v7228_v56 = vpop.f32.mrb[175].mxu1  ;;  %v8945_v44 = vld [vmem:[%s9994_s7 + $0x78] sm:$0xff]  }
 0x7ff   : > { %v12413_v58 = vadd.f32 %v7226_v24, %v12307_v0  ;;  %v7229_v16 = vadd.f32 %v7228_v56, %v7227_v19 }
 0x800   : > { %v12416_v36 = vadd.f32 %v12316_v11, %v7317_v49  ;;  %7909 = vmatmul.mubr.bf16.gmra.mrb[120].mxu1 %v8941_v46 }
 0x801   : > { %v12419_v51 = vadd.f32 %v7229_v16, %v12309_v48  ;;  %7912 = vmatprep.mubr.bf16.mxu1 %v8942_v60 }
 0x802   : > { %v7318_v14 = vpop.f32.mrb[244].mxu0 }
 0x803   : > { %v7230_v41 = vpop.f32.mrb[176].mxu1  ;;  %v7319_v30 = vpop.f32.mrb[245].mxu0 }
 0x804   : > { %v7320_v6 = vadd.f32 %v7319_v30, %v7318_v14  ;;  %v7231_v57 = vpop.f32.mrb[177].mxu1  ;;  %v7321_v12 = vpop.f32.mrb[246].mxu0 }
 0x805   : > { %v7232_v39 = vadd.f32 %v7231_v57, %v7230_v41  ;;  %v7233_v0 = vpop.f32.mrb[178].mxu1  ;;  %v7322_v32 = vpop.f32.mrb[247].mxu0 }
 0x806   : > { %v12424_v11 = vadd.f32 %v12324_v13, %v7320_v6  ;;  %v7323_v35 = vadd.f32 %v7322_v32, %v7321_v12  ;;  %v7234_v10 = vpop.f32.mrb[179].mxu1 }
 0x807   : > { %v12427_v48 = vadd.f32 %v7232_v39, %v12319_v42  ;;  %v7235_v43 = vadd.f32 %v7234_v10, %v7233_v0 }
 0x808   : > { %v12430_v34 = vadd.f32 %v12328_v47, %v7323_v35  ;;  %7913 = vmatmul.mubr.bf16.gmra.mrb[124].mxu1 %v8943_v27 }
 0x809   : > { %v12433_v1 = vadd.f32 %v7235_v43, %v12321_v63  ;;  %7916 = vmatprep.mubr.bf16.mxu1 %v8944_v26 }
 0x80a   : > { %v7324_v33 = vpop.f32.mrb[248].mxu0 }
 0x80b   : > { %v7236_v59 = vpop.f32.mrb[180].mxu1  ;;  %v7325_v25 = vpop.f32.mrb[249].mxu0 }
 0x80c   : > { %v7326_v50 = vadd.f32 %v7325_v25, %v7324_v33  ;;  %v7237_v13 = vpop.f32.mrb[181].mxu1  ;;  %v7327_v53 = vpop.f32.mrb[250].mxu0 }
 0x80d   : > { %v7238_v46 = vadd.f32 %v7237_v13, %v7236_v59  ;;  %v7239_v24 = vpop.f32.mrb[182].mxu1  ;;  %v7328_v42 = vpop.f32.mrb[251].mxu0 }
 0x80e   : > { %v12437_v19 = vadd.f32 %v12337_v2, %v7326_v50  ;;  %v7329_v47 = vadd.f32 %v7328_v42, %v7327_v53  ;;  %v7240_v8 = vpop.f32.mrb[183].mxu1 }
 0x80f   : > { %v12440_v60 = vadd.f32 %v7238_v46, %v12331_v23  ;;  %v7241_v63 = vadd.f32 %v7240_v8, %v7239_v24 }
 0x810   : > { %v12443_v49 = vadd.f32 %v12341_v40, %v7329_v47  ;;  %7917 = vmatmul.mubr.bf16.gmra.mrb[128].mxu1 %v8945_v44 }
 0x811   : > { %v12446_v56 = vadd.f32 %v7241_v63, %v12334_v62 }
 0x812   : > { %v7330_v16 = vpop.f32.mrb[252].mxu0 }
 0x813   : > { %v7242_v14 = vpop.f32.mrb[184].mxu1  ;;  %v7331_v41 = vpop.f32.mrb[253].mxu0 }
 0x814   : > { %v7332_v30 = vadd.f32 %v7331_v41, %v7330_v16  ;;  %v7243_v6 = vpop.f32.mrb[185].mxu1  ;;  %v7333_v2 = vpop.f32.mrb[254].mxu0 }
 0x815   : > { %v7244_v57 = vadd.f32 %v7243_v6, %v7242_v14  ;;  %v7245_v12 = vpop.f32.mrb[186].mxu1  ;;  %v7334_v27 = vpop.f32.mrb[255].mxu0 }
 0x816   : > { %v12449_v23 = vadd.f32 %v12350_v3, %v7332_v30  ;;  %v7335_v39 = vadd.f32 %v7334_v27, %v7333_v2  ;;  %v7246_v0 = vpop.f32.mrb[187].mxu1 }
 0x817   : > { %v12452_v40 = vadd.f32 %v7244_v57, %v12343_v18  ;;  %v7247_v32 = vadd.f32 %v7246_v0, %v7245_v12 }
 0x818   : > { %v12455_v62 = vadd.f32 %v12353_v7, %v7335_v39 }
 0x819   : > { %v12458_v26 = vadd.f32 %v7247_v32, %v12347_v61 }
 0x81a   : > { %v7336_v35 = vpop.f32.mrb[4].mxu0 }
 0x81b   : > { %v7248_v10 = vpop.f32.mrb[188].mxu1  ;;  %v7337_v43 = vpop.f32.mrb[5].mxu0 }
 0x81c   : > { %v7338_v33 = vadd.f32 %v7337_v43, %v7336_v35  ;;  %v7249_v59 = vpop.f32.mrb[189].mxu1  ;;  %v7339_v25 = vpop.f32.mrb[6].mxu0 }
 0x81d   : > { %v7250_v3 = vadd.f32 %v7249_v59, %v7248_v10  ;;  %v7251_v50 = vpop.f32.mrb[190].mxu1  ;;  %v7340_v13 = vpop.f32.mrb[7].mxu0 }
 0x81e   : > { %v12461_v53 = vadd.f32 %v12362_v28, %v7338_v33  ;;  %v7341_v18 = vadd.f32 %v7340_v13, %v7339_v25  ;;  %v7252_v44 = vpop.f32.mrb[191].mxu1 }
 0x81f   : > { %v12464_v7 = vadd.f32 %v7250_v3, %v12355_v15  ;;  %v7253_v46 = vadd.f32 %v7252_v44, %v7251_v50 }
 0x820   : > { %v12467_v61 = vadd.f32 %v12365_v45, %v7341_v18 }
 0x821   : > { %v12470_v24 = vadd.f32 %v7253_v46, %v12359_v20 }
 0x822   : > { %v7342_v42 = vpop.f32.mrb[8].mxu0 }
 0x823   : > { %v7254_v47 = vpop.f32.mrb[192].mxu1  ;;  %v7343_v8 = vpop.f32.mrb[9].mxu0 }
 0x824   : > { %v7344_v63 = vadd.f32 %v7343_v8, %v7342_v42  ;;  %v7255_v16 = vpop.f32.mrb[193].mxu1  ;;  %v7345_v14 = vpop.f32.mrb[10].mxu0 }
 0x825   : > { %v7256_v28 = vadd.f32 %v7255_v16, %v7254_v47  ;;  %v7257_v41 = vpop.f32.mrb[194].mxu1  ;;  %v7346_v30 = vpop.f32.mrb[11].mxu0 }
 0x826   : > { %v12473_v6 = vadd.f32 %v12374_v9, %v7344_v63  ;;  %v7347_v15 = vadd.f32 %v7346_v30, %v7345_v14  ;;  %v7258_v2 = vpop.f32.mrb[195].mxu1 }
 0x827   : > { %v12476_v45 = vadd.f32 %v7256_v28, %v12367_v55  ;;  %v7259_v57 = vadd.f32 %v7258_v2, %v7257_v41 }
 0x828   : > { %v12479_v20 = vadd.f32 %v12377_v22, %v7347_v15 }
 0x829   : > { %v12482_v12 = vadd.f32 %v7259_v57, %v12371_v21 }
 0x82a   : > { %v7348_v27 = vpop.f32.mrb[12].mxu0 }
 0x82b   : > { %v7349_v39 = vpop.f32.mrb[13].mxu0 }
 0x82c   : > { %v7350_v0 = vadd.f32 %v7349_v39, %v7348_v27  ;;  %v7351_v32 = vpop.f32.mrb[14].mxu0 }
 0x82d   : > { %v7352_v35 = vpop.f32.mrb[15].mxu0 }
 0x82e   : > { %v12485_v9 = vadd.f32 %v12385_v31, %v7350_v0  ;;  %v7353_v10 = vadd.f32 %v7352_v35, %v7351_v32 }
 0x830   : > { %v12488_v43 = vadd.f32 %v12391_v5, %v7353_v10 }
 0x832   : > { %v7354_v55 = vpop.f32.mrb[16].mxu0 }
 0x833   : > { %v7355_v33 = vpop.f32.mrb[17].mxu0 }
 0x834   : > { %v7356_v59 = vadd.f32 %v7355_v33, %v7354_v55  ;;  %v7357_v22 = vpop.f32.mrb[18].mxu0 }
 0x835   : > { %v7358_v25 = vpop.f32.mrb[19].mxu0 }
 0x836   : > { %v12491_v21 = vadd.f32 %v12399_v54, %v7356_v59  ;;  %v7359_v3 = vadd.f32 %v7358_v25, %v7357_v22 }
 0x838   : > { %v12494_v50 = vadd.f32 %v12405_v52, %v7359_v3 }
 0x83a   : > { %v7360_v13 = vpop.f32.mrb[20].mxu0 }
 0x83b   : > { %v7361_v18 = vpop.f32.mrb[21].mxu0 }
 0x83c   : > { %v7362_v31 = vadd.f32 %v7361_v18, %v7360_v13  ;;  %v7363_v44 = vpop.f32.mrb[22].mxu0 }
 0x83d   : > { %v7364_v46 = vpop.f32.mrb[23].mxu0 }
 0x83e   : > { %v12497_v5 = vadd.f32 %v12413_v58, %v7362_v31  ;;  %v7365_v42 = vadd.f32 %v7364_v46, %v7363_v44 }
 0x840   : > { %v12500_v47 = vadd.f32 %v12419_v51, %v7365_v42 }
 0x842   : > { %v7366_v8 = vpop.f32.mrb[24].mxu0 }
 0x843   : > { %v7367_v63 = vpop.f32.mrb[25].mxu0 }
 0x844   : > { %v7368_v54 = vadd.f32 %v7367_v63, %v7366_v8  ;;  %v7369_v16 = vpop.f32.mrb[26].mxu0 }
 0x845   : > { %v7370_v14 = vpop.f32.mrb[27].mxu0 }
 0x846   : > { %v12503_v52 = vadd.f32 %v12427_v48, %v7368_v54  ;;  %v7371_v28 = vadd.f32 %v7370_v14, %v7369_v16  ;;  %v12532_v54 = vld [vmem:[#allocation20] ss:$0 sm:$0xff]  ;;  %v12538_v16 = vld [vmem:[#allocation23] ss:$0 sm:$0xff] }
 0x847   : > { %v8146_v14 = vadd.f32 %v12396_v37, %v12532_v54  ;;  %v8166_v37 = vadd.f32 %v12424_v11, %v12532_v54 }
 0x848   : > { %v12506_v41 = vadd.f32 %v12433_v1, %v7371_v28 }
 0x849   : > { %v8167_v11 = vadd.f32 %v8166_v37, %v12538_v16 }
 0x84a   : > { %v7372_v30 = vpop.f32.mrb[28].mxu0 }
 0x84b   : > { %v7373_v15 = vpop.f32.mrb[29].mxu0 }
 0x84c   : > { %v7374_v58 = vadd.f32 %v7373_v15, %v7372_v30  ;;  %v7375_v2 = vpop.f32.mrb[30].mxu0 }
 0x84d   : > { %v7376_v57 = vpop.f32.mrb[31].mxu0 }
 0x84e   : > { %v12509_v51 = vadd.f32 %v12440_v60, %v7374_v58  ;;  %v7377_v27 = vadd.f32 %v7376_v57, %v7375_v2 }
 0x850   : > { %v12512_v39 = vadd.f32 %v12446_v56, %v7377_v27 }
 0x852   : > { %v7378_v0 = vpop.f32.mrb[32].mxu0 }
 0x853   : > { %v7379_v32 = vpop.f32.mrb[33].mxu0 }
 0x854   : > { %v7380_v48 = vadd.f32 %v7379_v32, %v7378_v0  ;;  %v7381_v35 = vpop.f32.mrb[34].mxu0 }
 0x855   : > { %v7382_v10 = vpop.f32.mrb[35].mxu0 }
 0x856   : > { %v12515_v1 = vadd.f32 %v12452_v40, %v7380_v48  ;;  %v7383_v55 = vadd.f32 %v7382_v10, %v7381_v35  ;;  %v8176_v35 = vadd.f32 %v12430_v34, %v12532_v54 }
 0x858   : > { %v12518_v33 = vadd.f32 %v12458_v26, %v7383_v55  ;;  %v8181_v55 = vadd.f32 %v12416_v36, %v12532_v54  ;;  %v8177_v34 = vadd.f32 %v8176_v35, %v12538_v16 }
 0x85a   : > { %v7384_v59 = vpop.f32.mrb[36].mxu0 }
 0x85b   : > { %v7385_v22 = vpop.f32.mrb[37].mxu0 }
 0x85c   : > { %v7386_v60 = vadd.f32 %v7385_v22, %v7384_v59  ;;  %v7387_v25 = vpop.f32.mrb[38].mxu0 }
 0x85d   : > { %v7388_v3 = vpop.f32.mrb[39].mxu0 }
 0x85e   : > { %v12521_v56 = vadd.f32 %v12464_v7, %v7386_v60  ;;  %v7389_v13 = vadd.f32 %v7388_v3, %v7387_v25  ;;  %v8156_v7 = vadd.f32 %v12402_v38, %v12532_v54  ;;  %v8182_v3 = vadd.f32 %v8181_v55, %v12538_v16 }
 0x860   : > { %v12524_v18 = vadd.f32 %v12470_v24, %v7389_v13  ;;  %v8161_v24 = vadd.f32 %v12388_v17, %v12532_v54  ;;  %v8157_v15 = vadd.f32 %v8156_v7, %v12538_v16 }
 0x862   : > { %v7390_v31 = vpop.f32.mrb[40].mxu0  ;;  %v8162_v38 = vadd.f32 %v8161_v24, %v12538_v16  ;;  %v8201_v24 = vadd.f32 %v12443_v49, %v12532_v54  ;;  %v8206_v49 = vadd.f32 %v12473_v6, %v12532_v54 }
 0x863   : > { %v7391_v44 = vpop.f32.mrb[41].mxu0 }
 0x864   : > { %v7392_v40 = vadd.f32 %v7391_v44, %v7390_v31  ;;  %v7393_v46 = vpop.f32.mrb[42].mxu0  ;;  %v8186_v44 = vadd.f32 %v12449_v23, %v12532_v54 }
 0x865   : > { %v7394_v42 = vpop.f32.mrb[43].mxu0 }
 0x866   : > { %v12527_v26 = vadd.f32 %v12476_v45, %v7392_v40  ;;  %v7395_v8 = vadd.f32 %v7394_v42, %v7393_v46  ;;  %v8151_v45 = vadd.f32 %v12382_v29, %v12532_v54  ;;  %v8171_v29 = vadd.f32 %v12410_v4, %v12532_v54 }
 0x867   : > { %v8191_v46 = vadd.f32 %v12437_v19, %v12532_v54 }
 0x868   : > { %v12530_v63 = vadd.f32 %v12482_v12, %v7395_v8  ;;  %v8172_v4 = vadd.f32 %v8171_v29, %v12538_v16  ;;  %v8196_v8 = vadd.f32 %v12455_v62, %v12532_v54  ;;  %v8202_v62 = vadd.f32 %v8201_v24, %v12538_v16 }
 0x869   : > { %v8251_v24 = vadd.f32 %v12497_v5, %v12532_v54 }
 0x86a   : > { %v8197_v19 = vadd.f32 %v8196_v8, %v12538_v16 }
 0x8ab   : > { %v7890_v28 = vpop.f32.mrb[100].mxu1 }
 0x8ac   : > { %v8147_v30 = vadd.f32 %v8146_v14, %v7890_v28  ;;  %v5624_v12 = vpop.f32.mrb[101].mxu1  ;;  %v8187_v14 = vadd.f32 %v8186_v44, %v12538_v16 }
 0x8ad   : > { %v8152_v58 = vadd.f32 %v8151_v45, %v5624_v12  ;;  %v7891_v2 = vpop.f32.mrb[102].mxu1  ;;  %v8192_v45 = vadd.f32 %v8191_v46, %v12538_v16 }
 0x8ae   : > { %v8148_v17 = vadd.f32 %v8147_v30, %v12538_v16  ;;  %v8158_v57 = vadd.f32 %v8157_v15, %v7891_v2  ;;  %v5627_v27 = vpop.f32.mrb[103].mxu1 }
 0x8af   : > { %v8153_v0 = vadd.f32 %v8152_v58, %v12538_v16  ;;  %v8163_v32 = vadd.f32 %v8162_v38, %v5627_v27  ;;  %v8216_v27 = vadd.f32 %v12479_v20, %v12532_v54 }
 0x8b0   : > { %v6449_v48 = vpack.c.bf16 %v8158_v57, %v8148_v17  ;;  %v8211_v17 = vadd.f32 %v12461_v53, %v12532_v54 }
 0x8b1   : > { %v6444_v10 = vpack.c.bf16 %v8163_v32, %v8153_v0  ;;  %v8221_v0 = vadd.f32 %v12467_v61, %v12532_v54  ;;  %v8207_v32 = vadd.f32 %v8206_v49, %v12538_v16  ;;  %v8217_v53 = vadd.f32 %v8216_v27, %v12538_v16 }
 0x8b2   : > { %6521 = vst [vmem:[%s12558_s3 + $0x8] sm:$0xff] %v6449_v48   ;;  %v8212_v48 = vadd.f32 %v8211_v17, %v12538_v16  ;;  %v8226_v61 = vadd.f32 %v12491_v21, %v12532_v54  ;;  %v8271_v17 = vadd.f32 %v12509_v51, %v12532_v54  ;;  %v8276_v27 = vadd.f32 %v12518_v33, %v12532_v54 }
 0x8b3   : > { %6445 = vst [vmem:[%s12558_s3] sm:$0xff] %v6444_v10   ;;  %v7894_v59 = vpop.f32.mrb[104].mxu1  ;;  %v8222_v20 = vadd.f32 %v8221_v0, %v12538_v16  ;;  %v8281_v0 = vadd.f32 %v12512_v39, %v12532_v54  ;;  %v8286_v39 = vadd.f32 %v12527_v26, %v12532_v54 }
 0x8b4   : > { %v8168_v22 = vadd.f32 %v8167_v11, %v7894_v59  ;;  %v5640_v60 = vpop.f32.mrb[105].mxu1  ;;  %v8277_v51 = vadd.f32 %v8276_v27, %v12538_v16 }
 0x8b5   : > { %v8173_v25 = vadd.f32 %v8172_v4, %v5640_v60  ;;  %v7895_v36 = vpop.f32.mrb[106].mxu1  ;;  %v8282_v33 = vadd.f32 %v8281_v0, %v12538_v16 }
 0x8b6   : > { %v8178_v13 = vadd.f32 %v8177_v34, %v7895_v36  ;;  %v5643_v31 = vpop.f32.mrb[107].mxu1  ;;  %v8236_v34 = vadd.f32 %v12494_v50, %v12532_v54  ;;  %v8241_v36 = vadd.f32 %v12488_v43, %v12532_v54  ;;  %v8246_v43 = vadd.f32 %v12503_v52, %v12532_v54 }
 0x8b7   : > { %v8183_v40 = vadd.f32 %v8182_v3, %v5643_v31  ;;  %v8227_v3 = vadd.f32 %v8226_v61, %v12538_v16  ;;  %v8296_v61 = vadd.f32 %v12530_v63, %v12532_v54 }
 0x8b8   : > { %v6459_v42 = vpack.c.bf16 %v8178_v13, %v8168_v22  ;;  %v8231_v22 = vadd.f32 %v12485_v9, %v12532_v54  ;;  %v8237_v9 = vadd.f32 %v8236_v34, %v12538_v16  ;;  %v8242_v50 = vadd.f32 %v8241_v36, %v12538_v16 }
 0x8b9   : > { %v6454_v7 = vpack.c.bf16 %v8183_v40, %v8173_v25  ;;  %v8297_v36 = vadd.f32 %v8296_v61, %v12538_v16 }
 0x8ba   : > { %6523 = vst [vmem:[%s12558_s3 + $0x18] sm:$0xff] %v6459_v42   ;;  %v8232_v31 = vadd.f32 %v8231_v22, %v12538_v16  ;;  %v8301_v22 = vadd.f32 %v12524_v18, %v12532_v54 }
 0x8bb   : > { %6522 = vst [vmem:[%s12558_s3 + $0x10] sm:$0xff] %v6454_v7   ;;  %v7898_v28 = vpop.f32.mrb[108].mxu1 }
 0x8bc   : > { %v8188_v23 = vadd.f32 %v8187_v14, %v7898_v28  ;;  %v5656_v30 = vpop.f32.mrb[109].mxu1  ;;  %v8256_v28 = vadd.f32 %v12506_v41, %v12532_v54 }
 0x8bd   : > { %v8193_v12 = vadd.f32 %v8192_v45, %v5656_v30  ;;  %v7899_v15 = vpop.f32.mrb[110].mxu1  ;;  %v8247_v30 = vadd.f32 %v8246_v43, %v12538_v16 }
 0x8be   : > { %v8198_v58 = vadd.f32 %v8197_v19, %v7899_v15  ;;  %v5659_v2 = vpop.f32.mrb[111].mxu1  ;;  %v8257_v5 = vadd.f32 %v8256_v28, %v12538_v16 }
 0x8bf   : > { %v8203_v38 = vadd.f32 %v8202_v62, %v5659_v2 }
 0x8c0   : > { %v6469_v57 = vpack.c.bf16 %v8198_v58, %v8188_v23  ;;  %v8261_v23 = vadd.f32 %v12500_v47, %v12532_v54  ;;  %v8266_v47 = vadd.f32 %v12515_v1, %v12532_v54 }
 0x8c1   : > { %v6464_v37 = vpack.c.bf16 %v8203_v38, %v8193_v12  ;;  %v8252_v12 = vadd.f32 %v8251_v24, %v12538_v16 }
 0x8c2   : > { %6525 = vst [vmem:[%s12558_s3 + $0x28] sm:$0xff] %v6469_v57   ;;  %v8262_v41 = vadd.f32 %v8261_v23, %v12538_v16 }
 0x8c3   : > { %6524 = vst [vmem:[%s12558_s3 + $0x20] sm:$0xff] %v6464_v37   ;;  %v7902_v29 = vpop.f32.mrb[112].mxu1 }
 0x8c4   : > { %v8208_v6 = vadd.f32 %v8207_v32, %v7902_v29  ;;  %v5672_v35 = vpop.f32.mrb[113].mxu1  ;;  %v8267_v32 = vadd.f32 %v8266_v47, %v12538_v16 }
 0x8c5   : > { %v8213_v10 = vadd.f32 %v8212_v48, %v5672_v35  ;;  %v7903_v55 = vpop.f32.mrb[114].mxu1  ;;  %v8272_v48 = vadd.f32 %v8271_v17, %v12538_v16 }
 0x8c6   : > { %v8218_v11 = vadd.f32 %v8217_v53, %v7903_v55  ;;  %v5675_v59 = vpop.f32.mrb[115].mxu1 }
 0x8c7   : > { %v8223_v4 = vadd.f32 %v8222_v20, %v5675_v59 }
 0x8c8   : > { %v6479_v60 = vpack.c.bf16 %v8218_v11, %v8208_v6  ;;  %v8291_v11 = vadd.f32 %v12521_v56, %v12532_v54 }
 0x8c9   : > { %v6474_v25 = vpack.c.bf16 %v8223_v4, %v8213_v10 }
 0x8ca   : > { %6527 = vst [vmem:[%s12558_s3 + $0x38] sm:$0xff] %v6479_v60   ;;  %v8287_v60 = vadd.f32 %v8286_v39, %v12538_v16  ;;  %v8292_v26 = vadd.f32 %v8291_v11, %v12538_v16 }
 0x8cb   : > { %6526 = vst [vmem:[%s12558_s3 + $0x30] sm:$0xff] %v6474_v25   ;;  %v7906_v13 = vpop.f32.mrb[116].mxu1 }
 0x8cc   : > { %v8228_v21 = vadd.f32 %v8227_v3, %v7906_v13  ;;  %v5688_v44 = vpop.f32.mrb[117].mxu1  ;;  %v8302_v13 = vadd.f32 %v8301_v22, %v12538_v16 }
 0x8cd   : > { %v8233_v40 = vadd.f32 %v8232_v31, %v5688_v44  ;;  %v7907_v46 = vpop.f32.mrb[118].mxu1 }
 0x8ce   : > { %v8238_v42 = vadd.f32 %v8237_v9, %v7907_v46  ;;  %v5691_v8 = vpop.f32.mrb[119].mxu1 }
 0x8cf   : > { %v8243_v7 = vadd.f32 %v8242_v50, %v5691_v8 }
 0x8d0   : > { %v6489_v14 = vpack.c.bf16 %v8238_v42, %v8228_v21 }
 0x8d1   : > { %v6484_v45 = vpack.c.bf16 %v8243_v7, %v8233_v40 }
 0x8d2   : > { %6529 = vst [vmem:[%s12558_s3 + $0x48] sm:$0xff] %v6489_v14  }
 0x8d3   : > { %6528 = vst [vmem:[%s12558_s3 + $0x40] sm:$0xff] %v6484_v45   ;;  %v7910_v19 = vpop.f32.mrb[120].mxu1 }
 0x8d4   : > { %v8248_v52 = vadd.f32 %v8247_v30, %v7910_v19  ;;  %v5704_v15 = vpop.f32.mrb[121].mxu1 }
 0x8d5   : > { %v8253_v62 = vadd.f32 %v8252_v12, %v5704_v15  ;;  %v7911_v58 = vpop.f32.mrb[122].mxu1 }
 0x8d6   : > { %v8258_v2 = vadd.f32 %v8257_v5, %v7911_v58  ;;  %v5707_v49 = vpop.f32.mrb[123].mxu1 }
 0x8d7   : > { %v8263_v38 = vadd.f32 %v8262_v41, %v5707_v49 }
 0x8d8   : > { %v6499_v57 = vpack.c.bf16 %v8258_v2, %v8248_v52 }
 0x8d9   : > { %v6494_v37 = vpack.c.bf16 %v8263_v38, %v8253_v62 }
 0x8da   : > { %6531 = vst [vmem:[%s12558_s3 + $0x58] sm:$0xff] %v6499_v57  }
 0x8db   : > { %6530 = vst [vmem:[%s12558_s3 + $0x50] sm:$0xff] %v6494_v37   ;;  %v7914_v29 = vpop.f32.mrb[124].mxu1 }
 0x8dc   : > { %v8268_v1 = vadd.f32 %v8267_v32, %v7914_v29  ;;  %v5720_v6 = vpop.f32.mrb[125].mxu1 }
 0x8dd   : > { %v8273_v35 = vadd.f32 %v8272_v48, %v5720_v6  ;;  %v7915_v53 = vpop.f32.mrb[126].mxu1 }
 0x8de   : > { %v8278_v10 = vadd.f32 %v8277_v51, %v7915_v53  ;;  %v5723_v55 = vpop.f32.mrb[127].mxu1 }
 0x8df   : > { %v8283_v20 = vadd.f32 %v8282_v33, %v5723_v55 }
 0x8e0   : > { %v6509_v59 = vpack.c.bf16 %v8278_v10, %v8268_v1 }
 0x8e1   : > { %v6504_v4 = vpack.c.bf16 %v8283_v20, %v8273_v35 }
 0x8e2   : > { %6533 = vst [vmem:[%s12558_s3 + $0x68] sm:$0xff] %v6509_v59  }
 0x8e3   : > { %6532 = vst [vmem:[%s12558_s3 + $0x60] sm:$0xff] %v6504_v4   ;;  %v7918_v34 = vpop.f32.mrb[128].mxu1 }
 0x8e4   : > { %v8288_v25 = vadd.f32 %v8287_v60, %v7918_v34  ;;  %v5736_v56 = vpop.f32.mrb[129].mxu1 }
 0x8e5   : > { %v8293_v3 = vadd.f32 %v8292_v26, %v5736_v56  ;;  %v7919_v63 = vpop.f32.mrb[130].mxu1 }
 0x8e6   : > { %v8298_v18 = vadd.f32 %v8297_v36, %v7919_v63  ;;  %v5739_v54 = vpop.f32.mrb[131].mxu1 }
 0x8e7   : > { %v8303_v31 = vadd.f32 %v8302_v13, %v5739_v54 }
 0x8e8   : > { %v6519_v21 = vpack.c.bf16 %v8298_v18, %v8288_v25 }
 0x8e9   : > { %v6514_v44 = vpack.c.bf16 %v8303_v31, %v8293_v3 }
 0x8ea   : > { %6535 = vst [vmem:[%s12558_s3 + $0x78] sm:$0xff] %v6519_v21  }
 0x8eb   : > { %6534 = vst [vmem:[%s12558_s3 + $0x70] sm:$0xff] %v6514_v44  }
 0x8ec   : > { %9355 = shalt.err (!%p9352_p2)
}
 0x8ed   : > { %s9356_s4 = scalar_lea.hbm %s12655_s0, 2048  ;;  %s9360_s9 = scalar_lea.hbm %s12886_s8, 4096 }
 0x8ee   : > { %p9357_p10 = scmp.ne.s32.totalorder %s12655_s0, %s9356_s4  ;;  %p9361_p7 = scmp.lt.u32.totalorder %s12655_s0, %s12886_s8 }
 0x8ef   : > { %p9362_p3 = scmp.lt.u32.totalorder %s9360_s9, %s9356_s4  ;;  %p9364_p12 = scmp.lt.u32.totalorder %s9356_s4, %s12655_s0 }
 0x8f0   : > { %p9358_p11 = pnand %p9357_p10, %p12887_p8 }
 0x8f1   : > { %p9363_p6 = por %p9362_p3, %p9361_p7 }
 0x8f2   : > { %p9359_p5 = pneg %p9358_p11 }
 0x8f3   : > { %p9365_p9 = por %p9364_p12, %p9363_p6 }
 0x8f5   : > { %p9366_p4 = pnand %p9365_p9, %p9359_p5 }
 0x8f7   : > { %9369 = shalt.err (!%p9366_p4)
}
 0x8f8   : > { %s9465_s28 = smov 64   ;;  %s9466_s23 = smov 4  }
 0x8f9   : > { %8484 = dma.vmem_to_hbm [thread:$0]  (%p12887_p8), %s12657_s27, 2048, %s12655_s0, %s5944_s1, %s9465_s28, %s9465_s28, %s9466_s23  }
 0x8fa PF: > { %s5972_s22 = sand.u32 1, %s9428_s29   ;;  %p12888_p1 = scmp.ne.s32.totalorder %s12788_s17, 0 }
 0x8fb   : > { %p12889_p13 = scmp.ge.s32.totalorder %s9440_s16, 2  ;;  %s5973_s19 = scalar_lea.sflag [#allocation4], %s5972_s22 }
 0x8fd   : > { %p8531_p0 = pnand %p12889_p13, %p12888_p1 }
 0x8ff   : > { %9423 = dma.done.wait (!%p8531_p0), %s5973_s19, 2048  }
 0x900   : > { %9425 = vsyncadd (!%p8531_p0), %s5973_s19, 4294965248  ;;  %p36_p2 = scmp.ge.s32.totalorder %s9874_s21, 4   ;;  %s12890_s29 = smov %s9432_s30 }
 0x901   : > { %s12891_s30 = smov %s9436_s15  ;;  %s12892_s15 = smov %s9885_s14 }
 0x902   : > { %s12893_s16 = smov %s9874_s21  ;;  %38 = sbr.rel (!%p36_p2) target bundleno = 26 (0x1a), region = 182 }
 0x909   :  { %5978 = vsyncpa [#allocation3], 1 }
 0x90a   :  { %5980 = vsyncpa [#allocation3 + $0x1], 1 }
 0x90b   :  { %5981 = vsyncpa [#allocation6], 1 }
 0x90c   :  { %5983 = vsyncpa [#allocation6 + $0x1], 1 }
 0x90d   :  { %5984 = vsyncpa [#allocation9], 1 }
 0x90e   :  { %5985 = vsyncpa [#allocation12], 1 }
 0x90f   :  { %5986 = vsyncpa [#allocation15], 1 }
 0x910   :  { %5987 = vsyncpa [#allocation18], 1 }
 0x911   :  { %5988 = vsyncpa [#allocation21], 1 }
 0x912   :  { %5989 = vsyncpa [#allocation24], 1 }
 0x913   :  { %5990 = vsyncpa [#allocation4], 1 }
 0x914   :  { %5992 = vsyncpa [#allocation4 + $0x1], 1 }

</bundles_post_ra>
